<compile_context>
chip_gen: v7x
topology: tpu7x:2x2x1
jax: 0.10.0
libtpu: 0.0.40
codegen_flags: <defaults>
</compile_context>

<pallas_src>
import jax
import jax.numpy as jnp
from jax.experimental import pallas as pl
from jax.experimental.pallas import tpu as pltpu

BN_EPS = 1e-5


def fused_kernel(gate_ref, x_ref, skip_ref, w1_ref, w2_ref, gamma_ref,
                 beta_ref, o_ref, acc_ref, w2_buf):
    # gate_ref : [tk, 1]    pre-sigmoid SE logits chunk (x377), f32
    # x_ref    : [tk, P]    x373 chunk, channel-major, f32
    # skip_ref : [C2, P]    x367, channel-major, f32
    # w1_ref   : [C2, tk]   conv2d128 weight chunk, bf16
    # w2_ref   : [C3/nk,C2] conv2d129 weight slice (streamed), bf16
    # gamma/beta: [C2, 1]   BN affine, f32
    # o_ref    : [C3, P]    x383, f32 (written on the last grid step only)
    # acc_ref  : [C2, P]    f32 conv1 accumulator (VMEM scratch)
    # w2_buf   : [C3, C2]   bf16 assembled conv2 weight (VMEM scratch)
    k = pl.program_id(0)
    nk = pl.num_programs(0)

    @pl.when(k == 0)
    def _():
        acc_ref[...] = jnp.zeros_like(acc_ref)

    # Stream this step's slice of w2 into the persistent VMEM buffer so its
    # HBM DMA is spread across (and hidden behind) the conv1 steps.
    c3_blk = w2_ref.shape[0]
    off = pl.multiple_of(k * c3_blk, c3_blk)
    w2_buf[pl.ds(off, c3_blk), :] = w2_ref[...]

    # SE gate applied to the (small) activation chunk; cast to bf16 so the
    # MXU matmul is single-pass bf16 x bf16 with f32 accumulation.
    gate = jax.nn.sigmoid(gate_ref[...])                     # [tk, 1] f32
    xg = (x_ref[...] * gate).astype(jnp.bfloat16)            # [tk, P] bf16

    # 1x1 conv #1 (2304 -> 384), chunk of the reduction dim, f32 accumulate.
    acc_ref[...] += jnp.dot(w1_ref[...], xg,
                            preferred_element_type=jnp.float32)

    @pl.when(k == nk - 1)
    def _():
        y = acc_ref[...]                                     # [C2, P] f32

        # BatchNorm2d, training mode: biased batch stats over P = N*H*W
        # (two-pass variance for robustness).
        mean = jnp.mean(y, axis=1, keepdims=True)            # [C2, 1]
        yc = y - mean
        var = jnp.mean(yc * yc, axis=1, keepdims=True)       # [C2, 1]
        y = yc * jax.lax.rsqrt(var + BN_EPS)
        y = y * gamma_ref[...] + beta_ref[...]

        # residual add
        y = y + skip_ref[...]

        # 1x1 conv #2 (384 -> 1536) from the assembled bf16 weight buffer,
        # bf16 operands / f32 accumulation, output stays channel-major.
        y_bf = y.astype(jnp.bfloat16)
        o_ref[...] = jnp.dot(w2_buf[...], y_bf,
                             preferred_element_type=jnp.float32
                             ).astype(o_ref.dtype)


def fused_forward(x377, x373, x367, w1, w2, gamma, beta, *, nk=3):
    """x377: [N,C1,1,1], x373: [N,C1,H,W], x367: [N,C2,H,W]
    w1: [C2,C1,1,1], w2: [C3,C2,1,1], gamma/beta: [C2].
    Returns [N,C3,H,W] (f32)."""
    N, C1, H, W = x373.shape
    C2 = x367.shape[1]
    C3 = w2.shape[0]
    assert N == 1, "wrapper assumes batch 1 (as in the source module)"
    P = N * H * W

    assert C1 % nk == 0 and C3 % nk == 0
    tk = C1 // nk          # conv1 reduction chunk (lane dim of w1 block)
    c3_blk = C3 // nk      # streamed w2 slice height
    assert tk % 128 == 0, "w1 block minor dim must be a multiple of 128"
    assert c3_blk % 8 == 0, "w2 block sublane dim must be a multiple of 8"

    # N == 1  =>  NCHW is already channel-major [C, H*W]; free reshapes.
    x_mat = x373.reshape(C1, P)
    skip_mat = x367.reshape(C2, P)
    gate_mat = x377.reshape(C1, 1)

    # Weights in native [C_out, C_in] layout; bf16 storage halves weight DMA
    # and feeds the MXU directly (single-pass bf16 matmul).
    w1_mat = w1.reshape(C2, C1).astype(jnp.bfloat16)
    w2_mat = w2.reshape(C3, C2).astype(jnp.bfloat16)
    gamma_mat = gamma.reshape(C2, 1).astype(jnp.float32)
    beta_mat = beta.reshape(C2, 1).astype(jnp.float32)

    grid_spec = pltpu.PrefetchScalarGridSpec(
        num_scalar_prefetch=0,
        grid=(nk,),
        in_specs=[
            pl.BlockSpec((tk, 1), lambda k: (k, 0)),        # gate chunk
            pl.BlockSpec((tk, P), lambda k: (k, 0)),        # x chunk
            pl.BlockSpec((C2, P), lambda k: (0, 0)),        # skip (resident)
            pl.BlockSpec((C2, tk), lambda k: (0, k)),       # w1 chunk
            pl.BlockSpec((c3_blk, C2), lambda k: (k, 0)),   # w2 slice (stream)
            pl.BlockSpec((C2, 1), lambda k: (0, 0)),        # gamma
            pl.BlockSpec((C2, 1), lambda k: (0, 0)),        # beta
        ],
        out_specs=pl.BlockSpec((C3, P), lambda k: (0, 0)),  # resident output
        scratch_shapes=[
            pltpu.VMEM((C2, P), jnp.float32),               # conv1 accumulator
            pltpu.VMEM((C3, C2), jnp.bfloat16),             # assembled w2
        ],
    )

    out_mat = pl.pallas_call(
        fused_kernel,
        out_shape=jax.ShapeDtypeStruct((C3, P), jnp.float32),
        grid_spec=grid_spec,
        compiler_params=pltpu.CompilerParams(
            dimension_semantics=("arbitrary",),
            vmem_limit_bytes=12 * 1024 * 1024,
        ),
    )(gate_mat, x_mat, skip_mat, w1_mat, w2_mat, gamma_mat, beta_mat)

    # Channel-major [C3, P] -> NCHW is again a free reshape for N == 1.
    return out_mat.reshape(N, C3, H, W)


def reference_forward(x377, x373, x367, w1, w2, gamma, beta):
    """Pure-JAX reference of the module forward (training-mode BN), using the
    same bf16 quantization of weights and pre-matmul activations as the kernel
    (f32 accumulation everywhere), so the two are comparable at tight
    tolerance.  Note: vs. the original all-f32 PyTorch module the bf16
    operands introduce ~1e-3-level relative differences by design."""
    N, C1, H, W = x373.shape
    C2, C3 = w1.shape[0], w2.shape[0]
    P = N * H * W

    gate = jax.nn.sigmoid(x377.reshape(C1, 1))                       # [C1, 1]
    xg = (x373.reshape(C1, P) * gate).astype(jnp.bfloat16)
    w1f = w1.reshape(C2, C1).astype(jnp.bfloat16).astype(jnp.float32)
    y = jnp.dot(w1f, xg.astype(jnp.float32))                         # [C2, P]

    mean = jnp.mean(y, axis=1, keepdims=True)
    var = jnp.mean((y - mean) ** 2, axis=1, keepdims=True)
    y = (y - mean) / jnp.sqrt(var + BN_EPS)
    y = y * gamma.reshape(C2, 1) + beta.reshape(C2, 1)
    y = y + x367.reshape(C2, P)

    w2f = w2.reshape(C3, C2).astype(jnp.bfloat16).astype(jnp.float32)
    y_bf = y.astype(jnp.bfloat16).astype(jnp.float32)
    out = jnp.dot(w2f, y_bf)                                         # [C3, P]
    return out.reshape(N, C3, H, W)


if __name__ == "__main__":
    # Shapes fixed by the module: 2304 -> 384 -> 1536 channels, 7x7 spatial.
    N, C1, C2, C3, H, W = 1, 2304, 384, 1536, 7, 7

    key = jax.random.PRNGKey(0)
    k1, k2, k3, k4, k5, k6, k7 = jax.random.split(key, 7)

    x377 = jax.random.normal(k1, (N, C1, 1, 1), dtype=jnp.float32)
    x373 = jax.random.normal(k2, (N, C1, H, W), dtype=jnp.float32)
    x367 = jax.random.normal(k3, (N, C2, H, W), dtype=jnp.float32)

    # Conv weights (kaiming-ish scale) in f32; the wrapper/reference quantize
    # them to bf16 consistently.  BN affine params are non-trivial.
    w1 = jax.random.normal(k4, (C2, C1, 1, 1), dtype=jnp.float32) * (1.0 / C1) ** 0.5
    w2 = jax.random.normal(k5, (C3, C2, 1, 1), dtype=jnp.float32) * (1.0 / C2) ** 0.5
    gamma = 1.0 + 0.1 * jax.random.normal(k6, (C2,), dtype=jnp.float32)
    beta = 0.1 * jax.random.normal(k7, (C2,), dtype=jnp.float32)

    out = jax.jit(fused_forward)(x377, x373, x367, w1, w2, gamma, beta)
    out = jax.block_until_ready(out)

    ref = reference_forward(x377, x373, x367, w1, w2, gamma, beta)
    assert out.shape == (N, C3, H, W), out.shape
    max_err = float(jnp.max(jnp.abs(out - ref)))
    assert jnp.allclose(out, ref, atol=1e-3, rtol=1e-3), max_err

    # TODO(synk): BatchNorm running_mean/running_var momentum updates are a
    # training-time buffer side effect and are not part of the returned tensor.
    print("KERNEL_OK")
</pallas_src>

<mosaic_0001>
module attributes {stable_mosaic.version = 11 : i64} {
  func.func @fused_kernel(%arg0: i32, %arg1: memref<768x1xf32, #tpu.memory_space<vmem>>, %arg2: memref<768x49xf32, #tpu.memory_space<vmem>>, %arg3: memref<384x49xf32, #tpu.memory_space<vmem>>, %arg4: memref<384x768xbf16, #tpu.memory_space<vmem>>, %arg5: memref<512x384xbf16, #tpu.memory_space<vmem>>, %arg6: memref<384x1xf32, #tpu.memory_space<vmem>>, %arg7: memref<384x1xf32, #tpu.memory_space<vmem>>, %arg8: memref<1536x49xf32, #tpu.memory_space<vmem>>, %arg9: memref<384x49xf32, #tpu.memory_space<vmem>>, %arg10: memref<1536x384xbf16, #tpu.memory_space<vmem>>) attributes {dimension_semantics = [#tpu.dimension_semantics<arbitrary>], iteration_bounds = array<i64: 3>, scalar_prefetch = 0 : i64, scratch_operands = 2 : i64, tpu.core_type = #tpu.core_type<tc>, window_params = [{transform_indices = @transform_0, window_bounds = array<i64: 768, 1>}, {transform_indices = @transform_1, window_bounds = array<i64: 768, 49>}, {pipeline_mode = #tpu.pipeline_mode<synchronous>, transform_indices = @transform_2, window_bounds = array<i64: 384, 49>}, {transform_indices = @transform_3, window_bounds = array<i64: 384, 768>}, {transform_indices = @transform_4, window_bounds = array<i64: 512, 384>}, {pipeline_mode = #tpu.pipeline_mode<synchronous>, transform_indices = @transform_5, window_bounds = array<i64: 384, 1>}, {pipeline_mode = #tpu.pipeline_mode<synchronous>, transform_indices = @transform_6, window_bounds = array<i64: 384, 1>}, {pipeline_mode = #tpu.pipeline_mode<synchronous>, transform_indices = @transform_7, window_bounds = array<i64: 1536, 49>}]} {
    %c0_i32 = arith.constant 0 : i32
    %0 = arith.cmpi eq, %arg0, %c0_i32 : i32
    %1 = arith.extui %0 : i1 to i32
    %c0_i32_0 = arith.constant 0 : i32
    %2 = arith.cmpi ne, %1, %c0_i32_0 : i32
    scf.if %2 {
      %cst_15 = arith.constant 0.000000e+00 : f32
      %26 = vector.broadcast %cst_15 : f32 to vector<384x49xf32>
      %c0_16 = arith.constant 0 : index
      %c0_17 = arith.constant 0 : index
      %27 = vector.load %arg9[%c0_16, %c0_17] : memref<384x49xf32, #tpu.memory_space<vmem>>, vector<384x49xf32>
      tpu.vector_store %arg9[%c0_16, %c0_17], %26 {strides = array<i32>} : memref<384x49xf32, #tpu.memory_space<vmem>>, vector<384x49xf32>,
    } else {
    }
    %c512_i32 = arith.constant 512 : i32
    %3 = arith.muli %arg0, %c512_i32 : i32
    %4 = tpu.assume_multiple %3, 512 : i32
    %c0 = arith.constant 0 : index
    %c0_1 = arith.constant 0 : index
    %5 = vector.load %arg5[%c0, %c0_1] : memref<512x384xbf16, #tpu.memory_space<vmem>>, vector<512x384xbf16>
    %6 = arith.index_cast %4 : i32 to index
    %c0_2 = arith.constant 0 : index
    %7 = vector.load %arg10[%6, %c0_2] : memref<1536x384xbf16, #tpu.memory_space<vmem>>, vector<512x384xbf16>
    tpu.vector_store %arg10[%6, %c0_2], %5 {strides = array<i32>} : memref<1536x384xbf16, #tpu.memory_space<vmem>>, vector<512x384xbf16>,
    %c0_3 = arith.constant 0 : index
    %c0_4 = arith.constant 0 : index
    %8 = vector.load %arg1[%c0_3, %c0_4] : memref<768x1xf32, #tpu.memory_space<vmem>>, vector<768x1xf32>
    %9 = arith.negf %8 : vector<768x1xf32>
    %10 = math.exp %9 : vector<768x1xf32>
    %cst = arith.constant 1.000000e+00 : f32
    %11 = vector.broadcast %cst : f32 to vector<768x1xf32>
    %12 = arith.addf %11, %10 : vector<768x1xf32>
    %13 = arith.divf %11, %12 : vector<768x1xf32>
    %c0_5 = arith.constant 0 : index
    %c0_6 = arith.constant 0 : index
    %14 = vector.load %arg2[%c0_5, %c0_6] : memref<768x49xf32, #tpu.memory_space<vmem>>, vector<768x49xf32>
    %15 = vector.broadcast %13 : vector<768x1xf32> to vector<768x49xf32>
    %16 = arith.mulf %14, %15 : vector<768x49xf32>
    %17 = arith.truncf %16 : vector<768x49xf32> to vector<768x49xbf16>
    %c0_7 = arith.constant 0 : index
    %c0_8 = arith.constant 0 : index
    %18 = vector.load %arg9[%c0_7, %c0_8] : memref<384x49xf32, #tpu.memory_space<vmem>>, vector<384x49xf32>
    %c0_9 = arith.constant 0 : index
    %c0_10 = arith.constant 0 : index
    %19 = vector.load %arg4[%c0_9, %c0_10] : memref<384x768xbf16, #tpu.memory_space<vmem>>, vector<384x768xbf16>
    %cst_11 = arith.constant dense<0.000000e+00> : vector<384x49xf32>
    %20 = tpu.matmul %19, %17, %cst_11 {dimension_numbers = #tpu.dot_dimension_numbers<[1], [0], [0], [1], [0, 0, 1, 1], [], []>} : vector<384x768xbf16>, vector<768x49xbf16>, vector<384x49xf32> -> vector<384x49xf32>
    %21 = arith.addf %18, %20 : vector<384x49xf32>
    %c0_12 = arith.constant 0 : index
    %c0_13 = arith.constant 0 : index
    %22 = vector.load %arg9[%c0_12, %c0_13] : memref<384x49xf32, #tpu.memory_space<vmem>>, vector<384x49xf32>
    tpu.vector_store %arg9[%c0_12, %c0_13], %21 {strides = array<i32>} : memref<384x49xf32, #tpu.memory_space<vmem>>, vector<384x49xf32>,
    %c2_i32 = arith.constant 2 : i32
    %23 = arith.cmpi eq, %arg0, %c2_i32 : i32
    %24 = arith.extui %23 : i1 to i32
    %c0_i32_14 = arith.constant 0 : i32
    %25 = arith.cmpi ne, %24, %c0_i32_14 : i32
    scf.if %25 {
      %c0_15 = arith.constant 0 : index
      %c0_16 = arith.constant 0 : index
      %26 = vector.load %arg9[%c0_15, %c0_16] : memref<384x49xf32, #tpu.memory_space<vmem>>, vector<384x49xf32>
      %cst_17 = arith.constant dense<0.000000e+00> : vector<384xf32>
      %27 = vector.multi_reduction <add>, %26, %cst_17 [1] : vector<384x49xf32> to vector<384xf32>
      %28 = vector.shape_cast %27 : vector<384xf32> to vector<384x1xf32>
      %cst_18 = arith.constant 4.900000e+01 : f32
      %29 = vector.broadcast %cst_18 : f32 to vector<384x1xf32>
      %30 = arith.divf %28, %29 : vector<384x1xf32>
      %31 = vector.broadcast %30 : vector<384x1xf32> to vector<384x49xf32>
      %32 = arith.subf %26, %31 : vector<384x49xf32>
      %33 = arith.mulf %32, %32 : vector<384x49xf32>
      %cst_19 = arith.constant dense<0.000000e+00> : vector<384xf32>
      %34 = vector.multi_reduction <add>, %33, %cst_19 [1] : vector<384x49xf32> to vector<384xf32>
      %35 = vector.shape_cast %34 : vector<384xf32> to vector<384x1xf32>
      %cst_20 = arith.constant 4.900000e+01 : f32
      %36 = vector.broadcast %cst_20 : f32 to vector<384x1xf32>
      %37 = arith.divf %35, %36 : vector<384x1xf32>
      %cst_21 = arith.constant 9.99999974E-6 : f32
      %38 = vector.broadcast %cst_21 : f32 to vector<384x1xf32>
      %39 = arith.addf %37, %38 : vector<384x1xf32>
      %40 = math.rsqrt %39 : vector<384x1xf32>
      %41 = vector.broadcast %40 : vector<384x1xf32> to vector<384x49xf32>
      %42 = arith.mulf %32, %41 : vector<384x49xf32>
      %c0_22 = arith.constant 0 : index
      %c0_23 = arith.constant 0 : index
      %43 = vector.load %arg6[%c0_22, %c0_23] : memref<384x1xf32, #tpu.memory_space<vmem>>, vector<384x1xf32>
      %44 = vector.broadcast %43 : vector<384x1xf32> to vector<384x49xf32>
      %45 = arith.mulf %42, %44 : vector<384x49xf32>
      %c0_24 = arith.constant 0 : index
      %c0_25 = arith.constant 0 : index
      %46 = vector.load %arg7[%c0_24, %c0_25] : memref<384x1xf32, #tpu.memory_space<vmem>>, vector<384x1xf32>
      %47 = vector.broadcast %46 : vector<384x1xf32> to vector<384x49xf32>
      %48 = arith.addf %45, %47 : vector<384x49xf32>
      %c0_26 = arith.constant 0 : index
      %c0_27 = arith.constant 0 : index
      %49 = vector.load %arg3[%c0_26, %c0_27] : memref<384x49xf32, #tpu.memory_space<vmem>>, vector<384x49xf32>
      %50 = arith.addf %48, %49 : vector<384x49xf32>
      %51 = arith.truncf %50 : vector<384x49xf32> to vector<384x49xbf16>
      %c0_28 = arith.constant 0 : index
      %c0_29 = arith.constant 0 : index
      %52 = vector.load %arg10[%c0_28, %c0_29] : memref<1536x384xbf16, #tpu.memory_space<vmem>>, vector<1536x384xbf16>
      %cst_30 = arith.constant dense<0.000000e+00> : vector<1536x49xf32>
      %53 = tpu.matmul %52, %51, %cst_30 {dimension_numbers = #tpu.dot_dimension_numbers<[1], [0], [0], [1], [0, 0, 1, 1], [], []>} : vector<1536x384xbf16>, vector<384x49xbf16>, vector<1536x49xf32> -> vector<1536x49xf32>
      %c0_31 = arith.constant 0 : index
      %c0_32 = arith.constant 0 : index
      %54 = vector.load %arg8[%c0_31, %c0_32] : memref<1536x49xf32, #tpu.memory_space<vmem>>, vector<1536x49xf32>
      tpu.vector_store %arg8[%c0_31, %c0_32], %53 {strides = array<i32>} : memref<1536x49xf32, #tpu.memory_space<vmem>>, vector<1536x49xf32>,
    } else {
    }
    return
  }
  func.func @transform_0(%arg0: i32) -> (i32, i32) {
    %c0_i32 = arith.constant 0 : i32
    %c0_i32_0 = arith.constant 0 : i32
    return %arg0, %c0_i32 : i32, i32
  }
  func.func @transform_1(%arg0: i32) -> (i32, i32) {
    %c0_i32 = arith.constant 0 : i32
    %c0_i32_0 = arith.constant 0 : i32
    return %arg0, %c0_i32 : i32, i32
  }
  func.func @transform_2(%arg0: i32) -> (i32, i32) {
    %c0_i32 = arith.constant 0 : i32
    %c0_i32_0 = arith.constant 0 : i32
    %c0_i32_1 = arith.constant 0 : i32
    return %c0_i32, %c0_i32_0 : i32, i32
  }
  func.func @transform_3(%arg0: i32) -> (i32, i32) {
    %c0_i32 = arith.constant 0 : i32
    %c0_i32_0 = arith.constant 0 : i32
    return %c0_i32, %arg0 : i32, i32
  }
  func.func @transform_4(%arg0: i32) -> (i32, i32) {
    %c0_i32 = arith.constant 0 : i32
    %c0_i32_0 = arith.constant 0 : i32
    return %arg0, %c0_i32 : i32, i32
  }
  func.func @transform_5(%arg0: i32) -> (i32, i32) {
    %c0_i32 = arith.constant 0 : i32
    %c0_i32_0 = arith.constant 0 : i32
    %c0_i32_1 = arith.constant 0 : i32
    return %c0_i32, %c0_i32_0 : i32, i32
  }
  func.func @transform_6(%arg0: i32) -> (i32, i32) {
    %c0_i32 = arith.constant 0 : i32
    %c0_i32_0 = arith.constant 0 : i32
    %c0_i32_1 = arith.constant 0 : i32
    return %c0_i32, %c0_i32_0 : i32, i32
  }
  func.func @transform_7(%arg0: i32) -> (i32, i32) {
    %c0_i32 = arith.constant 0 : i32
    %c0_i32_0 = arith.constant 0 : i32
    %c0_i32_1 = arith.constant 0 : i32
    return %c0_i32, %c0_i32_0 : i32, i32
  }
}

</mosaic_0001>

<bundles_post_ra>
// kernel: fused_forward.1
= control target key start
LH: loop header
LB: loop body
LE: loop exit
PB: predicated region body
PF: predicated region fallthrough
CT: control target
= control target key end

     0   :  { %s9789_s24 = smov 0   ;;  %s9791_s25 = smov 0   ;;  %s13635_s0 = inlined_call_operand.vmem [shape: f32[2304,1], index: 0, kind: input, shape index: {}]   ;;  %s13636_s1 = inlined_call_operand.vmem [shape: f32[2304,49], index: 1, kind: input, shape index: {}]   ;;  %s13637_s2 = inlined_call_operand.vmem [shape: f32[384,49], index: 2, kind: input, shape index: {}]   ;;  %s13638_s3 = inlined_call_operand.vmem [shape: bf16[384,2304], index: 3, kind: input, shape index: {}]   ;;  %s13639_s4 = inlined_call_operand.vmem [shape: bf16[1536,384], index: 4, kind: input, shape index: {}]   ;;  %s13640_s5 = inlined_call_operand.vmem [shape: f32[384,1], index: 5, kind: input, shape index: {}]   ;;  %s13641_s6 = inlined_call_operand.vmem [shape: f32[384,1], index: 6, kind: input, shape index: {}]   ;;  %s13642_s7 = inlined_call_operand.vmem [shape: f32[1536,49], index: 7, kind: output, shape index: {}]  }
   0x1   :  { %s9793_s26 = smov 0  }
   0x2 LB: > { %s9805_s27 = sadd.s32 4294967295, %s9744_s26   ;;  %s9808_s28 = sadd.s32 1, %s9744_s26   ;;  %s9744_s26 = sphi %s9793_s26, %s13836_s26   ;;  %s9740_s25 = sphi %s9791_s25, %s13835_s25   ;;  %s9736_s24 = sphi %s9789_s24, %s13834_s24  }
   0x3   : > { %s94_s29 = ssub.s32 %s9744_s26, %s9808_s28  ;;  %s97_s30 = sadd.s32 1, %s9740_s25 }
   0x4   : > { %p95_p0 = scmp.eq.s32.totalorder %s94_s29, 0  ;;  %p104_p1 = scmp.ne.s32.totalorder %s9740_s25, %s9736_s24 }
   0x5   : > { %p105_p2 = scmp.eq.s32.totalorder %s9744_s26, 0  ;;  %p8137_p4 = scmp.ge.s32.totalorder %s9744_s26, 3 }
   0x6   : > { %s9817_s8 = scalar_select %p95_p0, %s9740_s25, %s97_s30  }
   0x7   : > { %p106_p3 = por %p105_p2, %p104_p1  ;;  %228 = sbr.rel (%p8137_p4) target bundleno = 91 (0x5b), region = 28 }
   0xe   : > { %249 = sbr.rel (!%p106_p3) target bundleno = 91 (0x5b), region = 40  ;;  %s251_s9 = sand.u32 (%p106_p3), 1, %s9740_s25  }
   0xf   : > { %s8486_s10 = smul.u32 (%p106_p3), 24, %s9744_s26 }
  0x10   : > { %s8864_s11 = smul.u32 (%p106_p3), 1152, %s251_s9 }
  0x11   : > { %s9825_s14 = scalar_lea.vmem (%p106_p3), %s13638_s3, %s8486_s10 }
  0x12   : > { %v269_v0 = vld [vmem:[%s9825_s14] sm:$0xff] (%p106_p3)  ;;  %v271_v1 = vld [vmem:[%s9825_s14 + $0x8] sm:$0xff] (%p106_p3)  ;;  %v273_v2 = vld [vmem:[%s9825_s14 + $0x10] sm:$0xff] (%p106_p3)  ;;  %s9830_s15 = scalar_lea.vmem (%p106_p3), [#allocation4], %s8864_s11 }
  0x13   : > { %270 = vst [vmem:[%s9830_s15] sm:$0xff] (%p106_p3), %v269_v0  ;;  %272 = vst [vmem:[%s9830_s15 + $0x8] sm:$0xff] (%p106_p3), %v271_v1  ;;  %v275_v3 = vld [vmem:[%s9825_s14 + $0x48] sm:$0xff] (%p106_p3)  ;;  %v277_v4 = vld [vmem:[%s9825_s14 + $0x50] sm:$0xff] (%p106_p3) }
  0x14   : > { %274 = vst [vmem:[%s9830_s15 + $0x10] sm:$0xff] (%p106_p3), %v273_v2  ;;  %v279_v5 = vld [vmem:[%s9825_s14 + $0x58] sm:$0xff] (%p106_p3)  ;;  %276 = vst [vmem:[%s9830_s15 + $0x18] sm:$0xff] (%p106_p3), %v275_v3  ;;  %v281_v6 = vld [vmem:[%s9825_s14 + $0x90] sm:$0xff] (%p106_p3) }
  0x15   : > { %278 = vst [vmem:[%s9830_s15 + $0x20] sm:$0xff] %v277_v4  ;;  %280 = vst [vmem:[%s9830_s15 + $0x28] sm:$0xff] %v279_v5  ;;  %v283_v7 = vld [vmem:[%s9825_s14 + $0x98] sm:$0xff]  ;;  %v285_v8 = vld [vmem:[%s9825_s14 + $0xa0] sm:$0xff] }
  0x16   : > { %282 = vst [vmem:[%s9830_s15 + $0x30] sm:$0xff] %v281_v6  ;;  %284 = vst [vmem:[%s9830_s15 + $0x38] sm:$0xff] %v283_v7  ;;  %v287_v9 = vld [vmem:[%s9825_s14 + $0xd8] sm:$0xff]  ;;  %v289_v10 = vld [vmem:[%s9825_s14 + $0xe0] sm:$0xff] }
  0x17   : > { %286 = vst [vmem:[%s9830_s15 + $0x40] sm:$0xff] %v285_v8  ;;  %v291_v11 = vld [vmem:[%s9825_s14 + $0xe8] sm:$0xff]  ;;  %288 = vst [vmem:[%s9830_s15 + $0x48] sm:$0xff] %v287_v9  ;;  %v293_v12 = vld [vmem:[%s9825_s14 + $0x120] sm:$0xff] }
  0x18   : > { %290 = vst [vmem:[%s9830_s15 + $0x50] sm:$0xff] %v289_v10  ;;  %292 = vst [vmem:[%s9830_s15 + $0x58] sm:$0xff] %v291_v11  ;;  %v295_v13 = vld [vmem:[%s9825_s14 + $0x128] sm:$0xff]  ;;  %v297_v14 = vld [vmem:[%s9825_s14 + $0x130] sm:$0xff] }
  0x19   : > { %294 = vst [vmem:[%s9830_s15 + $0x60] sm:$0xff] %v293_v12  ;;  %296 = vst [vmem:[%s9830_s15 + $0x68] sm:$0xff] %v295_v13  ;;  %v299_v15 = vld [vmem:[%s9825_s14 + $0x168] sm:$0xff]  ;;  %v301_v16 = vld [vmem:[%s9825_s14 + $0x170] sm:$0xff] }
  0x1a   : > { %298 = vst [vmem:[%s9830_s15 + $0x70] sm:$0xff] %v297_v14  ;;  %v303_v17 = vld [vmem:[%s9825_s14 + $0x178] sm:$0xff]  ;;  %300 = vst [vmem:[%s9830_s15 + $0x78] sm:$0xff] %v299_v15  ;;  %v305_v18 = vld [vmem:[%s9825_s14 + $0x1b0] sm:$0xff] }
  0x1b   : > { %302 = vst [vmem:[%s9830_s15 + $0x80] sm:$0xff] %v301_v16  ;;  %304 = vst [vmem:[%s9830_s15 + $0x88] sm:$0xff] %v303_v17  ;;  %v307_v19 = vld [vmem:[%s9825_s14 + $0x1b8] sm:$0xff]  ;;  %v309_v20 = vld [vmem:[%s9825_s14 + $0x1c0] sm:$0xff] }
  0x1c   : > { %306 = vst [vmem:[%s9830_s15 + $0x90] sm:$0xff] %v305_v18  ;;  %308 = vst [vmem:[%s9830_s15 + $0x98] sm:$0xff] %v307_v19  ;;  %v311_v21 = vld [vmem:[%s9825_s14 + $0x1f8] sm:$0xff]  ;;  %v313_v22 = vld [vmem:[%s9825_s14 + $0x200] sm:$0xff] }
  0x1d   : > { %310 = vst [vmem:[%s9830_s15 + $0xa0] sm:$0xff] %v309_v20  ;;  %v315_v23 = vld [vmem:[%s9825_s14 + $0x208] sm:$0xff]  ;;  %312 = vst [vmem:[%s9830_s15 + $0xa8] sm:$0xff] %v311_v21  ;;  %v317_v24 = vld [vmem:[%s9825_s14 + $0x240] sm:$0xff] }
  0x1e   : > { %314 = vst [vmem:[%s9830_s15 + $0xb0] sm:$0xff] %v313_v22  ;;  %316 = vst [vmem:[%s9830_s15 + $0xb8] sm:$0xff] %v315_v23  ;;  %v319_v25 = vld [vmem:[%s9825_s14 + $0x248] sm:$0xff]  ;;  %v321_v26 = vld [vmem:[%s9825_s14 + $0x250] sm:$0xff] }
  0x1f   : > { %318 = vst [vmem:[%s9830_s15 + $0xc0] sm:$0xff] %v317_v24  ;;  %320 = vst [vmem:[%s9830_s15 + $0xc8] sm:$0xff] %v319_v25  ;;  %v323_v27 = vld [vmem:[%s9825_s14 + $0x288] sm:$0xff]  ;;  %v325_v28 = vld [vmem:[%s9825_s14 + $0x290] sm:$0xff] }
  0x20   : > { %322 = vst [vmem:[%s9830_s15 + $0xd0] sm:$0xff] %v321_v26  ;;  %v327_v29 = vld [vmem:[%s9825_s14 + $0x298] sm:$0xff]  ;;  %324 = vst [vmem:[%s9830_s15 + $0xd8] sm:$0xff] %v323_v27  ;;  %v329_v30 = vld [vmem:[%s9825_s14 + $0x2d0] sm:$0xff] }
  0x21   : > { %326 = vst [vmem:[%s9830_s15 + $0xe0] sm:$0xff] %v325_v28  ;;  %328 = vst [vmem:[%s9830_s15 + $0xe8] sm:$0xff] %v327_v29  ;;  %v331_v31 = vld [vmem:[%s9825_s14 + $0x2d8] sm:$0xff]  ;;  %v333_v32 = vld [vmem:[%s9825_s14 + $0x2e0] sm:$0xff] }
  0x22   : > { %330 = vst [vmem:[%s9830_s15 + $0xf0] sm:$0xff] %v329_v30  ;;  %332 = vst [vmem:[%s9830_s15 + $0xf8] sm:$0xff] %v331_v31  ;;  %v335_v33 = vld [vmem:[%s9825_s14 + $0x318] sm:$0xff]  ;;  %v337_v34 = vld [vmem:[%s9825_s14 + $0x320] sm:$0xff] }
  0x23   : > { %334 = vst [vmem:[%s9830_s15 + $0x100] sm:$0xff] %v333_v32  ;;  %v339_v35 = vld [vmem:[%s9825_s14 + $0x328] sm:$0xff]  ;;  %336 = vst [vmem:[%s9830_s15 + $0x108] sm:$0xff] %v335_v33  ;;  %v341_v36 = vld [vmem:[%s9825_s14 + $0x360] sm:$0xff] }
  0x24   : > { %338 = vst [vmem:[%s9830_s15 + $0x110] sm:$0xff] %v337_v34  ;;  %340 = vst [vmem:[%s9830_s15 + $0x118] sm:$0xff] %v339_v35  ;;  %v343_v37 = vld [vmem:[%s9825_s14 + $0x368] sm:$0xff]  ;;  %v345_v38 = vld [vmem:[%s9825_s14 + $0x370] sm:$0xff] }
  0x25   : > { %342 = vst [vmem:[%s9830_s15 + $0x120] sm:$0xff] %v341_v36  ;;  %344 = vst [vmem:[%s9830_s15 + $0x128] sm:$0xff] %v343_v37  ;;  %v347_v39 = vld [vmem:[%s9825_s14 + $0x3a8] sm:$0xff]  ;;  %v349_v40 = vld [vmem:[%s9825_s14 + $0x3b0] sm:$0xff] }
  0x26   : > { %346 = vst [vmem:[%s9830_s15 + $0x130] sm:$0xff] %v345_v38  ;;  %v351_v41 = vld [vmem:[%s9825_s14 + $0x3b8] sm:$0xff]  ;;  %348 = vst [vmem:[%s9830_s15 + $0x138] sm:$0xff] %v347_v39  ;;  %v353_v42 = vld [vmem:[%s9825_s14 + $0x3f0] sm:$0xff] }
  0x27   : > { %350 = vst [vmem:[%s9830_s15 + $0x140] sm:$0xff] %v349_v40  ;;  %352 = vst [vmem:[%s9830_s15 + $0x148] sm:$0xff] %v351_v41  ;;  %v355_v43 = vld [vmem:[%s9825_s14 + $0x3f8] sm:$0xff]  ;;  %v357_v44 = vld [vmem:[%s9825_s14 + $0x400] sm:$0xff] }
  0x28   : > { %354 = vst [vmem:[%s9830_s15 + $0x150] sm:$0xff] %v353_v42  ;;  %356 = vst [vmem:[%s9830_s15 + $0x158] sm:$0xff] %v355_v43  ;;  %v359_v45 = vld [vmem:[%s9825_s14 + $0x438] sm:$0xff]  ;;  %v361_v46 = vld [vmem:[%s9825_s14 + $0x440] sm:$0xff] }
  0x29   : > { %358 = vst [vmem:[%s9830_s15 + $0x160] sm:$0xff] %v357_v44  ;;  %v363_v47 = vld [vmem:[%s9825_s14 + $0x448] sm:$0xff]  ;;  %360 = vst [vmem:[%s9830_s15 + $0x168] sm:$0xff] %v359_v45  ;;  %v365_v48 = vld [vmem:[%s9825_s14 + $0x480] sm:$0xff] }
  0x2a   : > { %362 = vst [vmem:[%s9830_s15 + $0x170] sm:$0xff] %v361_v46  ;;  %364 = vst [vmem:[%s9830_s15 + $0x178] sm:$0xff] %v363_v47  ;;  %v367_v49 = vld [vmem:[%s9825_s14 + $0x488] sm:$0xff]  ;;  %v369_v50 = vld [vmem:[%s9825_s14 + $0x490] sm:$0xff] }
  0x2b   : > { %366 = vst [vmem:[%s9830_s15 + $0x180] sm:$0xff] %v365_v48  ;;  %368 = vst [vmem:[%s9830_s15 + $0x188] sm:$0xff] %v367_v49  ;;  %v371_v51 = vld [vmem:[%s9825_s14 + $0x4c8] sm:$0xff]  ;;  %v373_v52 = vld [vmem:[%s9825_s14 + $0x4d0] sm:$0xff] }
  0x2c   : > { %370 = vst [vmem:[%s9830_s15 + $0x190] sm:$0xff] %v369_v50  ;;  %v375_v53 = vld [vmem:[%s9825_s14 + $0x4d8] sm:$0xff]  ;;  %372 = vst [vmem:[%s9830_s15 + $0x198] sm:$0xff] %v371_v51  ;;  %v377_v54 = vld [vmem:[%s9825_s14 + $0x510] sm:$0xff] }
  0x2d   : > { %374 = vst [vmem:[%s9830_s15 + $0x1a0] sm:$0xff] %v373_v52  ;;  %376 = vst [vmem:[%s9830_s15 + $0x1a8] sm:$0xff] %v375_v53  ;;  %v379_v55 = vld [vmem:[%s9825_s14 + $0x518] sm:$0xff]  ;;  %v381_v56 = vld [vmem:[%s9825_s14 + $0x520] sm:$0xff] }
  0x2e   : > { %378 = vst [vmem:[%s9830_s15 + $0x1b0] sm:$0xff] %v377_v54  ;;  %380 = vst [vmem:[%s9830_s15 + $0x1b8] sm:$0xff] %v379_v55  ;;  %v383_v57 = vld [vmem:[%s9825_s14 + $0x558] sm:$0xff]  ;;  %v385_v58 = vld [vmem:[%s9825_s14 + $0x560] sm:$0xff] }
  0x2f   : > { %382 = vst [vmem:[%s9830_s15 + $0x1c0] sm:$0xff] %v381_v56  ;;  %v387_v59 = vld [vmem:[%s9825_s14 + $0x568] sm:$0xff]  ;;  %384 = vst [vmem:[%s9830_s15 + $0x1c8] sm:$0xff] %v383_v57  ;;  %v389_v60 = vld [vmem:[%s9825_s14 + $0x5a0] sm:$0xff] }
  0x30   : > { %386 = vst [vmem:[%s9830_s15 + $0x1d0] sm:$0xff] %v385_v58  ;;  %388 = vst [vmem:[%s9830_s15 + $0x1d8] sm:$0xff] %v387_v59  ;;  %v391_v61 = vld [vmem:[%s9825_s14 + $0x5a8] sm:$0xff]  ;;  %v393_v62 = vld [vmem:[%s9825_s14 + $0x5b0] sm:$0xff] }
  0x31   : > { %390 = vst [vmem:[%s9830_s15 + $0x1e0] sm:$0xff] %v389_v60  ;;  %392 = vst [vmem:[%s9830_s15 + $0x1e8] sm:$0xff] %v391_v61  ;;  %v395_v63 = vld [vmem:[%s9825_s14 + $0x5e8] sm:$0xff]  ;;  %v397_v0 = vld [vmem:[%s9825_s14 + $0x5f0] sm:$0xff] }
  0x32   : > { %394 = vst [vmem:[%s9830_s15 + $0x1f0] sm:$0xff] %v393_v62  ;;  %v399_v1 = vld [vmem:[%s9825_s14 + $0x5f8] sm:$0xff]  ;;  %396 = vst [vmem:[%s9830_s15 + $0x1f8] sm:$0xff] %v395_v63  ;;  %v401_v2 = vld [vmem:[%s9825_s14 + $0x630] sm:$0xff] }
  0x33   : > { %398 = vst [vmem:[%s9830_s15 + $0x200] sm:$0xff] %v397_v0  ;;  %400 = vst [vmem:[%s9830_s15 + $0x208] sm:$0xff] %v399_v1  ;;  %v403_v3 = vld [vmem:[%s9825_s14 + $0x638] sm:$0xff]  ;;  %v405_v4 = vld [vmem:[%s9825_s14 + $0x640] sm:$0xff] }
  0x34   : > { %402 = vst [vmem:[%s9830_s15 + $0x210] sm:$0xff] %v401_v2  ;;  %404 = vst [vmem:[%s9830_s15 + $0x218] sm:$0xff] %v403_v3  ;;  %v407_v5 = vld [vmem:[%s9825_s14 + $0x678] sm:$0xff]  ;;  %v409_v6 = vld [vmem:[%s9825_s14 + $0x680] sm:$0xff] }
  0x35   : > { %406 = vst [vmem:[%s9830_s15 + $0x220] sm:$0xff] %v405_v4  ;;  %v411_v7 = vld [vmem:[%s9825_s14 + $0x688] sm:$0xff]  ;;  %408 = vst [vmem:[%s9830_s15 + $0x228] sm:$0xff] %v407_v5  ;;  %v413_v8 = vld [vmem:[%s9825_s14 + $0x6c0] sm:$0xff] }
  0x36   : > { %410 = vst [vmem:[%s9830_s15 + $0x230] sm:$0xff] %v409_v6  ;;  %412 = vst [vmem:[%s9830_s15 + $0x238] sm:$0xff] %v411_v7  ;;  %v415_v9 = vld [vmem:[%s9825_s14 + $0x6c8] sm:$0xff]  ;;  %v417_v10 = vld [vmem:[%s9825_s14 + $0x6d0] sm:$0xff] }
  0x37   : > { %414 = vst [vmem:[%s9830_s15 + $0x240] sm:$0xff] %v413_v8  ;;  %416 = vst [vmem:[%s9830_s15 + $0x248] sm:$0xff] %v415_v9  ;;  %v419_v11 = vld [vmem:[%s9825_s14 + $0x708] sm:$0xff]  ;;  %v421_v12 = vld [vmem:[%s9825_s14 + $0x710] sm:$0xff] }
  0x38   : > { %418 = vst [vmem:[%s9830_s15 + $0x250] sm:$0xff] %v417_v10  ;;  %v423_v13 = vld [vmem:[%s9825_s14 + $0x718] sm:$0xff]  ;;  %420 = vst [vmem:[%s9830_s15 + $0x258] sm:$0xff] %v419_v11  ;;  %v425_v14 = vld [vmem:[%s9825_s14 + $0x750] sm:$0xff] }
  0x39   : > { %422 = vst [vmem:[%s9830_s15 + $0x260] sm:$0xff] %v421_v12  ;;  %424 = vst [vmem:[%s9830_s15 + $0x268] sm:$0xff] %v423_v13  ;;  %v427_v15 = vld [vmem:[%s9825_s14 + $0x758] sm:$0xff]  ;;  %v429_v16 = vld [vmem:[%s9825_s14 + $0x760] sm:$0xff] }
  0x3a   : > { %426 = vst [vmem:[%s9830_s15 + $0x270] sm:$0xff] %v425_v14  ;;  %428 = vst [vmem:[%s9830_s15 + $0x278] sm:$0xff] %v427_v15  ;;  %v431_v17 = vld [vmem:[%s9825_s14 + $0x798] sm:$0xff]  ;;  %v433_v18 = vld [vmem:[%s9825_s14 + $0x7a0] sm:$0xff] }
  0x3b   : > { %430 = vst [vmem:[%s9830_s15 + $0x280] sm:$0xff] %v429_v16  ;;  %v435_v19 = vld [vmem:[%s9825_s14 + $0x7a8] sm:$0xff]  ;;  %432 = vst [vmem:[%s9830_s15 + $0x288] sm:$0xff] %v431_v17  ;;  %v437_v20 = vld [vmem:[%s9825_s14 + $0x7e0] sm:$0xff] }
  0x3c   : > { %434 = vst [vmem:[%s9830_s15 + $0x290] sm:$0xff] %v433_v18  ;;  %436 = vst [vmem:[%s9830_s15 + $0x298] sm:$0xff] %v435_v19  ;;  %v439_v21 = vld [vmem:[%s9825_s14 + $0x7e8] sm:$0xff]  ;;  %v441_v22 = vld [vmem:[%s9825_s14 + $0x7f0] sm:$0xff] }
  0x3d   : > { %438 = vst [vmem:[%s9830_s15 + $0x2a0] sm:$0xff] %v437_v20  ;;  %440 = vst [vmem:[%s9830_s15 + $0x2a8] sm:$0xff] %v439_v21  ;;  %v443_v23 = vld [vmem:[%s9825_s14 + $0x828] sm:$0xff]  ;;  %v445_v24 = vld [vmem:[%s9825_s14 + $0x830] sm:$0xff] }
  0x3e   : > { %442 = vst [vmem:[%s9830_s15 + $0x2b0] sm:$0xff] %v441_v22  ;;  %v447_v25 = vld [vmem:[%s9825_s14 + $0x838] sm:$0xff]  ;;  %444 = vst [vmem:[%s9830_s15 + $0x2b8] sm:$0xff] %v443_v23  ;;  %v449_v26 = vld [vmem:[%s9825_s14 + $0x870] sm:$0xff] }
  0x3f   : > { %446 = vst [vmem:[%s9830_s15 + $0x2c0] sm:$0xff] %v445_v24  ;;  %448 = vst [vmem:[%s9830_s15 + $0x2c8] sm:$0xff] %v447_v25  ;;  %v451_v27 = vld [vmem:[%s9825_s14 + $0x878] sm:$0xff]  ;;  %v453_v28 = vld [vmem:[%s9825_s14 + $0x880] sm:$0xff] }
  0x40   : > { %450 = vst [vmem:[%s9830_s15 + $0x2d0] sm:$0xff] %v449_v26  ;;  %452 = vst [vmem:[%s9830_s15 + $0x2d8] sm:$0xff] %v451_v27  ;;  %v455_v29 = vld [vmem:[%s9825_s14 + $0x8b8] sm:$0xff]  ;;  %v457_v30 = vld [vmem:[%s9825_s14 + $0x8c0] sm:$0xff] }
  0x41   : > { %454 = vst [vmem:[%s9830_s15 + $0x2e0] sm:$0xff] %v453_v28  ;;  %v459_v31 = vld [vmem:[%s9825_s14 + $0x8c8] sm:$0xff]  ;;  %456 = vst [vmem:[%s9830_s15 + $0x2e8] sm:$0xff] %v455_v29  ;;  %v461_v32 = vld [vmem:[%s9825_s14 + $0x900] sm:$0xff] }
  0x42   : > { %458 = vst [vmem:[%s9830_s15 + $0x2f0] sm:$0xff] %v457_v30  ;;  %460 = vst [vmem:[%s9830_s15 + $0x2f8] sm:$0xff] %v459_v31  ;;  %v463_v33 = vld [vmem:[%s9825_s14 + $0x908] sm:$0xff]  ;;  %v465_v34 = vld [vmem:[%s9825_s14 + $0x910] sm:$0xff] }
  0x43   : > { %462 = vst [vmem:[%s9830_s15 + $0x300] sm:$0xff] %v461_v32  ;;  %464 = vst [vmem:[%s9830_s15 + $0x308] sm:$0xff] %v463_v33  ;;  %v467_v35 = vld [vmem:[%s9825_s14 + $0x948] sm:$0xff]  ;;  %v469_v36 = vld [vmem:[%s9825_s14 + $0x950] sm:$0xff] }
  0x44   : > { %466 = vst [vmem:[%s9830_s15 + $0x310] sm:$0xff] %v465_v34  ;;  %v471_v37 = vld [vmem:[%s9825_s14 + $0x958] sm:$0xff]  ;;  %468 = vst [vmem:[%s9830_s15 + $0x318] sm:$0xff] %v467_v35  ;;  %v473_v38 = vld [vmem:[%s9825_s14 + $0x990] sm:$0xff] }
  0x45   : > { %470 = vst [vmem:[%s9830_s15 + $0x320] sm:$0xff] %v469_v36  ;;  %472 = vst [vmem:[%s9830_s15 + $0x328] sm:$0xff] %v471_v37  ;;  %v475_v39 = vld [vmem:[%s9825_s14 + $0x998] sm:$0xff]  ;;  %v477_v40 = vld [vmem:[%s9825_s14 + $0x9a0] sm:$0xff] }
  0x46   : > { %474 = vst [vmem:[%s9830_s15 + $0x330] sm:$0xff] %v473_v38  ;;  %476 = vst [vmem:[%s9830_s15 + $0x338] sm:$0xff] %v475_v39  ;;  %v479_v41 = vld [vmem:[%s9825_s14 + $0x9d8] sm:$0xff]  ;;  %v481_v42 = vld [vmem:[%s9825_s14 + $0x9e0] sm:$0xff] }
  0x47   : > { %478 = vst [vmem:[%s9830_s15 + $0x340] sm:$0xff] %v477_v40  ;;  %v483_v43 = vld [vmem:[%s9825_s14 + $0x9e8] sm:$0xff]  ;;  %480 = vst [vmem:[%s9830_s15 + $0x348] sm:$0xff] %v479_v41  ;;  %v485_v44 = vld [vmem:[%s9825_s14 + $0xa20] sm:$0xff] }
  0x48   : > { %482 = vst [vmem:[%s9830_s15 + $0x350] sm:$0xff] %v481_v42  ;;  %484 = vst [vmem:[%s9830_s15 + $0x358] sm:$0xff] %v483_v43  ;;  %v487_v45 = vld [vmem:[%s9825_s14 + $0xa28] sm:$0xff]  ;;  %v489_v46 = vld [vmem:[%s9825_s14 + $0xa30] sm:$0xff] }
  0x49   : > { %486 = vst [vmem:[%s9830_s15 + $0x360] sm:$0xff] %v485_v44  ;;  %488 = vst [vmem:[%s9830_s15 + $0x368] sm:$0xff] %v487_v45  ;;  %v491_v47 = vld [vmem:[%s9825_s14 + $0xa68] sm:$0xff]  ;;  %v493_v48 = vld [vmem:[%s9825_s14 + $0xa70] sm:$0xff] }
  0x4a   : > { %490 = vst [vmem:[%s9830_s15 + $0x370] sm:$0xff] %v489_v46  ;;  %v495_v49 = vld [vmem:[%s9825_s14 + $0xa78] sm:$0xff]  ;;  %492 = vst [vmem:[%s9830_s15 + $0x378] sm:$0xff] %v491_v47  ;;  %v497_v50 = vld [vmem:[%s9825_s14 + $0xab0] sm:$0xff] }
  0x4b   : > { %494 = vst [vmem:[%s9830_s15 + $0x380] sm:$0xff] %v493_v48  ;;  %496 = vst [vmem:[%s9830_s15 + $0x388] sm:$0xff] %v495_v49  ;;  %v499_v51 = vld [vmem:[%s9825_s14 + $0xab8] sm:$0xff]  ;;  %v501_v52 = vld [vmem:[%s9825_s14 + $0xac0] sm:$0xff] }
  0x4c   : > { %498 = vst [vmem:[%s9830_s15 + $0x390] sm:$0xff] %v497_v50  ;;  %500 = vst [vmem:[%s9830_s15 + $0x398] sm:$0xff] %v499_v51  ;;  %v503_v53 = vld [vmem:[%s9825_s14 + $0xaf8] sm:$0xff]  ;;  %v505_v54 = vld [vmem:[%s9825_s14 + $0xb00] sm:$0xff] }
  0x4d   : > { %502 = vst [vmem:[%s9830_s15 + $0x3a0] sm:$0xff] %v501_v52  ;;  %v507_v55 = vld [vmem:[%s9825_s14 + $0xb08] sm:$0xff]  ;;  %504 = vst [vmem:[%s9830_s15 + $0x3a8] sm:$0xff] %v503_v53  ;;  %v509_v56 = vld [vmem:[%s9825_s14 + $0xb40] sm:$0xff] }
  0x4e   : > { %506 = vst [vmem:[%s9830_s15 + $0x3b0] sm:$0xff] %v505_v54  ;;  %508 = vst [vmem:[%s9830_s15 + $0x3b8] sm:$0xff] %v507_v55  ;;  %v511_v57 = vld [vmem:[%s9825_s14 + $0xb48] sm:$0xff]  ;;  %v513_v58 = vld [vmem:[%s9825_s14 + $0xb50] sm:$0xff] }
  0x4f   : > { %510 = vst [vmem:[%s9830_s15 + $0x3c0] sm:$0xff] %v509_v56  ;;  %512 = vst [vmem:[%s9830_s15 + $0x3c8] sm:$0xff] %v511_v57  ;;  %v515_v59 = vld [vmem:[%s9825_s14 + $0xb88] sm:$0xff]  ;;  %v517_v60 = vld [vmem:[%s9825_s14 + $0xb90] sm:$0xff] }
  0x50   : > { %514 = vst [vmem:[%s9830_s15 + $0x3d0] sm:$0xff] %v513_v58  ;;  %v519_v61 = vld [vmem:[%s9825_s14 + $0xb98] sm:$0xff]  ;;  %516 = vst [vmem:[%s9830_s15 + $0x3d8] sm:$0xff] %v515_v59  ;;  %v521_v62 = vld [vmem:[%s9825_s14 + $0xbd0] sm:$0xff] }
  0x51   : > { %518 = vst [vmem:[%s9830_s15 + $0x3e0] sm:$0xff] %v517_v60  ;;  %520 = vst [vmem:[%s9830_s15 + $0x3e8] sm:$0xff] %v519_v61  ;;  %v523_v63 = vld [vmem:[%s9825_s14 + $0xbd8] sm:$0xff]  ;;  %v525_v0 = vld [vmem:[%s9825_s14 + $0xbe0] sm:$0xff] }
  0x52   : > { %522 = vst [vmem:[%s9830_s15 + $0x3f0] sm:$0xff] %v521_v62  ;;  %524 = vst [vmem:[%s9830_s15 + $0x3f8] sm:$0xff] %v523_v63  ;;  %v527_v1 = vld [vmem:[%s9825_s14 + $0xc18] sm:$0xff]  ;;  %v529_v2 = vld [vmem:[%s9825_s14 + $0xc20] sm:$0xff] }
  0x53   : > { %526 = vst [vmem:[%s9830_s15 + $0x400] sm:$0xff] %v525_v0  ;;  %v531_v3 = vld [vmem:[%s9825_s14 + $0xc28] sm:$0xff]  ;;  %528 = vst [vmem:[%s9830_s15 + $0x408] sm:$0xff] %v527_v1  ;;  %v533_v4 = vld [vmem:[%s9825_s14 + $0xc60] sm:$0xff] }
  0x54   : > { %530 = vst [vmem:[%s9830_s15 + $0x410] sm:$0xff] %v529_v2  ;;  %532 = vst [vmem:[%s9830_s15 + $0x418] sm:$0xff] %v531_v3  ;;  %v535_v5 = vld [vmem:[%s9825_s14 + $0xc68] sm:$0xff]  ;;  %v537_v6 = vld [vmem:[%s9825_s14 + $0xc70] sm:$0xff] }
  0x55   : > { %534 = vst [vmem:[%s9830_s15 + $0x420] sm:$0xff] %v533_v4  ;;  %536 = vst [vmem:[%s9830_s15 + $0x428] sm:$0xff] %v535_v5  ;;  %v539_v7 = vld [vmem:[%s9825_s14 + $0xca8] sm:$0xff]  ;;  %v541_v8 = vld [vmem:[%s9825_s14 + $0xcb0] sm:$0xff] }
  0x56   : > { %538 = vst [vmem:[%s9830_s15 + $0x430] sm:$0xff] %v537_v6  ;;  %v543_v9 = vld [vmem:[%s9825_s14 + $0xcb8] sm:$0xff]  ;;  %540 = vst [vmem:[%s9830_s15 + $0x438] sm:$0xff] %v539_v7  ;;  %v545_v10 = vld [vmem:[%s9825_s14 + $0xcf0] sm:$0xff] }
  0x57   : > { %542 = vst [vmem:[%s9830_s15 + $0x440] sm:$0xff] %v541_v8  ;;  %544 = vst [vmem:[%s9830_s15 + $0x448] sm:$0xff] %v543_v9  ;;  %v547_v11 = vld [vmem:[%s9825_s14 + $0xcf8] sm:$0xff]  ;;  %v549_v12 = vld [vmem:[%s9825_s14 + $0xd00] sm:$0xff] }
  0x58   : > { %546 = vst [vmem:[%s9830_s15 + $0x450] sm:$0xff] %v545_v10  ;;  %548 = vst [vmem:[%s9830_s15 + $0x458] sm:$0xff] %v547_v11  ;;  %v551_v13 = vld [vmem:[%s9825_s14 + $0xd38] sm:$0xff]  ;;  %v553_v14 = vld [vmem:[%s9825_s14 + $0xd40] sm:$0xff] }
  0x59   : > { %550 = vst [vmem:[%s9830_s15 + $0x460] sm:$0xff] %v549_v12  ;;  %v555_v15 = vld [vmem:[%s9825_s14 + $0xd48] sm:$0xff]  ;;  %552 = vst [vmem:[%s9830_s15 + $0x468] sm:$0xff] %v551_v13 }
  0x5a   : > { %554 = vst [vmem:[%s9830_s15 + $0x470] sm:$0xff] %v553_v14  ;;  %556 = vst [vmem:[%s9830_s15 + $0x478] sm:$0xff] %v555_v15 }
  0x5b PF: > { %p8139_p5 = scmp.ge.s32.totalorder %s9744_s26, 1  ;;  %p571_p6 = scmp.lt.s32.totalorder %s9744_s26, 4 }
  0x5d   : > { %p572_p7 = pnand %p8139_p5, %p571_p6 }
  0x5f   : > { %575 = sbr.rel (%p572_p7) target bundleno = 2282 (0x8ea), region = 67 }
  0x66   : > { %s578_s16 = sand.u32 1, %s9736_s24   ;;  %s620_s17 = smul.u32 96, %s9805_s27 }
  0x67   : > { %s8865_s18 = smul.u32 1152, %s578_s16  ;;  %s8142_s19 = sshll.u32 %s9805_s27, 6 }
  0x68   : > { %p621_p8 = scmp.lt.s32.totalorder %s620_s17, 287  ;;  %p634_p9 = scmp.lt.s32.totalorder %s8142_s19, 191 }
  0x69   : > { %s10137_s12 = scalar_lea.vmem [#allocation4], %s8865_s18  ;;  %p8144_p10 = scmp.ne.s32.totalorder %s9805_s27, 0 }
  0x6a   : > { %s13838_s17 = smov (!%p621_p8, %s620_s17), 287  ;;  %s13840_s19 = smov (!%p634_p9, %s8142_s19), 191 }
  0x6b   : > { %s8140_s20 = sshll.u32 %s13838_s17, 3  ;;  %s8866_s9 = smul.u32 12, %s13840_s19  ;;  %vm645_vm0 = vcmask (!%p8144_p10), 400384   ;;  %v9746_v16 = vmov (!%p8144_p10), 0.0  }
  0x6c   : > { %s10125_s23 = scalar_lea.vmem %s13635_s0, %s8140_s20  ;;  %s10130_s30 = scalar_lea.vmem %s13636_s1, %s8140_s20  ;;  %646 = vst.msk [vmem:[#allocation2] sm:$0xff] (!%p8144_p10), %vm645_vm0, %v9746_v16  ;;  %647 = vst.msk [vmem:[#allocation2 + $0x8] sm:$0xff] (!%p8144_p10), %vm645_vm0, %v9746_v16 }
  0x6d   : > { %s10135_s11 = scalar_lea.vmem %s13639_s4, %s8866_s9  ;;  %644 = sbr.rel (%p8144_p10) target bundleno = 132 (0x84), region = 75  ;;  %648 = vst.msk [vmem:[#allocation2 + $0x10] sm:$0xff] (!%p8144_p10), %vm645_vm0, %v9746_v16  ;;  %649 = vst.msk [vmem:[#allocation2 + $0x18] sm:$0xff] (!%p8144_p10), %vm645_vm0, %v9746_v16 }
  0x6e   : > { %650 = vst.msk [vmem:[#allocation2 + $0x20] sm:$0xff] (!%p8144_p10), %vm645_vm0, %v9746_v16  ;;  %651 = vst.msk [vmem:[#allocation2 + $0x28] sm:$0xff] (!%p8144_p10), %vm645_vm0, %v9746_v16 }
  0x6f   : > { %652 = vst.msk [vmem:[#allocation2 + $0x30] sm:$0xff] (!%p8144_p10), %vm645_vm0, %v9746_v16  ;;  %653 = vst.msk [vmem:[#allocation2 + $0x38] sm:$0xff] (!%p8144_p10), %vm645_vm0, %v9746_v16 }
  0x70   : > { %654 = vst.msk [vmem:[#allocation2 + $0x40] sm:$0xff] (!%p8144_p10), %vm645_vm0, %v9746_v16  ;;  %655 = vst.msk [vmem:[#allocation2 + $0x48] sm:$0xff] (!%p8144_p10), %vm645_vm0, %v9746_v16 }
  0x71   : > { %656 = vst.msk [vmem:[#allocation2 + $0x50] sm:$0xff] (!%p8144_p10), %vm645_vm0, %v9746_v16  ;;  %657 = vst.msk [vmem:[#allocation2 + $0x58] sm:$0xff] (!%p8144_p10), %vm645_vm0, %v9746_v16 }
  0x72   : > { %658 = vst.msk [vmem:[#allocation2 + $0x60] sm:$0xff] (!%p8144_p10), %vm645_vm0, %v9746_v16  ;;  %659 = vst.msk [vmem:[#allocation2 + $0x68] sm:$0xff] (!%p8144_p10), %vm645_vm0, %v9746_v16 }
  0x73   : > { %660 = vst.msk [vmem:[#allocation2 + $0x70] sm:$0xff] (!%p8144_p10), %vm645_vm0, %v9746_v16  ;;  %661 = vst.msk [vmem:[#allocation2 + $0x78] sm:$0xff] (!%p8144_p10), %vm645_vm0, %v9746_v16 }
  0x74   : > { %662 = vst.msk [vmem:[#allocation2 + $0x80] sm:$0xff] %vm645_vm0, %v9746_v16  ;;  %663 = vst.msk [vmem:[#allocation2 + $0x88] sm:$0xff] %vm645_vm0, %v9746_v16 }
  0x75   : > { %664 = vst.msk [vmem:[#allocation2 + $0x90] sm:$0xff] %vm645_vm0, %v9746_v16  ;;  %665 = vst.msk [vmem:[#allocation2 + $0x98] sm:$0xff] %vm645_vm0, %v9746_v16 }
  0x76   : > { %666 = vst.msk [vmem:[#allocation2 + $0xa0] sm:$0xff] %vm645_vm0, %v9746_v16  ;;  %667 = vst.msk [vmem:[#allocation2 + $0xa8] sm:$0xff] %vm645_vm0, %v9746_v16 }
  0x77   : > { %668 = vst.msk [vmem:[#allocation2 + $0xb0] sm:$0xff] %vm645_vm0, %v9746_v16  ;;  %669 = vst.msk [vmem:[#allocation2 + $0xb8] sm:$0xff] %vm645_vm0, %v9746_v16 }
  0x78   : > { %670 = vst.msk [vmem:[#allocation2 + $0xc0] sm:$0xff] %vm645_vm0, %v9746_v16  ;;  %671 = vst.msk [vmem:[#allocation2 + $0xc8] sm:$0xff] %vm645_vm0, %v9746_v16 }
  0x79   : > { %672 = vst.msk [vmem:[#allocation2 + $0xd0] sm:$0xff] %vm645_vm0, %v9746_v16  ;;  %673 = vst.msk [vmem:[#allocation2 + $0xd8] sm:$0xff] %vm645_vm0, %v9746_v16 }
  0x7a   : > { %674 = vst.msk [vmem:[#allocation2 + $0xe0] sm:$0xff] %vm645_vm0, %v9746_v16  ;;  %675 = vst.msk [vmem:[#allocation2 + $0xe8] sm:$0xff] %vm645_vm0, %v9746_v16 }
  0x7b   : > { %676 = vst.msk [vmem:[#allocation2 + $0xf0] sm:$0xff] %vm645_vm0, %v9746_v16  ;;  %677 = vst.msk [vmem:[#allocation2 + $0xf8] sm:$0xff] %vm645_vm0, %v9746_v16 }
  0x7c   : > { %678 = vst.msk [vmem:[#allocation2 + $0x100] sm:$0xff] %vm645_vm0, %v9746_v16  ;;  %679 = vst.msk [vmem:[#allocation2 + $0x108] sm:$0xff] %vm645_vm0, %v9746_v16 }
  0x7d   : > { %680 = vst.msk [vmem:[#allocation2 + $0x110] sm:$0xff] %vm645_vm0, %v9746_v16  ;;  %681 = vst.msk [vmem:[#allocation2 + $0x118] sm:$0xff] %vm645_vm0, %v9746_v16 }
  0x7e   : > { %682 = vst.msk [vmem:[#allocation2 + $0x120] sm:$0xff] %vm645_vm0, %v9746_v16  ;;  %683 = vst.msk [vmem:[#allocation2 + $0x128] sm:$0xff] %vm645_vm0, %v9746_v16 }
  0x7f   : > { %684 = vst.msk [vmem:[#allocation2 + $0x130] sm:$0xff] %vm645_vm0, %v9746_v16  ;;  %685 = vst.msk [vmem:[#allocation2 + $0x138] sm:$0xff] %vm645_vm0, %v9746_v16 }
  0x80   : > { %686 = vst.msk [vmem:[#allocation2 + $0x140] sm:$0xff] %vm645_vm0, %v9746_v16  ;;  %687 = vst.msk [vmem:[#allocation2 + $0x148] sm:$0xff] %vm645_vm0, %v9746_v16 }
  0x81   : > { %688 = vst.msk [vmem:[#allocation2 + $0x150] sm:$0xff] %vm645_vm0, %v9746_v16  ;;  %689 = vst.msk [vmem:[#allocation2 + $0x158] sm:$0xff] %vm645_vm0, %v9746_v16 }
  0x82   : > { %690 = vst.msk [vmem:[#allocation2 + $0x160] sm:$0xff] %vm645_vm0, %v9746_v16  ;;  %691 = vst.msk [vmem:[#allocation2 + $0x168] sm:$0xff] %vm645_vm0, %v9746_v16 }
  0x83   : > { %692 = vst.msk [vmem:[#allocation2 + $0x170] sm:$0xff] %vm645_vm0, %v9746_v16  ;;  %693 = vst.msk [vmem:[#allocation2 + $0x178] sm:$0xff] %vm645_vm0, %v9746_v16 }
  0x84 PF: > { %v1438_v17 = vld [vmem:[%s10125_s23 + $0x10] sm:$0xff]  ;;  %v1436_v18 = vld [vmem:[%s10125_s23] sm:$0xff]  ;;  %v1439_v19 = vld [vmem:[%s10125_s23 + $0x18] sm:$0xff]  ;;  %v9747_v20 = vmov 0   ;;  %s8145_s13 = sshll.u32 %s9805_s27, 9  ;;  %vm4463_vm1 = vcmask 400384  }
  0x85   : > { %8895 = vset.pattern.permute.xlu1 %v9747_v20  ;;  %8894 = vset.pattern.permute.xlu0 %v9747_v20  ;;  %v8245_v21 = vmul.f32 -1.442695, %v1438_v17  ;;  %v8243_v22 = vmul.f32 -1.442695, %v1436_v18  ;;  %v8246_v23 = vmul.f32 -1.442695, %v1439_v19 }
  0x86   : > { %v1437_v24 = vld [vmem:[%s10125_s23 + $0x8] sm:$0xff]  ;;  %v1440_v26 = vld [vmem:[%s10125_s23 + $0x20] sm:$0xff]  ;;  %3740 = vmatprep.subr.bf16.mxu0 %v9747_v20  ;;  %8800 = vmatprep.subr.bf16.mxu1 %v9747_v20  ;;  %v1443_v30 = vld [vmem:[%s10125_s23 + $0x38] sm:$0xff]  ;;  %s10352_s14 = sshra.s32 %s8145_s13, 4  ;;  %p8483_p11 = scmp.ne.s32.totalorder %s9805_s27, 2 }
  0x87   : > { %v1441_v25 = vld [vmem:[%s10125_s23 + $0x28] sm:$0xff]  ;;  %9240 = vpow2.f32 %v8245_v21  ;;  %v8244_v27 = vmul.f32 -1.442695, %v1437_v24  ;;  %v8247_v29 = vmul.f32 -1.442695, %v1440_v26  ;;  %v1442_v31 = vld [vmem:[%s10125_s23 + $0x30] sm:$0xff] }
  0x88   : > { %v8248_v28 = vmul.f32 -1.442695, %v1441_v25  ;;  %9242 = vpow2.f32 %v8243_v22  ;;  %v1445_v32 = vld [vmem:[%s10125_s23 + $0x48] sm:$0xff]  ;;  %v8250_v33 = vmul.f32 -1.442695, %v1443_v30  ;;  %v1444_v35 = vld [vmem:[%s10125_s23 + $0x40] sm:$0xff] }
  0x89   : > { %9244 = vpow2.f32 %v8246_v23  ;;  %v8249_v34 = vmul.f32 -1.442695, %v1442_v31  ;;  %v1447_v36 = vld [vmem:[%s10125_s23 + $0x58] sm:$0xff]  ;;  %v8252_v37 = vmul.f32 -1.442695, %v1445_v32  ;;  %v1446_v38 = vld [vmem:[%s10125_s23 + $0x50] sm:$0xff] }
  0x8a   : > { %9246 = vpow2.f32 %v8244_v27  ;;  %v8251_v39 = vmul.f32 -1.442695, %v1444_v35  ;;  %v1449_v40 = vld [vmem:[%s10125_s23 + $0x68] sm:$0xff]  ;;  %v8254_v41 = vmul.f32 -1.442695, %v1447_v36  ;;  %v1448_v57 = vld [vmem:[%s10125_s23 + $0x60] sm:$0xff] }
  0x8b   : > { %9248 = vpow2.f32 %v8248_v28  ;;  %v8253_v42 = vmul.f32 -1.442695, %v1446_v38  ;;  %v8256_v43 = vmul.f32 -1.442695, %v1449_v40  ;;  %v1451_v58 = vld [vmem:[%s10125_s23 + $0x78] sm:$0xff]  ;;  %v1450_v61 = vld [vmem:[%s10125_s23 + $0x70] sm:$0xff] }
  0x8c   : > { %9250 = vpow2.f32 %v8247_v29  ;;  %v1453_v62 = vld [vmem:[%s10125_s23 + $0x88] sm:$0xff]  ;;  %v1452_v1 = vld [vmem:[%s10125_s23 + $0x80] sm:$0xff]  ;;  %v8255_v4 = vmul.f32 -1.442695, %v1448_v57  ;;  %v8258_v5 = vmul.f32 -1.442695, %v1451_v58 }
  0x8d   : > { %9252 = vpow2.f32 %v8250_v33  ;;  %v1455_v6 = vld [vmem:[%s10125_s23 + $0x98] sm:$0xff]  ;;  %v8257_v9 = vmul.f32 -1.442695, %v1450_v61  ;;  %v8260_v10 = vmul.f32 -1.442695, %v1453_v62  ;;  %v1454_v11 = vld [vmem:[%s10125_s23 + $0x90] sm:$0xff] }
  0x8e   : > { %9254 = vpow2.f32 %v8249_v34  ;;  %v8259_v14 = vmul.f32 -1.442695, %v1452_v1  ;;  %v1457_v15 = vld [vmem:[%s10125_s23 + $0xa8] sm:$0xff]  ;;  %v1456_v16 = vld [vmem:[%s10125_s23 + $0xa0] sm:$0xff]  ;;  %v8262_v19 = vmul.f32 -1.442695, %v1455_v6 }
  0x8f   : > { %9256 = vpow2.f32 %v8252_v37  ;;  %v1459_v21 = vld [vmem:[%s10125_s23 + $0xb8] sm:$0xff]  ;;  %v1458_v22 = vld [vmem:[%s10125_s23 + $0xb0] sm:$0xff]  ;;  %v8261_v25 = vmul.f32 -1.442695, %v1454_v11  ;;  %v1461_v26 = vld [vmem:[%s10125_s23 + $0xc8] sm:$0xff]  ;;  %s8487_s15 = smul.u32 24, %s10352_s14 }
  0x90   : > { %9258 = vpow2.f32 %v8251_v39  ;;  %v1460_v27 = vld [vmem:[%s10125_s23 + $0xc0] sm:$0xff]  ;;  %v8264_v29 = vmul.f32 -1.442695, %v1457_v15  ;;  %v8263_v30 = vmul.f32 -1.442695, %v1456_v16  ;;  %v1463_v31 = vld [vmem:[%s10125_s23 + $0xd8] sm:$0xff] }
  0x91   : > { %v9241_v44 = vpop.eup %9240  ;;  %9260 = vpow2.f32 %v8254_v41  ;;  %v1462_v32 = vld [vmem:[%s10125_s23 + $0xd0] sm:$0xff]  ;;  %v8266_v34 = vmul.f32 -1.442695, %v1459_v21  ;;  %v10220_v35 = vmul.f32 -1.442695, %v1458_v22  ;;  %v1465_v36 = vld [vmem:[%s10125_s23 + $0xe8] sm:$0xff] }
  0x92   : > { %v9243_v45 = vpop.eup %9242  ;;  %v1822_v46 = vadd.f32 1.0, %v9241_v44  ;;  %9262 = vpow2.f32 %v8253_v42  ;;  %v1464_v37 = vld [vmem:[%s10125_s23 + $0xe0] sm:$0xff]  ;;  %v10224_v39 = vmul.f32 -1.442695, %v1461_v26  ;;  %v10226_v40 = vmul.f32 -1.442695, %v1460_v27 }
  0x93   : > { %v9245_v47 = vpop.eup %9244  ;;  %v1820_v48 = vadd.f32 1.0, %v9243_v45  ;;  %9264 = vpow2.f32 %v8256_v43  ;;  %v1467_v41 = vld [vmem:[%s10125_s23 + $0xf8] sm:$0xff]  ;;  %v1466_v42 = vld [vmem:[%s10125_s23 + $0xf0] sm:$0xff]  ;;  %v10230_v44 = vmul.f32 -1.442695, %v1463_v31  ;;  %v1477_v26 = vld [vmem:[%s10125_s23 + $0x148] sm:$0xff] }
  0x94   : > { %v9247_v49 = vpop.eup %9246  ;;  %9266 = vrcp.f32 %v1822_v46  ;;  %v1823_v50 = vadd.f32 1.0, %v9245_v47  ;;  %v10232_v45 = vmul.f32 -1.442695, %v1462_v32  ;;  %v1469_v46 = vld [vmem:[%s10125_s23 + $0x108] sm:$0xff]  ;;  %v1468_v47 = vld [vmem:[%s10125_s23 + $0x100] sm:$0xff]  ;;  %v1470_v57 = vld [vmem:[%s10125_s23 + $0x110] sm:$0xff] }
  0x95   : > { %v9249_v51 = vpop.eup %9248  ;;  %9268 = vrcp.f32 %v1820_v48  ;;  %v1821_v52 = vadd.f32 1.0, %v9247_v49  ;;  %v10236_v49 = vmul.f32 -1.442695, %v1465_v36  ;;  %v1503_v61 = vld [vmem:[%s10125_s23 + $0x218] sm:$0xff]  ;;  %v1502_v62 = vld [vmem:[%s10125_s23 + $0x210] sm:$0xff]  ;;  %v1509_v31 = vld [vmem:[%s10125_s23 + $0x248] sm:$0xff] }
  0x96   : > { %v9251_v53 = vpop.eup %9250  ;;  %9270 = vrcp.f32 %v1823_v50  ;;  %v1825_v54 = vadd.f32 1.0, %v9249_v51  ;;  %v10238_v50 = vmul.f32 -1.442695, %v1464_v37  ;;  %v1501_v51 = vld [vmem:[%s10125_s23 + $0x208] sm:$0xff]  ;;  %v10262_v6 = vmul.f32 -1.442695, %v1470_v57 }
  0x97   : > { %v9253_v55 = vpop.eup %9252  ;;  %9272 = vrcp.f32 %v1821_v52  ;;  %v1824_v56 = vadd.f32 1.0, %v9251_v53  ;;  %v1500_v52 = vld [vmem:[%s10125_s23 + $0x200] sm:$0xff]  ;;  %v10268_v11 = vmul.f32 -1.442695, %v1502_v62  ;;  %v1506_v22 = vld [vmem:[%s10125_s23 + $0x230] sm:$0xff]  ;;  %v1479_v36 = vld [vmem:[%s10125_s23 + $0x158] sm:$0xff] }
  0x98   : > { %v9255_v59 = vpop.eup %9254  ;;  %9274 = vrcp.f32 %v1825_v54  ;;  %v1827_v60 = vadd.f32 1.0, %v9253_v55  ;;  %v10242_v54 = vmul.f32 -1.442695, %v1467_v41  ;;  %v10244_v55 = vmul.f32 -1.442695, %v1466_v42  ;;  %v1478_v42 = vld [vmem:[%s10125_s23 + $0x150] sm:$0xff] }
  0x99   : > { %v9257_v63 = vpop.eup %9256  ;;  %9276 = vrcp.f32 %v1824_v56  ;;  %v1826_v0 = vadd.f32 1.0, %v9255_v59  ;;  %v1471_v56 = vld [vmem:[%s10125_s23 + $0x118] sm:$0xff]  ;;  %v10248_v59 = vmul.f32 -1.442695, %v1469_v46  ;;  %v10256_v1 = vmul.f32 -1.442695, %v1500_v52 }
  0x9a   : > { %v9259_v2 = vpop.eup %9258  ;;  %9278 = vrcp.f32 %v1827_v60  ;;  %v1829_v3 = vadd.f32 1.0, %v9257_v63  ;;  %v10250_v60 = vmul.f32 -1.442695, %v1468_v47  ;;  %v10300_v41 = vmul.f32 -1.442695, %v1477_v26  ;;  %v1481_v26 = vld [vmem:[%s10125_s23 + $0x168] sm:$0xff] }
  0x9b   : > { %v9261_v7 = vpop.eup %9260  ;;  %9280 = vrcp.f32 %v1826_v0  ;;  %v1828_v8 = vadd.f32 1.0, %v9259_v2  ;;  %v10254_v0 = vmul.f32 -1.442695, %v1501_v51  ;;  %v1473_v2 = vld [vmem:[%s10125_s23 + $0x128] sm:$0xff]  ;;  %s10391_s16 = scalar_lea.vmem [#allocation3], %s8487_s15 }
  0x9c   : > { %v9263_v12 = vpop.eup %9262  ;;  %9282 = vrcp.f32 %v1829_v3  ;;  %v1831_v13 = vadd.f32 1.0, %v9261_v7  ;;  %v1472_v3 = vld [vmem:[%s10125_s23 + $0x120] sm:$0xff]  ;;  %v1505_v7 = vld [vmem:[%s10125_s23 + $0x228] sm:$0xff]  ;;  %v10272_v15 = vmul.f32 -1.442695, %v1473_v2 }
  0x9d   : > { %v9265_v17 = vpop.eup %9264  ;;  %9284 = vrcp.f32 %v1828_v8  ;;  %v1830_v18 = vadd.f32 1.0, %v9263_v12  ;;  %v1504_v8 = vld [vmem:[%s10125_s23 + $0x220] sm:$0xff]  ;;  %v1475_v12 = vld [vmem:[%s10125_s23 + $0x138] sm:$0xff]  ;;  %v10274_v16 = vmul.f32 -1.442695, %v1472_v3 }
  0x9e   : > { %v9267_v23 = vpop.eup %9266  ;;  %9286 = vrcp.f32 %v1831_v13  ;;  %v1833_v24 = vadd.f32 1.0, %v9265_v17  ;;  %v1474_v13 = vld [vmem:[%s10125_s23 + $0x130] sm:$0xff]  ;;  %v1507_v17 = vld [vmem:[%s10125_s23 + $0x238] sm:$0xff]  ;;  %v10281_v21 = vmul.f32 -1.442695, %v1504_v8 }
  0x9f   : > { %v9269_v28 = vpop.eup %9268  ;;  %2216 = vperm.xlu1 %8895, %v9267_v23   ;;  %9288 = vrcp.f32 %v1830_v18 }
  0xa0   : > { %v9271_v33 = vpop.eup %9270  ;;  %2206 = vperm.xlu0 %8894, %v9269_v28   ;;  %9290 = vrcp.f32 %v1833_v24  ;;  %v10285_v24 = vmul.f32 -1.442695, %v1475_v12 }
  0xa1   : > { %v9273_v38 = vpop.eup %9272  ;;  %9292 = vpow2.f32 %v8255_v4 }
  0xa2   : > { %v9275_v43 = vpop.eup %9274  ;;  %9294 = vpow2.f32 %v8258_v5  ;;  %v10260_v5 = vmul.f32 -1.442695, %v1471_v56 }
  0xa3   : > { %v9277_v48 = vpop.eup %9276  ;;  %2221 = vperm.xlu1 %8895, %v9271_v33   ;;  %9296 = vpow2.f32 %v8257_v9 }
  0xa4   : > { %v9279_v53 = vpop.eup %9278  ;;  %2211 = vperm.xlu0 %8894, %v9273_v38   ;;  %9298 = vpow2.f32 %v8260_v10  ;;  %v10266_v10 = vmul.f32 -1.442695, %v1503_v61 }
  0xa5   : > { %v9281_v58 = vpop.eup %9280  ;;  %9300 = vpow2.f32 %v8259_v14 }
  0xa6   : > { %v9283_v63 = vpop.eup %9282  ;;  %9302 = vpow2.f32 %v8262_v19  ;;  %v10279_v19 = vmul.f32 -1.442695, %v1505_v7 }
  0xa7   : > { %v9285_v4 = vpop.eup %9284  ;;  %2231 = vperm.xlu1 %8895, %v9275_v43   ;;  %9304 = vpow2.f32 %v8261_v25  ;;  %v10287_v25 = vmul.f32 -1.442695, %v1474_v13  ;;  %v1511_v43 = vld [vmem:[%s10125_s23 + $0x258] sm:$0xff]  ;;  %v1510_v13 = vld [vmem:[%s10125_s23 + $0x250] sm:$0xff] }
  0xa8   : > { %v9287_v9 = vpop.eup %9286  ;;  %2226 = vperm.xlu0 %8894, %v9277_v48   ;;  %9306 = vpow2.f32 %v8264_v29  ;;  %v10291_v29 = vmul.f32 -1.442695, %v1507_v17  ;;  %v10306_v48 = vmul.f32 -1.442695, %v1509_v31  ;;  %v10314_v61 = vmul.f32 -1.442695, %v1511_v43 }
  0xa9   : > { %v9289_v14 = vpop.eup %9288  ;;  %9308 = vpow2.f32 %v8263_v30  ;;  %v1476_v30 = vld [vmem:[%s10125_s23 + $0x140] sm:$0xff] }
  0xaa   : > { %v10277_v18 = vpop.eup %9290  ;;  %9310 = vpow2.f32 %v8266_v34  ;;  %v10296_v34 = vmul.f32 -1.442695, %v1506_v22  ;;  %v10304_v47 = vmul.f32 -1.442695, %v1476_v30  ;;  %v1480_v30 = vld [vmem:[%s10125_s23 + $0x160] sm:$0xff] }
  0xab   : > { %v9293_v23 = vpop.eup %9292  ;;  %2241 = vperm.xlu1 %8895, %v9279_v53   ;;  %9312 = vpow2.f32 %v10220_v35  ;;  %v1508_v35 = vld [vmem:[%s10125_s23 + $0x240] sm:$0xff]  ;;  %v10310_v53 = vmul.f32 -1.442695, %v1479_v36  ;;  %v10325_v36 = vmul.f32 -1.442695, %v1481_v26 }
  0xac   : > { %v9295_v27 = vpop.eup %9294  ;;  %2236 = vperm.xlu0 %8894, %v9281_v58   ;;  %v1832_v28 = vadd.f32 1.0, %v9293_v23  ;;  %9314 = vpow2.f32 %v10224_v39  ;;  %v10308_v52 = vmul.f32 -1.442695, %v1508_v35  ;;  %v10312_v58 = vmul.f32 -1.442695, %v1478_v42 }
  0xad   : > { %v9297_v32 = vpop.eup %9296  ;;  %v1835_v33 = vadd.f32 1.0, %v9295_v27  ;;  %9316 = vpow2.f32 %v10226_v40  ;;  %v10330_v43 = vmul.f32 -1.442695, %v1480_v30  ;;  %v1515_v30 = vld [vmem:[%s10125_s23 + $0x278] sm:$0xff] }
  0xae   : > { %v9299_v37 = vpop.eup %9298  ;;  %9318 = vrcp.f32 %v1832_v28  ;;  %v1834_v38 = vadd.f32 1.0, %v9297_v32  ;;  %v10320_v32 = vmul.f32 -1.442695, %v1510_v13 }
  0xaf   : > { %v9301_v39 = vpop.eup %9300  ;;  %2251 = vperm.xlu1 %8895, %v9283_v63   ;;  %9320 = vrcp.f32 %v1835_v33  ;;  %v1837_v46 = vadd.f32 1.0, %v9299_v37 }
  0xb0   : > { %v9303_v40 = vpop.eup %9302  ;;  %2246 = vperm.xlu0 %8894, %v9285_v4   ;;  %9322 = vrcp.f32 %v1834_v38  ;;  %v1836_v51 = vadd.f32 1.0, %v9301_v39  ;;  %v1512_v38 = vld [vmem:[%s10125_s23 + $0x260] sm:$0xff] }
  0xb1   : > { %v9305_v56 = vpop.eup %9304  ;;  %9324 = vrcp.f32 %v1837_v46  ;;  %v1839_v57 = vadd.f32 1.0, %v9303_v40 }
  0xb2   : > { %v9307_v62 = vpop.eup %9306  ;;  %9326 = vrcp.f32 %v1836_v51  ;;  %v1838_v63 = vadd.f32 1.0, %v9305_v56 }
  0xb3   : > { %v9309_v2 = vpop.eup %9308  ;;  %2261 = vperm.xlu1 %8895, %v9287_v9   ;;  %9328 = vrcp.f32 %v1839_v57  ;;  %v1841_v3 = vadd.f32 1.0, %v9307_v62 }
  0xb4   : > { %v9311_v4 = vpop.eup %9310  ;;  %2256 = vperm.xlu0 %8894, %v9289_v14   ;;  %9330 = vrcp.f32 %v1838_v63  ;;  %v1840_v7 = vadd.f32 1.0, %v9309_v2 }
  0xb5   : > { %v9313_v8 = vpop.eup %9312  ;;  %9332 = vrcp.f32 %v1841_v3  ;;  %v1843_v12 = vadd.f32 1.0, %v9311_v4 }
  0xb6   : > { %v9315_v17 = vpop.eup %9314  ;;  %9334 = vrcp.f32 %v1840_v7  ;;  %v1842_v22 = vadd.f32 1.0, %v9313_v8 }
  0xb7   : > { %v9317_v23 = vpop.eup %9316  ;;  %2271 = vperm.xlu1 %8895, %v10277_v18   ;;  %9336 = vrcp.f32 %v1843_v12  ;;  %v1845_v9 = vadd.f32 1.0, %v9315_v17  ;;  %v1513_v18 = vld [vmem:[%s10125_s23 + $0x268] sm:$0xff] }
  0xb8   : > { %v9319_v27 = vpop.eup %9318  ;;  %9338 = vrcp.f32 %v1842_v22  ;;  %v1844_v14 = vadd.f32 1.0, %v9317_v23 }
  0xb9   : > { %v9321_v28 = vpop.eup %9320  ;;  %2266 = vperm.xlu0 %8894, %v9319_v27   ;;  %9340 = vrcp.f32 %v1845_v9  ;;  %v1482_v9 = vld [vmem:[%s10125_s23 + $0x170] sm:$0xff] }
  0xba   : > { %v9323_v31 = vpop.eup %9322  ;;  %9342 = vrcp.f32 %v1844_v14 }
  0xbb   : > { %v9325_v33 = vpop.eup %9324  ;;  %2281 = vperm.xlu1 %8895, %v9321_v28   ;;  %9344 = vpow2.f32 %v10230_v44  ;;  %v1483_v44 = vld [vmem:[%s10125_s23 + $0x178] sm:$0xff] }
  0xbc   : > { %v9327_v35 = vpop.eup %9326  ;;  %9346 = vpow2.f32 %v10232_v45  ;;  %v10335_v45 = vmul.f32 -1.442695, %v1513_v18  ;;  %v10343_v56 = vmul.f32 -1.442695, %v1483_v44 }
  0xbd   : > { %v9329_v37 = vpop.eup %9328  ;;  %2276 = vperm.xlu0 %8894, %v9323_v31   ;;  %9348 = vpow2.f32 %v10236_v49 }
  0xbe   : > { %v9331_v42 = vpop.eup %9330  ;;  %9350 = vpow2.f32 %v10238_v50  ;;  %v10339_v50 = vmul.f32 -1.442695, %v1512_v38  ;;  %v10354_v38 = vmul.f32 -1.442695, %v1482_v9  ;;  %v8922_v9 = vld [vmem:[%s10135_s11 + $0x94] ss:$12 sps:$4 sm:$0xff]  }
  0xbf   : > { %v9333_v39 = vpop.eup %9332  ;;  %2291 = vperm.xlu1 %8895, %v9325_v33   ;;  %9352 = vpow2.f32 %v10242_v54  ;;  %1359 = vst [vmem:[%s10391_s16 + $0x98] sm:$0xff] %v8922_v9  ;;  %v8959_v9 = vld [vmem:[%s10135_s11 + $0x170] ss:$12 sps:$4 sm:$0xff]  }
  0xc0   : > { %v9335_v46 = vpop.eup %9334  ;;  %9354 = vpow2.f32 %v10244_v55  ;;  %1387 = vst [vmem:[%s10391_s16 + $0x178] sm:$0xff] %v8959_v9 }
  0xc1   : > { %v9337_v40 = vpop.eup %9336  ;;  %2286 = vperm.xlu0 %8894, %v9327_v35   ;;  %9356 = vpow2.f32 %v10248_v59  ;;  %v1514_v35 = vld [vmem:[%s10125_s23 + $0x270] sm:$0xff] }
  0xc2   : > { %v9339_v49 = vpop.eup %9338  ;;  %9358 = vpow2.f32 %v10250_v60 }
  0xc3   : > { %v9341_v51 = vpop.eup %9340  ;;  %2301 = vperm.xlu1 %8895, %v9329_v37   ;;  %9360 = vpow2.f32 %v10254_v0 }
  0xc4   : > { %v9343_v54 = vpop.eup %9342  ;;  %9362 = vpow2.f32 %v10256_v1 }
  0xc5   : > { %v9345_v55 = vpop.eup %9344  ;;  %2296 = vperm.xlu0 %8894, %v9331_v42   ;;  %9364 = vpow2.f32 %v10260_v5 }
  0xc6   : > { %v9347_v57 = vpop.eup %9346  ;;  %v1847_v59 = vadd.f32 1.0, %v9345_v55  ;;  %9366 = vpow2.f32 %v10262_v6  ;;  %v8898_v55 = vld [vmem:[%s10135_s11 + $0x4] ss:$12 sps:$4 sm:$0xff]  }
  0xc7   : > { %v9349_v60 = vpop.eup %9348  ;;  %2311 = vperm.xlu1 %8895, %v9333_v39   ;;  %v1846_v62 = vadd.f32 1.0, %v9347_v57  ;;  %9368 = vpow2.f32 %v10266_v10  ;;  %v1485_v39 = vld [vmem:[%s10125_s23 + $0x188] sm:$0xff]  ;;  %1341 = vst [vmem:[%s10391_s16 + $0x8] sm:$0xff] %v8898_v55 }
  0xc8   : > { %v9351_v63 = vpop.eup %9350  ;;  %9370 = vrcp.f32 %v1847_v59  ;;  %v1849_v0 = vadd.f32 1.0, %v9349_v60  ;;  %v8899_v57 = vld [vmem:[%s10135_s11 + $0x8] ss:$12 sps:$4 sm:$0xff]   ;;  %v8935_v55 = vld [vmem:[%s10135_s11 + $0xe0] ss:$12 sps:$4 sm:$0xff]  }
  0xc9   : > { %v9353_v2 = vpop.eup %9352  ;;  %2306 = vperm.xlu0 %8894, %v9335_v46   ;;  %9372 = vrcp.f32 %v1846_v62  ;;  %v1848_v1 = vadd.f32 1.0, %v9351_v63  ;;  %v10359_v46 = vmul.f32 -1.442695, %v1515_v30  ;;  %v8902_v60 = vld [vmem:[%s10135_s11 + $0x1c] ss:$12 sps:$4 sm:$0xff]   ;;  %1342 = vst [vmem:[%s10391_s16 + $0x10] sm:$0xff] %v8899_v57 }
  0xca   : > { %v9355_v3 = vpop.eup %9354  ;;  %9374 = vrcp.f32 %v1849_v0  ;;  %v1851_v4 = vadd.f32 1.0, %v9353_v2  ;;  %v8903_v62 = vld [vmem:[%s10135_s11 + $0x20] ss:$12 sps:$4 sm:$0xff]   ;;  %v8904_v63 = vld [vmem:[%s10135_s11 + $0x30] ss:$12 sps:$4 sm:$0xff]   ;;  %1344 = vst [vmem:[%s10391_s16 + $0x20] sm:$0xff] %v8902_v60 }
  0xcb   : > { %v9357_v5 = vpop.eup %9356  ;;  %2321 = vperm.xlu1 %8895, %v9337_v40   ;;  %9376 = vrcp.f32 %v1848_v1  ;;  %v1850_v6 = vadd.f32 1.0, %v9355_v3  ;;  %v8907_v0 = vld [vmem:[%s10135_s11 + $0x38] ss:$12 sps:$4 sm:$0xff]   ;;  %v8911_v1 = vld [vmem:[%s10135_s11 + $0x50] ss:$12 sps:$4 sm:$0xff]   ;;  %1345 = vst [vmem:[%s10391_s16 + $0x28] sm:$0xff] %v8903_v62 }
  0xcc   : > { %v9359_v7 = vpop.eup %9358  ;;  %9378 = vrcp.f32 %v1851_v4  ;;  %v1853_v8 = vadd.f32 1.0, %v9357_v5  ;;  %v8910_v2 = vld [vmem:[%s10135_s11 + $0x4c] ss:$12 sps:$4 sm:$0xff]   ;;  %1346 = vst [vmem:[%s10391_s16 + $0x30] sm:$0xff] %v8904_v63  ;;  %1348 = vst [vmem:[%s10391_s16 + $0x40] sm:$0xff] %v8907_v0 }
  0xcd   : > { %v9361_v10 = vpop.eup %9360  ;;  %2316 = vperm.xlu0 %8894, %v9339_v49   ;;  %9380 = vrcp.f32 %v1850_v6  ;;  %v1852_v12 = vadd.f32 1.0, %v9359_v7  ;;  %v8912_v5 = vld [vmem:[%s10135_s11 + $0x60] ss:$12 sps:$4 sm:$0xff]   ;;  %v8914_v6 = vld [vmem:[%s10135_s11 + $0x64] ss:$12 sps:$4 sm:$0xff]   ;;  %1350 = vst [vmem:[%s10391_s16 + $0x50] sm:$0xff] %v8910_v2 }
  0xce   : > { %v9363_v13 = vpop.eup %9362  ;;  %9382 = vrcp.f32 %v1853_v8  ;;  %v1885_v17 = vadd.f32 1.0, %v9361_v10  ;;  %v8915_v8 = vld [vmem:[%s10135_s11 + $0x68] ss:$12 sps:$4 sm:$0xff]   ;;  %v8916_v10 = vld [vmem:[%s10135_s11 + $0x78] ss:$12 sps:$4 sm:$0xff]   ;;  %1351 = vst [vmem:[%s10391_s16 + $0x58] sm:$0xff] %v8911_v1 }
  0xcf   : > { %v9365_v22 = vpop.eup %9364  ;;  %2331 = vperm.xlu1 %8895, %v9341_v51   ;;  %9384 = vrcp.f32 %v1852_v12  ;;  %v1884_v23 = vadd.f32 1.0, %v9363_v13  ;;  %v10364_v51 = vmul.f32 -1.442695, %v1514_v35  ;;  %v8918_v13 = vld [vmem:[%s10135_s11 + $0x7c] ss:$12 sps:$4 sm:$0xff]   ;;  %1352 = vst [vmem:[%s10391_s16 + $0x60] sm:$0xff] %v8912_v5 }
  0xd0   : > { %v9367_v26 = vpop.eup %9366  ;;  %9386 = vrcp.f32 %v1885_v17  ;;  %v1855_v27 = vadd.f32 1.0, %v9365_v22  ;;  %v8919_v17 = vld [vmem:[%s10135_s11 + $0x80] ss:$12 sps:$4 sm:$0xff]   ;;  %1353 = vst [vmem:[%s10391_s16 + $0x68] sm:$0xff] %v8914_v6  ;;  %1354 = vst [vmem:[%s10391_s16 + $0x70] sm:$0xff] %v8915_v8 }
  0xd1   : > { %v9369_v14 = vpop.eup %9368  ;;  %2326 = vperm.xlu0 %8894, %v9343_v54   ;;  %9388 = vrcp.f32 %v1884_v23  ;;  %v1854_v28 = vadd.f32 1.0, %v9367_v26  ;;  %v8920_v23 = vld [vmem:[%s10135_s11 + $0x90] ss:$12 sps:$4 sm:$0xff]   ;;  %1355 = vst [vmem:[%s10391_s16 + $0x78] sm:$0xff] %v8916_v10  ;;  %1356 = vst [vmem:[%s10391_s16 + $0x80] sm:$0xff] %v8918_v13 }
  0xd2   : > { %v9371_v31 = vpop.eup %9370  ;;  %9390 = vrcp.f32 %v1855_v27  ;;  %v1887_v33 = vadd.f32 1.0, %v9369_v14  ;;  %v8923_v14 = vld [vmem:[%s10135_s11 + $0x98] ss:$12 sps:$4 sm:$0xff]   ;;  %1357 = vst [vmem:[%s10391_s16 + $0x88] sm:$0xff] %v8919_v17  ;;  %1358 = vst [vmem:[%s10391_s16 + $0x90] sm:$0xff] %v8920_v23 }
  0xd3   : > { %v9373_v18 = vpop.eup %9372  ;;  %2341 = vperm.xlu1 %8895, %v9371_v31   ;;  %9392 = vrcp.f32 %v1854_v28  ;;  %v8924_v28 = vld [vmem:[%s10135_s11 + $0xa8] ss:$12 sps:$4 sm:$0xff]   ;;  %1360 = vst [vmem:[%s10391_s16 + $0xa0] sm:$0xff] %v8923_v14  ;;  %1369 = vst [vmem:[%s10391_s16 + $0xe8] sm:$0xff] %v8935_v55  ;;  %v8943_v2 = vld [vmem:[%s10135_s11 + $0x110] ss:$12 sps:$4 sm:$0xff]  }
  0xd4   : > { %v9375_v37 = vpop.eup %9374  ;;  %9394 = vrcp.f32 %v1887_v33  ;;  %v8926_v33 = vld [vmem:[%s10135_s11 + $0xac] ss:$12 sps:$4 sm:$0xff]   ;;  %1361 = vst [vmem:[%s10391_s16 + $0xa8] sm:$0xff] %v8924_v28  ;;  %v8938_v60 = vld [vmem:[%s10135_s11 + $0xf4] ss:$12 sps:$4 sm:$0xff]   ;;  %1375 = vst [vmem:[%s10391_s16 + $0x118] sm:$0xff] %v8943_v2 }
  0xd5   : > { %v9377_v42 = vpop.eup %9376  ;;  %2336 = vperm.xlu0 %8894, %v9373_v18   ;;  %9396 = vpow2.f32 %v10268_v11  ;;  %v8927_v18 = vld [vmem:[%s10135_s11 + $0xb0] ss:$12 sps:$4 sm:$0xff]   ;;  %1362 = vst [vmem:[%s10391_s16 + $0xb0] sm:$0xff] %v8926_v33  ;;  %v8940_v0 = vld [vmem:[%s10135_s11 + $0x108] ss:$12 sps:$4 sm:$0xff]   ;;  %1371 = vst [vmem:[%s10391_s16 + $0xf8] sm:$0xff] %v8938_v60 }
  0xd6   : > { %v9379_v44 = vpop.eup %9378  ;;  %9398 = vpow2.f32 %v10272_v15  ;;  %1363 = vst [vmem:[%s10391_s16 + $0xb8] sm:$0xff] %v8927_v18  ;;  %v8946_v5 = vld [vmem:[%s10135_s11 + $0x124] ss:$12 sps:$4 sm:$0xff]   ;;  %1373 = vst [vmem:[%s10391_s16 + $0x108] sm:$0xff] %v8940_v0  ;;  %v8947_v6 = vld [vmem:[%s10135_s11 + $0x128] ss:$12 sps:$4 sm:$0xff]  }
  0xd7   : > { %v9381_v40 = vpop.eup %9380  ;;  %2351 = vperm.xlu1 %8895, %v9375_v37   ;;  %9400 = vpow2.f32 %v10274_v16  ;;  %v10368_v16 = vmul.f32 -1.442695, %v1485_v39  ;;  %v8930_v39 = vld [vmem:[%s10135_s11 + $0xc4] ss:$12 sps:$4 sm:$0xff]   ;;  %v8951_v10 = vld [vmem:[%s10135_s11 + $0x140] ss:$12 sps:$4 sm:$0xff]  }
  0xd8   : > { %v9383_v49 = vpop.eup %9382  ;;  %9402 = vpow2.f32 %v10279_v19  ;;  %1365 = vst [vmem:[%s10391_s16 + $0xc8] sm:$0xff] %v8930_v39  ;;  %1377 = vst [vmem:[%s10391_s16 + $0x128] sm:$0xff] %v8946_v5  ;;  %v8955_v17 = vld [vmem:[%s10135_s11 + $0x158] ss:$12 sps:$4 sm:$0xff]   ;;  %v8963_v14 = vld [vmem:[%s10135_s11 + $0x188] ss:$12 sps:$4 sm:$0xff]  }
  0xd9   : > { %v9385_v11 = vpop.eup %9384  ;;  %2346 = vperm.xlu0 %8894, %v9377_v42   ;;  %9404 = vpow2.f32 %v10281_v21  ;;  %v8896_v21 = vld [vmem:[%s10135_s11] ss:$12 sps:$4 sm:$0xff]   ;;  %1378 = vst [vmem:[%s10391_s16 + $0x130] sm:$0xff] %v8947_v6  ;;  %1381 = vst [vmem:[%s10391_s16 + $0x148] sm:$0xff] %v8951_v10  ;;  %v8964_v28 = vld [vmem:[%s10135_s11 + $0x198] ss:$12 sps:$4 sm:$0xff]  }
  0xda   : > { %v9387_v15 = vpop.eup %9386  ;;  %9406 = vpow2.f32 %v10285_v24  ;;  %v8900_v24 = vld [vmem:[%s10135_s11 + $0x18] ss:$12 sps:$4 sm:$0xff]   ;;  %1340 = vst [vmem:[%s10391_s16] sm:$0xff] %v8896_v21  ;;  %v8928_v42 = vld [vmem:[%s10135_s11 + $0xc0] ss:$12 sps:$4 sm:$0xff]   ;;  %v8934_v21 = vld [vmem:[%s10135_s11 + $0xdc] ss:$12 sps:$4 sm:$0xff]  }
  0xdb   : > { %v10370_v54 = vpop.eup %9388  ;;  %2361 = vperm.xlu1 %8895, %v9379_v44   ;;  %9408 = vpow2.f32 %v10287_v25  ;;  %1343 = vst [vmem:[%s10391_s16 + $0x18] sm:$0xff] %v8900_v24  ;;  %1364 = vst [vmem:[%s10391_s16 + $0xc0] sm:$0xff] %v8928_v42  ;;  %v8936_v24 = vld [vmem:[%s10135_s11 + $0xf0] ss:$12 sps:$4 sm:$0xff]   ;;  %v8970_v18 = vld [vmem:[%s10135_s11 + $0x1b4] ss:$12 sps:$4 sm:$0xff]  }
  0xdc   : > { %v10373_v19 = vpop.eup %9390  ;;  %9410 = vpow2.f32 %v10291_v29  ;;  %v8906_v29 = vld [vmem:[%s10135_s11 + $0x34] ss:$12 sps:$4 sm:$0xff]   ;;  %1368 = vst [vmem:[%s10391_s16 + $0xe0] sm:$0xff] %v8934_v21  ;;  %1370 = vst [vmem:[%s10391_s16 + $0xf0] sm:$0xff] %v8936_v24  ;;  %v8968_v33 = vld [vmem:[%s10135_s11 + $0x1b0] ss:$12 sps:$4 sm:$0xff]  }
  0xdd   : > { %v10379_v59 = vpop.eup %9392  ;;  %2356 = vperm.xlu0 %8894, %v9381_v40   ;;  %9412 = vpow2.f32 %v10296_v34  ;;  %1347 = vst [vmem:[%s10391_s16 + $0x38] sm:$0xff] %v8906_v29  ;;  %v8939_v29 = vld [vmem:[%s10135_s11 + $0xf8] ss:$12 sps:$4 sm:$0xff]   ;;  %1384 = vst [vmem:[%s10391_s16 + $0x160] sm:$0xff] %v8955_v17  ;;  %v8975_v39 = vld [vmem:[%s10135_s11 + $0x1d0] ss:$12 sps:$4 sm:$0xff]  }
  0xde   : > { %v10385_v25 = vpop.eup %9394  ;;  %9414 = vpow2.f32 %v10300_v41  ;;  %v8908_v41 = vld [vmem:[%s10135_s11 + $0x48] ss:$12 sps:$4 sm:$0xff]   ;;  %1372 = vst [vmem:[%s10391_s16 + $0x100] sm:$0xff] %v8939_v29  ;;  %1390 = vst [vmem:[%s10391_s16 + $0x190] sm:$0xff] %v8963_v14  ;;  %v8984_v21 = vld [vmem:[%s10135_s11 + $0x210] ss:$12 sps:$4 sm:$0xff]  }
  0xdf   : > { %v9397_v34 = vpop.eup %9396  ;;  %2371 = vperm.xlu1 %8895, %v9383_v49   ;;  %9416 = vpow2.f32 %v10304_v47  ;;  %1349 = vst [vmem:[%s10391_s16 + $0x48] sm:$0xff] %v8908_v41  ;;  %v8931_v49 = vld [vmem:[%s10135_s11 + $0xc8] ss:$12 sps:$4 sm:$0xff]   ;;  %v8942_v41 = vld [vmem:[%s10135_s11 + $0x10c] ss:$12 sps:$4 sm:$0xff]   ;;  %1391 = vst [vmem:[%s10391_s16 + $0x198] sm:$0xff] %v8964_v28 }
  0xe0   : > { %v9399_v3 = vpop.eup %9398  ;;  %v1886_v4 = vadd.f32 1.0, %v9397_v34  ;;  %9418 = vpow2.f32 %v10306_v48  ;;  %1366 = vst [vmem:[%s10391_s16 + $0xd0] sm:$0xff] %v8931_v49  ;;  %1374 = vst [vmem:[%s10391_s16 + $0x110] sm:$0xff] %v8942_v41  ;;  %v8979_v49 = vld [vmem:[%s10135_s11 + $0x1e8] ss:$12 sps:$4 sm:$0xff]  }
  0xe1   : > { %v9401_v47 = vpop.eup %9400  ;;  %2366 = vperm.xlu0 %8894, %v9385_v11   ;;  %v1857_v7 = vadd.f32 1.0, %v9399_v3  ;;  %9420 = vpow2.f32 %v10308_v52  ;;  %v8932_v11 = vld [vmem:[%s10135_s11 + $0xd8] ss:$12 sps:$4 sm:$0xff]   ;;  %1394 = vst [vmem:[%s10391_s16 + $0x1b0] sm:$0xff] %v8968_v33  ;;  %1395 = vst [vmem:[%s10391_s16 + $0x1b8] sm:$0xff] %v8970_v18 }
  0xe2   : > { %v9403_v48 = vpop.eup %9402  ;;  %9422 = vrcp.f32 %v1886_v4  ;;  %v1856_v12 = vadd.f32 1.0, %v9401_v47  ;;  %1367 = vst [vmem:[%s10391_s16 + $0xd8] sm:$0xff] %v8932_v11  ;;  %v8944_v4 = vld [vmem:[%s10135_s11 + $0x120] ss:$12 sps:$4 sm:$0xff]   ;;  %v8948_v47 = vld [vmem:[%s10135_s11 + $0x138] ss:$12 sps:$4 sm:$0xff]  }
  0xe3   : > { %v9405_v52 = vpop.eup %9404  ;;  %2531 = vperm.xlu1 %8895, %v9387_v15   ;;  %9424 = vrcp.f32 %v1857_v7  ;;  %v1889_v22 = vadd.f32 1.0, %v9403_v48  ;;  %v8950_v7 = vld [vmem:[%s10135_s11 + $0x13c] ss:$12 sps:$4 sm:$0xff]   ;;  %1376 = vst [vmem:[%s10391_s16 + $0x120] sm:$0xff] %v8944_v4  ;;  %1379 = vst [vmem:[%s10391_s16 + $0x138] sm:$0xff] %v8948_v47  ;;  %v1484_v18 = vld [vmem:[%s10125_s23 + $0x180] sm:$0xff] }
  0xe4   : > { %v9407_v26 = vpop.eup %9406  ;;  %9426 = vrcp.f32 %v1856_v12  ;;  %v1888_v27 = vadd.f32 1.0, %v9405_v52  ;;  %v8952_v48 = vld [vmem:[%s10135_s11 + $0x150] ss:$12 sps:$4 sm:$0xff]   ;;  %v8954_v12 = vld [vmem:[%s10135_s11 + $0x154] ss:$12 sps:$4 sm:$0xff]   ;;  %1380 = vst [vmem:[%s10391_s16 + $0x140] sm:$0xff] %v8950_v7 }
  0xe5   : > { %v9409_v30 = vpop.eup %9408  ;;  %2526 = vperm.xlu0 %8894, %v10370_v54   ;;  %9428 = vrcp.f32 %v1889_v22  ;;  %v1859_v31 = vadd.f32 1.0, %v9407_v26  ;;  %v8956_v52 = vld [vmem:[%s10135_s11 + $0x168] ss:$12 sps:$4 sm:$0xff]   ;;  %v8958_v22 = vld [vmem:[%s10135_s11 + $0x16c] ss:$12 sps:$4 sm:$0xff]   ;;  %1382 = vst [vmem:[%s10391_s16 + $0x150] sm:$0xff] %v8952_v48 }
  0xe6   : > { %v9411_v35 = vpop.eup %9410  ;;  %9430 = vrcp.f32 %v1888_v27  ;;  %v1858_v37 = vadd.f32 1.0, %v9409_v30  ;;  %v8960_v26 = vld [vmem:[%s10135_s11 + $0x180] ss:$12 sps:$4 sm:$0xff]   ;;  %v8962_v27 = vld [vmem:[%s10135_s11 + $0x184] ss:$12 sps:$4 sm:$0xff]   ;;  %1383 = vst [vmem:[%s10391_s16 + $0x158] sm:$0xff] %v8954_v12 }
  0xe7   : > { %v9413_v44 = vpop.eup %9412  ;;  %2381 = vperm.xlu1 %8895, %v10373_v19   ;;  %9432 = vrcp.f32 %v1859_v31  ;;  %v1891_v40 = vadd.f32 1.0, %v9411_v35  ;;  %1385 = vst [vmem:[%s10391_s16 + $0x168] sm:$0xff] %v8956_v52  ;;  %1386 = vst [vmem:[%s10391_s16 + $0x170] sm:$0xff] %v8958_v22  ;;  %v8967_v31 = vld [vmem:[%s10135_s11 + $0x1a0] ss:$12 sps:$4 sm:$0xff]  }
  0xe8   : > { %v9415_v15 = vpop.eup %9414  ;;  %9434 = vrcp.f32 %v1858_v37  ;;  %v1890_v54 = vadd.f32 1.0, %v9413_v44  ;;  %1388 = vst [vmem:[%s10391_s16 + $0x180] sm:$0xff] %v8960_v26  ;;  %1389 = vst [vmem:[%s10391_s16 + $0x188] sm:$0xff] %v8962_v27  ;;  %v8971_v35 = vld [vmem:[%s10135_s11 + $0x1b8] ss:$12 sps:$4 sm:$0xff]  }
  0xe9   : > { %v9417_v19 = vpop.eup %9416  ;;  %2376 = vperm.xlu0 %8894, %v10379_v59   ;;  %9436 = vrcp.f32 %v1891_v40  ;;  %v1861_v57 = vadd.f32 1.0, %v9415_v15  ;;  %v8972_v37 = vld [vmem:[%s10135_s11 + $0x1c8] ss:$12 sps:$4 sm:$0xff]   ;;  %v8976_v44 = vld [vmem:[%s10135_s11 + $0x1e0] ss:$12 sps:$4 sm:$0xff]   ;;  %1393 = vst [vmem:[%s10391_s16 + $0x1a8] sm:$0xff] %v8967_v31 }
  0xea   : > { %v9419_v62 = vpop.eup %9418  ;;  %9438 = vrcp.f32 %v1890_v54  ;;  %v1860_v63 = vadd.f32 1.0, %v9417_v19  ;;  %v8980_v11 = vld [vmem:[%s10135_s11 + $0x1f8] ss:$12 sps:$4 sm:$0xff]   ;;  %1396 = vst [vmem:[%s10391_s16 + $0x1c0] sm:$0xff] %v8971_v35  ;;  %1397 = vst [vmem:[%s10391_s16 + $0x1c8] sm:$0xff] %v8972_v37 }
  0xeb   : > { %v9421_v59 = vpop.eup %9420  ;;  %2541 = vperm.xlu1 %8895, %v10385_v25   ;;  %9440 = vrcp.f32 %v1861_v57  ;;  %v1893_v34 = vadd.f32 1.0, %v9419_v62  ;;  %v8983_v54 = vld [vmem:[%s10135_s11 + $0x200] ss:$12 sps:$4 sm:$0xff]   ;;  %1399 = vst [vmem:[%s10391_s16 + $0x1d8] sm:$0xff] %v8975_v39  ;;  %1400 = vst [vmem:[%s10391_s16 + $0x1e0] sm:$0xff] %v8976_v44 }
  0xec   : > { %v9423_v1 = vpop.eup %9422  ;;  %9442 = vrcp.f32 %v1860_v63  ;;  %v1892_v3 = vadd.f32 1.0, %v9421_v59  ;;  %v8987_v19 = vld [vmem:[%s10135_s11 + $0x218] ss:$12 sps:$4 sm:$0xff]   ;;  %v8988_v57 = vld [vmem:[%s10135_s11 + $0x228] ss:$12 sps:$4 sm:$0xff]   ;;  %1402 = vst [vmem:[%s10391_s16 + $0x1f0] sm:$0xff] %v8979_v49 }
  0xed   : > { %v9425_v25 = vpop.eup %9424  ;;  %2536 = vperm.xlu0 %8894, %v9423_v1   ;;  %9444 = vrcp.f32 %v1893_v34  ;;  %1403 = vst [vmem:[%s10391_s16 + $0x1f8] sm:$0xff] %v8980_v11  ;;  %v8991_v60 = vld [vmem:[%s10135_s11 + $0x230] ss:$12 sps:$4 sm:$0xff]   ;;  %v8992_v62 = vld [vmem:[%s10135_s11 + $0x240] ss:$12 sps:$4 sm:$0xff]   ;;  %1405 = vst [vmem:[%s10391_s16 + $0x208] sm:$0xff] %v8983_v54 }
  0xee   : > { %v9427_v8 = vpop.eup %9426  ;;  %9446 = vrcp.f32 %v1892_v3  ;;  %v8994_v63 = vld [vmem:[%s10135_s11 + $0x244] ss:$12 sps:$4 sm:$0xff]   ;;  %1406 = vst [vmem:[%s10391_s16 + $0x210] sm:$0xff] %v8984_v21  ;;  %v8995_v29 = vld [vmem:[%s10135_s11 + $0x248] ss:$12 sps:$4 sm:$0xff]   ;;  %1408 = vst [vmem:[%s10391_s16 + $0x220] sm:$0xff] %v8987_v19 }
  0xef   : > { %v9429_v13 = vpop.eup %9428  ;;  %2391 = vperm.xlu1 %8895, %v9425_v25   ;;  %9448 = vpow2.f32 %v10310_v53  ;;  %v8996_v0 = vld [vmem:[%s10135_s11 + $0x258] ss:$12 sps:$4 sm:$0xff]   ;;  %v8998_v59 = vld [vmem:[%s10135_s11 + $0x25c] ss:$12 sps:$4 sm:$0xff]   ;;  %1409 = vst [vmem:[%s10391_s16 + $0x228] sm:$0xff] %v8988_v57  ;;  %1411 = vst [vmem:[%s10391_s16 + $0x238] sm:$0xff] %v8991_v60 }
  0xf0   : > { %v9431_v23 = vpop.eup %9430  ;;  %9450 = vpow2.f32 %v10312_v58  ;;  %v8966_v58 = vld [vmem:[%s10135_s11 + $0x19c] ss:$12 sps:$4 sm:$0xff]   ;;  %v8999_v41 = vld [vmem:[%s10135_s11 + $0x260] ss:$12 sps:$4 sm:$0xff]   ;;  %1412 = vst [vmem:[%s10391_s16 + $0x240] sm:$0xff] %v8992_v62  ;;  %1413 = vst [vmem:[%s10391_s16 + $0x248] sm:$0xff] %v8994_v63 }
  0xf1   : > { %v9433_v53 = vpop.eup %9432  ;;  %2386 = vperm.xlu0 %8894, %v9427_v8   ;;  %9452 = vpow2.f32 %v10314_v61  ;;  %1392 = vst [vmem:[%s10391_s16 + $0x1a0] sm:$0xff] %v8966_v58  ;;  %v9000_v2 = vld [vmem:[%s10135_s11 + $0x270] ss:$12 sps:$4 sm:$0xff]   ;;  %v9002_v3 = vld [vmem:[%s10135_s11 + $0x274] ss:$12 sps:$4 sm:$0xff]   ;;  %1414 = vst [vmem:[%s10391_s16 + $0x250] sm:$0xff] %v8995_v29 }
  0xf2   : > { %v9435_v30 = vpop.eup %9434  ;;  %9454 = vpow2.f32 %v10320_v32  ;;  %v8974_v32 = vld [vmem:[%s10135_s11 + $0x1cc] ss:$12 sps:$4 sm:$0xff]   ;;  %1415 = vst [vmem:[%s10391_s16 + $0x258] sm:$0xff] %v8996_v0  ;;  %1416 = vst [vmem:[%s10391_s16 + $0x260] sm:$0xff] %v8998_v59  ;;  %v9004_v25 = vld [vmem:[%s10135_s11 + $0x288] ss:$12 sps:$4 sm:$0xff]  }
  0xf3   : > { %v10501_v61 = vpop.eup %9436  ;;  %2551 = vperm.xlu1 %8895, %v9429_v13   ;;  %9456 = vpow2.f32 %v10325_v36  ;;  %v8978_v36 = vld [vmem:[%s10135_s11 + $0x1e4] ss:$12 sps:$4 sm:$0xff]   ;;  %1398 = vst [vmem:[%s10391_s16 + $0x1d0] sm:$0xff] %v8974_v32  ;;  %v9006_v6 = vld [vmem:[%s10135_s11 + $0x28c] ss:$12 sps:$4 sm:$0xff]   ;;  %1417 = vst [vmem:[%s10391_s16 + $0x268] sm:$0xff] %v8999_v41 }
  0xf4   : > { %v10510_v42 = vpop.eup %9438  ;;  %9458 = vpow2.f32 %v10330_v43  ;;  %v8982_v43 = vld [vmem:[%s10135_s11 + $0x1fc] ss:$12 sps:$4 sm:$0xff]   ;;  %1401 = vst [vmem:[%s10391_s16 + $0x1e8] sm:$0xff] %v8978_v36  ;;  %v9003_v4 = vld [vmem:[%s10135_s11 + $0x278] ss:$12 sps:$4 sm:$0xff]   ;;  %1418 = vst [vmem:[%s10391_s16 + $0x270] sm:$0xff] %v9000_v2 }
  0xf5   : > { %v10519_v40 = vpop.eup %9440  ;;  %2546 = vperm.xlu0 %8894, %v9431_v23   ;;  %9460 = vpow2.f32 %v10335_v45  ;;  %v8986_v45 = vld [vmem:[%s10135_s11 + $0x214] ss:$12 sps:$4 sm:$0xff]   ;;  %1404 = vst [vmem:[%s10391_s16 + $0x200] sm:$0xff] %v8982_v43  ;;  %v9007_v7 = vld [vmem:[%s10135_s11 + $0x290] ss:$12 sps:$4 sm:$0xff]   ;;  %1419 = vst [vmem:[%s10391_s16 + $0x278] sm:$0xff] %v9002_v3 }
  0xf6   : > { %v10528_v15 = vpop.eup %9442  ;;  %9462 = vpow2.f32 %v10339_v50  ;;  %v8990_v50 = vld [vmem:[%s10135_s11 + $0x22c] ss:$12 sps:$4 sm:$0xff]   ;;  %1407 = vst [vmem:[%s10391_s16 + $0x218] sm:$0xff] %v8986_v45  ;;  %1420 = vst [vmem:[%s10391_s16 + $0x280] sm:$0xff] %v9003_v4  ;;  %v9010_v12 = vld [vmem:[%s10135_s11 + $0x2a4] ss:$12 sps:$4 sm:$0xff]  }
  0xf7   : > { %v10537_v55 = vpop.eup %9444  ;;  %2401 = vperm.xlu1 %8895, %v9433_v53   ;;  %9464 = vpow2.f32 %v10343_v56  ;;  %1410 = vst [vmem:[%s10391_s16 + $0x230] sm:$0xff] %v8990_v50  ;;  %v9008_v8 = vld [vmem:[%s10135_s11 + $0x2a0] ss:$12 sps:$4 sm:$0xff]   ;;  %v9011_v13 = vld [vmem:[%s10135_s11 + $0x2a8] ss:$12 sps:$4 sm:$0xff]   ;;  %1421 = vst [vmem:[%s10391_s16 + $0x288] sm:$0xff] %v9004_v25 }
  0xf8   : > { %v10546_v24 = vpop.eup %9446  ;;  %9466 = vpow2.f32 %v10354_v38  ;;  %1422 = vst [vmem:[%s10391_s16 + $0x290] sm:$0xff] %v9006_v6  ;;  %v9012_v22 = vld [vmem:[%s10135_s11 + $0x2b8] ss:$12 sps:$4 sm:$0xff]   ;;  %v9014_v23 = vld [vmem:[%s10135_s11 + $0x2bc] ss:$12 sps:$4 sm:$0xff]   ;;  %1423 = vst [vmem:[%s10391_s16 + $0x298] sm:$0xff] %v9007_v7 }
  0xf9   : > { %v9449_v56 = vpop.eup %9448  ;;  %2396 = vperm.xlu0 %8894, %v9435_v30   ;;  %9468 = vpow2.f32 %v10359_v46  ;;  %1424 = vst [vmem:[%s10391_s16 + $0x2a0] sm:$0xff] %v9008_v8  ;;  %v9015_v27 = vld [vmem:[%s10135_s11 + $0x2c0] ss:$12 sps:$4 sm:$0xff]   ;;  %v9016_v53 = vld [vmem:[%s10135_s11 + $0x2d0] ss:$12 sps:$4 sm:$0xff]   ;;  %1425 = vst [vmem:[%s10391_s16 + $0x2a8] sm:$0xff] %v9010_v12 }
  0xfa   : > { %v9451_v38 = vpop.eup %9450  ;;  %v1863_v34 = vadd.f32 1.0, %v9449_v56  ;;  %9470 = vpow2.f32 %v10364_v51  ;;  %1426 = vst [vmem:[%s10391_s16 + $0x2b0] sm:$0xff] %v9011_v13  ;;  %v9018_v58 = vld [vmem:[%s10135_s11 + $0x2d4] ss:$12 sps:$4 sm:$0xff]   ;;  %v9019_v30 = vld [vmem:[%s10135_s11 + $0x2d8] ss:$12 sps:$4 sm:$0xff]  }
  0xfb   : > { %v9453_v46 = vpop.eup %9452  ;;  %2561 = vperm.xlu1 %8895, %v10501_v61   ;;  %v1862_v1 = vadd.f32 1.0, %v9451_v38  ;;  %9472 = vpow2.f32 %v10368_v16  ;;  %1427 = vst [vmem:[%s10391_s16 + $0x2b8] sm:$0xff] %v9012_v22  ;;  %1428 = vst [vmem:[%s10391_s16 + $0x2c0] sm:$0xff] %v9014_v23  ;;  %v9020_v61 = vld [vmem:[%s10135_s11 + $0x2e8] ss:$12 sps:$4 sm:$0xff]   ;;  %v1519_v50 = vld [vmem:[%s10125_s23 + $0x298] sm:$0xff] }
  0xfc   : > { %v9455_v51 = vpop.eup %9454  ;;  %9474 = vrcp.f32 %v1863_v34  ;;  %v1895_v5 = vadd.f32 1.0, %v9453_v46  ;;  %v9022_v35 = vld [vmem:[%s10135_s11 + $0x2ec] ss:$12 sps:$4 sm:$0xff]   ;;  %1429 = vst [vmem:[%s10391_s16 + $0x2c8] sm:$0xff] %v9015_v27  ;;  %1430 = vst [vmem:[%s10391_s16 + $0x2d0] sm:$0xff] %v9016_v53  ;;  %v1518_v62 = vld [vmem:[%s10125_s23 + $0x290] sm:$0xff] }
  0xfd   : > { %v9457_v16 = vpop.eup %9456  ;;  %2556 = vperm.xlu0 %8894, %v10510_v42   ;;  %9476 = vrcp.f32 %v1862_v1  ;;  %v1894_v47 = vadd.f32 1.0, %v9455_v51  ;;  %v1517_v42 = vld [vmem:[%s10125_s23 + $0x288] sm:$0xff]  ;;  %v9023_v39 = vld [vmem:[%s10135_s11 + $0x2f0] ss:$12 sps:$4 sm:$0xff]   ;;  %1431 = vst [vmem:[%s10391_s16 + $0x2d8] sm:$0xff] %v9018_v58  ;;  %1432 = vst [vmem:[%s10391_s16 + $0x2e0] sm:$0xff] %v9019_v30 }
  0xfe   : > { %v9459_v10 = vpop.eup %9458  ;;  %9478 = vrcp.f32 %v1895_v5  ;;  %v1865_v48 = vadd.f32 1.0, %v9457_v16  ;;  %1433 = vst [vmem:[%s10391_s16 + $0x2e8] sm:$0xff] %v9020_v61  ;;  %1434 = vst [vmem:[%s10391_s16 + $0x2f0] sm:$0xff] %v9022_v35  ;;  %v8291_v43 = vmul.f32 -1.442695, %v1484_v18  ;;  %v1489_v29 = vld [vmem:[%s10125_s23 + $0x1a8] sm:$0xff] }
  0xff   : > { %v9461_v17 = vpop.eup %9460  ;;  %2411 = vperm.xlu1 %8895, %v10519_v40   ;;  %9480 = vrcp.f32 %v1894_v47  ;;  %v1864_v52 = vadd.f32 1.0, %v9459_v10  ;;  %v1516_v40 = vld [vmem:[%s10125_s23 + $0x280] sm:$0xff]  ;;  %1435 = vst [vmem:[%s10391_s16 + $0x2f8] sm:$0xff] %v9023_v39  ;;  %v8324_v45 = vmul.f32 -1.442695, %v1517_v42  ;;  %v1521_v2 = vld [vmem:[%s10125_s23 + $0x2a8] sm:$0xff] }
 0x100   : > { %v9463_v9 = vpop.eup %9462  ;;  %9482 = vrcp.f32 %v1865_v48  ;;  %v1897_v26 = vadd.f32 1.0, %v9461_v17  ;;  %v8323_v57 = vmul.f32 -1.442695, %v1516_v40  ;;  %v8326_v59 = vmul.f32 -1.442695, %v1519_v50  ;;  %v1488_v38 = vld [vmem:[%s10125_s23 + $0x1a0] sm:$0xff] }
 0x101   : > { %v9465_v14 = vpop.eup %9464  ;;  %2406 = vperm.xlu0 %8894, %v10528_v15   ;;  %9484 = vrcp.f32 %v1864_v52  ;;  %v1896_v28 = vadd.f32 1.0, %v9463_v9  ;;  %v1487_v15 = vld [vmem:[%s10125_s23 + $0x198] sm:$0xff]  ;;  %v8325_v41 = vmul.f32 -1.442695, %v1518_v62  ;;  %v8296_v1 = vmul.f32 -1.442695, %v1489_v29 }
 0x102   : > { %v9467_v31 = vpop.eup %9466  ;;  %9486 = vrcp.f32 %v1897_v26  ;;  %v1867_v33 = vadd.f32 1.0, %v9465_v14  ;;  %v1520_v3 = vld [vmem:[%s10125_s23 + $0x2a0] sm:$0xff]  ;;  %v8295_v51 = vmul.f32 -1.442695, %v1488_v38  ;;  %v1491_v5 = vld [vmem:[%s10125_s23 + $0x1b8] sm:$0xff]  ;;  %v1490_v16 = vld [vmem:[%s10125_s23 + $0x1b0] sm:$0xff] }
 0x103   : > { %v9469_v37 = vpop.eup %9468  ;;  %2571 = vperm.xlu1 %8895, %v10537_v55   ;;  %9488 = vrcp.f32 %v1896_v28  ;;  %v1866_v32 = vadd.f32 1.0, %v9467_v31  ;;  %v1486_v55 = vld [vmem:[%s10125_s23 + $0x190] sm:$0xff]  ;;  %v8328_v6 = vmul.f32 -1.442695, %v1521_v2  ;;  %v8327_v7 = vmul.f32 -1.442695, %v1520_v3 }
 0x104   : > { %v9471_v44 = vpop.eup %9470  ;;  %9490 = vrcp.f32 %v1867_v33  ;;  %v1899_v36 = vadd.f32 1.0, %v9469_v37  ;;  %v8293_v56 = vmul.f32 -1.442695, %v1486_v55  ;;  %v8298_v10 = vmul.f32 -1.442695, %v1491_v5  ;;  %v2109_v29 = vld [vmem:[%s10130_s30 + $0x8] sm:$0xff] }
 0x105   : > { %v9473_v49 = vpop.eup %9472  ;;  %2566 = vperm.xlu0 %8894, %v10546_v24   ;;  %9492 = vrcp.f32 %v1866_v32  ;;  %v1898_v11 = vadd.f32 1.0, %v9471_v44  ;;  %v8294_v24 = vmul.f32 -1.442695, %v1487_v15  ;;  %v8297_v12 = vmul.f32 -1.442695, %v1490_v16  ;;  %v1523_v44 = vld [vmem:[%s10125_s23 + $0x2b8] sm:$0xff] }
 0x106   : > { %v9475_v54 = vpop.eup %9474  ;;  %9494 = vrcp.f32 %v1899_v36  ;;  %v1869_v21 = vadd.f32 1.0, %v9473_v49  ;;  %v9026_v53 = vld [vmem:[%s10137_s12 + $0x4] ss:$24 sps:$4 sm:$0xff]   ;;  %v1522_v49 = vld [vmem:[%s10125_s23 + $0x2b0] sm:$0xff] }
 0x107   : > { %v9477_v19 = vpop.eup %9476  ;;  %2421 = vperm.xlu1 %8895, %v9475_v54   ;;  %9496 = vrcp.f32 %v1898_v11  ;;  %3772 = vmatprep.mubr.bf16.mxu0 %v9026_v53  ;;  %v9029_v31 = vld [vmem:[%s10137_s12 + $0x244] ss:$24 sps:$4 sm:$0xff]   ;;  %v1493_v54 = vld [vmem:[%s10125_s23 + $0x1c8] sm:$0xff]  ;;  %v8329_v62 = vmul.f32 -1.442695, %v1522_v49 }
 0x108   : > { %v9479_v60 = vpop.eup %9478  ;;  %9498 = vrcp.f32 %v1869_v21  ;;  %3868 = vmatprep.mubr.bf16.mxu1 %v9029_v31  ;;  %v1495_v2 = vld [vmem:[%s10125_s23 + $0x1d8] sm:$0xff]  ;;  %v1496_v49 = vld [vmem:[%s10125_s23 + $0x1e0] sm:$0xff] }
 0x109   : > { %v9481_v63 = vpop.eup %9480  ;;  %2416 = vperm.xlu0 %8894, %v9477_v19   ;;  %9500 = vpow2.f32 %v8291_v43  ;;  %v8330_v19 = vmul.f32 -1.442695, %v1523_v44  ;;  %v2114_v44 = vld [vmem:[%s10130_s30 + $0x30] sm:$0xff] }
 0x10a   : > { %v9483_v0 = vpop.eup %9482  ;;  %9502 = vpow2.f32 %v8324_v45 }
 0x10b   : > { %v9485_v34 = vpop.eup %9484  ;;  %2581 = vperm.xlu1 %8895, %v9479_v60   ;;  %9504 = vpow2.f32 %v8323_v57  ;;  %v1492_v57 = vld [vmem:[%s10125_s23 + $0x1c0] sm:$0xff] }
 0x10c   : > { %v9487_v46 = vpop.eup %9486  ;;  %9506 = vpow2.f32 %v8294_v24  ;;  %v2108_v60 = vld [vmem:[%s10130_s30] sm:$0xff] }
 0x10d   : > { %v9489_v4 = vpop.eup %9488  ;;  %2576 = vperm.xlu0 %8894, %v9481_v63   ;;  %9508 = vpow2.f32 %v8293_v56  ;;  %v1525_v63 = vld [vmem:[%s10125_s23 + $0x2c8] sm:$0xff] }
 0x10e   : > { %v9491_v25 = vpop.eup %9490  ;;  %9510 = vpow2.f32 %v8326_v59  ;;  %v1524_v59 = vld [vmem:[%s10125_s23 + $0x2c0] sm:$0xff] }
 0x10f   : > { %v9493_v47 = vpop.eup %9492  ;;  %2431 = vperm.xlu1 %8895, %v9483_v0   ;;  %9512 = vpow2.f32 %v8325_v41  ;;  %v8300_v0 = vmul.f32 -1.442695, %v1493_v54  ;;  %v8299_v41 = vmul.f32 -1.442695, %v1492_v57  ;;  %v8331_v16 = vmul.f32 -1.442695, %v1524_v59 }
 0x110   : > { %v9495_v8 = vpop.eup %9494  ;;  %9514 = vpow2.f32 %v8296_v1  ;;  %v2111_v1 = vld [vmem:[%s10130_s30 + $0x18] sm:$0xff]  ;;  %v2116_v57 = vld [vmem:[%s10130_s30 + $0x40] sm:$0xff] }
 0x111   : > { %v9497_v48 = vpop.eup %9496  ;;  %2426 = vperm.xlu0 %8894, %v9485_v34   ;;  %9516 = vpow2.f32 %v8295_v51  ;;  %v1494_v51 = vld [vmem:[%s10125_s23 + $0x1d0] sm:$0xff] }
 0x112   : > { %v9499_v13 = vpop.eup %9498  ;;  %9518 = vpow2.f32 %v8328_v6 }
 0x113   : > { %v9501_v17 = vpop.eup %9500  ;;  %2591 = vperm.xlu1 %8895, %v9487_v46   ;;  %9520 = vpow2.f32 %v8327_v7 }
 0x114   : > { %v9503_v52 = vpop.eup %9502  ;;  %v1868_v22 = vadd.f32 1.0, %v9501_v17  ;;  %9522 = vpow2.f32 %v8298_v10  ;;  %v8302_v10 = vmul.f32 -1.442695, %v1495_v2 }
 0x115   : > { %v9505_v23 = vpop.eup %9504  ;;  %2586 = vperm.xlu0 %8894, %v9489_v4   ;;  %v1901_v9 = vadd.f32 1.0, %v9503_v52  ;;  %9524 = vpow2.f32 %v8297_v12  ;;  %v8332_v4 = vmul.f32 -1.442695, %v1525_v63  ;;  %v8303_v63 = vmul.f32 -1.442695, %v1496_v49 }
 0x116   : > { %v9507_v26 = vpop.eup %9506  ;;  %9526 = vrcp.f32 %v1868_v22  ;;  %v1900_v27 = vadd.f32 1.0, %v9505_v23  ;;  %v8301_v22 = vmul.f32 -1.442695, %v1494_v51  ;;  %v1497_v23 = vld [vmem:[%s10125_s23 + $0x1e8] sm:$0xff]  ;;  %v2119_v51 = vld [vmem:[%s10130_s30 + $0x58] sm:$0xff] }
 0x117   : > { %v9509_v14 = vpop.eup %9508  ;;  %2441 = vperm.xlu1 %8895, %v9491_v25   ;;  %9528 = vrcp.f32 %v1901_v9  ;;  %v1871_v28 = vadd.f32 1.0, %v9507_v26  ;;  %v2113_v26 = vld [vmem:[%s10130_s30 + $0x28] sm:$0xff] }
 0x118   : > { %v9511_v58 = vpop.eup %9510  ;;  %9530 = vrcp.f32 %v1900_v27  ;;  %v1870_v30 = vadd.f32 1.0, %v9509_v14  ;;  %v2112_v27 = vld [vmem:[%s10130_s30 + $0x20] sm:$0xff] }
 0x119   : > { %v9513_v33 = vpop.eup %9512  ;;  %2436 = vperm.xlu0 %8894, %v9493_v47   ;;  %9532 = vrcp.f32 %v1871_v28  ;;  %v1903_v18 = vadd.f32 1.0, %v9511_v58  ;;  %v1527_v47 = vld [vmem:[%s10125_s23 + $0x2d8] sm:$0xff] }
 0x11a   : > { %v9515_v61 = vpop.eup %9514  ;;  %9534 = vrcp.f32 %v1870_v30  ;;  %v1902_v35 = vadd.f32 1.0, %v9513_v33  ;;  %v8334_v14 = vmul.f32 -1.442695, %v1527_v47  ;;  %v8304_v33 = vmul.f32 -1.442695, %v1497_v23 }
 0x11b   : > { %v9517_v37 = vpop.eup %9516  ;;  %2601 = vperm.xlu1 %8895, %v9495_v8   ;;  %9536 = vrcp.f32 %v1903_v18  ;;  %v1873_v32 = vadd.f32 1.0, %v9515_v61  ;;  %v2110_v8 = vld [vmem:[%s10130_s30 + $0x10] sm:$0xff] }
 0x11c   : > { %v9519_v42 = vpop.eup %9518  ;;  %9538 = vrcp.f32 %v1902_v35  ;;  %v1872_v39 = vadd.f32 1.0, %v9517_v37 }
 0x11d   : > { %v9521_v36 = vpop.eup %9520  ;;  %2596 = vperm.xlu0 %8894, %v9497_v48   ;;  %9540 = vrcp.f32 %v1873_v32  ;;  %v1905_v40 = vadd.f32 1.0, %v9519_v42  ;;  %v1526_v48 = vld [vmem:[%s10125_s23 + $0x2d0] sm:$0xff] }
 0x11e   : > { %v9523_v11 = vpop.eup %9522  ;;  %v2217_v43 = vpop.permute.xlu1 %2216  ;;  %9542 = vrcp.f32 %v1872_v39  ;;  %v1904_v15 = vadd.f32 1.0, %v9521_v36  ;;  %v8333_v30 = vmul.f32 -1.442695, %v1526_v48  ;;  %v2115_v39 = vld [vmem:[%s10130_s30 + $0x38] sm:$0xff]  ;;  %v1528_v48 = vld [vmem:[%s10125_s23 + $0x2e0] sm:$0xff] }
 0x11f   : > { %v9525_v21 = vpop.eup %9524  ;;  %v2207_v45 = vpop.permute.xlu0 %2206  ;;  %2451 = vperm.xlu1 %8895, %v9499_v13   ;;  %9544 = vrcp.f32 %v1905_v40  ;;  %v1875_v55 = vadd.f32 1.0, %v9523_v11  ;;  %v2686_v58 = vmul.f32 %v2217_v43, %v2110_v8  ;;  %v1529_v43 = vld [vmem:[%s10125_s23 + $0x2e8] sm:$0xff] }
 0x120   : > { %v9527_v50 = vpop.eup %9526  ;;  %9546 = vrcp.f32 %v1904_v15  ;;  %v1874_v24 = vadd.f32 1.0, %v9525_v21  ;;  %v2684_v25 = vmul.f32 %v2207_v45, %v2108_v60 }
 0x121   : > { %v9529_v56 = vpop.eup %9528  ;;  %2446 = vperm.xlu0 %8894, %v9527_v50   ;;  %9548 = vrcp.f32 %v1875_v55  ;;  %v2117_v55 = vld [vmem:[%s10130_s30 + $0x48] sm:$0xff] }
 0x122   : > { %v9531_v38 = vpop.eup %9530  ;;  %v2222_v34 = vpop.permute.xlu1 %2221  ;;  %9550 = vrcp.f32 %v1874_v24 }
 0x123   : > { %v9533_v46 = vpop.eup %9532  ;;  %v2212_v3 = vpop.permute.xlu0 %2211  ;;  %2611 = vperm.xlu1 %8895, %v9529_v56   ;;  %9552 = vpow2.f32 %v8330_v19  ;;  %v2687_v13 = vmul.f32 %v2222_v34, %v2111_v1 }
 0x124   : > { %v9535_v5 = vpop.eup %9534  ;;  %v2685_v6 = vmul.f32 %v2212_v3, %v2109_v29  ;;  %9554 = vpow2.f32 %v8329_v62 }
 0x125   : > { %v9537_v7 = vpop.eup %9536  ;;  %2606 = vperm.xlu0 %8894, %v9531_v38   ;;  %9556 = vpow2.f32 %v8300_v0  ;;  %v2781_v61 = vpack.c.bf16 %v2687_v13, %v2686_v58  ;;  %v8336_v0 = vmul.f32 -1.442695, %v1529_v43 }
 0x126   : > { %v9539_v12 = vpop.eup %9538  ;;  %v2232_v17 = vpop.permute.xlu1 %2231  ;;  %v2780_v52 = vpack.c.bf16 %v2685_v6, %v2684_v25  ;;  %9558 = vpow2.f32 %v8299_v41 }
 0x127   : > { %v9541_v9 = vpop.eup %9540  ;;  %v2227_v53 = vpop.permute.xlu0 %2226  ;;  %2461 = vperm.xlu1 %8895, %v9533_v46   ;;  %9560 = vpow2.f32 %v8332_v4  ;;  %v2689_v35 = vmul.f32 %v2232_v17, %v2113_v26 }
 0x128   : > { %v9543_v28 = vpop.eup %9542  ;;  %3741 = vmatpush1.bf16.msra.mxu0 %v2780_v52  ;;  %8816 = vmatpush1.bf16.msra.mxu1 %v2780_v52  ;;  %9562 = vpow2.f32 %v8331_v16  ;;  %v2688_v37 = vmul.f32 %v2227_v53, %v2112_v27  ;;  %v2121_v52 = vld [vmem:[%s10130_s30 + $0x68] sm:$0xff]  ;;  %v2120_v27 = vld [vmem:[%s10130_s30 + $0x60] sm:$0xff] }
 0x129   : > { %v10646_v31 = vpop.eup %9544  ;;  %2456 = vperm.xlu0 %8894, %v9535_v5   ;;  %3742 = vmatprep.subr.bf16.mxu0 %v9747_v20  ;;  %9564 = vpow2.f32 %v8302_v10  ;;  %v2118_v5 = vld [vmem:[%s10130_s30 + $0x50] sm:$0xff] }
 0x12a   : > { %v10649_v18 = vpop.eup %9546  ;;  %v2242_v32 = vpop.permute.xlu1 %2241  ;;  %8801 = vmatprep.subr.bf16.mxu1 %v9747_v20  ;;  %9566 = vpow2.f32 %v8301_v22  ;;  %v2782_v54 = vpack.c.bf16 %v2689_v35, %v2688_v37 }
 0x12b   : > { %v10652_v42 = vpop.eup %9548  ;;  %v2237_v36 = vpop.permute.xlu0 %2236  ;;  %2621 = vperm.xlu1 %8895, %v9537_v7   ;;  %9568 = vpow2.f32 %v8334_v14  ;;  %v2691_v21 = vmul.f32 %v2242_v32, %v2115_v39  ;;  %v1498_v14 = vld [vmem:[%s10125_s23 + $0x1f0] sm:$0xff] }
 0x12c   : > { %v10656_v40 = vpop.eup %9550  ;;  %3743 = vmatpush1.bf16.msra.mxu0 %v2781_v61  ;;  %8817 = vmatpush1.bf16.msra.mxu1 %v2781_v61  ;;  %9570 = vpow2.f32 %v8333_v30  ;;  %v2690_v45 = vmul.f32 %v2237_v36, %v2114_v44  ;;  %v8335_v30 = vmul.f32 -1.442695, %v1528_v48  ;;  %v2123_v44 = vld [vmem:[%s10130_s30 + $0x78] sm:$0xff]  ;;  %v2122_v36 = vld [vmem:[%s10130_s30 + $0x70] sm:$0xff]  ;;  %v8305_v49 = vmul.f32 -1.442695, %v1498_v14 }
 0x12d   : > { %v9553_v11 = vpop.eup %9552  ;;  %2616 = vperm.xlu0 %8894, %v9539_v12   ;;  %3744 = vmatprep.subr.bf16.mxu0 %v9747_v20  ;;  %9572 = vpow2.f32 %v8304_v33  ;;  %v1530_v33 = vld [vmem:[%s10125_s23 + $0x2f0] sm:$0xff]  ;;  %v2128_v48 = vld [vmem:[%s10130_s30 + $0xa0] sm:$0xff] }
 0x12e   : > { %v9555_v15 = vpop.eup %9554  ;;  %v2252_v19 = vpop.permute.xlu1 %2251  ;;  %8802 = vmatprep.subr.bf16.mxu1 %v9747_v20  ;;  %v1907_v50 = vadd.f32 1.0, %v9553_v11  ;;  %v2783_v46 = vpack.c.bf16 %v2691_v21, %v2690_v45 }
 0x12f   : > { %v9557_v60 = vpop.eup %9556  ;;  %v2247_v24 = vpop.permute.xlu0 %2246  ;;  %2471 = vperm.xlu1 %8895, %v9541_v9   ;;  %v1906_v62 = vadd.f32 1.0, %v9555_v15  ;;  %v2693_v38 = vmul.f32 %v2252_v19, %v2117_v55  ;;  %v1499_v9 = vld [vmem:[%s10125_s23 + $0x1f8] sm:$0xff] }
 0x130   : > { %v9559_v56 = vpop.eup %9558  ;;  %3745 = vmatpush1.bf16.msra.mxu0 %v2782_v54  ;;  %8818 = vmatpush1.bf16.msra.mxu1 %v2782_v54  ;;  %9574 = vrcp.f32 %v1907_v50  ;;  %v1877_v29 = vadd.f32 1.0, %v9557_v60  ;;  %v2692_v34 = vmul.f32 %v2247_v24, %v2116_v57  ;;  %v8337_v54 = vmul.f32 -1.442695, %v1530_v33  ;;  %v2125_v60 = vld [vmem:[%s10130_s30 + $0x88] sm:$0xff]  ;;  %v2124_v24 = vld [vmem:[%s10130_s30 + $0x80] sm:$0xff] }
 0x131   : > { %v9561_v59 = vpop.eup %9560  ;;  %2466 = vperm.xlu0 %8894, %v9543_v28   ;;  %3746 = vmatprep.subr.bf16.mxu0 %v9747_v20  ;;  %9576 = vrcp.f32 %v1906_v62  ;;  %v1876_v41 = vadd.f32 1.0, %v9559_v56  ;;  %v2127_v56 = vld [vmem:[%s10130_s30 + $0x98] sm:$0xff] }
 0x132   : > { %v9563_v2 = vpop.eup %9562  ;;  %v2262_v1 = vpop.permute.xlu1 %2261  ;;  %8803 = vmatprep.subr.bf16.mxu1 %v9747_v20  ;;  %9578 = vrcp.f32 %v1877_v29  ;;  %v1909_v3 = vadd.f32 1.0, %v9561_v59  ;;  %v2784_v8 = vpack.c.bf16 %v2693_v38, %v2692_v34  ;;  %v2126_v29 = vld [vmem:[%s10130_s30 + $0x90] sm:$0xff] }
 0x133   : > { %v9565_v4 = vpop.eup %9564  ;;  %v2257_v25 = vpop.permute.xlu0 %2256  ;;  %2631 = vperm.xlu1 %8895, %v10646_v31   ;;  %v1908_v6 = vadd.f32 1.0, %v9563_v2  ;;  %9580 = vpow2.f32 %v8303_v63  ;;  %v2695_v13 = vmul.f32 %v2262_v1, %v2119_v51  ;;  %v1531_v31 = vld [vmem:[%s10125_s23 + $0x2f8] sm:$0xff] }
 0x134   : > { %v9567_v16 = vpop.eup %9566  ;;  %3747 = vmatpush1.bf16.msra.mxu0 %v2783_v46  ;;  %8819 = vmatpush1.bf16.msra.mxu1 %v2783_v46  ;;  %9582 = vrcp.f32 %v1876_v41  ;;  %v1879_v47 = vadd.f32 1.0, %v9565_v4  ;;  %v2694_v17 = vmul.f32 %v2257_v25, %v2118_v5  ;;  %v8338_v43 = vmul.f32 -1.442695, %v1531_v31 }
 0x135   : > { %v9569_v7 = vpop.eup %9568  ;;  %2626 = vperm.xlu0 %8894, %v10649_v18   ;;  %3748 = vmatprep.subr.bf16.mxu0 %v9747_v20  ;;  %v1878_v10 = vadd.f32 1.0, %v9567_v16  ;;  %9584 = vpow2.f32 %v8336_v0  ;;  %v8306_v18 = vmul.f32 -1.442695, %v1499_v9 }
 0x136   : > { %v9571_v12 = vpop.eup %9570  ;;  %v2272_v22 = vpop.permute.xlu1 %2271  ;;  %8804 = vmatprep.subr.bf16.mxu1 %v9747_v20  ;;  %9586 = vrcp.f32 %v1909_v3  ;;  %v1911_v23 = vadd.f32 1.0, %v9569_v7  ;;  %v2785_v35 = vpack.c.bf16 %v2695_v13, %v2694_v17 }
 0x137   : > { %v9573_v26 = vpop.eup %9572  ;;  %2481 = vperm.xlu1 %8895, %v10652_v42   ;;  %9588 = vrcp.f32 %v1908_v6  ;;  %v1910_v53 = vadd.f32 1.0, %v9571_v12  ;;  %v2697_v37 = vmul.f32 %v2272_v22, %v2121_v52 }
 0x138   : > { %v2267_v28 = vpop.permute.xlu0 %2266  ;;  %3749 = vmatpush1.bf16.msra.mxu0 %v2784_v8  ;;  %8820 = vmatpush1.bf16.msra.mxu1 %v2784_v8  ;;  %9590 = vrcp.f32 %v1879_v47  ;;  %v1881_v58 = vadd.f32 1.0, %v9573_v26 }
 0x139   : > { %2476 = vperm.xlu0 %8894, %v10656_v40   ;;  %3750 = vmatprep.subr.bf16.mxu0 %v9747_v20  ;;  %9592 = vrcp.f32 %v1878_v10  ;;  %v2696_v32 = vmul.f32 %v2267_v28, %v2120_v27  ;;  %v2129_v10 = vld [vmem:[%s10130_s30 + $0xa8] sm:$0xff] }
 0x13a   : > { %v9575_v61 = vpop.eup %9574  ;;  %v2282_v42 = vpop.permute.xlu1 %2281  ;;  %8805 = vmatprep.subr.bf16.mxu1 %v9747_v20  ;;  %9594 = vrcp.f32 %v1911_v23 }
 0x13b   : > { %v9577_v39 = vpop.eup %9576  ;;  %2641 = vperm.xlu1 %8895, %v9575_v61   ;;  %9596 = vrcp.f32 %v1910_v53  ;;  %v2786_v45 = vpack.c.bf16 %v2697_v37, %v2696_v32  ;;  %v2699_v55 = vmul.f32 %v2282_v42, %v2123_v44  ;;  %v2132_v44 = vld [vmem:[%s10130_s30 + $0xc0] sm:$0xff] }
 0x13c   : > { %v9579_v11 = vpop.eup %9578  ;;  %v2277_v40 = vpop.permute.xlu0 %2276  ;;  %3751 = vmatpush1.bf16.msra.mxu0 %v2785_v35  ;;  %8821 = vmatpush1.bf16.msra.mxu1 %v2785_v35  ;;  %9598 = vrcp.f32 %v1881_v58  ;;  %v2131_v58 = vld [vmem:[%s10130_s30 + $0xb8] sm:$0xff] }
 0x13d   : > { %v9581_v15 = vpop.eup %9580  ;;  %2636 = vperm.xlu0 %8894, %v9577_v39   ;;  %3752 = vmatprep.subr.bf16.mxu0 %v9747_v20  ;;  %9600 = vpow2.f32 %v8335_v30  ;;  %v2698_v19 = vmul.f32 %v2277_v40, %v2122_v36  ;;  %v2130_v30 = vld [vmem:[%s10130_s30 + $0xb0] sm:$0xff]  ;;  %v2133_v39 = vld [vmem:[%s10130_s30 + $0xc8] sm:$0xff] }
 0x13e   : > { %v9583_v21 = vpop.eup %9582  ;;  %v2292_v57 = vpop.permute.xlu1 %2291  ;;  %8806 = vmatprep.subr.bf16.mxu1 %v9747_v20  ;;  %9602 = vpow2.f32 %v8306_v18  ;;  %v1880_v0 = vadd.f32 1.0, %v9581_v15 }
 0x13f   : > { %v9585_v50 = vpop.eup %9584  ;;  %2491 = vperm.xlu1 %8895, %v9579_v11   ;;  %9604 = vpow2.f32 %v8305_v49  ;;  %v2787_v34 = vpack.c.bf16 %v2699_v55, %v2698_v19  ;;  %v2701_v41 = vmul.f32 %v2292_v57, %v2125_v60 }
 0x140   : > { %v9587_v62 = vpop.eup %9586  ;;  %v2287_v63 = vpop.permute.xlu0 %2286  ;;  %3753 = vmatpush1.bf16.msra.mxu0 %v2786_v45  ;;  %8822 = vmatpush1.bf16.msra.mxu1 %v2786_v45  ;;  %9606 = vpow2.f32 %v8338_v43  ;;  %v1913_v1 = vadd.f32 1.0, %v9585_v50 }
 0x141   : > { %v9589_v59 = vpop.eup %9588  ;;  %2486 = vperm.xlu0 %8894, %v9583_v21   ;;  %3754 = vmatprep.subr.bf16.mxu0 %v9747_v20  ;;  %9608 = vpow2.f32 %v8337_v54  ;;  %v2700_v2 = vmul.f32 %v2287_v63, %v2124_v24  ;;  %v2135_v54 = vld [vmem:[%s10130_s30 + $0xd8] sm:$0xff]  ;;  %v2134_v21 = vld [vmem:[%s10130_s30 + $0xd0] sm:$0xff]  ;;  %v2137_v63 = vld [vmem:[%s10130_s30 + $0xe8] sm:$0xff] }
 0x142   : > { %v9591_v38 = vpop.eup %9590  ;;  %v2302_v46 = vpop.permute.xlu1 %2301  ;;  %8807 = vmatprep.subr.bf16.mxu1 %v9747_v20  ;;  %9610 = vrcp.f32 %v1880_v0 }
 0x143   : > { %v9593_v3 = vpop.eup %9592  ;;  %2651 = vperm.xlu1 %8895, %v9587_v62   ;;  %v2703_v25 = vmul.f32 %v2302_v46, %v2127_v56  ;;  %v2788_v47 = vpack.c.bf16 %v2701_v41, %v2700_v2  ;;  %9612 = vrcp.f32 %v1913_v1  ;;  %v2136_v56 = vld [vmem:[%s10130_s30 + $0xe0] sm:$0xff]  ;;  %v2139_v46 = vld [vmem:[%s10130_s30 + $0xf8] sm:$0xff]  ;;  %v2138_v1 = vld [vmem:[%s10130_s30 + $0xf0] sm:$0xff] }
 0x144   : > { %v9595_v4 = vpop.eup %9594  ;;  %v2297_v51 = vpop.permute.xlu0 %2296  ;;  %3755 = vmatpush1.bf16.msra.mxu0 %v2787_v34  ;;  %8823 = vmatpush1.bf16.msra.mxu1 %v2787_v34 }
 0x145   : > { %v9597_v5 = vpop.eup %9596  ;;  %v2702_v6 = vmul.f32 %v2297_v51, %v2126_v29  ;;  %2646 = vperm.xlu0 %8894, %v9589_v59   ;;  %3756 = vmatprep.subr.bf16.mxu0 %v9747_v20  ;;  %v2140_v51 = vld [vmem:[%s10130_s30 + $0x100] sm:$0xff] }
 0x146   : > { %v9599_v16 = vpop.eup %9598  ;;  %v2312_v7 = vpop.permute.xlu1 %2311  ;;  %8808 = vmatprep.subr.bf16.mxu1 %v9747_v20 }
 0x147   : > { %v9601_v8 = vpop.eup %9600  ;;  %2501 = vperm.xlu1 %8895, %v9591_v38   ;;  %v2789_v22 = vpack.c.bf16 %v2703_v25, %v2702_v6  ;;  %v2705_v26 = vmul.f32 %v2312_v7, %v2129_v10  ;;  %v9024_v10 = vld [vmem:[%s10137_s12] ss:$24 sps:$4 sm:$0xff]  }
 0x148   : > { %v9603_v12 = vpop.eup %9602  ;;  %v2307_v13 = vpop.permute.xlu0 %2306  ;;  %3757 = vmatpush1.bf16.msra.mxu0 %v2788_v47  ;;  %8824 = vmatpush1.bf16.msra.mxu1 %v2788_v47  ;;  %v1912_v17 = vadd.f32 1.0, %v9601_v8  ;;  %v2173_v47 = vld [vmem:[%s10130_s30 + $0x208] sm:$0xff]  ;;  %v2172_v8 = vld [vmem:[%s10130_s30 + $0x200] sm:$0xff] }
 0x149   : > { %v9605_v52 = vpop.eup %9604  ;;  %2496 = vperm.xlu0 %8894, %v9593_v3   ;;  %3758 = vmatprep.subr.bf16.mxu0 %v9747_v20  ;;  %v1883_v23 = vadd.f32 1.0, %v9603_v12  ;;  %v2704_v27 = vmul.f32 %v2307_v13, %v2128_v48  ;;  %v9027_v48 = vld [vmem:[%s10137_s12 + $0x240] ss:$24 sps:$4 sm:$0xff]  }
 0x14a   : > { %v9607_v9 = vpop.eup %9606  ;;  %v2322_v53 = vpop.permute.xlu1 %2321  ;;  %8809 = vmatprep.subr.bf16.mxu1 %v9747_v20  ;;  %9614 = vrcp.f32 %v1912_v17  ;;  %v1882_v14 = vadd.f32 1.0, %v9605_v52 }
 0x14b   : > { %v9609_v28 = vpop.eup %9608  ;;  %2661 = vperm.xlu1 %8895, %v9595_v4   ;;  %9616 = vrcp.f32 %v1883_v23  ;;  %v1915_v31 = vadd.f32 1.0, %v9607_v9  ;;  %v2790_v35 = vpack.c.bf16 %v2705_v26, %v2704_v27  ;;  %v2707_v37 = vmul.f32 %v2322_v53, %v2131_v58  ;;  %v2141_v4 = vld [vmem:[%s10130_s30 + $0x108] sm:$0xff]  ;;  %v2142_v26 = vld [vmem:[%s10130_s30 + $0x110] sm:$0xff] }
 0x14c   : > { %v2317_v33 = vpop.permute.xlu0 %2316  ;;  %3759 = vmatpush1.bf16.msra.mxu0 %v2789_v22  ;;  %8825 = vmatpush1.bf16.msra.mxu1 %v2789_v22  ;;  %9618 = vrcp.f32 %v1882_v14  ;;  %v1914_v18 = vadd.f32 1.0, %v9609_v28  ;;  %v9611_v61 = vpop.eup %9610  ;;  %v2143_v22 = vld [vmem:[%s10130_s30 + $0x118] sm:$0xff]  ;;  %v9030_v27 = vld [vmem:[%s10137_s12 + $0x274] ss:$24 sps:$4 sm:$0xff]  }
 0x14d   : > { %2656 = vperm.xlu0 %8894, %v9597_v5   ;;  %3760 = vmatprep.subr.bf16.mxu0 %v9747_v20  ;;  %v2706_v32 = vmul.f32 %v2317_v33, %v2130_v30  ;;  %9620 = vrcp.f32 %v1915_v31  ;;  %v9613_v36 = vpop.eup %9612  ;;  %v9033_v53 = vld [vmem:[%s10137_s12 + $0x34] ss:$24 sps:$4 sm:$0xff]  }
 0x14e   : > { %v2332_v42 = vpop.permute.xlu1 %2331  ;;  %8810 = vmatprep.subr.bf16.mxu1 %v9747_v20  ;;  %9622 = vrcp.f32 %v1914_v18  ;;  %v2175_v18 = vld [vmem:[%s10130_s30 + $0x218] sm:$0xff] }
 0x14f   : > { %2511 = vperm.xlu1 %8895, %v9599_v16   ;;  %v2791_v11 = vpack.c.bf16 %v2707_v37, %v2706_v32  ;;  %v2709_v40 = vmul.f32 %v2332_v42, %v2133_v39  ;;  %v9032_v37 = vld [vmem:[%s10137_s12 + $0x270] ss:$24 sps:$4 sm:$0xff]  }
 0x150   : > { %v2327_v49 = vpop.permute.xlu0 %2326  ;;  %3761 = vmatpush1.bf16.msra.mxu0 %v2790_v35  ;;  %8826 = vmatpush1.bf16.msra.mxu1 %v2790_v35  ;;  %v9035_v32 = vld [vmem:[%s10137_s12 + $0x30] ss:$24 sps:$4 sm:$0xff]  }
 0x151   : > { %2506 = vperm.xlu0 %8894, %v9611_v61   ;;  %3762 = vmatprep.subr.bf16.mxu0 %v9747_v20  ;;  %v2708_v43 = vmul.f32 %v2327_v49, %v2132_v44  ;;  %v2174_v61 = vld [vmem:[%s10130_s30 + $0x210] sm:$0xff]  ;;  %v2145_v39 = vld [vmem:[%s10130_s30 + $0x128] sm:$0xff] }
 0x152   : > { %v2342_v15 = vpop.permute.xlu1 %2341  ;;  %8811 = vmatprep.subr.bf16.mxu1 %v9747_v20 }
 0x153   : > { %2671 = vperm.xlu1 %8895, %v9613_v36   ;;  %v2792_v50 = vpack.c.bf16 %v2709_v40, %v2708_v43  ;;  %v2711_v60 = vmul.f32 %v2342_v15, %v2135_v54  ;;  %v9039_v40 = vld [vmem:[%s10137_s12 + $0x64] ss:$24 sps:$4 sm:$0xff]  }
 0x154   : > { %v9615_v45 = vpop.eup %9614  ;;  %v2337_v55 = vpop.permute.xlu0 %2336  ;;  %3763 = vmatpush1.bf16.msra.mxu0 %v2791_v11  ;;  %8827 = vmatpush1.bf16.msra.mxu1 %v2791_v11  ;;  %v9036_v11 = vld [vmem:[%s10137_s12 + $0x2a4] ss:$24 sps:$4 sm:$0xff]  }
 0x155   : > { %v9617_v19 = vpop.eup %9616  ;;  %2666 = vperm.xlu0 %8894, %v9615_v45   ;;  %3764 = vmatprep.subr.bf16.mxu0 %v9747_v20  ;;  %v2710_v24 = vmul.f32 %v2337_v55, %v2134_v21  ;;  %v2144_v54 = vld [vmem:[%s10130_s30 + $0x120] sm:$0xff] }
 0x156   : > { %v9619_v57 = vpop.eup %9618  ;;  %v2352_v62 = vpop.permute.xlu1 %2351  ;;  %8812 = vmatprep.subr.bf16.mxu1 %v9747_v20 }
 0x157   : > { %2521 = vperm.xlu1 %8895, %v9617_v19   ;;  %v9621_v29 = vpop.eup %9620  ;;  %v2793_v38 = vpack.c.bf16 %v2711_v60, %v2710_v24  ;;  %v2713_v34 = vmul.f32 %v2352_v62, %v2137_v63  ;;  %v2177_v19 = vld [vmem:[%s10130_s30 + $0x228] sm:$0xff]  ;;  %v2176_v60 = vld [vmem:[%s10130_s30 + $0x220] sm:$0xff] }
 0x158   : > { %v2347_v0 = vpop.permute.xlu0 %2346  ;;  %3765 = vmatpush1.bf16.msra.mxu0 %v2792_v50  ;;  %8828 = vmatpush1.bf16.msra.mxu1 %v2792_v50  ;;  %v9623_v59 = vpop.eup %9622  ;;  %v9038_v63 = vld [vmem:[%s10137_s12 + $0x2a0] ss:$24 sps:$4 sm:$0xff]  }
 0x159   : > { %2516 = vperm.xlu0 %8894, %v9619_v57   ;;  %3766 = vmatprep.subr.bf16.mxu0 %v9747_v20  ;;  %v2712_v41 = vmul.f32 %v2347_v0, %v2136_v56  ;;  %v9041_v56 = vld [vmem:[%s10137_s12 + $0x60] ss:$24 sps:$4 sm:$0xff]  }
 0x15a   : > { %v2362_v2 = vpop.permute.xlu1 %2361  ;;  %8813 = vmatprep.subr.bf16.mxu1 %v9747_v20  ;;  %v2147_v0 = vld [vmem:[%s10130_s30 + $0x138] sm:$0xff] }
 0x15b   : > { %2681 = vperm.xlu1 %8895, %v9621_v29   ;;  %v2794_v5 = vpack.c.bf16 %v2713_v34, %v2712_v41  ;;  %v2715_v25 = vmul.f32 %v2362_v2, %v2139_v46  ;;  %v2146_v2 = vld [vmem:[%s10130_s30 + $0x130] sm:$0xff] }
 0x15c   : > { %v2357_v3 = vpop.permute.xlu0 %2356  ;;  %3767 = vmatpush1.bf16.msra.mxu0 %v2793_v38  ;;  %8829 = vmatpush1.bf16.msra.mxu1 %v2793_v38  ;;  %v9045_v38 = vld [vmem:[%s10137_s12 + $0x94] ss:$24 sps:$4 sm:$0xff]  }
 0x15d   : > { %2676 = vperm.xlu0 %8894, %v9623_v59   ;;  %3768 = vmatprep.subr.bf16.mxu0 %v9747_v20  ;;  %v2714_v6 = vmul.f32 %v2357_v3, %v2138_v1  ;;  %v9042_v59 = vld [vmem:[%s10137_s12 + $0x2d4] ss:$24 sps:$4 sm:$0xff]  }
 0x15e   : > { %v2372_v16 = vpop.permute.xlu1 %2371  ;;  %8814 = vmatprep.subr.bf16.mxu1 %v9747_v20 }
 0x15f   : > { %v2795_v12 = vpack.c.bf16 %v2715_v25, %v2714_v6  ;;  %v2717_v13 = vmul.f32 %v2372_v16, %v2141_v4  ;;  %v2179_v4 = vld [vmem:[%s10130_s30 + $0x238] sm:$0xff]  ;;  %v2178_v25 = vld [vmem:[%s10130_s30 + $0x230] sm:$0xff] }
 0x160   : > { %v2367_v7 = vpop.permute.xlu0 %2366  ;;  %3769 = vmatpush1.bf16.msra.mxu0 %v2794_v5  ;;  %8830 = vmatpush1.bf16.msra.mxu1 %v2794_v5 }
 0x161   : > { %3770 = vmatprep.subr.bf16.mxu0 %v9747_v20  ;;  %8815 = vmatprep.subr.bf16.mxu1 %v9747_v20  ;;  %v2716_v17 = vmul.f32 %v2367_v7, %v2140_v51  ;;  %v9047_v7 = vld [vmem:[%s10137_s12 + $0x90] ss:$24 sps:$4 sm:$0xff]  }
 0x162   : > { %v2532_v52 = vpop.permute.xlu1 %2531 }
 0x163   : > { %v2749_v23 = vmul.f32 %v2532_v52, %v2173_v47  ;;  %v2796_v28 = vpack.c.bf16 %v2717_v13, %v2716_v17  ;;  %v9044_v47 = vld [vmem:[%s10137_s12 + $0x2d0] ss:$24 sps:$4 sm:$0xff]   ;;  %v2148_v52 = vld [vmem:[%s10130_s30 + $0x140] sm:$0xff] }
 0x164   : > { %v2527_v9 = vpop.permute.xlu0 %2526  ;;  %3771 = vmatpush1.bf16.msra.mxu0 %v2795_v12  ;;  %8831 = vmatpush1.bf16.msra.mxu1 %v2795_v12  ;;  %v9051_v12 = vld [vmem:[%s10137_s12 + $0xc4] ss:$24 sps:$4 sm:$0xff]  }
 0x165   : > { %v2748_v14 = vmul.f32 %v2527_v9, %v2172_v8  ;;  %3965 = vmatprep.subr.bf16.mxu1 %v9747_v20  ;;  %4190 = vmatprep.subr.bf16.mxu0 %v9747_v20 }
 0x166   : > { %v2382_v58 = vpop.permute.xlu1 %2381 }
 0x167   : > { %v2812_v30 = vpack.c.bf16 %v2749_v23, %v2748_v14  ;;  %v2719_v31 = vmul.f32 %v2382_v58, %v2143_v22  ;;  %3773 = vmatmul.mubr.bf16.vlgmr.msra.gmra.mrb[0].mxu0 %v9024_v10  ;;  %3869 = vmatmul.mubr.bf16.vlgmr.msra.gmra.mrb[0].mxu1 %v9027_v48  ;;  %v2149_v10 = vld [vmem:[%s10130_s30 + $0x148] sm:$0xff]  ;;  %v9048_v48 = vld [vmem:[%s10137_s12 + $0x304] ss:$24 sps:$4 sm:$0xff]  }
 0x168   : > { %v2377_v33 = vpop.permute.xlu0 %2376  ;;  %3966 = vmatpush1.bf16.msra.mxu1 %v2796_v28  ;;  %3876 = vmatprep.mubr.bf16.mxu1 %v9030_v27  ;;  %v2180_v14 = vld [vmem:[%s10130_s30 + $0x240] sm:$0xff] }
 0x169   : > { %v2718_v35 = vmul.f32 %v2377_v33, %v2142_v26  ;;  %4191 = vmatpush1.bf16.msra.mxu0 %v2812_v30  ;;  %3967 = vmatprep.subr.bf16.mxu1 %v9747_v20  ;;  %v2181_v26 = vld [vmem:[%s10130_s30 + $0x248] sm:$0xff]  ;;  %v9050_v30 = vld [vmem:[%s10137_s12 + $0x300] ss:$24 sps:$4 sm:$0xff]  }
 0x16a   : > { %v2542_v42 = vpop.permute.xlu1 %2541  ;;  %4192 = vmatprep.subr.bf16.mxu0 %v9747_v20  ;;  %3780 = vmatprep.mubr.bf16.mxu0 %v9033_v53 }
 0x16b   : > { %v2797_v44 = vpack.c.bf16 %v2719_v31, %v2718_v35  ;;  %v2751_v36 = vmul.f32 %v2542_v42, %v2175_v18  ;;  %v9053_v31 = vld [vmem:[%s10137_s12 + $0xc0] ss:$24 sps:$4 sm:$0xff]   ;;  %v9057_v35 = vld [vmem:[%s10137_s12 + $0xf4] ss:$24 sps:$4 sm:$0xff]  }
 0x16c   : > { %v2537_v49 = vpop.permute.xlu0 %2536  ;;  %v2151_v18 = vld [vmem:[%s10130_s30 + $0x158] sm:$0xff]  ;;  %v2150_v42 = vld [vmem:[%s10130_s30 + $0x150] sm:$0xff] }
 0x16d   : > { %v2750_v43 = vmul.f32 %v2537_v49, %v2174_v61  ;;  %3968 = vmatpush1.bf16.msra.mxu1 %v2797_v44  ;;  %v9054_v61 = vld [vmem:[%s10137_s12 + $0x334] ss:$24 sps:$4 sm:$0xff]   ;;  %v2183_v49 = vld [vmem:[%s10130_s30 + $0x258] sm:$0xff] }
 0x16e   : > { %v2392_v15 = vpop.permute.xlu1 %2391  ;;  %3969 = vmatprep.subr.bf16.mxu1 %v9747_v20 }
 0x16f   : > { %v2813_v21 = vpack.c.bf16 %v2751_v36, %v2750_v43  ;;  %v2721_v45 = vmul.f32 %v2392_v15, %v2145_v39  ;;  %3877 = vmatmul.mubr.bf16.gmra.mrb[4].mxu1 %v9032_v37  ;;  %3781 = vmatmul.mubr.bf16.gmra.mrb[4].mxu0 %v9035_v32  ;;  %v2182_v43 = vld [vmem:[%s10130_s30 + $0x250] sm:$0xff] }
 0x170   : > { %v2387_v55 = vpop.permute.xlu0 %2386  ;;  %3884 = vmatprep.mubr.bf16.mxu1 %v9036_v11  ;;  %3788 = vmatprep.mubr.bf16.mxu0 %v9039_v40 }
 0x171   : > { %v2720_v57 = vmul.f32 %v2387_v55, %v2144_v54  ;;  %4193 = vmatpush1.bf16.msra.mxu0 %v2813_v21  ;;  %v9056_v21 = vld [vmem:[%s10137_s12 + $0x330] ss:$24 sps:$4 sm:$0xff]  }
 0x172   : > { %v2552_v50 = vpop.permute.xlu1 %2551  ;;  %4194 = vmatprep.subr.bf16.mxu0 %v9747_v20 }
 0x173   : > { %v2798_v24 = vpack.c.bf16 %v2721_v45, %v2720_v57  ;;  %v2753_v62 = vmul.f32 %v2552_v50, %v2177_v19  ;;  %v9059_v45 = vld [vmem:[%s10137_s12 + $0xf0] ss:$24 sps:$4 sm:$0xff]   ;;  %v9060_v57 = vld [vmem:[%s10137_s12 + $0x364] ss:$24 sps:$4 sm:$0xff]  }
 0x174   : > { %v2547_v29 = vpop.permute.xlu0 %2546  ;;  %v2153_v19 = vld [vmem:[%s10130_s30 + $0x168] sm:$0xff]  ;;  %v9063_v50 = vld [vmem:[%s10137_s12 + $0x124] ss:$24 sps:$4 sm:$0xff]  }
 0x175   : > { %v2752_v34 = vmul.f32 %v2547_v29, %v2176_v60  ;;  %3970 = vmatpush1.bf16.msra.mxu1 %v2798_v24 }
 0x176   : > { %v2402_v41 = vpop.permute.xlu1 %2401  ;;  %3971 = vmatprep.subr.bf16.mxu1 %v9747_v20 }
 0x177   : > { %v2814_v46 = vpack.c.bf16 %v2753_v62, %v2752_v34  ;;  %v2723_v1 = vmul.f32 %v2402_v41, %v2147_v0  ;;  %3885 = vmatmul.mubr.bf16.gmra.mrb[8].mxu1 %v9038_v63  ;;  %3789 = vmatmul.mubr.bf16.gmra.mrb[8].mxu0 %v9041_v56  ;;  %v2152_v62 = vld [vmem:[%s10130_s30 + $0x160] sm:$0xff]  ;;  %v2185_v0 = vld [vmem:[%s10130_s30 + $0x268] sm:$0xff] }
 0x178   : > { %v2397_v3 = vpop.permute.xlu0 %2396  ;;  %3892 = vmatprep.mubr.bf16.mxu1 %v9042_v59  ;;  %3796 = vmatprep.mubr.bf16.mxu0 %v9045_v38  ;;  %v2184_v34 = vld [vmem:[%s10130_s30 + $0x260] sm:$0xff] }
 0x179   : > { %v2722_v51 = vmul.f32 %v2397_v3, %v2146_v2  ;;  %4195 = vmatpush1.bf16.msra.mxu0 %v2814_v46  ;;  %v9062_v46 = vld [vmem:[%s10137_s12 + $0x360] ss:$24 sps:$4 sm:$0xff]  }
 0x17a   : > { %v2562_v5 = vpop.permute.xlu1 %2561  ;;  %4196 = vmatprep.subr.bf16.mxu0 %v9747_v20 }
 0x17b   : > { %v2799_v6 = vpack.c.bf16 %v2723_v1, %v2722_v51  ;;  %v2755_v16 = vmul.f32 %v2562_v5, %v2179_v4  ;;  %v9065_v1 = vld [vmem:[%s10137_s12 + $0x120] ss:$24 sps:$4 sm:$0xff]   ;;  %v9066_v51 = vld [vmem:[%s10137_s12 + $0x394] ss:$24 sps:$4 sm:$0xff]  }
 0x17c   : > { %v2557_v8 = vpop.permute.xlu0 %2556  ;;  %v2155_v4 = vld [vmem:[%s10130_s30 + $0x178] sm:$0xff]  ;;  %v9069_v5 = vld [vmem:[%s10137_s12 + $0x154] ss:$24 sps:$4 sm:$0xff]  }
 0x17d   : > { %v2754_v13 = vmul.f32 %v2557_v8, %v2178_v25  ;;  %3972 = vmatpush1.bf16.msra.mxu1 %v2799_v6 }
 0x17e   : > { %v2412_v17 = vpop.permute.xlu1 %2411  ;;  %3973 = vmatprep.subr.bf16.mxu1 %v9747_v20 }
 0x17f   : > { %v2815_v22 = vpack.c.bf16 %v2755_v16, %v2754_v13  ;;  %v2725_v23 = vmul.f32 %v2412_v17, %v2149_v10  ;;  %3893 = vmatmul.mubr.bf16.gmra.mrb[12].mxu1 %v9044_v47  ;;  %3797 = vmatmul.mubr.bf16.gmra.mrb[12].mxu0 %v9047_v7  ;;  %v2154_v16 = vld [vmem:[%s10130_s30 + $0x170] sm:$0xff]  ;;  %v2187_v10 = vld [vmem:[%s10130_s30 + $0x278] sm:$0xff] }
 0x180   : > { %v2407_v9 = vpop.permute.xlu0 %2406  ;;  %3900 = vmatprep.mubr.bf16.mxu1 %v9048_v48  ;;  %3804 = vmatprep.mubr.bf16.mxu0 %v9051_v12  ;;  %v2186_v13 = vld [vmem:[%s10130_s30 + $0x270] sm:$0xff] }
 0x181   : > { %v2724_v27 = vmul.f32 %v2407_v9, %v2148_v52  ;;  %4197 = vmatpush1.bf16.msra.mxu0 %v2815_v22  ;;  %v9068_v22 = vld [vmem:[%s10137_s12 + $0x390] ss:$24 sps:$4 sm:$0xff]  }
 0x182   : > { %v2572_v53 = vpop.permute.xlu1 %2571  ;;  %4198 = vmatprep.subr.bf16.mxu0 %v9747_v20 }
 0x183   : > { %v2800_v28 = vpack.c.bf16 %v2725_v23, %v2724_v27  ;;  %v2757_v58 = vmul.f32 %v2572_v53, %v2181_v26  ;;  %v9071_v23 = vld [vmem:[%s10137_s12 + $0x150] ss:$24 sps:$4 sm:$0xff]   ;;  %v9072_v27 = vld [vmem:[%s10137_s12 + $0x3c4] ss:$24 sps:$4 sm:$0xff]  }
 0x184   : > { %v2567_v33 = vpop.permute.xlu0 %2566  ;;  %v2157_v26 = vld [vmem:[%s10130_s30 + $0x188] sm:$0xff]  ;;  %v9075_v53 = vld [vmem:[%s10137_s12 + $0x184] ss:$24 sps:$4 sm:$0xff]  }
 0x185   : > { %v2756_v37 = vmul.f32 %v2567_v33, %v2180_v14  ;;  %3974 = vmatpush1.bf16.msra.mxu1 %v2800_v28 }
 0x186   : > { %v2422_v32 = vpop.permute.xlu1 %2421  ;;  %3975 = vmatprep.subr.bf16.mxu1 %v9747_v20 }
 0x187   : > { %v2816_v39 = vpack.c.bf16 %v2757_v58, %v2756_v37  ;;  %v2727_v44 = vmul.f32 %v2422_v32, %v2151_v18  ;;  %3901 = vmatmul.mubr.bf16.gmra.mrb[16].mxu1 %v9050_v30  ;;  %3805 = vmatmul.mubr.bf16.gmra.mrb[16].mxu0 %v9053_v31  ;;  %v2156_v58 = vld [vmem:[%s10130_s30 + $0x180] sm:$0xff]  ;;  %v2189_v18 = vld [vmem:[%s10130_s30 + $0x288] sm:$0xff] }
 0x188   : > { %v2417_v36 = vpop.permute.xlu0 %2416  ;;  %3908 = vmatprep.mubr.bf16.mxu1 %v9054_v61  ;;  %3812 = vmatprep.mubr.bf16.mxu0 %v9057_v35  ;;  %v2188_v37 = vld [vmem:[%s10130_s30 + $0x280] sm:$0xff] }
 0x189   : > { %v2726_v11 = vmul.f32 %v2417_v36, %v2150_v42  ;;  %4199 = vmatpush1.bf16.msra.mxu0 %v2816_v39  ;;  %v9074_v39 = vld [vmem:[%s10137_s12 + $0x3c0] ss:$24 sps:$4 sm:$0xff]  }
 0x18a   : > { %v2582_v40 = vpop.permute.xlu1 %2581  ;;  %4200 = vmatprep.subr.bf16.mxu0 %v9747_v20 }
 0x18b   : > { %v2801_v15 = vpack.c.bf16 %v2727_v44, %v2726_v11  ;;  %v2759_v54 = vmul.f32 %v2582_v40, %v2183_v49  ;;  %v9077_v44 = vld [vmem:[%s10137_s12 + $0x180] ss:$24 sps:$4 sm:$0xff]   ;;  %v9078_v11 = vld [vmem:[%s10137_s12 + $0x3f4] ss:$24 sps:$4 sm:$0xff]  }
 0x18c   : > { %v2577_v55 = vpop.permute.xlu0 %2576  ;;  %v2159_v49 = vld [vmem:[%s10130_s30 + $0x198] sm:$0xff]  ;;  %v9081_v40 = vld [vmem:[%s10137_s12 + $0x1b4] ss:$24 sps:$4 sm:$0xff]  }
 0x18d   : > { %v2758_v60 = vmul.f32 %v2577_v55, %v2182_v43  ;;  %3976 = vmatpush1.bf16.msra.mxu1 %v2801_v15 }
 0x18e   : > { %v2432_v24 = vpop.permute.xlu1 %2431  ;;  %3977 = vmatprep.subr.bf16.mxu1 %v9747_v20 }
 0x18f   : > { %v2817_v63 = vpack.c.bf16 %v2759_v54, %v2758_v60  ;;  %v2729_v56 = vmul.f32 %v2432_v24, %v2153_v19  ;;  %3909 = vmatmul.mubr.bf16.gmra.mrb[20].mxu1 %v9056_v21  ;;  %3813 = vmatmul.mubr.bf16.gmra.mrb[20].mxu0 %v9059_v45  ;;  %v2158_v54 = vld [vmem:[%s10130_s30 + $0x190] sm:$0xff]  ;;  %v2191_v19 = vld [vmem:[%s10130_s30 + $0x298] sm:$0xff] }
 0x190   : > { %v2427_v29 = vpop.permute.xlu0 %2426  ;;  %3916 = vmatprep.mubr.bf16.mxu1 %v9060_v57  ;;  %3820 = vmatprep.mubr.bf16.mxu0 %v9063_v50  ;;  %v2190_v60 = vld [vmem:[%s10130_s30 + $0x290] sm:$0xff] }
 0x191   : > { %v2728_v59 = vmul.f32 %v2427_v29, %v2152_v62  ;;  %4201 = vmatpush1.bf16.msra.mxu0 %v2817_v63  ;;  %v9080_v63 = vld [vmem:[%s10137_s12 + $0x3f0] ss:$24 sps:$4 sm:$0xff]  }
 0x192   : > { %v2592_v38 = vpop.permute.xlu1 %2591  ;;  %4202 = vmatprep.subr.bf16.mxu0 %v9747_v20 }
 0x193   : > { %v2802_v41 = vpack.c.bf16 %v2729_v56, %v2728_v59  ;;  %v2761_v2 = vmul.f32 %v2592_v38, %v2185_v0  ;;  %v9083_v56 = vld [vmem:[%s10137_s12 + $0x1b0] ss:$24 sps:$4 sm:$0xff]   ;;  %v9084_v59 = vld [vmem:[%s10137_s12 + $0x424] ss:$24 sps:$4 sm:$0xff]  }
 0x194   : > { %v2587_v3 = vpop.permute.xlu0 %2586  ;;  %v2161_v0 = vld [vmem:[%s10130_s30 + $0x1a8] sm:$0xff]  ;;  %v9087_v38 = vld [vmem:[%s10137_s12 + $0x1e4] ss:$24 sps:$4 sm:$0xff]  }
 0x195   : > { %v2760_v25 = vmul.f32 %v2587_v3, %v2184_v34  ;;  %3978 = vmatpush1.bf16.msra.mxu1 %v2802_v41 }
 0x196   : > { %v2442_v6 = vpop.permute.xlu1 %2441  ;;  %3979 = vmatprep.subr.bf16.mxu1 %v9747_v20 }
 0x197   : > { %v2818_v47 = vpack.c.bf16 %v2761_v2, %v2760_v25  ;;  %v2731_v7 = vmul.f32 %v2442_v6, %v2155_v4  ;;  %3917 = vmatmul.mubr.bf16.gmra.mrb[24].mxu1 %v9062_v46  ;;  %3821 = vmatmul.mubr.bf16.gmra.mrb[24].mxu0 %v9065_v1  ;;  %v2160_v2 = vld [vmem:[%s10130_s30 + $0x1a0] sm:$0xff]  ;;  %v2193_v4 = vld [vmem:[%s10130_s30 + $0x2a8] sm:$0xff] }
 0x198   : > { %v2437_v8 = vpop.permute.xlu0 %2436  ;;  %3924 = vmatprep.mubr.bf16.mxu1 %v9066_v51  ;;  %3828 = vmatprep.mubr.bf16.mxu0 %v9069_v5  ;;  %v2192_v25 = vld [vmem:[%s10130_s30 + $0x2a0] sm:$0xff] }
 0x199   : > { %v2730_v48 = vmul.f32 %v2437_v8, %v2154_v16  ;;  %4203 = vmatpush1.bf16.msra.mxu0 %v2818_v47  ;;  %v9086_v47 = vld [vmem:[%s10137_s12 + $0x420] ss:$24 sps:$4 sm:$0xff]  }
 0x19a   : > { %v2602_v12 = vpop.permute.xlu1 %2601  ;;  %4204 = vmatprep.subr.bf16.mxu0 %v9747_v20 }
 0x19b   : > { %v2803_v17 = vpack.c.bf16 %v2731_v7, %v2730_v48  ;;  %v2763_v52 = vmul.f32 %v2602_v12, %v2187_v10  ;;  %v9089_v7 = vld [vmem:[%s10137_s12 + $0x1e0] ss:$24 sps:$4 sm:$0xff]   ;;  %v9090_v48 = vld [vmem:[%s10137_s12 + $0x454] ss:$24 sps:$4 sm:$0xff]  }
 0x19c   : > { %v2597_v9 = vpop.permute.xlu0 %2596  ;;  %v2163_v10 = vld [vmem:[%s10130_s30 + $0x1b8] sm:$0xff]  ;;  %v9093_v12 = vld [vmem:[%s10137_s12 + $0x214] ss:$24 sps:$4 sm:$0xff]  }
 0x19d   : > { %v2762_v14 = vmul.f32 %v2597_v9, %v2186_v13  ;;  %3980 = vmatpush1.bf16.msra.mxu1 %v2803_v17 }
 0x19e   : > { %v2452_v28 = vpop.permute.xlu1 %2451  ;;  %3981 = vmatprep.subr.bf16.mxu1 %v9747_v20 }
 0x19f   : > { %v2819_v30 = vpack.c.bf16 %v2763_v52, %v2762_v14  ;;  %v2733_v31 = vmul.f32 %v2452_v28, %v2157_v26  ;;  %3925 = vmatmul.mubr.bf16.gmra.mrb[28].mxu1 %v9068_v22  ;;  %3829 = vmatmul.mubr.bf16.gmra.mrb[28].mxu0 %v9071_v23  ;;  %v2162_v52 = vld [vmem:[%s10130_s30 + $0x1b0] sm:$0xff]  ;;  %v2195_v26 = vld [vmem:[%s10130_s30 + $0x2b8] sm:$0xff] }
 0x1a0   : > { %v2447_v33 = vpop.permute.xlu0 %2446  ;;  %3932 = vmatprep.mubr.bf16.mxu1 %v9072_v27  ;;  %3836 = vmatprep.mubr.bf16.mxu0 %v9075_v53  ;;  %v2194_v14 = vld [vmem:[%s10130_s30 + $0x2b0] sm:$0xff] }
 0x1a1   : > { %v2732_v61 = vmul.f32 %v2447_v33, %v2156_v58  ;;  %4205 = vmatpush1.bf16.msra.mxu0 %v2819_v30  ;;  %v9092_v30 = vld [vmem:[%s10137_s12 + $0x450] ss:$24 sps:$4 sm:$0xff]  }
 0x1a2   : > { %v2612_v35 = vpop.permute.xlu1 %2611  ;;  %4206 = vmatprep.subr.bf16.mxu0 %v9747_v20 }
 0x1a3   : > { %v2804_v32 = vpack.c.bf16 %v2733_v31, %v2732_v61  ;;  %v2765_v42 = vmul.f32 %v2612_v35, %v2189_v18  ;;  %v9095_v31 = vld [vmem:[%s10137_s12 + $0x210] ss:$24 sps:$4 sm:$0xff]   ;;  %v9098_v61 = vld [vmem:[%s10137_s12 + $0xc] ss:$24 sps:$4 sm:$0xff]  }
 0x1a4   : > { %v2607_v36 = vpop.permute.xlu0 %2606  ;;  %v2165_v18 = vld [vmem:[%s10130_s30 + $0x1c8] sm:$0xff] }
 0x1a5   : > { %v2764_v43 = vmul.f32 %v2607_v36, %v2188_v37  ;;  %3982 = vmatpush1.bf16.msra.mxu1 %v2804_v32  ;;  %v9101_v35 = vld [vmem:[%s10137_s12 + $0x14] ss:$24 sps:$4 sm:$0xff]  }
 0x1a6   : > { %v2462_v15 = vpop.permute.xlu1 %2461  ;;  %3983 = vmatprep.subr.bf16.mxu1 %v9747_v20 }
 0x1a7   : > { %v2820_v21 = vpack.c.bf16 %v2765_v42, %v2764_v43  ;;  %v2735_v45 = vmul.f32 %v2462_v15, %v2159_v49  ;;  %3933 = vmatmul.mubr.bf16.gmra.mrb[32].mxu1 %v9074_v39  ;;  %3837 = vmatmul.mubr.bf16.gmra.mrb[32].mxu0 %v9077_v44  ;;  %v2164_v42 = vld [vmem:[%s10130_s30 + $0x1c0] sm:$0xff]  ;;  %v2197_v49 = vld [vmem:[%s10130_s30 + $0x2c8] sm:$0xff] }
 0x1a8   : > { %v2457_v55 = vpop.permute.xlu0 %2456  ;;  %3940 = vmatprep.mubr.bf16.mxu1 %v9078_v11  ;;  %3844 = vmatprep.mubr.bf16.mxu0 %v9081_v40  ;;  %v2196_v43 = vld [vmem:[%s10130_s30 + $0x2c0] sm:$0xff] }
 0x1a9   : > { %v2734_v57 = vmul.f32 %v2457_v55, %v2158_v54  ;;  %4207 = vmatpush1.bf16.msra.mxu0 %v2820_v21 }
 0x1aa   : > { %v2622_v50 = vpop.permute.xlu1 %2621  ;;  %4208 = vmatprep.subr.bf16.mxu0 %v9747_v20 }
 0x1ab   : > { %v2805_v24 = vpack.c.bf16 %v2735_v45, %v2734_v57  ;;  %v2767_v62 = vmul.f32 %v2622_v50, %v2191_v19  ;;  %v2167_v45 = vld [vmem:[%s10130_s30 + $0x1d8] sm:$0xff]  ;;  %v2166_v57 = vld [vmem:[%s10130_s30 + $0x1d0] sm:$0xff] }
 0x1ac   : > { %v2617_v29 = vpop.permute.xlu0 %2616 }
 0x1ad   : > { %v2766_v34 = vmul.f32 %v2617_v29, %v2190_v60  ;;  %3984 = vmatpush1.bf16.msra.mxu1 %v2805_v24  ;;  %v2198_v29 = vld [vmem:[%s10130_s30 + $0x2d0] sm:$0xff] }
 0x1ae   : > { %v2472_v41 = vpop.permute.xlu1 %2471  ;;  %3985 = vmatprep.subr.bf16.mxu1 %v9747_v20 }
 0x1af   : > { %v2821_v46 = vpack.c.bf16 %v2767_v62, %v2766_v34  ;;  %v2737_v1 = vmul.f32 %v2472_v41, %v2161_v0  ;;  %3941 = vmatmul.mubr.bf16.gmra.mrb[36].mxu1 %v9080_v63  ;;  %3845 = vmatmul.mubr.bf16.gmra.mrb[36].mxu0 %v9083_v56  ;;  %v2199_v62 = vld [vmem:[%s10130_s30 + $0x2d8] sm:$0xff]  ;;  %v2169_v34 = vld [vmem:[%s10130_s30 + $0x1e8] sm:$0xff] }
 0x1b0   : > { %v2467_v3 = vpop.permute.xlu0 %2466  ;;  %3948 = vmatprep.mubr.bf16.mxu1 %v9084_v59  ;;  %3852 = vmatprep.mubr.bf16.mxu0 %v9087_v38 }
 0x1b1   : > { %v2736_v51 = vmul.f32 %v2467_v3, %v2160_v2  ;;  %4209 = vmatpush1.bf16.msra.mxu0 %v2821_v46  ;;  %v2168_v46 = vld [vmem:[%s10130_s30 + $0x1e0] sm:$0xff] }
 0x1b2   : > { %v2632_v5 = vpop.permute.xlu1 %2631  ;;  %4210 = vmatprep.subr.bf16.mxu0 %v9747_v20 }
 0x1b3   : > { %v2806_v6 = vpack.c.bf16 %v2737_v1, %v2736_v51  ;;  %v2769_v16 = vmul.f32 %v2632_v5, %v2193_v4  ;;  %v2201_v51 = vld [vmem:[%s10130_s30 + $0x2e8] sm:$0xff] }
 0x1b4   : > { %v2627_v8 = vpop.permute.xlu0 %2626 }
 0x1b5   : > { %v2768_v13 = vmul.f32 %v2627_v8, %v2192_v25  ;;  %3986 = vmatpush1.bf16.msra.mxu1 %v2806_v6  ;;  %v2200_v6 = vld [vmem:[%s10130_s30 + $0x2e0] sm:$0xff]  ;;  %v2171_v8 = vld [vmem:[%s10130_s30 + $0x1f8] sm:$0xff] }
 0x1b6   : > { %v2482_v17 = vpop.permute.xlu1 %2481  ;;  %3987 = vmatprep.subr.bf16.mxu1 %v9747_v20 }
 0x1b7   : > { %v2822_v22 = vpack.c.bf16 %v2769_v16, %v2768_v13  ;;  %v2739_v23 = vmul.f32 %v2482_v17, %v2163_v10  ;;  %3949 = vmatmul.mubr.bf16.gmra.mrb[40].mxu1 %v9086_v47  ;;  %3853 = vmatmul.mubr.bf16.gmra.mrb[40].mxu0 %v9089_v7 }
 0x1b8   : > { %v2477_v9 = vpop.permute.xlu0 %2476  ;;  %3956 = vmatprep.mubr.bf16.mxu1 %v9090_v48  ;;  %3860 = vmatprep.mubr.bf16.mxu0 %v9093_v12  ;;  %v2170_v12 = vld [vmem:[%s10130_s30 + $0x1f0] sm:$0xff] }
 0x1b9   : > { %v2738_v27 = vmul.f32 %v2477_v9, %v2162_v52  ;;  %4211 = vmatpush1.bf16.msra.mxu0 %v2822_v22  ;;  %v2203_v22 = vld [vmem:[%s10130_s30 + $0x2f8] sm:$0xff] }
 0x1ba   : > { %v2642_v53 = vpop.permute.xlu1 %2641  ;;  %4212 = vmatprep.subr.bf16.mxu0 %v9747_v20 }
 0x1bb   : > { %v2807_v28 = vpack.c.bf16 %v2739_v23, %v2738_v27  ;;  %v2771_v58 = vmul.f32 %v2642_v53, %v2195_v26  ;;  %v2202_v26 = vld [vmem:[%s10130_s30 + $0x2f0] sm:$0xff] }
 0x1bc   : > { %v2637_v33 = vpop.permute.xlu0 %2636 }
 0x1bd   : > { %v2770_v37 = vmul.f32 %v2637_v33, %v2194_v14  ;;  %3988 = vmatpush1.bf16.msra.mxu1 %v2807_v28  ;;  %v9096_v28 = vld [vmem:[%s10137_s12 + $0x8] ss:$24 sps:$4 sm:$0xff]  }
 0x1be   : > { %v2492_v32 = vpop.permute.xlu1 %2491  ;;  %3989 = vmatprep.subr.bf16.mxu1 %v9747_v20  ;;  %v9099_v33 = vld [vmem:[%s10137_s12 + $0x10] ss:$24 sps:$4 sm:$0xff]  }
 0x1bf   : > { %v2823_v39 = vpack.c.bf16 %v2771_v58, %v2770_v37  ;;  %v2741_v44 = vmul.f32 %v2492_v32, %v2165_v18  ;;  %3957 = vmatmul.mubr.bf16.gmra.mrb[44].mxu1 %v9092_v30  ;;  %3861 = vmatmul.mubr.bf16.gmra.mrb[44].mxu0 %v9095_v31  ;;  %v9102_v30 = vld [vmem:[%s10137_s12 + $0x3c] ss:$24 sps:$4 sm:$0xff]   ;;  %v9110_v32 = vld [vmem:[%s10137_s12 + $0x68] ss:$24 sps:$4 sm:$0xff]  }
 0x1c0   : > { %v2487_v36 = vpop.permute.xlu0 %2486  ;;  %3997 = vmatprep.mubr.bf16.mxu1 %v9098_v61  ;;  %4222 = vmatprep.mubr.bf16.mxu0 %v9101_v35  ;;  %v9105_v18 = vld [vmem:[%s10137_s12 + $0x44] ss:$24 sps:$4 sm:$0xff]   ;;  %v9107_v35 = vld [vmem:[%s10137_s12 + $0x40] ss:$24 sps:$4 sm:$0xff]   ;;  %v9111_v37 = vld [vmem:[%s10137_s12 + $0x74] ss:$24 sps:$4 sm:$0xff]  }
 0x1c1   : > { %v2740_v11 = vmul.f32 %v2487_v36, %v2164_v42  ;;  %4213 = vmatpush1.bf16.msra.mxu0 %v2823_v39  ;;  %v9108_v61 = vld [vmem:[%s10137_s12 + $0x6c] ss:$24 sps:$4 sm:$0xff]   ;;  %v9114_v42 = vld [vmem:[%s10137_s12 + $0x9c] ss:$24 sps:$4 sm:$0xff]   ;;  %v9113_v39 = vld [vmem:[%s10137_s12 + $0x70] ss:$24 sps:$4 sm:$0xff]  }
 0x1c2   : > { %v2652_v40 = vpop.permute.xlu1 %2651  ;;  %4214 = vmatprep.subr.bf16.mxu0 %v9747_v20  ;;  %v9116_v36 = vld [vmem:[%s10137_s12 + $0x98] ss:$24 sps:$4 sm:$0xff]  }
 0x1c3   : > { %v2808_v15 = vpack.c.bf16 %v2741_v44, %v2740_v11  ;;  %v2773_v54 = vmul.f32 %v2652_v40, %v2197_v49  ;;  %v9117_v44 = vld [vmem:[%s10137_s12 + $0xa4] ss:$24 sps:$4 sm:$0xff]   ;;  %v9119_v11 = vld [vmem:[%s10137_s12 + $0xa0] ss:$24 sps:$4 sm:$0xff]   ;;  %v9123_v40 = vld [vmem:[%s10137_s12 + $0xd4] ss:$24 sps:$4 sm:$0xff]  }
 0x1c4   : > { %v2647_v21 = vpop.permute.xlu0 %2646  ;;  %v9120_v49 = vld [vmem:[%s10137_s12 + $0xcc] ss:$24 sps:$4 sm:$0xff]  }
 0x1c5   : > { %v2772_v55 = vmul.f32 %v2647_v21, %v2196_v43  ;;  %3990 = vmatpush1.bf16.msra.mxu1 %v2808_v15  ;;  %v9122_v43 = vld [vmem:[%s10137_s12 + $0xc8] ss:$24 sps:$4 sm:$0xff]   ;;  %v9126_v15 = vld [vmem:[%s10137_s12 + $0xfc] ss:$24 sps:$4 sm:$0xff]  }
 0x1c6   : > { %v2502_v19 = vpop.permute.xlu1 %2501  ;;  %3991 = vmatprep.subr.bf16.mxu1 %v9747_v20  ;;  %v9129_v21 = vld [vmem:[%s10137_s12 + $0x104] ss:$24 sps:$4 sm:$0xff]  }
 0x1c7   : > { %v2824_v50 = vpack.c.bf16 %v2773_v54, %v2772_v55  ;;  %v2743_v60 = vmul.f32 %v2502_v19, %v2167_v45  ;;  %v9125_v54 = vld [vmem:[%s10137_s12 + $0xd0] ss:$24 sps:$4 sm:$0xff]   ;;  %v9132_v55 = vld [vmem:[%s10137_s12 + $0x12c] ss:$24 sps:$4 sm:$0xff]   ;;  %v9131_v19 = vld [vmem:[%s10137_s12 + $0x100] ss:$24 sps:$4 sm:$0xff]  }
 0x1c8   : > { %v2497_v24 = vpop.permute.xlu0 %2496  ;;  %v9128_v45 = vld [vmem:[%s10137_s12 + $0xf8] ss:$24 sps:$4 sm:$0xff]  }
 0x1c9   : > { %v2742_v63 = vmul.f32 %v2497_v24, %v2166_v57  ;;  %4215 = vmatpush1.bf16.msra.mxu0 %v2824_v50  ;;  %v9135_v57 = vld [vmem:[%s10137_s12 + $0x134] ss:$24 sps:$4 sm:$0xff]   ;;  %v9134_v50 = vld [vmem:[%s10137_s12 + $0x128] ss:$24 sps:$4 sm:$0xff]  }
 0x1ca   : > { %v2662_v56 = vpop.permute.xlu1 %2661  ;;  %4216 = vmatprep.subr.bf16.mxu0 %v9747_v20  ;;  %v9137_v24 = vld [vmem:[%s10137_s12 + $0x130] ss:$24 sps:$4 sm:$0xff]  }
 0x1cb   : > { %v2809_v0 = vpack.c.bf16 %v2743_v60, %v2742_v63  ;;  %v2775_v59 = vmul.f32 %v2662_v56, %v2199_v62  ;;  %v9138_v60 = vld [vmem:[%s10137_s12 + $0x15c] ss:$24 sps:$4 sm:$0xff]   ;;  %v9140_v63 = vld [vmem:[%s10137_s12 + $0x158] ss:$24 sps:$4 sm:$0xff]   ;;  %v9144_v56 = vld [vmem:[%s10137_s12 + $0x18c] ss:$24 sps:$4 sm:$0xff]  }
 0x1cc   : > { %v2657_v38 = vpop.permute.xlu0 %2656  ;;  %v9141_v62 = vld [vmem:[%s10137_s12 + $0x164] ss:$24 sps:$4 sm:$0xff]  }
 0x1cd   : > { %v2774_v41 = vmul.f32 %v2657_v38, %v2198_v29  ;;  %3992 = vmatpush1.bf16.msra.mxu1 %v2809_v0  ;;  %v9143_v29 = vld [vmem:[%s10137_s12 + $0x160] ss:$24 sps:$4 sm:$0xff]   ;;  %v9147_v0 = vld [vmem:[%s10137_s12 + $0x194] ss:$24 sps:$4 sm:$0xff]  }
 0x1ce   : > { %v2512_v2 = vpop.permute.xlu1 %2511  ;;  %3993 = vmatprep.subr.bf16.mxu1 %v9747_v20  ;;  %v9150_v38 = vld [vmem:[%s10137_s12 + $0x1bc] ss:$24 sps:$4 sm:$0xff]  }
 0x1cf   : > { %v2825_v1 = vpack.c.bf16 %v2775_v59, %v2774_v41  ;;  %v2745_v3 = vmul.f32 %v2512_v2, %v2169_v34  ;;  %v9146_v59 = vld [vmem:[%s10137_s12 + $0x188] ss:$24 sps:$4 sm:$0xff]   ;;  %v9153_v41 = vld [vmem:[%s10137_s12 + $0x1c4] ss:$24 sps:$4 sm:$0xff]   ;;  %v9152_v2 = vld [vmem:[%s10137_s12 + $0x1b8] ss:$24 sps:$4 sm:$0xff]  }
 0x1d0   : > { %v2507_v4 = vpop.permute.xlu0 %2506  ;;  %v9149_v34 = vld [vmem:[%s10137_s12 + $0x190] ss:$24 sps:$4 sm:$0xff]  }
 0x1d1   : > { %v2744_v5 = vmul.f32 %v2507_v4, %v2168_v46  ;;  %4217 = vmatpush1.bf16.msra.mxu0 %v2825_v1  ;;  %v9156_v46 = vld [vmem:[%s10137_s12 + $0x1ec] ss:$24 sps:$4 sm:$0xff]   ;;  %v9155_v1 = vld [vmem:[%s10137_s12 + $0x1c0] ss:$24 sps:$4 sm:$0xff]  }
 0x1d2   : > { %v2672_v25 = vpop.permute.xlu1 %2671  ;;  %4218 = vmatprep.subr.bf16.mxu0 %v9747_v20  ;;  %v9158_v4 = vld [vmem:[%s10137_s12 + $0x1e8] ss:$24 sps:$4 sm:$0xff]  }
 0x1d3   : > { %v2810_v16 = vpack.c.bf16 %v2745_v3, %v2744_v5  ;;  %v2777_v47 = vmul.f32 %v2672_v25, %v2201_v51  ;;  %v9159_v3 = vld [vmem:[%s10137_s12 + $0x1f4] ss:$24 sps:$4 sm:$0xff]   ;;  %v9161_v5 = vld [vmem:[%s10137_s12 + $0x1f0] ss:$24 sps:$4 sm:$0xff]   ;;  %v9165_v25 = vld [vmem:[%s10137_s12 + $0x224] ss:$24 sps:$4 sm:$0xff]  }
 0x1d4   : > { %v2667_v7 = vpop.permute.xlu0 %2666  ;;  %v9162_v51 = vld [vmem:[%s10137_s12 + $0x21c] ss:$24 sps:$4 sm:$0xff]  }
 0x1d5   : > { %v2776_v10 = vmul.f32 %v2667_v7, %v2200_v6  ;;  %3994 = vmatpush1.bf16.msra.mxu1 %v2810_v16  ;;  %v9164_v6 = vld [vmem:[%s10137_s12 + $0x218] ss:$24 sps:$4 sm:$0xff]   ;;  %v9168_v16 = vld [vmem:[%s10137_s12 + $0x24c] ss:$24 sps:$4 sm:$0xff]  }
 0x1d6   : > { %v2522_v48 = vpop.permute.xlu1 %2521  ;;  %3995 = vmatprep.subr.bf16.mxu1 %v9747_v20  ;;  %v9171_v7 = vld [vmem:[%s10137_s12 + $0x254] ss:$24 sps:$4 sm:$0xff]  }
 0x1d7   : > { %v2826_v13 = vpack.c.bf16 %v2777_v47, %v2776_v10  ;;  %v2747_v17 = vmul.f32 %v2522_v48, %v2171_v8  ;;  %v9167_v47 = vld [vmem:[%s10137_s12 + $0x220] ss:$24 sps:$4 sm:$0xff]  }
 0x1d8   : > { %v2517_v52 = vpop.permute.xlu0 %2516 }
 0x1d9   : > { %v2746_v23 = vmul.f32 %v2517_v52, %v2170_v12  ;;  %4219 = vmatpush1.bf16.msra.mxu0 %v2826_v13  ;;  %v9170_v13 = vld [vmem:[%s10137_s12 + $0x248] ss:$24 sps:$4 sm:$0xff]  }
 0x1da   : > { %v2682_v9 = vpop.permute.xlu1 %2681  ;;  %4220 = vmatprep.subr.bf16.mxu0 %v9747_v20  ;;  %v9104_v20 = vld [vmem:[%s10137_s12 + $0x38] ss:$24 sps:$4 sm:$0xff]  }
 0x1db   : > { %v2811_v27 = vpack.c.bf16 %v2747_v17, %v2746_v23  ;;  %v2779_v53 = vmul.f32 %v2682_v9, %v2203_v22  ;;  %v9174_v22 = vld [vmem:[%s10137_s12 + $0x27c] ss:$24 sps:$4 sm:$0xff]  }
 0x1dc   : > { %v2677_v14 = vpop.permute.xlu0 %2676 }
 0x1dd   : > { %v2778_v58 = vmul.f32 %v2677_v14, %v2202_v26  ;;  %3996 = vmatpush1.bf16.msra.mxu1 %v2811_v27  ;;  %v9173_v26 = vld [vmem:[%s10137_s12 + $0x250] ss:$24 sps:$4 sm:$0xff]   ;;  %v9177_v27 = vld [vmem:[%s10137_s12 + $0x284] ss:$24 sps:$4 sm:$0xff]  }
 0x1df   : > { %v2827_v31 = vpack.c.bf16 %v2779_v53, %v2778_v58 }
 0x1e0   : > { %3998 = vmatmul.mubr.bf16.vlgmr.msra.gmra.mrb[48].mxu1 %v9096_v28 }
 0x1e1   : > { %4221 = vmatpush1.bf16.msra.mxu0 %v2827_v31  ;;  %4005 = vmatprep.mubr.bf16.mxu1 %v9102_v30  ;;  %v9176_v30 = vld [vmem:[%s10137_s12 + $0x278] ss:$24 sps:$4 sm:$0xff]  }
 0x1e4   : > { %4223 = vmatmul.mubr.bf16.vlgmr.msra.gmra.mrb[48].mxu0 %v9099_v33 }
 0x1e5   : > { %4230 = vmatprep.mubr.bf16.mxu0 %v9105_v18  ;;  %v9180_v18 = vld [vmem:[%s10137_s12 + $0x2ac] ss:$24 sps:$4 sm:$0xff]  }
 0x1e8   : > { %4006 = vmatmul.mubr.bf16.gmra.mrb[52].mxu1 %v9104_v20 }
 0x1e9   : > { %4013 = vmatprep.mubr.bf16.mxu1 %v9108_v61 }
 0x1ec   : > { %4231 = vmatmul.mubr.bf16.gmra.mrb[52].mxu0 %v9107_v35  ;;  %v9179_v35 = vld [vmem:[%s10137_s12 + $0x280] ss:$24 sps:$4 sm:$0xff]  }
 0x1ed   : > { %4238 = vmatprep.mubr.bf16.mxu0 %v9111_v37  ;;  %v9183_v37 = vld [vmem:[%s10137_s12 + $0x2b4] ss:$24 sps:$4 sm:$0xff]  }
 0x1f0   : > { %4014 = vmatmul.mubr.bf16.gmra.mrb[56].mxu1 %v9110_v32 }
 0x1f1   : > { %4021 = vmatprep.mubr.bf16.mxu1 %v9114_v42 }
 0x1f4   : > { %4239 = vmatmul.mubr.bf16.gmra.mrb[56].mxu0 %v9113_v39 }
 0x1f5   : > { %4246 = vmatprep.mubr.bf16.mxu0 %v9117_v44 }
 0x1f8   : > { %4022 = vmatmul.mubr.bf16.gmra.mrb[60].mxu1 %v9116_v36  ;;  %v9182_v36 = vld [vmem:[%s10137_s12 + $0x2a8] ss:$24 sps:$4 sm:$0xff]  }
 0x1f9   : > { %4029 = vmatprep.mubr.bf16.mxu1 %v9120_v49 }
 0x1fc   : > { %4247 = vmatmul.mubr.bf16.gmra.mrb[60].mxu0 %v9119_v11 }
 0x1fd   : > { %4254 = vmatprep.mubr.bf16.mxu0 %v9123_v40  ;;  %v9186_v40 = vld [vmem:[%s10137_s12 + $0x2dc] ss:$24 sps:$4 sm:$0xff]  }
 0x200   : > { %4030 = vmatmul.mubr.bf16.gmra.mrb[64].mxu1 %v9122_v43 }
 0x201   : > { %4037 = vmatprep.mubr.bf16.mxu1 %v9126_v15 }
 0x204   : > { %4255 = vmatmul.mubr.bf16.gmra.mrb[64].mxu0 %v9125_v54  ;;  %v9185_v54 = vld [vmem:[%s10137_s12 + $0x2b0] ss:$24 sps:$4 sm:$0xff]  }
 0x205   : > { %4262 = vmatprep.mubr.bf16.mxu0 %v9129_v21  ;;  %v9189_v21 = vld [vmem:[%s10137_s12 + $0x2e4] ss:$24 sps:$4 sm:$0xff]  }
 0x208   : > { %4038 = vmatmul.mubr.bf16.gmra.mrb[68].mxu1 %v9128_v45 }
 0x209   : > { %4045 = vmatprep.mubr.bf16.mxu1 %v9132_v55 }
 0x20c   : > { %4263 = vmatmul.mubr.bf16.gmra.mrb[68].mxu0 %v9131_v19 }
 0x20d   : > { %4270 = vmatprep.mubr.bf16.mxu0 %v9135_v57 }
 0x210   : > { %4046 = vmatmul.mubr.bf16.gmra.mrb[72].mxu1 %v9134_v50  ;;  %v9188_v50 = vld [vmem:[%s10137_s12 + $0x2d8] ss:$24 sps:$4 sm:$0xff]  }
 0x211   : > { %4053 = vmatprep.mubr.bf16.mxu1 %v9138_v60 }
 0x214   : > { %4271 = vmatmul.mubr.bf16.gmra.mrb[72].mxu0 %v9137_v24 }
 0x215   : > { %4278 = vmatprep.mubr.bf16.mxu0 %v9141_v62  ;;  %v9192_v62 = vld [vmem:[%s10137_s12 + $0x30c] ss:$24 sps:$4 sm:$0xff]  }
 0x218   : > { %4054 = vmatmul.mubr.bf16.gmra.mrb[76].mxu1 %v9140_v63 }
 0x219   : > { %4061 = vmatprep.mubr.bf16.mxu1 %v9144_v56 }
 0x21c   : > { %4279 = vmatmul.mubr.bf16.gmra.mrb[76].mxu0 %v9143_v29  ;;  %v9191_v29 = vld [vmem:[%s10137_s12 + $0x2e0] ss:$24 sps:$4 sm:$0xff]  }
 0x21d   : > { %4286 = vmatprep.mubr.bf16.mxu0 %v9147_v0  ;;  %v9195_v0 = vld [vmem:[%s10137_s12 + $0x314] ss:$24 sps:$4 sm:$0xff]  }
 0x220   : > { %4062 = vmatmul.mubr.bf16.gmra.mrb[80].mxu1 %v9146_v59 }
 0x221   : > { %4069 = vmatprep.mubr.bf16.mxu1 %v9150_v38 }
 0x224   : > { %4287 = vmatmul.mubr.bf16.gmra.mrb[80].mxu0 %v9149_v34 }
 0x225   : > { %4294 = vmatprep.mubr.bf16.mxu0 %v9153_v41 }
 0x228   : > { %4070 = vmatmul.mubr.bf16.gmra.mrb[84].mxu1 %v9152_v2  ;;  %v9194_v2 = vld [vmem:[%s10137_s12 + $0x308] ss:$24 sps:$4 sm:$0xff]  }
 0x229   : > { %4077 = vmatprep.mubr.bf16.mxu1 %v9156_v46 }
 0x22c   : > { %4295 = vmatmul.mubr.bf16.gmra.mrb[84].mxu0 %v9155_v1 }
 0x22d   : > { %4302 = vmatprep.mubr.bf16.mxu0 %v9159_v3  ;;  %v9198_v3 = vld [vmem:[%s10137_s12 + $0x33c] ss:$24 sps:$4 sm:$0xff]  }
 0x230   : > { %4078 = vmatmul.mubr.bf16.gmra.mrb[88].mxu1 %v9158_v4 }
 0x231   : > { %4085 = vmatprep.mubr.bf16.mxu1 %v9162_v51 }
 0x234   : > { %4303 = vmatmul.mubr.bf16.gmra.mrb[88].mxu0 %v9161_v5  ;;  %v9197_v5 = vld [vmem:[%s10137_s12 + $0x310] ss:$24 sps:$4 sm:$0xff]  }
 0x235   : > { %4310 = vmatprep.mubr.bf16.mxu0 %v9165_v25  ;;  %v9201_v25 = vld [vmem:[%s10137_s12 + $0x344] ss:$24 sps:$4 sm:$0xff]  }
 0x238   : > { %4086 = vmatmul.mubr.bf16.gmra.mrb[92].mxu1 %v9164_v6 }
 0x239   : > { %4093 = vmatprep.mubr.bf16.mxu1 %v9168_v16 }
 0x23a   : > { %v10913_v8 = vpop.f32.mrb[0].mxu1  ;;  %v10915_v10 = vpop.f32.mrb[0].mxu0 }
 0x23b   : > { %v3872_v48 = vpop.f32.mrb[1].mxu1  ;;  %v3776_v12 = vpop.f32.mrb[1].mxu0 }
 0x23c   : > { %4311 = vmatmul.mubr.bf16.gmra.mrb[92].mxu0 %v9167_v47  ;;  %v10918_v17 = vpop.f32.mrb[2].mxu1  ;;  %v10920_v52 = vpop.f32.mrb[2].mxu0  ;;  %v9200_v48 = vld [vmem:[%s10137_s12 + $0x338] ss:$24 sps:$4 sm:$0xff]  }
 0x23d   : > { %4318 = vmatprep.mubr.bf16.mxu0 %v9171_v7  ;;  %v3875_v23 = vpop.f32.mrb[3].mxu1  ;;  %v3779_v9 = vpop.f32.mrb[3].mxu0 }
 0x240   : > { %4094 = vmatmul.mubr.bf16.gmra.mrb[96].mxu1 %v9170_v13 }
 0x241   : > { %4101 = vmatprep.mubr.bf16.mxu1 %v9174_v22  ;;  %v9204_v22 = vld [vmem:[%s10137_s12 + $0x36c] ss:$24 sps:$4 sm:$0xff]  }
 0x242   : > { %v10925_v53 = vpop.f32.mrb[4].mxu1  ;;  %v10927_v14 = vpop.f32.mrb[4].mxu0 }
 0x243   : > { %v3880_v28 = vpop.f32.mrb[5].mxu1  ;;  %v3784_v58 = vpop.f32.mrb[5].mxu0 }
 0x244   : > { %4319 = vmatmul.mubr.bf16.gmra.mrb[96].mxu0 %v9173_v26  ;;  %v10930_v31 = vpop.f32.mrb[6].mxu1  ;;  %v10932_v33 = vpop.f32.mrb[6].mxu0  ;;  %v9203_v26 = vld [vmem:[%s10137_s12 + $0x340] ss:$24 sps:$4 sm:$0xff]  }
 0x245   : > { %4326 = vmatprep.mubr.bf16.mxu0 %v9177_v27  ;;  %v3883_v20 = vpop.f32.mrb[7].mxu1  ;;  %v3787_v61 = vpop.f32.mrb[7].mxu0  ;;  %v9207_v27 = vld [vmem:[%s10137_s12 + $0x374] ss:$24 sps:$4 sm:$0xff]  }
 0x246   : > { %v9206_v20 = vld [vmem:[%s10137_s12 + $0x368] ss:$24 sps:$4 sm:$0xff]  }
 0x248   : > { %4102 = vmatmul.mubr.bf16.gmra.mrb[100].mxu1 %v9176_v30 }
 0x249   : > { %4109 = vmatprep.mubr.bf16.mxu1 %v9180_v18 }
 0x24a   : > { %v10937_v32 = vpop.f32.mrb[8].mxu1  ;;  %v10939_v42 = vpop.f32.mrb[8].mxu0 }
 0x24b   : > { %v3888_v39 = vpop.f32.mrb[9].mxu1  ;;  %v3792_v44 = vpop.f32.mrb[9].mxu0 }
 0x24c   : > { %4327 = vmatmul.mubr.bf16.gmra.mrb[100].mxu0 %v9179_v35  ;;  %v10942_v49 = vpop.f32.mrb[10].mxu1  ;;  %v10944_v11 = vpop.f32.mrb[10].mxu0 }
 0x24d   : > { %4334 = vmatprep.mubr.bf16.mxu0 %v9183_v37  ;;  %v3891_v43 = vpop.f32.mrb[11].mxu1  ;;  %v3795_v15 = vpop.f32.mrb[11].mxu0  ;;  %v9210_v37 = vld [vmem:[%s10137_s12 + $0x39c] ss:$24 sps:$4 sm:$0xff]  }
 0x250   : > { %4110 = vmatmul.mubr.bf16.gmra.mrb[104].mxu1 %v9182_v36  ;;  %v9209_v36 = vld [vmem:[%s10137_s12 + $0x370] ss:$24 sps:$4 sm:$0xff]  }
 0x251   : > { %4117 = vmatprep.mubr.bf16.mxu1 %v9186_v40  ;;  %v9213_v40 = vld [vmem:[%s10137_s12 + $0x3a4] ss:$24 sps:$4 sm:$0xff]  }
 0x252   : > { %v10949_v45 = vpop.f32.mrb[12].mxu1  ;;  %v10951_v55 = vpop.f32.mrb[12].mxu0 }
 0x253   : > { %v3896_v19 = vpop.f32.mrb[13].mxu1  ;;  %v3800_v57 = vpop.f32.mrb[13].mxu0 }
 0x254   : > { %4335 = vmatmul.mubr.bf16.gmra.mrb[104].mxu0 %v9185_v54  ;;  %v10954_v60 = vpop.f32.mrb[14].mxu1  ;;  %v10956_v24 = vpop.f32.mrb[14].mxu0  ;;  %v9212_v19 = vld [vmem:[%s10137_s12 + $0x398] ss:$24 sps:$4 sm:$0xff]  }
 0x255   : > { %4342 = vmatprep.mubr.bf16.mxu0 %v9189_v21  ;;  %v3899_v63 = vpop.f32.mrb[15].mxu1  ;;  %v3803_v56 = vpop.f32.mrb[15].mxu0 }
 0x258   : > { %4118 = vmatmul.mubr.bf16.gmra.mrb[108].mxu1 %v9188_v50 }
 0x259   : > { %4125 = vmatprep.mubr.bf16.mxu1 %v9192_v62  ;;  %v9216_v62 = vld [vmem:[%s10137_s12 + $0x3cc] ss:$24 sps:$4 sm:$0xff]  }
 0x25a   : > { %v10961_v59 = vpop.f32.mrb[16].mxu1  ;;  %v10963_v38 = vpop.f32.mrb[16].mxu0 }
 0x25b   : > { %v3904_v34 = vpop.f32.mrb[17].mxu1  ;;  %v3808_v41 = vpop.f32.mrb[17].mxu0 }
 0x25c   : > { %4343 = vmatmul.mubr.bf16.gmra.mrb[108].mxu0 %v9191_v29  ;;  %v10966_v46 = vpop.f32.mrb[18].mxu1  ;;  %v10968_v1 = vpop.f32.mrb[18].mxu0  ;;  %v9215_v29 = vld [vmem:[%s10137_s12 + $0x3a0] ss:$24 sps:$4 sm:$0xff]  }
 0x25d   : > { %4350 = vmatprep.mubr.bf16.mxu0 %v9195_v0  ;;  %v3907_v4 = vpop.f32.mrb[19].mxu1  ;;  %v3811_v51 = vpop.f32.mrb[19].mxu0  ;;  %v9219_v0 = vld [vmem:[%s10137_s12 + $0x3d4] ss:$24 sps:$4 sm:$0xff]  }
 0x25e   : > { %v9218_v4 = vld [vmem:[%s10137_s12 + $0x3c8] ss:$24 sps:$4 sm:$0xff]  }
 0x260   : > { %4126 = vmatmul.mubr.bf16.gmra.mrb[112].mxu1 %v9194_v2 }
 0x261   : > { %4133 = vmatprep.mubr.bf16.mxu1 %v9198_v3 }
 0x262   : > { %v10973_v6 = vpop.f32.mrb[20].mxu1  ;;  %v10975_v16 = vpop.f32.mrb[20].mxu0 }
 0x263   : > { %v3912_v47 = vpop.f32.mrb[21].mxu1  ;;  %v3816_v7 = vpop.f32.mrb[21].mxu0 }
 0x264   : > { %4351 = vmatmul.mubr.bf16.gmra.mrb[112].mxu0 %v9197_v5  ;;  %v10978_v12 = vpop.f32.mrb[22].mxu1  ;;  %v10980_v13 = vpop.f32.mrb[22].mxu0 }
 0x265   : > { %4358 = vmatprep.mubr.bf16.mxu0 %v9201_v25  ;;  %v3915_v23 = vpop.f32.mrb[23].mxu1  ;;  %v3819_v9 = vpop.f32.mrb[23].mxu0  ;;  %v9222_v25 = vld [vmem:[%s10137_s12 + $0x3fc] ss:$24 sps:$4 sm:$0xff]  }
 0x268   : > { %4134 = vmatmul.mubr.bf16.gmra.mrb[116].mxu1 %v9200_v48  ;;  %v9221_v48 = vld [vmem:[%s10137_s12 + $0x3d0] ss:$24 sps:$4 sm:$0xff]  }
 0x269   : > { %4141 = vmatprep.mubr.bf16.mxu1 %v9204_v22  ;;  %v9225_v22 = vld [vmem:[%s10137_s12 + $0x404] ss:$24 sps:$4 sm:$0xff]  }
 0x26a   : > { %v10985_v28 = vpop.f32.mrb[24].mxu1  ;;  %v10987_v58 = vpop.f32.mrb[24].mxu0 }
 0x26b   : > { %v3920_v30 = vpop.f32.mrb[25].mxu1  ;;  %v3824_v18 = vpop.f32.mrb[25].mxu0 }
 0x26c   : > { %4359 = vmatmul.mubr.bf16.gmra.mrb[116].mxu0 %v9203_v26  ;;  %v10990_v61 = vpop.f32.mrb[26].mxu1  ;;  %v10992_v35 = vpop.f32.mrb[26].mxu0  ;;  %v9224_v30 = vld [vmem:[%s10137_s12 + $0x3f8] ss:$24 sps:$4 sm:$0xff]  }
 0x26d   : > { %4366 = vmatprep.mubr.bf16.mxu0 %v9207_v27  ;;  %v3923_v39 = vpop.f32.mrb[27].mxu1  ;;  %v3827_v44 = vpop.f32.mrb[27].mxu0 }
 0x270   : > { %4142 = vmatmul.mubr.bf16.gmra.mrb[120].mxu1 %v9206_v20 }
 0x271   : > { %4149 = vmatprep.mubr.bf16.mxu1 %v9210_v37  ;;  %v9228_v37 = vld [vmem:[%s10137_s12 + $0x42c] ss:$24 sps:$4 sm:$0xff]  }
 0x272   : > { %v10997_v43 = vpop.f32.mrb[28].mxu1  ;;  %v10999_v15 = vpop.f32.mrb[28].mxu0 }
 0x273   : > { %v3928_v54 = vpop.f32.mrb[29].mxu1  ;;  %v3832_v21 = vpop.f32.mrb[29].mxu0 }
 0x274   : > { %4367 = vmatmul.mubr.bf16.gmra.mrb[120].mxu0 %v9209_v36  ;;  %v11002_v57 = vpop.f32.mrb[30].mxu1  ;;  %v11004_v50 = vpop.f32.mrb[30].mxu0  ;;  %v9227_v36 = vld [vmem:[%s10137_s12 + $0x400] ss:$24 sps:$4 sm:$0xff]  }
 0x275   : > { %4374 = vmatprep.mubr.bf16.mxu0 %v9213_v40  ;;  %v3931_v63 = vpop.f32.mrb[31].mxu1  ;;  %v3835_v56 = vpop.f32.mrb[31].mxu0  ;;  %v9231_v40 = vld [vmem:[%s10137_s12 + $0x434] ss:$24 sps:$4 sm:$0xff]  }
 0x276   : > { %v9230_v63 = vld [vmem:[%s10137_s12 + $0x428] ss:$24 sps:$4 sm:$0xff]  }
 0x278   : > { %4150 = vmatmul.mubr.bf16.gmra.mrb[124].mxu1 %v9212_v19 }
 0x279   : > { %4157 = vmatprep.mubr.bf16.mxu1 %v9216_v62 }
 0x27a   : > { %v11009_v34 = vpop.f32.mrb[32].mxu1  ;;  %v11011_v41 = vpop.f32.mrb[32].mxu0 }
 0x27b   : > { %v3936_v2 = vpop.f32.mrb[33].mxu1  ;;  %v3840_v3 = vpop.f32.mrb[33].mxu0 }
 0x27c   : > { %4375 = vmatmul.mubr.bf16.gmra.mrb[124].mxu0 %v9215_v29  ;;  %v11014_v51 = vpop.f32.mrb[34].mxu1  ;;  %v11016_v5 = vpop.f32.mrb[34].mxu0 }
 0x27d   : > { %4382 = vmatprep.mubr.bf16.mxu0 %v9219_v0  ;;  %v3939_v47 = vpop.f32.mrb[35].mxu1  ;;  %v3843_v7 = vpop.f32.mrb[35].mxu0  ;;  %v9234_v0 = vld [vmem:[%s10137_s12 + $0x45c] ss:$24 sps:$4 sm:$0xff]  }
 0x280   : > { %4158 = vmatmul.mubr.bf16.gmra.mrb[128].mxu1 %v9218_v4  ;;  %v9233_v4 = vld [vmem:[%s10137_s12 + $0x430] ss:$24 sps:$4 sm:$0xff]  }
 0x281   : > { %4165 = vmatprep.mubr.bf16.mxu1 %v9222_v25  ;;  %v9237_v25 = vld [vmem:[%s10137_s12 + $0x464] ss:$24 sps:$4 sm:$0xff]  }
 0x282   : > { %v11021_v23 = vpop.f32.mrb[36].mxu1  ;;  %v11023_v9 = vpop.f32.mrb[36].mxu0 }
 0x283   : > { %v3944_v26 = vpop.f32.mrb[37].mxu1  ;;  %v3848_v27 = vpop.f32.mrb[37].mxu0 }
 0x284   : > { %4383 = vmatmul.mubr.bf16.gmra.mrb[128].mxu0 %v9221_v48  ;;  %v11026_v18 = vpop.f32.mrb[38].mxu1  ;;  %v11028_v20 = vpop.f32.mrb[38].mxu0  ;;  %v9236_v26 = vld [vmem:[%s10137_s12 + $0x458] ss:$24 sps:$4 sm:$0xff]  }
 0x285   : > { %4390 = vmatprep.mubr.bf16.mxu0 %v9225_v22  ;;  %v3947_v39 = vpop.f32.mrb[39].mxu1  ;;  %v3851_v44 = vpop.f32.mrb[39].mxu0 }
 0x286   : > { %v9239_v44 = vld [vmem:[%s10137_s12 + $0x460] ss:$24 sps:$4 sm:$0xff]  }
 0x288   : > { %4166 = vmatmul.mubr.bf16.gmra.mrb[132].mxu1 %v9224_v30 }
 0x289   : > { %4173 = vmatprep.mubr.bf16.mxu1 %v9228_v37 }
 0x28a   : > { %v11033_v54 = vpop.f32.mrb[40].mxu1  ;;  %v11035_v21 = vpop.f32.mrb[40].mxu0 }
 0x28b   : > { %v3952_v19 = vpop.f32.mrb[41].mxu1  ;;  %v3856_v62 = vpop.f32.mrb[41].mxu0 }
 0x28c   : > { %4391 = vmatmul.mubr.bf16.gmra.mrb[132].mxu0 %v9227_v36  ;;  %v11038_v56 = vpop.f32.mrb[42].mxu1  ;;  %v11040_v29 = vpop.f32.mrb[42].mxu0 }
 0x28d   : > { %4398 = vmatprep.mubr.bf16.mxu0 %v9231_v40  ;;  %v3955_v2 = vpop.f32.mrb[43].mxu1  ;;  %v3859_v3 = vpop.f32.mrb[43].mxu0 }
 0x28e   : > { %v2828_v2 = vld [vmem:[#allocation2] sm:$0xff] }
 0x290   : > { %4174 = vmatmul.mubr.bf16.gmra.mrb[136].mxu1 %v9230_v63 }
 0x291   : > { %4181 = vmatprep.mubr.bf16.mxu1 %v9234_v0 }
 0x292   : > { %v11045_v47 = vpop.f32.mrb[44].mxu1  ;;  %v11047_v7 = vpop.f32.mrb[44].mxu0 }
 0x293   : > { %v3960_v48 = vpop.f32.mrb[45].mxu1  ;;  %v3864_v22 = vpop.f32.mrb[45].mxu0 }
 0x294   : > { %4399 = vmatmul.mubr.bf16.gmra.mrb[136].mxu0 %v9233_v4  ;;  %v11050_v27 = vpop.f32.mrb[46].mxu1  ;;  %v11052_v30 = vpop.f32.mrb[46].mxu0  ;;  %v2829_v22 = vld [vmem:[#allocation2 + $0x8] sm:$0xff] }
 0x295   : > { %13657 = vst [vmem:[#allocation5_spill] sm:$0xff] %v11050_v27  ;;  %4406 = vmatprep.mubr.bf16.mxu0 %v9237_v25  ;;  %v3963_v37 = vpop.f32.mrb[47].mxu1  ;;  %v3867_v39 = vpop.f32.mrb[47].mxu0 }
 0x298   : > { %4182 = vmatmul.mubr.bf16.gmra.mrb[140].mxu1 %v9236_v26 }
 0x29c   : > { %4407 = vmatmul.mubr.bf16.gmra.mrb[140].mxu0 %v9239_v44 }
 0x2b3   : > { %v3999_v36 = vpop.f32.mrb[48].mxu1 }
 0x2b4   : > { %v4000_v40 = vadd.f32 %v3999_v36, %v10915_v10  ;;  %v4001_v19 = vpop.f32.mrb[49].mxu1 }
 0x2b5   : > { %v4002_v62 = vpop.f32.mrb[50].mxu1 }
 0x2b6   : > { %v4003_v63 = vadd.f32 %v4002_v62, %v10920_v52  ;;  %v4004_v0 = vpop.f32.mrb[51].mxu1  ;;  %v2830_v62 = vld [vmem:[#allocation2 + $0x10] sm:$0xff] }
 0x2b7   : > { %v4224_v3 = vpop.f32.mrb[48].mxu0 }
 0x2b8   : > { %v4225_v4 = vadd.f32 %v4224_v3, %v4000_v40  ;;  %v4226_v48 = vpop.f32.mrb[49].mxu0 }
 0x2b9   : > { %v4227_v25 = vpop.f32.mrb[50].mxu0 }
 0x2ba   : > { %v4415_v37 = vadd.f32 %v4225_v4, %v2828_v2  ;;  %v4228_v39 = vadd.f32 %v4227_v25, %v4003_v63  ;;  %v4229_v26 = vpop.f32.mrb[51].mxu0  ;;  %v2831_v2 = vld [vmem:[#allocation2 + $0x18] sm:$0xff] }
 0x2bb   : > { %v4007_v27 = vpop.f32.mrb[52].mxu1 }
 0x2bc   : > { %4464 = vst.msk [vmem:[#allocation2] sm:$0xff] %vm4463_vm1, %v4415_v37  ;;  %v4416_v44 = vadd.f32 %v4228_v39, %v2829_v22  ;;  %v4008_v10 = vadd.f32 %v4007_v27, %v10927_v14  ;;  %v4009_v36 = vpop.f32.mrb[53].mxu1 }
 0x2bd   : > { %v4010_v19 = vpop.f32.mrb[54].mxu1 }
 0x2be   : > { %4465 = vst.msk [vmem:[#allocation2 + $0x8] sm:$0xff] %vm4463_vm1, %v4416_v44  ;;  %v4011_v52 = vadd.f32 %v4010_v19, %v10932_v33  ;;  %v4012_v40 = vpop.f32.mrb[55].mxu1 }
 0x2bf   : > { %v4232_v0 = vpop.f32.mrb[52].mxu0 }
 0x2c0   : > { %v4233_v3 = vadd.f32 %v4232_v0, %v4008_v10  ;;  %v4234_v48 = vpop.f32.mrb[53].mxu0  ;;  %v2832_v10 = vld [vmem:[#allocation2 + $0x20] sm:$0xff] }
 0x2c1   : > { %v4235_v63 = vpop.f32.mrb[54].mxu0 }
 0x2c2   : > { %v4417_v4 = vadd.f32 %v4233_v3, %v2830_v62  ;;  %v4236_v25 = vadd.f32 %v4235_v63, %v4011_v52  ;;  %v4237_v26 = vpop.f32.mrb[55].mxu0  ;;  %v2833_v62 = vld [vmem:[#allocation2 + $0x28] sm:$0xff] }
 0x2c3   : > { %v4015_v37 = vpop.f32.mrb[56].mxu1 }
 0x2c4   : > { %4466 = vst.msk [vmem:[#allocation2 + $0x10] sm:$0xff] %vm4463_vm1, %v4417_v4  ;;  %v4418_v14 = vadd.f32 %v4236_v25, %v2831_v2  ;;  %v4016_v27 = vadd.f32 %v4015_v37, %v10939_v42  ;;  %v4017_v22 = vpop.f32.mrb[57].mxu1  ;;  %v2834_v37 = vld [vmem:[#allocation2 + $0x30] sm:$0xff] }
 0x2c5   : > { %v4018_v39 = vpop.f32.mrb[58].mxu1 }
 0x2c6   : > { %4467 = vst.msk [vmem:[#allocation2 + $0x18] sm:$0xff] %vm4463_vm1, %v4418_v14  ;;  %v4019_v33 = vadd.f32 %v4018_v39, %v10944_v11  ;;  %v4020_v44 = vpop.f32.mrb[59].mxu1  ;;  %v2835_v39 = vld [vmem:[#allocation2 + $0x38] sm:$0xff] }
 0x2c7   : > { %v4240_v36 = vpop.f32.mrb[56].mxu0 }
 0x2c8   : > { %v4241_v19 = vadd.f32 %v4240_v36, %v4016_v27  ;;  %v4242_v40 = vpop.f32.mrb[57].mxu0 }
 0x2c9   : > { %v4243_v52 = vpop.f32.mrb[58].mxu0 }
 0x2ca   : > { %v4419_v0 = vadd.f32 %v4241_v19, %v2832_v10  ;;  %v4244_v3 = vadd.f32 %v4243_v52, %v4019_v33  ;;  %v4245_v48 = vpop.f32.mrb[59].mxu0 }
 0x2cb   : > { %v4023_v63 = vpop.f32.mrb[60].mxu1 }
 0x2cc   : > { %4468 = vst.msk [vmem:[#allocation2 + $0x20] sm:$0xff] %vm4463_vm1, %v4419_v0  ;;  %v4420_v42 = vadd.f32 %v4244_v3, %v2833_v62  ;;  %v4024_v2 = vadd.f32 %v4023_v63, %v10951_v55  ;;  %v4025_v4 = vpop.f32.mrb[61].mxu1  ;;  %v2836_v3 = vld [vmem:[#allocation2 + $0x40] sm:$0xff] }
 0x2cd   : > { %v4026_v25 = vpop.f32.mrb[62].mxu1 }
 0x2ce   : > { %4469 = vst.msk [vmem:[#allocation2 + $0x28] sm:$0xff] %vm4463_vm1, %v4420_v42  ;;  %v4027_v11 = vadd.f32 %v4026_v25, %v10956_v24  ;;  %v4028_v26 = vpop.f32.mrb[63].mxu1 }
 0x2cf   : > { %v4248_v14 = vpop.f32.mrb[60].mxu0 }
 0x2d0   : > { %v4249_v27 = vadd.f32 %v4248_v14, %v4024_v2  ;;  %v4250_v22 = vpop.f32.mrb[61].mxu0  ;;  %v2837_v2 = vld [vmem:[#allocation2 + $0x48] sm:$0xff] }
 0x2d1   : > { %v4251_v33 = vpop.f32.mrb[62].mxu0 }
 0x2d2   : > { %v4421_v44 = vadd.f32 %v4249_v27, %v2834_v37  ;;  %v4252_v10 = vadd.f32 %v4251_v33, %v4027_v11  ;;  %v4253_v36 = vpop.f32.mrb[63].mxu0  ;;  %v2838_v33 = vld [vmem:[#allocation2 + $0x50] sm:$0xff] }
 0x2d3   : > { %v4031_v19 = vpop.f32.mrb[64].mxu1 }
 0x2d4   : > { %4470 = vst.msk [vmem:[#allocation2 + $0x30] sm:$0xff] %vm4463_vm1, %v4421_v44  ;;  %v4422_v55 = vadd.f32 %v4252_v10, %v2835_v39  ;;  %v4032_v40 = vadd.f32 %v4031_v19, %v10963_v38  ;;  %v4033_v62 = vpop.f32.mrb[65].mxu1  ;;  %v2839_v19 = vld [vmem:[#allocation2 + $0x58] sm:$0xff] }
 0x2d5   : > { %v4034_v52 = vpop.f32.mrb[66].mxu1 }
 0x2d6   : > { %4471 = vst.msk [vmem:[#allocation2 + $0x38] sm:$0xff] %vm4463_vm1, %v4422_v55  ;;  %v4035_v24 = vadd.f32 %v4034_v52, %v10968_v1  ;;  %v4036_v0 = vpop.f32.mrb[67].mxu1 }
 0x2d7   : > { %v4256_v48 = vpop.f32.mrb[64].mxu0 }
 0x2d8   : > { %v4257_v63 = vadd.f32 %v4256_v48, %v4032_v40  ;;  %v4258_v42 = vpop.f32.mrb[65].mxu0 }
 0x2d9   : > { %v4259_v4 = vpop.f32.mrb[66].mxu0  ;;  %v2840_v42 = vld [vmem:[#allocation2 + $0x60] sm:$0xff] }
 0x2da   : > { %v4423_v25 = vadd.f32 %v4257_v63, %v2836_v3  ;;  %v4260_v11 = vadd.f32 %v4259_v4, %v4035_v24  ;;  %v4261_v26 = vpop.f32.mrb[67].mxu0 }
 0x2db   : > { %v4039_v37 = vpop.f32.mrb[68].mxu1 }
 0x2dc   : > { %4472 = vst.msk [vmem:[#allocation2 + $0x40] sm:$0xff] %vm4463_vm1, %v4423_v25  ;;  %v4424_v38 = vadd.f32 %v4260_v11, %v2837_v2  ;;  %v4040_v14 = vadd.f32 %v4039_v37, %v10975_v16  ;;  %v4041_v27 = vpop.f32.mrb[69].mxu1  ;;  %v2841_v11 = vld [vmem:[#allocation2 + $0x68] sm:$0xff] }
 0x2dd   : > { %v4042_v22 = vpop.f32.mrb[70].mxu1 }
 0x2de   : > { %4473 = vst.msk [vmem:[#allocation2 + $0x48] sm:$0xff] %vm4463_vm1, %v4424_v38  ;;  %v4043_v1 = vadd.f32 %v4042_v22, %v10980_v13  ;;  %v4044_v39 = vpop.f32.mrb[71].mxu1 }
 0x2df   : > { %v4264_v44 = vpop.f32.mrb[68].mxu0 }
 0x2e0   : > { %v4265_v10 = vadd.f32 %v4264_v44, %v4040_v14  ;;  %v4266_v36 = vpop.f32.mrb[69].mxu0  ;;  %v2842_v44 = vld [vmem:[#allocation2 + $0x70] sm:$0xff] }
 0x2e1   : > { %v4267_v55 = vpop.f32.mrb[70].mxu0 }
 0x2e2   : > { %v4425_v40 = vadd.f32 %v4265_v10, %v2838_v33  ;;  %v4268_v62 = vadd.f32 %v4267_v55, %v4043_v1  ;;  %v4269_v52 = vpop.f32.mrb[71].mxu0  ;;  %v2843_v55 = vld [vmem:[#allocation2 + $0x78] sm:$0xff] }
 0x2e3   : > { %v4047_v24 = vpop.f32.mrb[72].mxu1 }
 0x2e4   : > { %4474 = vst.msk [vmem:[#allocation2 + $0x50] sm:$0xff] %vm4463_vm1, %v4425_v40  ;;  %v4426_v16 = vadd.f32 %v4268_v62, %v2839_v19  ;;  %v4048_v0 = vadd.f32 %v4047_v24, %v10987_v58  ;;  %v4049_v3 = vpop.f32.mrb[73].mxu1 }
 0x2e5   : > { %v4050_v48 = vpop.f32.mrb[74].mxu1 }
 0x2e6   : > { %4475 = vst.msk [vmem:[#allocation2 + $0x58] sm:$0xff] %vm4463_vm1, %v4426_v16  ;;  %v4051_v13 = vadd.f32 %v4050_v48, %v10992_v35  ;;  %v4052_v63 = vpop.f32.mrb[75].mxu1 }
 0x2e7   : > { %v4272_v2 = vpop.f32.mrb[72].mxu0  ;;  %v2844_v63 = vld [vmem:[#allocation2 + $0x80] sm:$0xff] }
 0x2e8   : > { %v4273_v4 = vadd.f32 %v4272_v2, %v4048_v0  ;;  %v4274_v25 = vpop.f32.mrb[73].mxu0 }
 0x2e9   : > { %v4275_v26 = vpop.f32.mrb[74].mxu0  ;;  %v2845_v25 = vld [vmem:[#allocation2 + $0x88] sm:$0xff] }
 0x2ea   : > { %v4427_v37 = vadd.f32 %v4273_v4, %v2840_v42  ;;  %v4276_v38 = vadd.f32 %v4275_v26, %v4051_v13  ;;  %v4277_v14 = vpop.f32.mrb[75].mxu0 }
 0x2eb   : > { %v4055_v27 = vpop.f32.mrb[76].mxu1 }
 0x2ec   : > { %4476 = vst.msk [vmem:[#allocation2 + $0x60] sm:$0xff] %vm4463_vm1, %v4427_v37  ;;  %v4428_v58 = vadd.f32 %v4276_v38, %v2841_v11  ;;  %v4056_v22 = vadd.f32 %v4055_v27, %v10999_v15  ;;  %v4057_v1 = vpop.f32.mrb[77].mxu1 }
 0x2ed   : > { %v4058_v39 = vpop.f32.mrb[78].mxu1 }
 0x2ee   : > { %4477 = vst.msk [vmem:[#allocation2 + $0x68] sm:$0xff] %vm4463_vm1, %v4428_v58  ;;  %v4059_v35 = vadd.f32 %v4058_v39, %v11004_v50  ;;  %v4060_v33 = vpop.f32.mrb[79].mxu1  ;;  %v2846_v39 = vld [vmem:[#allocation2 + $0x90] sm:$0xff] }
 0x2ef   : > { %v4280_v10 = vpop.f32.mrb[76].mxu0 }
 0x2f0   : > { %v4281_v36 = vadd.f32 %v4280_v10, %v4056_v22  ;;  %v4282_v19 = vpop.f32.mrb[77].mxu0  ;;  %v2847_v10 = vld [vmem:[#allocation2 + $0x98] sm:$0xff] }
 0x2f1   : > { %v4283_v40 = vpop.f32.mrb[78].mxu0 }
 0x2f2   : > { %v4429_v62 = vadd.f32 %v4281_v36, %v2842_v44  ;;  %v4284_v52 = vadd.f32 %v4283_v40, %v4059_v35  ;;  %v4285_v24 = vpop.f32.mrb[79].mxu0 }
 0x2f3   : > { %v4063_v16 = vpop.f32.mrb[80].mxu1 }
 0x2f4   : > { %4478 = vst.msk [vmem:[#allocation2 + $0x70] sm:$0xff] %vm4463_vm1, %v4429_v62  ;;  %v4430_v15 = vadd.f32 %v4284_v52, %v2843_v55  ;;  %v4064_v0 = vadd.f32 %v4063_v16, %v11011_v41  ;;  %v4065_v3 = vpop.f32.mrb[81].mxu1 }
 0x2f5   : > { %v4066_v48 = vpop.f32.mrb[82].mxu1 }
 0x2f6   : > { %4479 = vst.msk [vmem:[#allocation2 + $0x78] sm:$0xff] %vm4463_vm1, %v4430_v15  ;;  %v4067_v50 = vadd.f32 %v4066_v48, %v11016_v5  ;;  %v4068_v13 = vpop.f32.mrb[83].mxu1 }
 0x2f7   : > { %v4288_v42 = vpop.f32.mrb[80].mxu0  ;;  %v2849_v13 = vld [vmem:[#allocation2 + $0xa8] sm:$0xff] }
 0x2f8   : > { %v4289_v2 = vadd.f32 %v4288_v42, %v4064_v0  ;;  %v4290_v4 = vpop.f32.mrb[81].mxu0  ;;  %v2848_v0 = vld [vmem:[#allocation2 + $0xa0] sm:$0xff] }
 0x2f9   : > { %v4291_v11 = vpop.f32.mrb[82].mxu0 }
 0x2fa   : > { %v4431_v26 = vadd.f32 %v4289_v2, %v2844_v63  ;;  %v4292_v37 = vadd.f32 %v4291_v11, %v4067_v50  ;;  %v4293_v38 = vpop.f32.mrb[83].mxu0 }
 0x2fb   : > { %v4071_v14 = vpop.f32.mrb[84].mxu1 }
 0x2fc   : > { %4480 = vst.msk [vmem:[#allocation2 + $0x80] sm:$0xff] %vm4463_vm1, %v4431_v26  ;;  %v4432_v41 = vadd.f32 %v4292_v37, %v2845_v25  ;;  %v4072_v27 = vadd.f32 %v4071_v14, %v11023_v9  ;;  %v4073_v58 = vpop.f32.mrb[85].mxu1  ;;  %v2850_v14 = vld [vmem:[#allocation2 + $0xb0] sm:$0xff] }
 0x2fd   : > { %v4074_v22 = vpop.f32.mrb[86].mxu1 }
 0x2fe   : > { %4481 = vst.msk [vmem:[#allocation2 + $0x88] sm:$0xff] %vm4463_vm1, %v4432_v41  ;;  %v4075_v5 = vadd.f32 %v4074_v22, %v11028_v20  ;;  %v4076_v1 = vpop.f32.mrb[87].mxu1  ;;  %v2851_v22 = vld [vmem:[#allocation2 + $0xb8] sm:$0xff] }
 0x2ff   : > { %v4296_v35 = vpop.f32.mrb[84].mxu0 }
 0x300   : > { %v4297_v33 = vadd.f32 %v4296_v35, %v4072_v27  ;;  %v4298_v44 = vpop.f32.mrb[85].mxu0 }
 0x301   : > { %v4299_v36 = vpop.f32.mrb[86].mxu0 }
 0x302   : > { %v4433_v19 = vadd.f32 %v4297_v33, %v2846_v39  ;;  %v4300_v55 = vadd.f32 %v4299_v36, %v4075_v5  ;;  %v4301_v40 = vpop.f32.mrb[87].mxu0 }
 0x303   : > { %v4079_v62 = vpop.f32.mrb[88].mxu1 }
 0x304   : > { %4482 = vst.msk [vmem:[#allocation2 + $0x90] sm:$0xff] %vm4463_vm1, %v4433_v19  ;;  %v4434_v9 = vadd.f32 %v4300_v55, %v2847_v10  ;;  %v4080_v52 = vadd.f32 %v4079_v62, %v11035_v21  ;;  %v4081_v24 = vpop.f32.mrb[89].mxu1  ;;  %v2852_v55 = vld [vmem:[#allocation2 + $0xc0] sm:$0xff] }
 0x305   : > { %v4082_v16 = vpop.f32.mrb[90].mxu1 }
 0x306   : > { %4483 = vst.msk [vmem:[#allocation2 + $0x98] sm:$0xff] %vm4463_vm1, %v4434_v9  ;;  %v4083_v20 = vadd.f32 %v4082_v16, %v11040_v29  ;;  %v4084_v15 = vpop.f32.mrb[91].mxu1 }
 0x307   : > { %v4304_v3 = vpop.f32.mrb[88].mxu0 }
 0x308   : > { %v4305_v48 = vadd.f32 %v4304_v3, %v4080_v52  ;;  %v4306_v50 = vpop.f32.mrb[89].mxu0  ;;  %v2853_v52 = vld [vmem:[#allocation2 + $0xc8] sm:$0xff] }
 0x309   : > { %v4307_v63 = vpop.f32.mrb[90].mxu0 }
 0x30a   : > { %v4435_v42 = vadd.f32 %v4305_v48, %v2848_v0  ;;  %v4308_v2 = vadd.f32 %v4307_v63, %v4083_v20  ;;  %v4309_v4 = vpop.f32.mrb[91].mxu0  ;;  %v2854_v63 = vld [vmem:[#allocation2 + $0xd0] sm:$0xff] }
 0x30b   : > { %v4087_v25 = vpop.f32.mrb[92].mxu1 }
 0x30c   : > { %4484 = vst.msk [vmem:[#allocation2 + $0xa0] sm:$0xff] %vm4463_vm1, %v4435_v42  ;;  %v4436_v21 = vadd.f32 %v4308_v2, %v2849_v13  ;;  %v4088_v11 = vadd.f32 %v4087_v25, %v11047_v7  ;;  %v4089_v26 = vpop.f32.mrb[93].mxu1  ;;  %v2855_v25 = vld [vmem:[#allocation2 + $0xd8] sm:$0xff] }
 0x30d   : > { %v4090_v37 = vpop.f32.mrb[94].mxu1 }
 0x30e   : > { %4485 = vst.msk [vmem:[#allocation2 + $0xa8] sm:$0xff] %vm4463_vm1, %v4436_v21  ;;  %v4091_v29 = vadd.f32 %v4090_v37, %v11052_v30  ;;  %v4092_v38 = vpop.f32.mrb[95].mxu1 }
 0x30f   : > { %v4312_v41 = vpop.f32.mrb[92].mxu0 }
 0x310   : > { %v4313_v27 = vadd.f32 %v4312_v41, %v4088_v11  ;;  %v4314_v58 = vpop.f32.mrb[93].mxu0 }
 0x311   : > { %v4315_v5 = vpop.f32.mrb[94].mxu0  ;;  %v2856_v58 = vld [vmem:[#allocation2 + $0xe0] sm:$0xff] }
 0x312   : > { %v4437_v1 = vadd.f32 %v4313_v27, %v2850_v14  ;;  %v4316_v39 = vadd.f32 %v4315_v5, %v4091_v29  ;;  %v4317_v35 = vpop.f32.mrb[95].mxu0 }
 0x313   : > { %v4095_v33 = vpop.f32.mrb[96].mxu1 }
 0x314   : > { %4486 = vst.msk [vmem:[#allocation2 + $0xb0] sm:$0xff] %vm4463_vm1, %v4437_v1  ;;  %v4438_v7 = vadd.f32 %v4316_v39, %v2851_v22  ;;  %v4096_v44 = vadd.f32 %v4095_v33, %v10913_v8  ;;  %v4097_v10 = vpop.f32.mrb[97].mxu1  ;;  %v2857_v39 = vld [vmem:[#allocation2 + $0xe8] sm:$0xff] }
 0x315   : > { %v4098_v36 = vpop.f32.mrb[98].mxu1 }
 0x316   : > { %4487 = vst.msk [vmem:[#allocation2 + $0xb8] sm:$0xff] %vm4463_vm1, %v4438_v7  ;;  %v4099_v30 = vadd.f32 %v4098_v36, %v10918_v17  ;;  %v4100_v19 = vpop.f32.mrb[99].mxu1 }
 0x317   : > { %v4320_v40 = vpop.f32.mrb[96].mxu0 }
 0x318   : > { %v4321_v62 = vadd.f32 %v4320_v40, %v4096_v44  ;;  %v4322_v9 = vpop.f32.mrb[97].mxu0  ;;  %v2858_v40 = vld [vmem:[#allocation2 + $0xf0] sm:$0xff] }
 0x319   : > { %v4323_v24 = vpop.f32.mrb[98].mxu0 }
 0x31a   : > { %v4439_v16 = vadd.f32 %v4321_v62, %v2852_v55  ;;  %v4324_v20 = vadd.f32 %v4323_v24, %v4099_v30  ;;  %v4325_v15 = vpop.f32.mrb[99].mxu0  ;;  %v2859_v24 = vld [vmem:[#allocation2 + $0xf8] sm:$0xff] }
 0x31b   : > { %v4103_v0 = vpop.f32.mrb[100].mxu1 }
 0x31c   : > { %4488 = vst.msk [vmem:[#allocation2 + $0xc0] sm:$0xff] %vm4463_vm1, %v4439_v16  ;;  %v4440_v8 = vadd.f32 %v4324_v20, %v2853_v52  ;;  %v4104_v3 = vadd.f32 %v4103_v0, %v10925_v53  ;;  %v4105_v48 = vpop.f32.mrb[101].mxu1 }
 0x31d   : > { %v4106_v50 = vpop.f32.mrb[102].mxu1 }
 0x31e   : > { %4489 = vst.msk [vmem:[#allocation2 + $0xc8] sm:$0xff] %vm4463_vm1, %v4440_v8  ;;  %v4107_v17 = vadd.f32 %v4106_v50, %v10930_v31  ;;  %v4108_v13 = vpop.f32.mrb[103].mxu1 }
 0x31f   : > { %v4328_v42 = vpop.f32.mrb[100].mxu0  ;;  %v2860_v13 = vld [vmem:[#allocation2 + $0x100] sm:$0xff] }
 0x320   : > { %v4329_v2 = vadd.f32 %v4328_v42, %v4104_v3  ;;  %v4330_v4 = vpop.f32.mrb[101].mxu0 }
 0x321   : > { %v4331_v21 = vpop.f32.mrb[102].mxu0  ;;  %v2861_v4 = vld [vmem:[#allocation2 + $0x108] sm:$0xff] }
 0x322   : > { %v4441_v11 = vadd.f32 %v4329_v2, %v2854_v63  ;;  %v4332_v26 = vadd.f32 %v4331_v21, %v4107_v17  ;;  %v4333_v37 = vpop.f32.mrb[103].mxu0 }
 0x323   : > { %v4111_v29 = vpop.f32.mrb[104].mxu1 }
 0x324   : > { %4490 = vst.msk [vmem:[#allocation2 + $0xd0] sm:$0xff] %vm4463_vm1, %v4441_v11  ;;  %v4442_v53 = vadd.f32 %v4332_v26, %v2855_v25  ;;  %v4112_v38 = vadd.f32 %v4111_v29, %v10937_v32  ;;  %v4113_v14 = vpop.f32.mrb[105].mxu1 }
 0x325   : > { %v4114_v41 = vpop.f32.mrb[106].mxu1 }
 0x326   : > { %4491 = vst.msk [vmem:[#allocation2 + $0xd8] sm:$0xff] %vm4463_vm1, %v4442_v53  ;;  %v4115_v31 = vadd.f32 %v4114_v41, %v10942_v49  ;;  %v4116_v27 = vpop.f32.mrb[107].mxu1  ;;  %v2862_v41 = vld [vmem:[#allocation2 + $0x110] sm:$0xff] }
 0x327   : > { %v4336_v22 = vpop.f32.mrb[104].mxu0 }
 0x328   : > { %v4337_v5 = vadd.f32 %v4336_v22, %v4112_v38  ;;  %v4338_v1 = vpop.f32.mrb[105].mxu0  ;;  %v2863_v22 = vld [vmem:[#allocation2 + $0x118] sm:$0xff] }
 0x329   : > { %v4339_v35 = vpop.f32.mrb[106].mxu0 }
 0x32a   : > { %v4443_v33 = vadd.f32 %v4337_v5, %v2856_v58  ;;  %v4340_v7 = vadd.f32 %v4339_v35, %v4115_v31  ;;  %v4341_v44 = vpop.f32.mrb[107].mxu0 }
 0x32b   : > { %v4119_v10 = vpop.f32.mrb[108].mxu1 }
 0x32c   : > { %4492 = vst.msk [vmem:[#allocation2 + $0xe0] sm:$0xff] %vm4463_vm1, %v4443_v33  ;;  %v4444_v32 = vadd.f32 %v4340_v7, %v2857_v39  ;;  %v4120_v36 = vadd.f32 %v4119_v10, %v10949_v45  ;;  %v4121_v30 = vpop.f32.mrb[109].mxu1 }
 0x32d   : > { %v4122_v19 = vpop.f32.mrb[110].mxu1 }
 0x32e   : > { %4493 = vst.msk [vmem:[#allocation2 + $0xe8] sm:$0xff] %vm4463_vm1, %v4444_v32  ;;  %v4123_v49 = vadd.f32 %v4122_v19, %v10954_v60  ;;  %v4124_v55 = vpop.f32.mrb[111].mxu1 }
 0x32f   : > { %v4344_v62 = vpop.f32.mrb[108].mxu0  ;;  %v2865_v55 = vld [vmem:[#allocation2 + $0x128] sm:$0xff] }
 0x330   : > { %v4345_v9 = vadd.f32 %v4344_v62, %v4120_v36  ;;  %v4346_v52 = vpop.f32.mrb[109].mxu0  ;;  %v2864_v36 = vld [vmem:[#allocation2 + $0x120] sm:$0xff] }
 0x331   : > { %v4347_v16 = vpop.f32.mrb[110].mxu0 }
 0x332   : > { %v4445_v20 = vadd.f32 %v4345_v9, %v2858_v40  ;;  %v4348_v15 = vadd.f32 %v4347_v16, %v4123_v49  ;;  %v4349_v0 = vpop.f32.mrb[111].mxu0 }
 0x333   : > { %v4127_v8 = vpop.f32.mrb[112].mxu1 }
 0x334   : > { %4494 = vst.msk [vmem:[#allocation2 + $0xf0] sm:$0xff] %vm4463_vm1, %v4445_v20  ;;  %v4446_v45 = vadd.f32 %v4348_v15, %v2859_v24  ;;  %v4128_v3 = vadd.f32 %v4127_v8, %v10961_v59  ;;  %v4129_v48 = vpop.f32.mrb[113].mxu1  ;;  %v2866_v8 = vld [vmem:[#allocation2 + $0x130] sm:$0xff] }
 0x335   : > { %v4130_v50 = vpop.f32.mrb[114].mxu1 }
 0x336   : > { %4495 = vst.msk [vmem:[#allocation2 + $0xf8] sm:$0xff] %vm4463_vm1, %v4446_v45  ;;  %v4131_v60 = vadd.f32 %v4130_v50, %v10966_v46  ;;  %v4132_v17 = vpop.f32.mrb[115].mxu1  ;;  %v2867_v50 = vld [vmem:[#allocation2 + $0x138] sm:$0xff] }
 0x337   : > { %v4352_v63 = vpop.f32.mrb[112].mxu0 }
 0x338   : > { %v4353_v42 = vadd.f32 %v4352_v63, %v4128_v3  ;;  %v4354_v2 = vpop.f32.mrb[113].mxu0 }
 0x339   : > { %v4355_v25 = vpop.f32.mrb[114].mxu0 }
 0x33a   : > { %v4447_v21 = vadd.f32 %v4353_v42, %v2860_v13  ;;  %v4356_v11 = vadd.f32 %v4355_v25, %v4131_v60  ;;  %v4357_v26 = vpop.f32.mrb[115].mxu0 }
 0x33b   : > { %v4135_v37 = vpop.f32.mrb[116].mxu1 }
 0x33c   : > { %4496 = vst.msk [vmem:[#allocation2 + $0x100] sm:$0xff] %vm4463_vm1, %v4447_v21  ;;  %v4448_v59 = vadd.f32 %v4356_v11, %v2861_v4  ;;  %v4136_v29 = vadd.f32 %v4135_v37, %v10973_v6  ;;  %v4137_v53 = vpop.f32.mrb[117].mxu1  ;;  %v2868_v11 = vld [vmem:[#allocation2 + $0x140] sm:$0xff] }
 0x33d   : > { %v4138_v38 = vpop.f32.mrb[118].mxu1 }
 0x33e   : > { %4497 = vst.msk [vmem:[#allocation2 + $0x108] sm:$0xff] %vm4463_vm1, %v4448_v59  ;;  %v4139_v46 = vadd.f32 %v4138_v38, %v10978_v12  ;;  %v4140_v14 = vpop.f32.mrb[119].mxu1 }
 0x33f   : > { %v4360_v31 = vpop.f32.mrb[116].mxu0 }
 0x340   : > { %v4361_v27 = vadd.f32 %v4360_v31, %v4136_v29  ;;  %v4362_v58 = vpop.f32.mrb[117].mxu0  ;;  %v2869_v29 = vld [vmem:[#allocation2 + $0x148] sm:$0xff] }
 0x341   : > { %v4363_v5 = vpop.f32.mrb[118].mxu0 }
 0x342   : > { %v4449_v1 = vadd.f32 %v4361_v27, %v2862_v41  ;;  %v4364_v39 = vadd.f32 %v4363_v5, %v4139_v46  ;;  %v4365_v35 = vpop.f32.mrb[119].mxu0  ;;  %v2870_v5 = vld [vmem:[#allocation2 + $0x150] sm:$0xff] }
 0x343   : > { %v4143_v33 = vpop.f32.mrb[120].mxu1 }
 0x344   : > { %4498 = vst.msk [vmem:[#allocation2 + $0x110] sm:$0xff] %vm4463_vm1, %v4449_v1  ;;  %v4450_v6 = vadd.f32 %v4364_v39, %v2863_v22  ;;  %v4144_v7 = vadd.f32 %v4143_v33, %v10985_v28  ;;  %v4145_v44 = vpop.f32.mrb[121].mxu1  ;;  %v2871_v33 = vld [vmem:[#allocation2 + $0x158] sm:$0xff] }
 0x345   : > { %v4146_v10 = vpop.f32.mrb[122].mxu1 }
 0x346   : > { %4499 = vst.msk [vmem:[#allocation2 + $0x118] sm:$0xff] %vm4463_vm1, %v4450_v6  ;;  %v4147_v12 = vadd.f32 %v4146_v10, %v10990_v61  ;;  %v4148_v32 = vpop.f32.mrb[123].mxu1 }
 0x347   : > { %v4368_v30 = vpop.f32.mrb[120].mxu0 }
 0x348   : > { %v4369_v19 = vadd.f32 %v4368_v30, %v4144_v7  ;;  %v4370_v49 = vpop.f32.mrb[121].mxu0 }
 0x349   : > { %v4371_v40 = vpop.f32.mrb[122].mxu0  ;;  %v2872_v49 = vld [vmem:[#allocation2 + $0x160] sm:$0xff] }
 0x34a   : > { %v4451_v62 = vadd.f32 %v4369_v19, %v2864_v36  ;;  %v4372_v9 = vadd.f32 %v4371_v40, %v4147_v12  ;;  %v4373_v52 = vpop.f32.mrb[123].mxu0 }
 0x34b   : > { %v4151_v24 = vpop.f32.mrb[124].mxu1 }
 0x34c   : > { %4500 = vst.msk [vmem:[#allocation2 + $0x120] sm:$0xff] %vm4463_vm1, %v4451_v62  ;;  %v4452_v28 = vadd.f32 %v4372_v9, %v2865_v55  ;;  %v4152_v16 = vadd.f32 %v4151_v24, %v10997_v43  ;;  %v4153_v20 = vpop.f32.mrb[125].mxu1  ;;  %v2873_v9 = vld [vmem:[#allocation2 + $0x168] sm:$0xff] }
 0x34d   : > { %v4154_v15 = vpop.f32.mrb[126].mxu1 }
 0x34e   : > { %4501 = vst.msk [vmem:[#allocation2 + $0x128] sm:$0xff] %vm4463_vm1, %v4452_v28  ;;  %v4155_v61 = vadd.f32 %v4154_v15, %v11002_v57  ;;  %v4156_v0 = vpop.f32.mrb[127].mxu1 }
 0x34f   : > { %v4376_v45 = vpop.f32.mrb[124].mxu0 }
 0x350   : > { %v4377_v3 = vadd.f32 %v4376_v45, %v4152_v16  ;;  %v4378_v48 = vpop.f32.mrb[125].mxu0 }
 0x351   : > { %v4379_v60 = vpop.f32.mrb[126].mxu0 }
 0x352   : > { %v4453_v17 = vadd.f32 %v4377_v3, %v2866_v8  ;;  %v4380_v13 = vadd.f32 %v4379_v60, %v4155_v61  ;;  %v4381_v63 = vpop.f32.mrb[127].mxu0  ;;  %v2874_v3 = vld [vmem:[#allocation2 + $0x170] sm:$0xff] }
 0x353   : > { %v4159_v42 = vpop.f32.mrb[128].mxu1 }
 0x354   : > { %4502 = vst.msk [vmem:[#allocation2 + $0x130] sm:$0xff] %vm4463_vm1, %v4453_v17  ;;  %v4454_v43 = vadd.f32 %v4380_v13, %v2867_v50  ;;  %v4160_v2 = vadd.f32 %v4159_v42, %v11009_v34  ;;  %v4161_v4 = vpop.f32.mrb[129].mxu1  ;;  %v2875_v17 = vld [vmem:[#allocation2 + $0x178] sm:$0xff] }
 0x355   : > { %v4162_v25 = vpop.f32.mrb[130].mxu1 }
 0x356   : > { %4503 = vst.msk [vmem:[#allocation2 + $0x138] sm:$0xff] %vm4463_vm1, %v4454_v43  ;;  %v4163_v57 = vadd.f32 %v4162_v25, %v11014_v51  ;;  %v4164_v21 = vpop.f32.mrb[131].mxu1 }
 0x357   : > { %v4384_v26 = vpop.f32.mrb[128].mxu0 }
 0x358   : > { %v4385_v37 = vadd.f32 %v4384_v26, %v4160_v2  ;;  %v4386_v59 = vpop.f32.mrb[129].mxu0 }
 0x359   : > { %v4387_v53 = vpop.f32.mrb[130].mxu0 }
 0x35a   : > { %v4455_v38 = vadd.f32 %v4385_v37, %v2868_v11  ;;  %v4388_v46 = vadd.f32 %v4387_v53, %v4163_v57  ;;  %v4389_v14 = vpop.f32.mrb[131].mxu0 }
 0x35b   : > { %v4167_v41 = vpop.f32.mrb[132].mxu1 }
 0x35c   : > { %4504 = vst.msk [vmem:[#allocation2 + $0x140] sm:$0xff] %vm4463_vm1, %v4455_v38  ;;  %v4456_v34 = vadd.f32 %v4388_v46, %v2869_v29  ;;  %v4168_v31 = vadd.f32 %v4167_v41, %v11021_v23  ;;  %v4169_v27 = vpop.f32.mrb[133].mxu1 }
 0x35d   : > { %v4170_v58 = vpop.f32.mrb[134].mxu1 }
 0x35e   : > { %4505 = vst.msk [vmem:[#allocation2 + $0x148] sm:$0xff] %vm4463_vm1, %v4456_v34  ;;  %v4171_v51 = vadd.f32 %v4170_v58, %v11026_v18  ;;  %v4172_v22 = vpop.f32.mrb[135].mxu1 }
 0x35f   : > { %v4392_v1 = vpop.f32.mrb[132].mxu0 }
 0x360   : > { %v4393_v39 = vadd.f32 %v4392_v1, %v4168_v31  ;;  %v4394_v35 = vpop.f32.mrb[133].mxu0 }
 0x361   : > { %v4395_v6 = vpop.f32.mrb[134].mxu0 }
 0x362   : > { %v4457_v7 = vadd.f32 %v4393_v39, %v2870_v5  ;;  %v4396_v44 = vadd.f32 %v4395_v6, %v4171_v51  ;;  %v4397_v10 = vpop.f32.mrb[135].mxu0 }
 0x363   : > { %v4175_v12 = vpop.f32.mrb[136].mxu1 }
 0x364   : > { %4506 = vst.msk [vmem:[#allocation2 + $0x150] sm:$0xff] %vm4463_vm1, %v4457_v7  ;;  %v4458_v23 = vadd.f32 %v4396_v44, %v2871_v33  ;;  %v4176_v32 = vadd.f32 %v4175_v12, %v11033_v54  ;;  %v4177_v36 = vpop.f32.mrb[137].mxu1 }
 0x365   : > { %v4178_v30 = vpop.f32.mrb[138].mxu1 }
 0x366   : > { %4507 = vst.msk [vmem:[#allocation2 + $0x158] sm:$0xff] %vm4463_vm1, %v4458_v23  ;;  %v4179_v18 = vadd.f32 %v4178_v30, %v11038_v56  ;;  %v4180_v19 = vpop.f32.mrb[139].mxu1  ;;  %v13658_v56 = vld [vmem:[#allocation5_spill] sm:$0xff] }
 0x367   : > { %v4400_v55 = vpop.f32.mrb[136].mxu0 }
 0x368   : > { %v4401_v40 = vadd.f32 %v4400_v55, %v4176_v32  ;;  %v4402_v62 = vpop.f32.mrb[137].mxu0 }
 0x369   : > { %v4403_v52 = vpop.f32.mrb[138].mxu0 }
 0x36a   : > { %v4459_v24 = vadd.f32 %v4401_v40, %v2872_v49  ;;  %v4404_v28 = vadd.f32 %v4403_v52, %v4179_v18  ;;  %v4405_v16 = vpop.f32.mrb[139].mxu0 }
 0x36b   : > { %v4183_v20 = vpop.f32.mrb[140].mxu1 }
 0x36c   : > { %4508 = vst.msk [vmem:[#allocation2 + $0x160] sm:$0xff] %vm4463_vm1, %v4459_v24  ;;  %v4460_v54 = vadd.f32 %v4404_v28, %v2873_v9  ;;  %v4184_v15 = vadd.f32 %v4183_v20, %v11045_v47  ;;  %v4185_v61 = vpop.f32.mrb[141].mxu1 }
 0x36d   : > { %v4186_v0 = vpop.f32.mrb[142].mxu1 }
 0x36e   : > { %4509 = vst.msk [vmem:[#allocation2 + $0x168] sm:$0xff] %vm4463_vm1, %v4460_v54  ;;  %v4187_v8 = vadd.f32 %v4186_v0, %v13658_v56  ;;  %v4188_v45 = vpop.f32.mrb[143].mxu1 }
 0x36f   : > { %v4408_v48 = vpop.f32.mrb[140].mxu0 }
 0x370   : > { %v4409_v50 = vadd.f32 %v4408_v48, %v4184_v15  ;;  %v4410_v60 = vpop.f32.mrb[141].mxu0  ;;  %4515 = sbr.rel (%p8483_p11) target bundleno = 2282 (0x8ea), region = 79 }
 0x371   : > { %v4411_v13 = vpop.f32.mrb[142].mxu0 }
 0x372   : > { %v4461_v63 = vadd.f32 %v4409_v50, %v2874_v3  ;;  %v4412_v42 = vadd.f32 %v4411_v13, %v4187_v8  ;;  %v4413_v43 = vpop.f32.mrb[143].mxu0 }
 0x374   : > { %4510 = vst.msk [vmem:[#allocation2 + $0x170] sm:$0xff] %vm4463_vm1, %v4461_v63  ;;  %v4462_v2 = vadd.f32 %v4412_v42, %v2875_v17 }
 0x376   : > { %4511 = vst.msk [vmem:[#allocation2 + $0x178] sm:$0xff] %vm4463_vm1, %v4462_v2 }
 0x377   : > { %v11152_v47 = vld [vmem:[#allocation2 + $0x10] sm:$0xff]  ;;  %v11154_v4 = vld [vmem:[#allocation2] sm:$0xff]  ;;  %v11156_v25 = vld [vmem:[#allocation2 + $0x18] sm:$0xff] }
 0x378   : > { %v4570_v57 = vsel %vm4463_vm1, %v11152_v47, 0.0  ;;  %v4564_v21 = vsel %vm4463_vm1, %v11154_v4, 0.0  ;;  %v11162_v11 = vld [vmem:[#allocation2 + $0x8] sm:$0xff]  ;;  %v4573_v26 = vsel %vm4463_vm1, %v11156_v25, 0.0  ;;  %v11170_v29 = vld [vmem:[#allocation2 + $0x20] sm:$0xff]  ;;  %v11176_v46 = vld [vmem:[#allocation2 + $0x38] sm:$0xff] }
 0x379   : > { %4571 = vadd.xlane.f32.xlu1 %v4570_v57  ;;  %4565 = vadd.xlane.f32.xlu0 %v4564_v21  ;;  %v4567_v37 = vsel %vm4463_vm1, %v11162_v11, 0.0  ;;  %v11168_v59 = vld [vmem:[#allocation2 + $0x28] sm:$0xff]  ;;  %v4576_v38 = vsel %vm4463_vm1, %v11170_v29, 0.0  ;;  %v11178_v14 = vld [vmem:[#allocation2 + $0x30] sm:$0xff]  ;;  %v4585_v41 = vsel %vm4463_vm1, %v11176_v46, 0.0  ;;  %v11186_v27 = vld [vmem:[#allocation2 + $0x40] sm:$0xff] }
 0x37a   : > { %v4579_v53 = vsel %vm4463_vm1, %v11168_v59, 0.0  ;;  %v4582_v34 = vsel %vm4463_vm1, %v11178_v14, 0.0  ;;  %v11184_v31 = vld [vmem:[#allocation2 + $0x48] sm:$0xff]  ;;  %v4588_v51 = vsel %vm4463_vm1, %v11186_v27, 0.0  ;;  %v11192_v22 = vld [vmem:[#allocation2 + $0x58] sm:$0xff]  ;;  %v11194_v5 = vld [vmem:[#allocation2 + $0x50] sm:$0xff] }
 0x37b   : > { %v4591_v58 = vsel %vm4463_vm1, %v11184_v31, 0.0  ;;  %v4597_v1 = vsel %vm4463_vm1, %v11192_v22, 0.0  ;;  %v4594_v39 = vsel %vm4463_vm1, %v11194_v5, 0.0  ;;  %v11200_v35 = vld [vmem:[#allocation2 + $0x68] sm:$0xff]  ;;  %v11202_v33 = vld [vmem:[#allocation2 + $0x60] sm:$0xff]  ;;  %v11208_v44 = vld [vmem:[#allocation2 + $0x78] sm:$0xff] }
 0x37c   : > { %v4603_v6 = vsel %vm4463_vm1, %v11200_v35, 0.0  ;;  %v4600_v7 = vsel %vm4463_vm1, %v11202_v33, 0.0  ;;  %v11210_v10 = vld [vmem:[#allocation2 + $0x70] sm:$0xff]  ;;  %v4609_v12 = vsel %vm4463_vm1, %v11208_v44, 0.0  ;;  %v11216_v32 = vld [vmem:[#allocation2 + $0x88] sm:$0xff]  ;;  %v11218_v36 = vld [vmem:[#allocation2 + $0x80] sm:$0xff] }
 0x37d   : > { %4574 = vadd.xlane.f32.xlu1 %v4573_v26  ;;  %4568 = vadd.xlane.f32.xlu0 %v4567_v37  ;;  %v4606_v23 = vsel %vm4463_vm1, %v11210_v10, 0.0  ;;  %v4615_v30 = vsel %vm4463_vm1, %v11216_v32, 0.0  ;;  %v4612_v18 = vsel %vm4463_vm1, %v11218_v36, 0.0  ;;  %v11224_v19 = vld [vmem:[#allocation2 + $0x98] sm:$0xff]  ;;  %v11226_v49 = vld [vmem:[#allocation2 + $0x90] sm:$0xff]  ;;  %v11232_v62 = vld [vmem:[#allocation2 + $0xa8] sm:$0xff] }
 0x37e   : > { %v4621_v55 = vsel %vm4463_vm1, %v11224_v19, 0.0  ;;  %v4618_v40 = vsel %vm4463_vm1, %v11226_v49, 0.0  ;;  %v11234_v9 = vld [vmem:[#allocation2 + $0xa0] sm:$0xff]  ;;  %v4627_v52 = vsel %vm4463_vm1, %v11232_v62, 0.0  ;;  %v11240_v28 = vld [vmem:[#allocation2 + $0xb8] sm:$0xff]  ;;  %v11242_v16 = vld [vmem:[#allocation2 + $0xb0] sm:$0xff] }
 0x37f   : > { %v4624_v24 = vsel %vm4463_vm1, %v11234_v9, 0.0  ;;  %v4633_v20 = vsel %vm4463_vm1, %v11240_v28, 0.0  ;;  %v4630_v54 = vsel %vm4463_vm1, %v11242_v16, 0.0  ;;  %v11248_v15 = vld [vmem:[#allocation2 + $0xc8] sm:$0xff]  ;;  %v11250_v61 = vld [vmem:[#allocation2 + $0xc0] sm:$0xff]  ;;  %v11256_v8 = vld [vmem:[#allocation2 + $0xd8] sm:$0xff] }
 0x380   : > { %v4639_v0 = vsel %vm4463_vm1, %v11248_v15, 0.0  ;;  %v4636_v56 = vsel %vm4463_vm1, %v11250_v61, 0.0  ;;  %v11258_v45 = vld [vmem:[#allocation2 + $0xd0] sm:$0xff]  ;;  %v4645_v3 = vsel %vm4463_vm1, %v11256_v8, 0.0  ;;  %v11264_v50 = vld [vmem:[#allocation2 + $0xe8] sm:$0xff]  ;;  %v11266_v60 = vld [vmem:[#allocation2 + $0xe0] sm:$0xff] }
 0x381   : > { %4580 = vadd.xlane.f32.xlu1 %v4579_v53  ;;  %4577 = vadd.xlane.f32.xlu0 %v4576_v38  ;;  %v4642_v48 = vsel %vm4463_vm1, %v11258_v45, 0.0  ;;  %v4651_v17 = vsel %vm4463_vm1, %v11264_v50, 0.0  ;;  %v4648_v13 = vsel %vm4463_vm1, %v11266_v60, 0.0  ;;  %v11272_v63 = vld [vmem:[#allocation2 + $0xf8] sm:$0xff]  ;;  %v11274_v42 = vld [vmem:[#allocation2 + $0xf0] sm:$0xff]  ;;  %v13643_v57 = vmov 0  }
 0x382   : > { %v4657_v43 = vsel %vm4463_vm1, %v11272_v63, 0.0  ;;  %v4654_v2 = vsel %vm4463_vm1, %v11274_v42, 0.0  ;;  %9624 = vset.pattern.permute.xlu1 %v13643_v57  ;;  %9625 = vset.pattern.permute.xlu0 %v13643_v57 }
 0x383   : > { %6269 = vmatprep.subr.bf16.mxu0 %v13643_v57  ;;  %8832 = vmatprep.subr.bf16.mxu1 %v13643_v57 }
 0x385   : > { %4586 = vadd.xlane.f32.xlu1 %v4585_v41  ;;  %4583 = vadd.xlane.f32.xlu0 %v4582_v34 }
 0x389   : > { %4592 = vadd.xlane.f32.xlu1 %v4591_v58  ;;  %4589 = vadd.xlane.f32.xlu0 %v4588_v51 }
 0x38d   : > { %4598 = vadd.xlane.f32.xlu1 %v4597_v1  ;;  %4595 = vadd.xlane.f32.xlu0 %v4594_v39 }
 0x391   : > { %4604 = vadd.xlane.f32.xlu1 %v4603_v6  ;;  %4601 = vadd.xlane.f32.xlu0 %v4600_v7 }
 0x395   : > { %4610 = vadd.xlane.f32.xlu1 %v4609_v12  ;;  %4607 = vadd.xlane.f32.xlu0 %v4606_v23 }
 0x399   : > { %4616 = vadd.xlane.f32.xlu1 %v4615_v30  ;;  %4613 = vadd.xlane.f32.xlu0 %v4612_v18 }
 0x39d   : > { %4622 = vadd.xlane.f32.xlu1 %v4621_v55  ;;  %4619 = vadd.xlane.f32.xlu0 %v4618_v40 }
 0x3a1   : > { %4628 = vadd.xlane.f32.xlu1 %v4627_v52  ;;  %4625 = vadd.xlane.f32.xlu0 %v4624_v24 }
 0x3a5   : > { %4634 = vadd.xlane.f32.xlu1 %v4633_v20  ;;  %4631 = vadd.xlane.f32.xlu0 %v4630_v54 }
 0x3a9   : > { %4640 = vadd.xlane.f32.xlu1 %v4639_v0  ;;  %4637 = vadd.xlane.f32.xlu0 %v4636_v56 }
 0x3ad   : > { %4646 = vadd.xlane.f32.xlu1 %v4645_v3  ;;  %4643 = vadd.xlane.f32.xlu0 %v4642_v48 }
 0x3b1   : > { %4652 = vadd.xlane.f32.xlu1 %v4651_v17  ;;  %4649 = vadd.xlane.f32.xlu0 %v4648_v13 }
 0x3b5   : > { %4658 = vadd.xlane.f32.xlu1 %v4657_v43  ;;  %4655 = vadd.xlane.f32.xlu0 %v4654_v2 }
 0x406   : > { %v4572_v21 = vpop.xlane.xlu1 %4571  ;;  %v4566_v26 = vpop.xlane.xlu0 %4565 }
 0x407   : > { %v4711_v37 = vmul.f32 0.020408163, %v4572_v21  ;;  %v4709_v53 = vmul.f32 0.020408163, %v4566_v26 }
 0x409   : > { %v11285_v38 = vsub.f32 %v11154_v4, %v4709_v53  ;;  %v11288_v41 = vsub.f32 %v11152_v47, %v4711_v37 }
 0x40a   : > { %v4575_v34 = vpop.xlane.xlu1 %4574  ;;  %v4569_v58 = vpop.xlane.xlu0 %4568 }
 0x40b   : > { %v4712_v51 = vmul.f32 0.020408163, %v4575_v34  ;;  %v4710_v1 = vmul.f32 0.020408163, %v4569_v58  ;;  %v4805_v39 = vmul.f32 %v11285_v38, %v11285_v38  ;;  %v4807_v6 = vmul.f32 %v11288_v41, %v11288_v41 }
 0x40d   : > { %v4853_v7 = vsel %vm4463_vm1, %v4805_v39, 0.0  ;;  %v11296_v12 = vsub.f32 %v11162_v11, %v4710_v1  ;;  %v11299_v4 = vsub.f32 %v11156_v25, %v4712_v51  ;;  %v4859_v30 = vsel %vm4463_vm1, %v4807_v6, 0.0 }
 0x40e   : > { %v4581_v47 = vpop.xlane.xlu1 %4580  ;;  %4854 = vadd.xlane.f32.xlu0 %v4853_v7  ;;  %v4578_v23 = vpop.xlane.xlu0 %4577 }
 0x40f   : > { %v4714_v18 = vmul.f32 0.020408163, %v4581_v47  ;;  %v4713_v55 = vmul.f32 0.020408163, %v4578_v23  ;;  %v4806_v40 = vmul.f32 %v11296_v12, %v11296_v12  ;;  %v4808_v52 = vmul.f32 %v11299_v4, %v11299_v4 }
 0x411   : > { %v4856_v24 = vsel %vm4463_vm1, %v4806_v40, 0.0  ;;  %v11308_v11 = vsub.f32 %v11170_v29, %v4713_v55  ;;  %v11311_v25 = vsub.f32 %v11168_v59, %v4714_v18  ;;  %v4862_v0 = vsel %vm4463_vm1, %v4808_v52, 0.0 }
 0x412   : > { %v4587_v20 = vpop.xlane.xlu1 %4586  ;;  %4860 = vadd.xlane.f32.xlu0 %v4859_v30  ;;  %4857 = vadd.xlane.f32.xlu1 %v4856_v24  ;;  %v4584_v54 = vpop.xlane.xlu0 %4583 }
 0x413   : > { %v4716_v56 = vmul.f32 0.020408163, %v4587_v20  ;;  %v4715_v3 = vmul.f32 0.020408163, %v4584_v54  ;;  %v4809_v48 = vmul.f32 %v11308_v11, %v11308_v11  ;;  %v4810_v17 = vmul.f32 %v11311_v25, %v11311_v25 }
 0x415   : > { %v4865_v29 = vsel %vm4463_vm1, %v4809_v48, 0.0  ;;  %v11320_v13 = vsub.f32 %v11178_v14, %v4715_v3  ;;  %v11323_v59 = vsub.f32 %v11176_v46, %v4716_v56  ;;  %v4868_v21 = vsel %vm4463_vm1, %v4810_v17, 0.0 }
 0x416   : > { %v4593_v43 = vpop.xlane.xlu1 %4592  ;;  %4863 = vadd.xlane.f32.xlu1 %v4862_v0  ;;  %4866 = vadd.xlane.f32.xlu0 %v4865_v29  ;;  %v4590_v2 = vpop.xlane.xlu0 %4589 }
 0x417   : > { %v4718_v26 = vmul.f32 0.020408163, %v4593_v43  ;;  %v4717_v37 = vmul.f32 0.020408163, %v4590_v2  ;;  %v4811_v53 = vmul.f32 %v11320_v13, %v11320_v13  ;;  %v4812_v34 = vmul.f32 %v11323_v59, %v11323_v59 }
 0x419   : > { %v4871_v14 = vsel %vm4463_vm1, %v4811_v53, 0.0  ;;  %v11332_v58 = vsub.f32 %v11186_v27, %v4717_v37  ;;  %v11335_v46 = vsub.f32 %v11184_v31, %v4718_v26  ;;  %v4874_v39 = vsel %vm4463_vm1, %v4812_v34, 0.0 }
 0x41a   : > { %v4599_v51 = vpop.xlane.xlu1 %4598  ;;  %4869 = vadd.xlane.f32.xlu1 %v4868_v21  ;;  %4872 = vadd.xlane.f32.xlu0 %v4871_v14  ;;  %v4596_v1 = vpop.xlane.xlu0 %4595 }
 0x41b   : > { %v4720_v6 = vmul.f32 0.020408163, %v4599_v51  ;;  %v4719_v7 = vmul.f32 0.020408163, %v4596_v1  ;;  %v4813_v47 = vmul.f32 %v11332_v58, %v11332_v58  ;;  %v4814_v23 = vmul.f32 %v11335_v46, %v11335_v46 }
 0x41d   : > { %v4877_v27 = vsel %vm4463_vm1, %v4813_v47, 0.0  ;;  %v11344_v30 = vsub.f32 %v11194_v5, %v4719_v7  ;;  %v11347_v31 = vsub.f32 %v11192_v22, %v4720_v6  ;;  %v4880_v40 = vsel %vm4463_vm1, %v4814_v23, 0.0 }
 0x41e   : > { %v4605_v18 = vpop.xlane.xlu1 %4604  ;;  %4875 = vadd.xlane.f32.xlu1 %v4874_v39  ;;  %4878 = vadd.xlane.f32.xlu0 %v4877_v27  ;;  %v4602_v55 = vpop.xlane.xlu0 %4601 }
 0x41f   : > { %v4722_v52 = vmul.f32 0.020408163, %v4605_v18  ;;  %v4721_v24 = vmul.f32 0.020408163, %v4602_v55  ;;  %v4815_v20 = vmul.f32 %v11344_v30, %v11344_v30  ;;  %v4816_v54 = vmul.f32 %v11347_v31, %v11347_v31 }
 0x421   : > { %v4883_v5 = vsel %vm4463_vm1, %v4815_v20, 0.0  ;;  %v11356_v0 = vsub.f32 %v11202_v33, %v4721_v24  ;;  %v11359_v22 = vsub.f32 %v11200_v35, %v4722_v52  ;;  %v4886_v3 = vsel %vm4463_vm1, %v4816_v54, 0.0 }
 0x422   : > { %v4611_v56 = vpop.xlane.xlu1 %4610  ;;  %4881 = vadd.xlane.f32.xlu1 %v4880_v40  ;;  %4884 = vadd.xlane.f32.xlu0 %v4883_v5  ;;  %v4608_v48 = vpop.xlane.xlu0 %4607 }
 0x423   : > { %v4724_v17 = vmul.f32 0.020408163, %v4611_v56  ;;  %v4817_v29 = vmul.f32 %v11356_v0, %v11356_v0  ;;  %v4723_v43 = vmul.f32 0.020408163, %v4608_v48  ;;  %v4818_v2 = vmul.f32 %v11359_v22, %v11359_v22 }
 0x425   : > { %v4889_v33 = vsel %vm4463_vm1, %v4817_v29, 0.0  ;;  %v11368_v21 = vsub.f32 %v11208_v44, %v4724_v17  ;;  %v11371_v35 = vsub.f32 %v11210_v10, %v4723_v43  ;;  %v4892_v37 = vsel %vm4463_vm1, %v4818_v2, 0.0 }
 0x426   : > { %v4617_v26 = vpop.xlane.xlu1 %4616  ;;  %4887 = vadd.xlane.f32.xlu1 %v4886_v3  ;;  %4890 = vadd.xlane.f32.xlu0 %v4889_v33  ;;  %v4614_v53 = vpop.xlane.xlu0 %4613 }
 0x427   : > { %v4726_v34 = vmul.f32 0.020408163, %v4617_v26  ;;  %v4820_v14 = vmul.f32 %v11368_v21, %v11368_v21  ;;  %v4725_v51 = vmul.f32 0.020408163, %v4614_v53  ;;  %v4819_v1 = vmul.f32 %v11371_v35, %v11371_v35 }
 0x429   : > { %v4898_v44 = vsel %vm4463_vm1, %v4820_v14, 0.0  ;;  %v11380_v39 = vsub.f32 %v11216_v32, %v4726_v34  ;;  %v11383_v10 = vsub.f32 %v11218_v36, %v4725_v51  ;;  %v4895_v7 = vsel %vm4463_vm1, %v4819_v1, 0.0 }
 0x42a   : > { %v4623_v6 = vpop.xlane.xlu1 %4622  ;;  %4893 = vadd.xlane.f32.xlu1 %v4892_v37  ;;  %4899 = vadd.xlane.f32.xlu0 %v4898_v44  ;;  %v4620_v47 = vpop.xlane.xlu0 %4619 }
 0x42b   : > { %v4728_v23 = vmul.f32 0.020408163, %v4623_v6  ;;  %v4822_v27 = vmul.f32 %v11380_v39, %v11380_v39  ;;  %v4727_v18 = vmul.f32 0.020408163, %v4620_v47  ;;  %v4821_v55 = vmul.f32 %v11383_v10, %v11383_v10 }
 0x42d   : > { %v4904_v32 = vsel %vm4463_vm1, %v4822_v27, 0.0  ;;  %v11392_v40 = vsub.f32 %v11224_v19, %v4728_v23  ;;  %v11395_v36 = vsub.f32 %v11226_v49, %v4727_v18  ;;  %v4901_v24 = vsel %vm4463_vm1, %v4821_v55, 0.0 }
 0x42e   : > { %v4629_v52 = vpop.xlane.xlu1 %4628  ;;  %4905 = vadd.xlane.f32.xlu0 %v4904_v32  ;;  %4896 = vadd.xlane.f32.xlu1 %v4895_v7  ;;  %v4626_v20 = vpop.xlane.xlu0 %4625 }
 0x42f   : > { %v4730_v54 = vmul.f32 0.020408163, %v4629_v52  ;;  %v4824_v5 = vmul.f32 %v11392_v40, %v11392_v40  ;;  %v4729_v56 = vmul.f32 0.020408163, %v4626_v20  ;;  %v4823_v3 = vmul.f32 %v11395_v36, %v11395_v36 }
 0x431   : > { %v4910_v19 = vsel %vm4463_vm1, %v4824_v5, 0.0  ;;  %v11404_v48 = vsub.f32 %v11232_v62, %v4730_v54  ;;  %v11407_v49 = vsub.f32 %v11234_v9, %v4729_v56  ;;  %v4907_v29 = vsel %vm4463_vm1, %v4823_v3, 0.0 }
 0x432   : > { %v4635_v17 = vpop.xlane.xlu1 %4634  ;;  %4911 = vadd.xlane.f32.xlu0 %v4910_v19  ;;  %4902 = vadd.xlane.f32.xlu1 %v4901_v24  ;;  %v4632_v43 = vpop.xlane.xlu0 %4631 }
 0x433   : > { %v4732_v2 = vmul.f32 0.020408163, %v4635_v17  ;;  %v4826_v33 = vmul.f32 %v11404_v48, %v11404_v48  ;;  %v4731_v26 = vmul.f32 0.020408163, %v4632_v43  ;;  %v4825_v37 = vmul.f32 %v11407_v49, %v11407_v49 }
 0x435   : > { %v4916_v62 = vsel %vm4463_vm1, %v4826_v33, 0.0  ;;  %v11416_v53 = vsub.f32 %v11240_v28, %v4732_v2  ;;  %v11419_v9 = vsub.f32 %v11242_v16, %v4731_v26  ;;  %v4913_v14 = vsel %vm4463_vm1, %v4825_v37, 0.0 }
 0x436   : > { %v4641_v34 = vpop.xlane.xlu1 %4640  ;;  %4917 = vadd.xlane.f32.xlu0 %v4916_v62  ;;  %4908 = vadd.xlane.f32.xlu1 %v4907_v29  ;;  %v4638_v51 = vpop.xlane.xlu0 %4637 }
 0x437   : > { %13659 = vst [vmem:[#allocation6_spill] sm:$0xff] %v11416_v53  ;;  %13660 = vst [vmem:[#allocation7_spill] sm:$0xff] %v11419_v9  ;;  %v4734_v1 = vmul.f32 0.020408163, %v4641_v34  ;;  %v4828_v44 = vmul.f32 %v11416_v53, %v11416_v53  ;;  %v4733_v6 = vmul.f32 0.020408163, %v4638_v51  ;;  %v4827_v7 = vmul.f32 %v11419_v9, %v11419_v9 }
 0x439   : > { %v4922_v28 = vsel %vm4463_vm1, %v4828_v44, 0.0  ;;  %v11428_v47 = vsub.f32 %v11248_v15, %v4734_v1  ;;  %v11431_v16 = vsub.f32 %v11250_v61, %v4733_v6  ;;  %v4919_v27 = vsel %vm4463_vm1, %v4827_v7, 0.0 }
 0x43a   : > { %v4647_v23 = vpop.xlane.xlu1 %4646  ;;  %4923 = vadd.xlane.f32.xlu0 %v4922_v28  ;;  %4914 = vadd.xlane.f32.xlu1 %v4913_v14  ;;  %v4644_v18 = vpop.xlane.xlu0 %4643  ;;  %v5189_v28 = vld [vmem:[%s13640_s5] sm:$0xff] }
 0x43b   : > { %13661 = vst [vmem:[#allocation8_spill] sm:$0xff] %v11428_v47  ;;  %13662 = vst [vmem:[#allocation9_spill] sm:$0xff] %v11431_v16  ;;  %v4736_v55 = vmul.f32 0.020408163, %v4647_v23  ;;  %v4830_v32 = vmul.f32 %v11428_v47, %v11428_v47  ;;  %v4735_v52 = vmul.f32 0.020408163, %v4644_v18  ;;  %v4829_v24 = vmul.f32 %v11431_v16, %v11431_v16 }
 0x43c   : > { %v5525_v23 = vld [vmem:[%s13641_s6] sm:$0xff]  ;;  %v5526_v18 = vld [vmem:[%s13641_s6 + $0x8] sm:$0xff] }
 0x43d   : > { %v4928_v15 = vsel %vm4463_vm1, %v4830_v32, 0.0  ;;  %v11440_v20 = vsub.f32 %v11256_v8, %v4736_v55  ;;  %v11443_v61 = vsub.f32 %v11258_v45, %v4735_v52  ;;  %v4925_v5 = vsel %vm4463_vm1, %v4829_v24, 0.0  ;;  %v5194_v55 = vld [vmem:[%s13640_s5 + $0x28] sm:$0xff]  ;;  %v5191_v32 = vld [vmem:[%s13640_s5 + $0x10] sm:$0xff] }
 0x43e   : > { %v4653_v54 = vpop.xlane.xlu1 %4652  ;;  %4929 = vadd.xlane.f32.xlu0 %v4928_v15  ;;  %4920 = vadd.xlane.f32.xlu1 %v4919_v27  ;;  %v4650_v56 = vpop.xlane.xlu0 %4649  ;;  %v5192_v27 = vld [vmem:[%s13640_s5 + $0x18] sm:$0xff]  ;;  %v5195_v52 = vld [vmem:[%s13640_s5 + $0x30] sm:$0xff] }
 0x43f   : > { %13663 = vst [vmem:[#allocation10_spill] sm:$0xff] %v11440_v20  ;;  %13664 = vst [vmem:[#allocation11_spill] sm:$0xff] %v11443_v61  ;;  %v4738_v3 = vmul.f32 0.020408163, %v4653_v54  ;;  %v4832_v19 = vmul.f32 %v11440_v20, %v11440_v20  ;;  %v4737_v17 = vmul.f32 0.020408163, %v4650_v56  ;;  %v4831_v29 = vmul.f32 %v11443_v61, %v11443_v61 }
 0x440   : > { %v5527_v24 = vld [vmem:[%s13641_s6 + $0x10] sm:$0xff]  ;;  %v5532_v15 = vld [vmem:[%s13641_s6 + $0x38] sm:$0xff]  ;;  %v5193_v56 = vld [vmem:[%s13640_s5 + $0x20] sm:$0xff] }
 0x441   : > { %v4934_v8 = vsel %vm4463_vm1, %v4832_v19, 0.0  ;;  %v11452_v43 = vsub.f32 %v11264_v50, %v4738_v3  ;;  %v11455_v45 = vsub.f32 %v11266_v60, %v4737_v17  ;;  %v4931_v33 = vsel %vm4463_vm1, %v4831_v29, 0.0  ;;  %v5528_v54 = vld [vmem:[%s13641_s6 + $0x18] sm:$0xff]  ;;  %v5534_v3 = vld [vmem:[%s13641_s6 + $0x48] sm:$0xff]  ;;  %v5529_v19 = vld [vmem:[%s13641_s6 + $0x20] sm:$0xff] }
 0x442   : > { %v4659_v2 = vpop.xlane.xlu1 %4658  ;;  %4935 = vadd.xlane.f32.xlu0 %v4934_v8  ;;  %4926 = vadd.xlane.f32.xlu1 %v4925_v5  ;;  %v4656_v26 = vpop.xlane.xlu0 %4655  ;;  %v5197_v5 = vld [vmem:[%s13640_s5 + $0x40] sm:$0xff]  ;;  %v5199_v17 = vld [vmem:[%s13640_s5 + $0x50] sm:$0xff]  ;;  %v5530_v29 = vld [vmem:[%s13641_s6 + $0x28] sm:$0xff] }
 0x443   : > { %13665 = vst [vmem:[#allocation12_spill] sm:$0xff] %v11452_v43  ;;  %13666 = vst [vmem:[#allocation13_spill] sm:$0xff] %v11455_v45  ;;  %v4740_v37 = vmul.f32 0.020408163, %v4659_v2  ;;  %v4834_v62 = vmul.f32 %v11452_v43, %v11452_v43  ;;  %v4739_v34 = vmul.f32 0.020408163, %v4656_v26  ;;  %v4833_v14 = vmul.f32 %v11455_v45, %v11455_v45 }
 0x444   : > { %v5536_v8 = vld [vmem:[%s13641_s6 + $0x58] sm:$0xff]  ;;  %v5531_v26 = vld [vmem:[%s13641_s6 + $0x30] sm:$0xff] }
 0x445   : > { %v4940_v50 = vsel %vm4463_vm1, %v4834_v62, 0.0  ;;  %v11464_v51 = vsub.f32 %v11272_v63, %v4740_v37  ;;  %v11467_v60 = vsub.f32 %v11274_v42, %v4739_v34  ;;  %v4937_v44 = vsel %vm4463_vm1, %v4833_v14, 0.0  ;;  %v5190_v42 = vld [vmem:[%s13640_s5 + $0x8] sm:$0xff]  ;;  %v5196_v2 = vld [vmem:[%s13640_s5 + $0x38] sm:$0xff]  ;;  %v5203_v34 = vld [vmem:[%s13640_s5 + $0x70] sm:$0xff] }
 0x446   : > { %4941 = vadd.xlane.f32.xlu0 %v4940_v50  ;;  %4932 = vadd.xlane.f32.xlu1 %v4931_v33  ;;  %v5201_v33 = vld [vmem:[%s13640_s5 + $0x60] sm:$0xff]  ;;  %v5538_v37 = vld [vmem:[%s13641_s6 + $0x68] sm:$0xff]  ;;  %v5540_v50 = vld [vmem:[%s13641_s6 + $0x78] sm:$0xff] }
 0x447   : > { %13667 = vst [vmem:[#allocation14_spill] sm:$0xff] %v11464_v51  ;;  %13668 = vst [vmem:[#allocation15_spill] sm:$0xff] %v11467_v60  ;;  %v4836_v1 = vmul.f32 %v11464_v51, %v11464_v51  ;;  %v4835_v6 = vmul.f32 %v11467_v60, %v11467_v60  ;;  %v5198_v62 = vld [vmem:[%s13640_s5 + $0x48] sm:$0xff]  ;;  %v5533_v14 = vld [vmem:[%s13641_s6 + $0x40] sm:$0xff] }
 0x449   : > { %v4946_v7 = vsel %vm4463_vm1, %v4836_v1, 0.0  ;;  %v4943_v63 = vsel %vm4463_vm1, %v4835_v6, 0.0  ;;  %v5200_v1 = vld [vmem:[%s13640_s5 + $0x58] sm:$0xff]  ;;  %v5535_v6 = vld [vmem:[%s13641_s6 + $0x50] sm:$0xff] }
 0x44a   : > { %4947 = vadd.xlane.f32.xlu0 %v4946_v7  ;;  %4938 = vadd.xlane.f32.xlu1 %v4937_v44  ;;  %v5205_v44 = vld [vmem:[%s13640_s5 + $0x80] sm:$0xff]  ;;  %v5542_v7 = vld [vmem:[%s13641_s6 + $0x88] sm:$0xff] }
 0x44e   : > { %4944 = vadd.xlane.f32.xlu1 %v4943_v63  ;;  %v5202_v63 = vld [vmem:[%s13640_s5 + $0x68] sm:$0xff] }
 0x45f   : > { %5244 = vperm.xlu1 %9624, %v5190_v42   ;;  %v5207_v42 = vld [vmem:[%s13640_s5 + $0x90] sm:$0xff] }
 0x460   : > { %5239 = vperm.xlu0 %9625, %v5189_v28  }
 0x463   : > { %5575 = vperm.xlu1 %9624, %v5525_v23   ;;  %v5537_v23 = vld [vmem:[%s13641_s6 + $0x60] sm:$0xff] }
 0x464   : > { %5254 = vperm.xlu0 %9625, %v5192_v27   ;;  %v5544_v27 = vld [vmem:[%s13641_s6 + $0x98] sm:$0xff] }
 0x467   : > { %5580 = vperm.xlu1 %9624, %v5526_v18  }
 0x468   : > { %5264 = vperm.xlu0 %9625, %v5194_v55  }
 0x46b   : > { %5249 = vperm.xlu1 %9624, %v5191_v32   ;;  %v5204_v32 = vld [vmem:[%s13640_s5 + $0x78] sm:$0xff] }
 0x46c   : > { %5269 = vperm.xlu0 %9625, %v5195_v52   ;;  %v5210_v52 = vld [vmem:[%s13640_s5 + $0xa8] sm:$0xff] }
 0x46f   : > { %5585 = vperm.xlu1 %9624, %v5527_v24  }
 0x470   : > { %5610 = vperm.xlu0 %9625, %v5532_v15  }
 0x473   : > { %5590 = vperm.xlu1 %9624, %v5528_v54   ;;  %v5539_v54 = vld [vmem:[%s13641_s6 + $0x70] sm:$0xff] }
 0x474   : > { %5279 = vperm.xlu0 %9625, %v5197_v5   ;;  %v5546_v5 = vld [vmem:[%s13641_s6 + $0xa8] sm:$0xff] }
 0x477   : > { %5259 = vperm.xlu1 %9624, %v5193_v56  }
 0x478   : > { %5620 = vperm.xlu0 %9625, %v5534_v3  }
 0x47b   : > { %5595 = vperm.xlu1 %9624, %v5529_v19   ;;  %v5206_v19 = vld [vmem:[%s13640_s5 + $0x88] sm:$0xff] }
 0x47c   : > { %5289 = vperm.xlu0 %9625, %v5199_v17   ;;  %v5212_v17 = vld [vmem:[%s13640_s5 + $0xb8] sm:$0xff] }
 0x47f   : > { %5600 = vperm.xlu1 %9624, %v5530_v29  }
 0x480   : > { %5630 = vperm.xlu0 %9625, %v5536_v8  }
 0x483   : > { %5274 = vperm.xlu1 %9624, %v5196_v2   ;;  %v5541_v2 = vld [vmem:[%s13641_s6 + $0x80] sm:$0xff] }
 0x484   : > { %5299 = vperm.xlu0 %9625, %v5201_v33   ;;  %v5548_v33 = vld [vmem:[%s13641_s6 + $0xb8] sm:$0xff] }
 0x487   : > { %5605 = vperm.xlu1 %9624, %v5531_v26  }
 0x488   : > { %5640 = vperm.xlu0 %9625, %v5538_v37  }
 0x48b   : > { %5284 = vperm.xlu1 %9624, %v5198_v62   ;;  %v5208_v62 = vld [vmem:[%s13640_s5 + $0x98] sm:$0xff] }
 0x48c   : > { %5309 = vperm.xlu0 %9625, %v5203_v34   ;;  %v5214_v34 = vld [vmem:[%s13640_s5 + $0xc8] sm:$0xff] }
 0x48f   : > { %5615 = vperm.xlu1 %9624, %v5533_v14  }
 0x490   : > { %5650 = vperm.xlu0 %9625, %v5540_v50  }
 0x493   : > { %5294 = vperm.xlu1 %9624, %v5200_v1   ;;  %v5543_v1 = vld [vmem:[%s13641_s6 + $0x90] sm:$0xff] }
 0x494   : > { %5319 = vperm.xlu0 %9625, %v5205_v44   ;;  %v5550_v44 = vld [vmem:[%s13641_s6 + $0xc8] sm:$0xff] }
 0x497   : > { %5625 = vperm.xlu1 %9624, %v5535_v6  }
 0x498   : > { %5660 = vperm.xlu0 %9625, %v5542_v7  }
 0x49b   : > { %5304 = vperm.xlu1 %9624, %v5202_v63   ;;  %v11572_v28 = vpop.xlane.xlu0 %4854  ;;  %v5209_v63 = vld [vmem:[%s13640_s5 + $0xa0] sm:$0xff] }
 0x49c   : > { %5329 = vperm.xlu0 %9625, %v5207_v42   ;;  %v5216_v42 = vld [vmem:[%s13640_s5 + $0xd8] sm:$0xff] }
 0x49f   : > { %v11580_v18 = vpop.xlane.xlu1 %4857  ;;  %5635 = vperm.xlu1 %9624, %v5537_v23   ;;  %v11582_v55 = vpop.xlane.xlu0 %4860 }
 0x4a0   : > { %5670 = vperm.xlu0 %9625, %v5544_v27  }
 0x4a3   : > { %v11590_v24 = vpop.xlane.xlu1 %4863  ;;  %5314 = vperm.xlu1 %9624, %v5204_v32   ;;  %v11592_v15 = vpop.xlane.xlu0 %4866  ;;  %v5545_v32 = vld [vmem:[%s13641_s6 + $0xa0] sm:$0xff] }
 0x4a4   : > { %5344 = vperm.xlu0 %9625, %v5210_v52   ;;  %v5552_v52 = vld [vmem:[%s13641_s6 + $0xd8] sm:$0xff] }
 0x4a7   : > { %v11600_v56 = vpop.xlane.xlu1 %4869  ;;  %5645 = vperm.xlu1 %9624, %v5539_v54   ;;  %v11602_v3 = vpop.xlane.xlu0 %4872 }
 0x4a8   : > { %5680 = vperm.xlu0 %9625, %v5546_v5   ;;  %v5002_v9 = vmul.f32 0.020408163, %v11600_v56 }
 0x4ab   : > { %v11610_v29 = vpop.xlane.xlu1 %4875  ;;  %5324 = vperm.xlu1 %9624, %v5206_v19   ;;  %v11612_v8 = vpop.xlane.xlu0 %4878  ;;  %v5211_v19 = vld [vmem:[%s13640_s5 + $0xb0] sm:$0xff] }
 0x4ac   : > { %5354 = vperm.xlu0 %9625, %v5212_v17   ;;  %v5218_v17 = vld [vmem:[%s13640_s5 + $0xe8] sm:$0xff]  ;;  %v5004_v53 = vmul.f32 0.020408163, %v11610_v29 }
 0x4af   : > { %v11620_v26 = vpop.xlane.xlu1 %4881  ;;  %5655 = vperm.xlu1 %9624, %v5541_v2   ;;  %v11622_v37 = vpop.xlane.xlu0 %4884 }
 0x4b0   : > { %5690 = vperm.xlu0 %9625, %v5548_v33  }
 0x4b3   : > { %v11630_v14 = vpop.xlane.xlu1 %4887  ;;  %5334 = vperm.xlu1 %9624, %v5208_v62   ;;  %v11632_v50 = vpop.xlane.xlu0 %4890  ;;  %v5547_v62 = vld [vmem:[%s13641_s6 + $0xb0] sm:$0xff] }
 0x4b4   : > { %5364 = vperm.xlu0 %9625, %v5214_v34   ;;  %v5554_v34 = vld [vmem:[%s13641_s6 + $0xe8] sm:$0xff] }
 0x4b7   : > { %v11640_v6 = vpop.xlane.xlu1 %4893  ;;  %5665 = vperm.xlu1 %9624, %v5543_v1   ;;  %v11642_v7 = vpop.xlane.xlu0 %4899 }
 0x4b8   : > { %5700 = vperm.xlu0 %9625, %v5550_v44  }
 0x4bb   : > { %v11650_v23 = vpop.xlane.xlu1 %4896  ;;  %5339 = vperm.xlu1 %9624, %v5209_v63   ;;  %v11652_v27 = vpop.xlane.xlu0 %4905  ;;  %v5213_v63 = vld [vmem:[%s13640_s5 + $0xc0] sm:$0xff] }
 0x4bc   : > { %5374 = vperm.xlu0 %9625, %v5216_v42   ;;  %v5220_v42 = vld [vmem:[%s13640_s5 + $0xf8] sm:$0xff] }
 0x4bf   : > { %v11660_v54 = vpop.xlane.xlu1 %4902  ;;  %5675 = vperm.xlu1 %9624, %v5545_v32   ;;  %v11662_v5 = vpop.xlane.xlu0 %4911 }
 0x4c0   : > { %5710 = vperm.xlu0 %9625, %v5552_v52  }
 0x4c3   : > { %v11670_v2 = vpop.xlane.xlu1 %4908  ;;  %5349 = vperm.xlu1 %9624, %v5211_v19   ;;  %v11672_v33 = vpop.xlane.xlu0 %4917  ;;  %v5549_v19 = vld [vmem:[%s13641_s6 + $0xc0] sm:$0xff] }
 0x4c4   : > { %5384 = vperm.xlu0 %9625, %v5218_v17   ;;  %v4997_v17 = vmul.f32 0.020408163, %v11572_v28  ;;  %v5551_v28 = vld [vmem:[%s13641_s6 + $0xd0] sm:$0xff] }
 0x4c7   : > { %v11680_v1 = vpop.xlane.xlu1 %4914  ;;  %5685 = vperm.xlu1 %9624, %v5547_v62   ;;  %v11682_v44 = vpop.xlane.xlu0 %4923  ;;  %v5556_v62 = vld [vmem:[%s13641_s6 + $0xf8] sm:$0xff] }
 0x4c8   : > { %5720 = vperm.xlu0 %9625, %v5554_v34   ;;  %v4998_v34 = vmul.f32 0.020408163, %v11580_v18 }
 0x4ca   : > { %v5046_v51 = vadd.f32 1e-05, %v4998_v34  ;;  %v5000_v34 = vmul.f32 0.020408163, %v11590_v24 }
 0x4cb   : > { %v11690_v32 = vpop.xlane.xlu1 %4920  ;;  %5359 = vperm.xlu1 %9624, %v5213_v63   ;;  %v11692_v52 = vpop.xlane.xlu0 %4929  ;;  %v5215_v63 = vld [vmem:[%s13640_s5 + $0xd0] sm:$0xff] }
 0x4cc   : > { %5394 = vperm.xlu0 %9625, %v5220_v42   ;;  %v5045_v42 = vadd.f32 1e-05, %v4997_v17  ;;  %v4999_v17 = vmul.f32 0.020408163, %v11582_v55  ;;  %v5219_v55 = vld [vmem:[%s13640_s5 + $0xf0] sm:$0xff] }
 0x4ce   : > { %9626 = vrsqrt.f32 %v5045_v42  ;;  %v5047_v42 = vadd.f32 1e-05, %v4999_v17 }
 0x4cf   : > { %v11702_v57 = vpop.xlane.xlu1 %4926  ;;  %5695 = vperm.xlu1 %9624, %v5549_v19   ;;  %v11704_v60 = vpop.xlane.xlu0 %4935  ;;  %9628 = vrsqrt.f32 %v5046_v51  ;;  %v5553_v51 = vld [vmem:[%s13641_s6 + $0xe0] sm:$0xff] }
 0x4d0   : > { %5730 = vperm.xlu0 %9625, %v5556_v62   ;;  %v5217_v62 = vld [vmem:[%s13640_s5 + $0xe0] sm:$0xff]  ;;  %9630 = vrsqrt.f32 %v5047_v42 }
 0x4d3   : > { %v11709_v45 = vpop.xlane.xlu1 %4932  ;;  %5369 = vperm.xlu1 %9624, %v5215_v63   ;;  %v11714_v18 = vpop.xlane.xlu0 %4941 }
 0x4d4   : > { %13669 = vst [vmem:[#allocation16_spill] sm:$0xff] %v11709_v45  ;;  %13670 = vst [vmem:[#allocation17_spill] sm:$0xff] %v11714_v18  ;;  %v11755_v45 = vld [vmem:[#allocation2 + $0x110] sm:$0xff] }
 0x4d5   : > { %v4666_v29 = vsel %vm4463_vm1, %v11755_v45, 0.0 }
 0x4d7   : > { %v11716_v19 = vpop.xlane.xlu1 %4938  ;;  %5705 = vperm.xlu1 %9624, %v5551_v28   ;;  %v11723_v63 = vpop.xlane.xlu0 %4947  ;;  %v5048_v28 = vadd.f32 1e-05, %v5000_v34  ;;  %v5555_v34 = vld [vmem:[%s13641_s6 + $0xf0] sm:$0xff] }
 0x4d8   : > { %13671 = vst [vmem:[#allocation18_spill] sm:$0xff] %v11716_v19  ;;  %13672 = vst [vmem:[#allocation19_spill] sm:$0xff] %v11723_v63  ;;  %v9627_v61 = vpop.eup %9626 }
 0x4d9   : > { %v9629_v24 = vpop.eup %9628  ;;  %9632 = vrsqrt.f32 %v5048_v28 }
 0x4da   : > { %v5142_v47 = vmul.f32 %v9629_v24, %v11296_v12  ;;  %v5862_v12 = vld [vmem:[%s13637_s2 + $0x8] sm:$0xff] }
 0x4db   : > { %5379 = vperm.xlu1 %9624, %v5217_v62   ;;  %v11725_v43 = vpop.xlane.xlu1 %4944  ;;  %v5141_v62 = vmul.f32 %v9627_v61, %v11285_v38  ;;  %v5861_v61 = vld [vmem:[%s13637_s2] sm:$0xff] }
 0x4dc   : > { %13673 = vst [vmem:[#allocation20_spill] sm:$0xff] %v11725_v43 }
 0x4df   : > { %5715 = vperm.xlu1 %9624, %v5553_v51   ;;  %v5245_v20 = vpop.permute.xlu1 %5244  ;;  %v5240_v16 = vpop.permute.xlu0 %5239  ;;  %v5001_v51 = vmul.f32 0.020408163, %v11592_v15  ;;  %v5050_v15 = vadd.f32 1e-05, %v5002_v9  ;;  %v5003_v9 = vmul.f32 0.020408163, %v11602_v3 }
 0x4e0   : > { %v5477_v17 = vmul.f32 %v5240_v16, %v5141_v62  ;;  %v5478_v19 = vmul.f32 %v5245_v20, %v5142_v47 }
 0x4e1   : > { %v5049_v28 = vadd.f32 1e-05, %v5001_v51  ;;  %v5051_v3 = vadd.f32 1e-05, %v5003_v9  ;;  %v5005_v9 = vmul.f32 0.020408163, %v11612_v8 }
 0x4e3   : > { %5389 = vperm.xlu1 %9624, %v5219_v55   ;;  %v5576_v43 = vpop.permute.xlu1 %5575  ;;  %v5255_v63 = vpop.permute.xlu0 %5254  ;;  %v11748_v55 = vld [vmem:[#allocation2 + $0x108] sm:$0xff]  ;;  %9634 = vrsqrt.f32 %v5049_v28 }
 0x4e4   : > { %v5813_v18 = vadd.f32 %v5576_v43, %v5477_v17  ;;  %v9631_v43 = vpop.eup %9630  ;;  %v4663_v17 = vsel %vm4463_vm1, %v11748_v55, 0.0  ;;  %9636 = vrsqrt.f32 %v5050_v15 }
 0x4e6   : > { %v5909_v47 = vadd.f32 %v5861_v61, %v5813_v18 }
 0x4e7   : > { %5725 = vperm.xlu1 %9624, %v5555_v34   ;;  %v5581_v42 = vpop.permute.xlu1 %5580  ;;  %v11740_v38 = vpop.permute.xlu0 %5264 }
 0x4e8   : > { %v5814_v16 = vadd.f32 %v5581_v42, %v5478_v19  ;;  %v9633_v34 = vpop.eup %9632  ;;  %v5143_v19 = vmul.f32 %v9631_v43, %v11288_v41  ;;  %v13674_v42 = vmov 0   ;;  %v5052_v41 = vadd.f32 1e-05, %v5004_v53 }
 0x4e9   : > { %v5144_v61 = vmul.f32 %v9633_v34, %v11299_v4  ;;  %v5864_v4 = vld [vmem:[%s13637_s2 + $0x18] sm:$0xff]  ;;  %v11779_v34 = vld [vmem:[#allocation2 + $0x130] sm:$0xff] }
 0x4ea   : > { %v5910_v20 = vadd.f32 %v5862_v12, %v5814_v16  ;;  %v11766_v16 = vld [vmem:[#allocation2 + $0x120] sm:$0xff]  ;;  %9638 = vrsqrt.f32 %v5052_v41  ;;  %13675 = vst [vmem:[#allocation21_spill] sm:$0xff] %v11779_v34 }
 0x4eb   : > { %v5250_v56 = vpop.permute.xlu1 %5249  ;;  %v11750_v24 = vpop.permute.xlu0 %5269  ;;  %v5480_v28 = vmul.f32 %v5255_v63, %v5144_v61  ;;  %v4672_v53 = vsel %vm4463_vm1, %v11766_v16, 0.0  ;;  %v5006_v63 = vmul.f32 0.020408163, %v11620_v26  ;;  %9640 = vrsqrt.f32 %v5051_v3 }
 0x4ec   : > { %v5957_v62 = vpack.c.bf16 %v5910_v20, %v5909_v47  ;;  %v5479_v12 = vmul.f32 %v5250_v56, %v5143_v19  ;;  %v5863_v20 = vld [vmem:[%s13637_s2 + $0x10] sm:$0xff]  ;;  %v4678_v26 = vsel %vm4463_vm1, %v11779_v34, 0.0  ;;  %v5053_v3 = vadd.f32 1e-05, %v5005_v9 }
 0x4ed   : > { %v9635_v19 = vpop.eup %9634  ;;  %v5007_v9 = vmul.f32 0.020408163, %v11622_v37 }
 0x4ee   : > { %6270 = vmatpush1.bf16.msra.mxu0 %v5957_v62  ;;  %8848 = vmatpush1.bf16.msra.mxu1 %v5957_v62  ;;  %v5145_v41 = vmul.f32 %v9635_v19, %v11308_v11 }
 0x4ef   : > { %4664 = vadd.xlane.f32.xlu0 %v4663_v17  ;;  %v5586_v18 = vpop.permute.xlu1 %5585  ;;  %v11759_v51 = vpop.permute.xlu0 %5610  ;;  %6271 = vmatprep.subr.bf16.mxu0 %v13674_v42 }
 0x4f0   : > { %8833 = vmatprep.subr.bf16.mxu1 %v13674_v42  ;;  %v5815_v47 = vadd.f32 %v5586_v18, %v5479_v12  ;;  %v5982_v12 = vld [vmem:[#allocation3 + $0x8] sm:$0xff] }
 0x4f1   : > { %6301 = vmatprep.mubr.bf16.mxu0 %v5982_v12 }
 0x4f2   : > { %v5911_v62 = vadd.f32 %v5863_v20, %v5815_v47  ;;  %v11787_v47 = vld [vmem:[#allocation2 + $0x140] sm:$0xff] }
 0x4f3   : > { %v5591_v43 = vpop.permute.xlu1 %5590  ;;  %v11774_v15 = vpop.permute.xlu0 %5279  ;;  %4667 = vadd.xlane.f32.xlu0 %v4666_v29  ;;  %13676 = vst [vmem:[#allocation22_spill] sm:$0xff] %v11787_v47  ;;  %v4684_v11 = vsel %vm4463_vm1, %v11787_v47, 0.0 }
 0x4f4   : > { %v5816_v56 = vadd.f32 %v5591_v43, %v5480_v28  ;;  %v9637_v28 = vpop.eup %9636  ;;  %v5054_v43 = vadd.f32 1e-05, %v5006_v63 }
 0x4f5   : > { %v9639_v19 = vpop.eup %9638 }
 0x4f6   : > { %v5912_v17 = vadd.f32 %v5864_v4, %v5816_v56  ;;  %v5146_v4 = vmul.f32 %v9637_v28, %v11311_v25  ;;  %9642 = vrsqrt.f32 %v5054_v43  ;;  %v5865_v25 = vld [vmem:[%s13637_s2 + $0x20] sm:$0xff] }
 0x4f7   : > { %v5260_v18 = vpop.permute.xlu1 %5259  ;;  %v11782_v61 = vpop.permute.xlu0 %5620  ;;  %4673 = vadd.xlane.f32.xlu0 %v4672_v53  ;;  %v5008_v53 = vmul.f32 0.020408163, %v11630_v14  ;;  %9644 = vrsqrt.f32 %v5053_v3  ;;  %v5866_v14 = vld [vmem:[%s13637_s2 + $0x28] sm:$0xff]  ;;  %v11812_v3 = vld [vmem:[#allocation2 + $0x160] sm:$0xff] }
 0x4f8   : > { %v5958_v29 = vpack.c.bf16 %v5912_v17, %v5911_v62  ;;  %v5481_v56 = vmul.f32 %v5260_v18, %v5145_v41  ;;  %v5482_v63 = vmul.f32 %v11740_v38, %v5146_v4  ;;  %v11798_v17 = vld [vmem:[#allocation2 + $0x150] sm:$0xff]  ;;  %v9641_v38 = vpop.eup %9640  ;;  %v5148_v41 = vmul.f32 %v9639_v19, %v11323_v59 }
 0x4f9   : > { %v5056_v28 = vadd.f32 1e-05, %v5008_v53  ;;  %v4690_v43 = vsel %vm4463_vm1, %v11798_v17, 0.0  ;;  %v5147_v47 = vmul.f32 %v9641_v38, %v11320_v13  ;;  %v5010_v53 = vmul.f32 0.020408163, %v11640_v6  ;;  %v5868_v6 = vld [vmem:[%s13637_s2 + $0x38] sm:$0xff] }
 0x4fa   : > { %6272 = vmatpush1.bf16.msra.mxu0 %v5958_v29  ;;  %8849 = vmatpush1.bf16.msra.mxu1 %v5958_v29 }
 0x4fb   : > { %v5596_v8 = vpop.permute.xlu1 %5595  ;;  %v11789_v20 = vpop.permute.xlu0 %5289  ;;  %6273 = vmatprep.subr.bf16.mxu0 %v13674_v42  ;;  %8834 = vmatprep.subr.bf16.mxu1 %v13674_v42  ;;  %9646 = vrsqrt.f32 %v5056_v28  ;;  %v5483_v59 = vmul.f32 %v11750_v24, %v5147_v47  ;;  %v5058_v47 = vadd.f32 1e-05, %v5010_v53 }
 0x4fc   : > { %4679 = vadd.xlane.f32.xlu0 %v4678_v26  ;;  %v5817_v62 = vadd.f32 %v5596_v8, %v5481_v56  ;;  %v5055_v8 = vadd.f32 1e-05, %v5007_v9  ;;  %v11824_v9 = vld [vmem:[#allocation2 + $0x170] sm:$0xff] }
 0x4fd   : > { %v4702_v38 = vsel %vm4463_vm1, %v11824_v9, 0.0 }
 0x4fe   : > { %v5913_v26 = vadd.f32 %v5865_v25, %v5817_v62  ;;  %v4696_v62 = vsel %vm4463_vm1, %v11812_v3, 0.0  ;;  %9648 = vrsqrt.f32 %v5055_v8  ;;  %v5009_v25 = vmul.f32 0.020408163, %v11632_v50 }
 0x4ff   : > { %v5601_v18 = vpop.permute.xlu1 %5600  ;;  %v11807_v12 = vpop.permute.xlu0 %5630  ;;  %9650 = vrsqrt.f32 %v5058_v47 }
 0x500   : > { %v5818_v29 = vadd.f32 %v5601_v18, %v5482_v63  ;;  %4685 = vadd.xlane.f32.xlu0 %v4684_v11  ;;  %v11818_v11 = vld [vmem:[#allocation2 + $0x100] sm:$0xff]  ;;  %v9643_v13 = vpop.eup %9642 }
 0x501   : > { %v9645_v50 = vpop.eup %9644 }
 0x502   : > { %v5914_v37 = vadd.f32 %v5866_v14, %v5818_v29  ;;  %v5867_v14 = vld [vmem:[%s13637_s2 + $0x30] sm:$0xff]  ;;  %v11839_v29 = vld [vmem:[#allocation2 + $0x118] sm:$0xff] }
 0x503   : > { %v5275_v4 = vpop.permute.xlu1 %5274  ;;  %v11814_v56 = vpop.permute.xlu0 %5299  ;;  %v4669_v53 = vsel %vm4463_vm1, %v11839_v29, 0.0 }
 0x504   : > { %v5484_v34 = vmul.f32 %v5275_v4, %v5148_v41  ;;  %v5959_v63 = vpack.c.bf16 %v5914_v37, %v5913_v26  ;;  %4691 = vadd.xlane.f32.xlu0 %v4690_v43  ;;  %v5150_v26 = vmul.f32 %v9643_v13, %v11335_v46  ;;  %v5057_v37 = vadd.f32 1e-05, %v5009_v25 }
 0x505   : > { %v5149_v4 = vmul.f32 %v9645_v50, %v11332_v58  ;;  %v9647_v25 = vpop.eup %9646  ;;  %v5011_v58 = vmul.f32 0.020408163, %v11650_v23 }
 0x506   : > { %v5820_v19 = vadd.f32 %v11759_v51, %v5484_v34  ;;  %6274 = vmatpush1.bf16.msra.mxu0 %v5959_v63  ;;  %8850 = vmatpush1.bf16.msra.mxu1 %v5959_v63  ;;  %v4660_v34 = vsel %vm4463_vm1, %v11818_v11, 0.0  ;;  %9652 = vrsqrt.f32 %v5057_v37 }
 0x507   : > { %v5606_v18 = vpop.permute.xlu1 %5605  ;;  %v11833_v24 = vpop.permute.xlu0 %5640  ;;  %6275 = vmatprep.subr.bf16.mxu0 %v13674_v42  ;;  %8835 = vmatprep.subr.bf16.mxu1 %v13674_v42  ;;  %v5485_v46 = vmul.f32 %v11774_v15, %v5149_v4 }
 0x508   : > { %v5819_v51 = vadd.f32 %v5606_v18, %v5483_v59  ;;  %4697 = vadd.xlane.f32.xlu0 %v4696_v62  ;;  %v5916_v28 = vadd.f32 %v5868_v6, %v5820_v19  ;;  %v5012_v59 = vmul.f32 0.020408163, %v11642_v7  ;;  %v11850_v19 = vld [vmem:[#allocation2 + $0x128] sm:$0xff]  ;;  %v5869_v7 = vld [vmem:[%s13637_s2 + $0x40] sm:$0xff]  ;;  %v9649_v23 = vpop.eup %9648 }
 0x509   : > { %v5870_v6 = vld [vmem:[%s13637_s2 + $0x48] sm:$0xff]  ;;  %v5151_v37 = vmul.f32 %v9649_v23, %v11344_v30  ;;  %v5013_v30 = vmul.f32 0.020408163, %v11660_v54 }
 0x50a   : > { %v5915_v43 = vadd.f32 %v5867_v14, %v5819_v51  ;;  %v5060_v51 = vadd.f32 1e-05, %v5012_v59 }
 0x50b   : > { %4661 = vadd.xlane.f32.xlu1 %v4660_v34  ;;  %v5285_v41 = vpop.permute.xlu1 %5284  ;;  %v11844_v8 = vpop.permute.xlu0 %5309  ;;  %v11867_v34 = vld [vmem:[#allocation2 + $0x138] sm:$0xff]  ;;  %v5487_v59 = vmul.f32 %v11789_v20, %v5151_v37  ;;  %v5061_v23 = vadd.f32 1e-05, %v5013_v30  ;;  %v5016_v37 = vmul.f32 0.020408163, %v11662_v5  ;;  %v5873_v5 = vld [vmem:[%s13637_s2 + $0x60] sm:$0xff] }
 0x50c   : > { %v5486_v63 = vmul.f32 %v5285_v41, %v5150_v26  ;;  %v5960_v62 = vpack.c.bf16 %v5916_v28, %v5915_v43  ;;  %4703 = vadd.xlane.f32.xlu0 %v4702_v38  ;;  %v5152_v38 = vmul.f32 %v9647_v25, %v11347_v31  ;;  %v5059_v28 = vadd.f32 1e-05, %v5011_v58  ;;  %v11919_v30 = vld [vmem:[#allocation2 + $0x178] sm:$0xff] }
 0x50d   : > { %9654 = vrsqrt.f32 %v5060_v51 }
 0x50e   : > { %v5822_v13 = vadd.f32 %v11782_v61, %v5486_v63  ;;  %6276 = vmatpush1.bf16.msra.mxu0 %v5960_v62  ;;  %8851 = vmatpush1.bf16.msra.mxu1 %v5960_v62  ;;  %v4675_v61 = vsel %vm4463_vm1, %v11850_v19, 0.0  ;;  %v4681_v63 = vsel %vm4463_vm1, %v11867_v34, 0.0  ;;  %v5014_v62 = vmul.f32 0.020408163, %v11652_v27  ;;  %v5871_v27 = vld [vmem:[%s13637_s2 + $0x50] sm:$0xff] }
 0x50f   : > { %4670 = vadd.xlane.f32.xlu1 %v4669_v53  ;;  %v5616_v14 = vpop.permute.xlu1 %5615  ;;  %v11861_v18 = vpop.permute.xlu0 %5650  ;;  %6277 = vmatprep.subr.bf16.mxu0 %v13674_v42  ;;  %v11876_v53 = vld [vmem:[#allocation2 + $0x148] sm:$0xff]  ;;  %9656 = vrsqrt.f32 %v5059_v28 }
 0x510   : > { %v5821_v15 = vadd.f32 %v5616_v14, %v5485_v46  ;;  %8836 = vmatprep.subr.bf16.mxu1 %v13674_v42  ;;  %v5918_v50 = vadd.f32 %v5870_v6, %v5822_v13  ;;  %v9651_v46 = vpop.eup %9650  ;;  %v5872_v13 = vld [vmem:[%s13637_s2 + $0x58] sm:$0xff]  ;;  %v5062_v6 = vadd.f32 1e-05, %v5014_v62  ;;  %v5874_v62 = vld [vmem:[%s13637_s2 + $0x68] sm:$0xff] }
 0x511   : > { %v9653_v54 = vpop.eup %9652 }
 0x512   : > { %v5917_v47 = vadd.f32 %v5869_v7, %v5821_v15  ;;  %v11893_v7 = vld [vmem:[#allocation2 + $0x158] sm:$0xff]  ;;  %9658 = vrsqrt.f32 %v5062_v6 }
 0x513   : > { %4676 = vadd.xlane.f32.xlu1 %v4675_v61  ;;  %v5295_v43 = vpop.permute.xlu1 %5294  ;;  %v11870_v26 = vpop.permute.xlu0 %5319  ;;  %v5154_v61 = vmul.f32 %v9651_v46, %v11359_v22  ;;  %9660 = vrsqrt.f32 %v5061_v23  ;;  %v5064_v46 = vadd.f32 1e-05, %v5016_v37  ;;  %v5018_v23 = vmul.f32 0.020408163, %v11672_v33 }
 0x514   : > { %v5488_v41 = vmul.f32 %v5295_v43, %v5152_v38  ;;  %v5961_v4 = vpack.c.bf16 %v5918_v50, %v5917_v47  ;;  %v5153_v47 = vmul.f32 %v9653_v54, %v11356_v0  ;;  %v4693_v43 = vsel %vm4463_vm1, %v11893_v7, 0.0 }
 0x515   : > { %v5015_v0 = vmul.f32 0.020408163, %v11670_v2  ;;  %9662 = vrsqrt.f32 %v5064_v46  ;;  %v5066_v37 = vadd.f32 1e-05, %v5018_v23 }
 0x516   : > { %v5824_v31 = vadd.f32 %v11807_v12, %v5488_v41  ;;  %6278 = vmatpush1.bf16.msra.mxu0 %v5961_v4  ;;  %8852 = vmatpush1.bf16.msra.mxu1 %v5961_v4  ;;  %v4687_v12 = vsel %vm4463_vm1, %v11876_v53, 0.0  ;;  %v11902_v41 = vld [vmem:[#allocation2 + $0x168] sm:$0xff]  ;;  %v5489_v4 = vmul.f32 %v11814_v56, %v5153_v47 }
 0x517   : > { %4682 = vadd.xlane.f32.xlu1 %v4681_v63  ;;  %v5626_v25 = vpop.permute.xlu1 %5625  ;;  %v11887_v58 = vpop.permute.xlu0 %5660  ;;  %6279 = vmatprep.subr.bf16.mxu0 %v13674_v42 }
 0x518   : > { %v5823_v20 = vadd.f32 %v5626_v25, %v5487_v59  ;;  %8837 = vmatprep.subr.bf16.mxu1 %v13674_v42  ;;  %v5920_v14 = vadd.f32 %v5872_v13, %v5824_v31  ;;  %v9655_v63 = vpop.eup %9654 }
 0x519   : > { %v9657_v2 = vpop.eup %9656  ;;  %v5156_v25 = vmul.f32 %v9655_v63, %v11368_v21 }
 0x51a   : > { %v5919_v15 = vadd.f32 %v5871_v27, %v5823_v20  ;;  %v5063_v20 = vadd.f32 1e-05, %v5015_v0  ;;  %v5155_v6 = vmul.f32 %v9657_v2, %v11371_v35  ;;  %v5876_v35 = vld [vmem:[%s13637_s2 + $0x78] sm:$0xff] }
 0x51b   : > { %4688 = vadd.xlane.f32.xlu1 %v4687_v12  ;;  %v5305_v51 = vpop.permute.xlu1 %5304  ;;  %v11896_v50 = vpop.permute.xlu0 %5329 }
 0x51c   : > { %v5490_v38 = vmul.f32 %v5305_v51, %v5154_v61  ;;  %v5962_v28 = vpack.c.bf16 %v5920_v14, %v5919_v15  ;;  %v4705_v61 = vsel %vm4463_vm1, %v11919_v30, 0.0  ;;  %v5491_v51 = vmul.f32 %v11844_v8, %v5155_v6  ;;  %v9659_v21 = vpop.eup %9658 }
 0x51d   : > { %9664 = vrsqrt.f32 %v5063_v20 }
 0x51e   : > { %v5826_v22 = vadd.f32 %v11833_v24, %v5490_v38  ;;  %6280 = vmatpush1.bf16.msra.mxu0 %v5962_v28  ;;  %8853 = vmatpush1.bf16.msra.mxu1 %v5962_v28  ;;  %v4699_v24 = vsel %vm4463_vm1, %v11902_v41, 0.0  ;;  %v5017_v38 = vmul.f32 0.020408163, %v11680_v1  ;;  %v5875_v28 = vld [vmem:[%s13637_s2 + $0x70] sm:$0xff]  ;;  %9666 = vrsqrt.f32 %v5066_v37 }
 0x51f   : > { %4694 = vadd.xlane.f32.xlu1 %v4693_v43  ;;  %v5636_v59 = vpop.permute.xlu1 %5635  ;;  %v11913_v31 = vpop.permute.xlu0 %5670  ;;  %6281 = vmatprep.subr.bf16.mxu0 %v13674_v42 }
 0x520   : > { %v5825_v56 = vadd.f32 %v5636_v59, %v5489_v4  ;;  %8838 = vmatprep.subr.bf16.mxu1 %v13674_v42  ;;  %v5922_v13 = vadd.f32 %v5874_v62, %v5826_v22  ;;  %v5158_v22 = vmul.f32 %v9659_v21, %v11380_v39  ;;  %v5065_v63 = vadd.f32 1e-05, %v5017_v38 }
 0x521   : > { %v5019_v39 = vmul.f32 0.020408163, %v11690_v32 }
 0x522   : > { %v5921_v27 = vadd.f32 %v5873_v5, %v5825_v56  ;;  %v5020_v56 = vmul.f32 0.020408163, %v11682_v44  ;;  %9668 = vrsqrt.f32 %v5065_v63  ;;  %v5877_v44 = vld [vmem:[%s13637_s2 + $0x80] sm:$0xff] }
 0x523   : > { %4700 = vadd.xlane.f32.xlu1 %v4699_v24  ;;  %v5315_v12 = vpop.permute.xlu1 %5314  ;;  %v11922_v54 = vpop.permute.xlu0 %5344  ;;  %v5067_v6 = vadd.f32 1e-05, %v5019_v39 }
 0x524   : > { %v5492_v14 = vmul.f32 %v5315_v12, %v5156_v25  ;;  %v5963_v15 = vpack.c.bf16 %v5922_v13, %v5921_v27  ;;  %v5068_v25 = vadd.f32 1e-05, %v5020_v56 }
 0x526   : > { %v5828_v47 = vadd.f32 %v11861_v18, %v5492_v14  ;;  %6282 = vmatpush1.bf16.msra.mxu0 %v5963_v15  ;;  %8854 = vmatpush1.bf16.msra.mxu1 %v5963_v15  ;;  %v9661_v18 = vpop.eup %9660  ;;  %9670 = vrsqrt.f32 %v5068_v25 }
 0x527   : > { %4706 = vadd.xlane.f32.xlu1 %v4705_v61  ;;  %v5646_v33 = vpop.permute.xlu1 %5645  ;;  %v11937_v43 = vpop.permute.xlu0 %5680  ;;  %6283 = vmatprep.subr.bf16.mxu0 %v13674_v42  ;;  %v5157_v62 = vmul.f32 %v9661_v18, %v11383_v10  ;;  %v5878_v10 = vld [vmem:[%s13637_s2 + $0x88] sm:$0xff]  ;;  %9672 = vrsqrt.f32 %v5067_v6 }
 0x528   : > { %v5827_v8 = vadd.f32 %v5646_v33, %v5491_v51  ;;  %8839 = vmatprep.subr.bf16.mxu1 %v13674_v42  ;;  %v5924_v1 = vadd.f32 %v5876_v35, %v5828_v47  ;;  %v9663_v13 = vpop.eup %9662  ;;  %v5022_v47 = vmul.f32 0.020408163, %v11692_v52 }
 0x529   : > { %v5493_v2 = vmul.f32 %v11870_v26, %v5157_v62  ;;  %v5160_v32 = vmul.f32 %v9663_v13, %v11392_v40  ;;  %v5021_v40 = vmul.f32 0.020408163, %v11702_v57  ;;  %v5024_v62 = vmul.f32 0.020408163, %v11704_v60 }
 0x52a   : > { %v5923_v4 = vadd.f32 %v5875_v28, %v5827_v8  ;;  %v5880_v28 = vld [vmem:[%s13637_s2 + $0x98] sm:$0xff] }
 0x52b   : > { %v5325_v0 = vpop.permute.xlu1 %5324  ;;  %v11944_v24 = vpop.permute.xlu0 %5354  ;;  %v5072_v39 = vadd.f32 1e-05, %v5024_v62  ;;  %v13684_v62 = vld [vmem:[#allocation19_spill] sm:$0xff] }
 0x52c   : > { %v5494_v5 = vmul.f32 %v5325_v0, %v5158_v22  ;;  %v5964_v59 = vpack.c.bf16 %v5924_v1, %v5923_v4  ;;  %v5069_v1 = vadd.f32 1e-05, %v5021_v40  ;;  %v5884_v40 = vld [vmem:[%s13637_s2 + $0xb8] sm:$0xff] }
 0x52e   : > { %v5830_v46 = vadd.f32 %v11887_v58, %v5494_v5  ;;  %6284 = vmatpush1.bf16.msra.mxu0 %v5964_v59  ;;  %8855 = vmatpush1.bf16.msra.mxu1 %v5964_v59  ;;  %v9665_v58 = vpop.eup %9664 }
 0x52f   : > { %v5656_v27 = vpop.permute.xlu1 %5655  ;;  %6285 = vmatprep.subr.bf16.mxu0 %v13674_v42  ;;  %8840 = vmatprep.subr.bf16.mxu1 %v13674_v42  ;;  %v5691_v14 = vpop.permute.xlu0 %5690  ;;  %v5159_v61 = vmul.f32 %v9665_v58, %v11395_v36  ;;  %v5879_v36 = vld [vmem:[%s13637_s2 + $0x90] sm:$0xff] }
 0x530   : > { %v5829_v26 = vadd.f32 %v5656_v27, %v5493_v2  ;;  %v5926_v20 = vadd.f32 %v5878_v10, %v5830_v46  ;;  %v9667_v35 = vpop.eup %9666  ;;  %v5882_v46 = vld [vmem:[%s13637_s2 + $0xa8] sm:$0xff] }
 0x531   : > { %v5495_v21 = vmul.f32 %v11896_v50, %v5159_v61  ;;  %v9669_v50 = vpop.eup %9668  ;;  %v5162_v18 = vmul.f32 %v9667_v35, %v11404_v48  ;;  %v13677_v48 = vld [vmem:[#allocation16_spill] sm:$0xff] }
 0x532   : > { %v5925_v12 = vadd.f32 %v5877_v44, %v5829_v26  ;;  %v5161_v63 = vmul.f32 %v9669_v50, %v11407_v49  ;;  %v9671_v56 = vpop.eup %9670  ;;  %v5023_v2 = vmul.f32 0.020408163, %v13677_v48  ;;  %v5881_v49 = vld [vmem:[%s13637_s2 + $0xa0] sm:$0xff]  ;;  %v13678_v44 = vld [vmem:[#allocation6_spill] sm:$0xff]  ;;  %v13682_v50 = vld [vmem:[#allocation8_spill] sm:$0xff] }
 0x533   : > { %v5335_v15 = vpop.permute.xlu1 %5334  ;;  %v5365_v8 = vpop.permute.xlu0 %5364  ;;  %v5498_v22 = vmul.f32 %v11922_v54, %v5162_v18  ;;  %v5164_v27 = vmul.f32 %v9671_v56, %v13678_v44  ;;  %v13686_v44 = vld [vmem:[#allocation10_spill] sm:$0xff] }
 0x534   : > { %v5496_v23 = vmul.f32 %v5335_v15, %v5160_v32  ;;  %v5965_v51 = vpack.c.bf16 %v5926_v20, %v5925_v12  ;;  %v5071_v58 = vadd.f32 1e-05, %v5023_v2  ;;  %v13679_v12 = vld [vmem:[#allocation7_spill] sm:$0xff]  ;;  %v13680_v15 = vld [vmem:[#allocation17_spill] sm:$0xff]  ;;  %v13685_v2 = vld [vmem:[#allocation20_spill] sm:$0xff] }
 0x535   : > { %v5834_v5 = vadd.f32 %v11937_v43, %v5498_v22  ;;  %v9673_v43 = vpop.eup %9672  ;;  %v5500_v20 = vmul.f32 %v11944_v24, %v5164_v27  ;;  %v5026_v61 = vmul.f32 0.020408163, %v13680_v15  ;;  %v5883_v24 = vld [vmem:[%s13637_s2 + $0xb0] sm:$0xff]  ;;  %v13683_v22 = vld [vmem:[#allocation9_spill] sm:$0xff]  ;;  %v6198_v15 = vld [vmem:[#allocation3 + $0x6c8] sm:$0xff] }
 0x536   : > { %v5832_v38 = vadd.f32 %v11913_v31, %v5496_v23  ;;  %6286 = vmatpush1.bf16.msra.mxu0 %v5965_v51  ;;  %8856 = vmatpush1.bf16.msra.mxu1 %v5965_v51  ;;  %v5070_v31 = vadd.f32 1e-05, %v5022_v47  ;;  %v5163_v32 = vmul.f32 %v9673_v43, %v13679_v12  ;;  %v13687_v12 = vld [vmem:[#allocation11_spill] sm:$0xff] }
 0x537   : > { %v5666_v33 = vpop.permute.xlu1 %5665  ;;  %6287 = vmatprep.subr.bf16.mxu0 %v13674_v42  ;;  %8841 = vmatprep.subr.bf16.mxu1 %v13674_v42  ;;  %v5701_v54 = vpop.permute.xlu0 %5700  ;;  %v5930_v10 = vadd.f32 %v5882_v46, %v5834_v5  ;;  %v5836_v51 = vadd.f32 %v5691_v14, %v5500_v20  ;;  %v5028_v5 = vmul.f32 0.020408163, %v13684_v62  ;;  %v5027_v46 = vmul.f32 0.020408163, %v13685_v2 }
 0x538   : > { %v5831_v52 = vadd.f32 %v5666_v33, %v5495_v21  ;;  %v5928_v57 = vadd.f32 %v5880_v28, %v5832_v38  ;;  %9674 = vrsqrt.f32 %v5070_v31  ;;  %v13681_v38 = vld [vmem:[#allocation18_spill] sm:$0xff]  ;;  %v5074_v33 = vadd.f32 1e-05, %v5026_v61  ;;  %6877 = vmatprep.mubr.bf16.mxu1 %v6198_v15  ;;  %v6201_v15 = vld [vmem:[#allocation3 + $0x6e0] sm:$0xff] }
 0x539   : > { %9676 = vrsqrt.f32 %v5069_v1  ;;  %v5025_v35 = vmul.f32 0.020408163, %v13681_v38  ;;  %v5076_v43 = vadd.f32 1e-05, %v5028_v5 }
 0x53a   : > { %v5927_v37 = vadd.f32 %v5879_v36, %v5831_v52  ;;  %9678 = vrsqrt.f32 %v5072_v39  ;;  %v5932_v52 = vadd.f32 %v5884_v40, %v5836_v51 }
 0x53b   : > { %v5340_v4 = vpop.permute.xlu1 %5339  ;;  %v5375_v23 = vpop.permute.xlu0 %5374  ;;  %9680 = vrsqrt.f32 %v5071_v58  ;;  %v5075_v58 = vadd.f32 1e-05, %v5027_v46 }
 0x53c   : > { %v5966_v0 = vpack.c.bf16 %v5928_v57, %v5927_v37  ;;  %v5497_v59 = vmul.f32 %v5340_v4, %v5161_v63  ;;  %v5073_v57 = vadd.f32 1e-05, %v5025_v35  ;;  %9682 = vrsqrt.f32 %v5074_v33 }
 0x53e   : > { %6288 = vmatpush1.bf16.msra.mxu0 %v5966_v0  ;;  %8857 = vmatpush1.bf16.msra.mxu1 %v5966_v0  ;;  %9684 = vrsqrt.f32 %v5073_v57 }
 0x53f   : > { %v5676_v13 = vpop.permute.xlu1 %5675  ;;  %6289 = vmatprep.subr.bf16.mxu0 %v13674_v42  ;;  %8842 = vmatprep.subr.bf16.mxu1 %v13674_v42  ;;  %v5711_v37 = vpop.permute.xlu0 %5710  ;;  %9686 = vrsqrt.f32 %v5076_v43 }
 0x540   : > { %v5833_v60 = vadd.f32 %v5676_v13, %v5497_v59  ;;  %9688 = vrsqrt.f32 %v5075_v58 }
 0x542   : > { %v5929_v26 = vadd.f32 %v5881_v49, %v5833_v60  ;;  %v9675_v21 = vpop.eup %9674  ;;  %v5886_v49 = vld [vmem:[%s13637_s2 + $0xc8] sm:$0xff] }
 0x543   : > { %v5350_v25 = vpop.permute.xlu1 %5349  ;;  %v9677_v36 = vpop.eup %9676  ;;  %v5166_v31 = vmul.f32 %v9675_v21, %v13682_v50  ;;  %v5888_v21 = vld [vmem:[%s13637_s2 + $0xd8] sm:$0xff] }
 0x544   : > { %v5967_v6 = vpack.c.bf16 %v5930_v10, %v5929_v26  ;;  %v5499_v47 = vmul.f32 %v5350_v25, %v5163_v32  ;;  %v5165_v63 = vmul.f32 %v9677_v36, %v13683_v22  ;;  %v9679_v48 = vpop.eup %9678  ;;  %v5385_v39 = vpop.permute.xlu0 %5384 }
 0x545   : > { %v5502_v4 = vmul.f32 %v5365_v8, %v5166_v31  ;;  %v5885_v8 = vld [vmem:[%s13637_s2 + $0xc0] sm:$0xff]  ;;  %v9681_v60 = vpop.eup %9680  ;;  %v5168_v27 = vmul.f32 %v9679_v48, %v13686_v44  ;;  %v13690_v48 = vld [vmem:[#allocation14_spill] sm:$0xff]  ;;  %v5892_v44 = vld [vmem:[%s13637_s2 + $0xf8] sm:$0xff] }
 0x546   : > { %6290 = vmatpush1.bf16.msra.mxu0 %v5967_v6  ;;  %8858 = vmatpush1.bf16.msra.mxu1 %v5967_v6  ;;  %v5167_v32 = vmul.f32 %v9681_v60, %v13687_v12  ;;  %v13689_v31 = vld [vmem:[#allocation13_spill] sm:$0xff] }
 0x547   : > { %v5686_v28 = vpop.permute.xlu1 %5685  ;;  %6291 = vmatprep.subr.bf16.mxu0 %v13674_v42  ;;  %8843 = vmatprep.subr.bf16.mxu1 %v13674_v42  ;;  %v5838_v59 = vadd.f32 %v5701_v54, %v5502_v4  ;;  %v5504_v20 = vmul.f32 %v5375_v23, %v5168_v27  ;;  %v5887_v23 = vld [vmem:[%s13637_s2 + $0xd0] sm:$0xff] }
 0x548   : > { %v5835_v14 = vadd.f32 %v5686_v28, %v5499_v47  ;;  %v9683_v47 = vpop.eup %9682  ;;  %v5721_v38 = vpop.permute.xlu0 %5720  ;;  %v5891_v27 = vld [vmem:[%s13637_s2 + $0xf0] sm:$0xff] }
 0x549   : > { %v5934_v10 = vadd.f32 %v5886_v49, %v5838_v59  ;;  %v5840_v61 = vadd.f32 %v5711_v37, %v5504_v20 }
 0x54a   : > { %v5931_v18 = vadd.f32 %v5883_v24, %v5835_v14  ;;  %v9685_v24 = vpop.eup %9684  ;;  %v13688_v14 = vld [vmem:[#allocation12_spill] sm:$0xff] }
 0x54b   : > { %v5360_v1 = vpop.permute.xlu1 %5359  ;;  %v5936_v28 = vadd.f32 %v5888_v21, %v5840_v61  ;;  %v5170_v36 = vmul.f32 %v9683_v47, %v13688_v14  ;;  %v9687_v22 = vpop.eup %9686  ;;  %v5985_v61 = vld [vmem:[#allocation3 + $0x20] sm:$0xff]  ;;  %v5984_v47 = vld [vmem:[#allocation3 + $0x18] sm:$0xff]  ;;  %v5991_v14 = vld [vmem:[#allocation3 + $0x50] sm:$0xff] }
 0x54c   : > { %v5968_v0 = vpack.c.bf16 %v5932_v52, %v5931_v18  ;;  %v5501_v56 = vmul.f32 %v5360_v1, %v5165_v63  ;;  %v5169_v18 = vmul.f32 %v9685_v24, %v13689_v31  ;;  %v5395_v37 = vpop.permute.xlu0 %5394  ;;  %v5890_v63 = vld [vmem:[%s13637_s2 + $0xe8] sm:$0xff]  ;;  %v9689_v59 = vpop.eup %9688  ;;  %v5172_v2 = vmul.f32 %v9687_v22, %v13690_v48  ;;  %v6204_v21 = vld [vmem:[#allocation3 + $0x6f8] sm:$0xff]  ;;  %v5997_v22 = vld [vmem:[#allocation3 + $0x80] sm:$0xff] }
 0x54d   : > { %v5506_v50 = vmul.f32 %v5385_v39, %v5170_v36  ;;  %v5990_v31 = vld [vmem:[#allocation3 + $0x48] sm:$0xff] }
 0x54e   : > { %6292 = vmatpush1.bf16.msra.mxu0 %v5968_v0  ;;  %8859 = vmatpush1.bf16.msra.mxu1 %v5968_v0  ;;  %v5889_v0 = vld [vmem:[%s13637_s2 + $0xe0] sm:$0xff] }
 0x54f   : > { %v5696_v13 = vpop.permute.xlu1 %5695  ;;  %6293 = vmatprep.subr.bf16.mxu0 %v13674_v42  ;;  %8844 = vmatprep.subr.bf16.mxu1 %v13674_v42  ;;  %v5842_v1 = vadd.f32 %v5721_v38, %v5506_v50  ;;  %v5988_v38 = vld [vmem:[#allocation3 + $0x38] sm:$0xff]  ;;  %v6206_v50 = vld [vmem:[#allocation3 + $0x708] sm:$0xff] }
 0x550   : > { %v5837_v54 = vadd.f32 %v5696_v13, %v5501_v56  ;;  %v5731_v49 = vpop.permute.xlu0 %5730  ;;  %v5508_v13 = vmul.f32 %v5395_v37, %v5172_v2  ;;  %v6209_v37 = vld [vmem:[#allocation3 + $0x720] sm:$0xff] }
 0x551   : > { %v5938_v56 = vadd.f32 %v5890_v63, %v5842_v1  ;;  %v5993_v1 = vld [vmem:[#allocation3 + $0x60] sm:$0xff] }
 0x552   : > { %v5933_v26 = vadd.f32 %v5885_v8, %v5837_v54  ;;  %v13691_v54 = vld [vmem:[#allocation15_spill] sm:$0xff]  ;;  %v5844_v39 = vadd.f32 %v5731_v49, %v5508_v13 }
 0x553   : > { %v5370_v25 = vpop.permute.xlu1 %5369  ;;  %v5171_v60 = vmul.f32 %v9689_v59, %v13691_v54  ;;  %v6216_v59 = vld [vmem:[#allocation3 + $0x758] sm:$0xff] }
 0x554   : > { %v5969_v6 = vpack.c.bf16 %v5934_v10, %v5933_v26  ;;  %v5503_v51 = vmul.f32 %v5370_v25, %v5167_v32  ;;  %v5940_v25 = vadd.f32 %v5892_v44, %v5844_v39  ;;  %v6197_v32 = vld [vmem:[#allocation3 + $0x6c0] sm:$0xff] }
 0x556   : > { %6294 = vmatpush1.bf16.msra.mxu0 %v5969_v6  ;;  %8860 = vmatpush1.bf16.msra.mxu1 %v5969_v6  ;;  %v5981_v6 = vld [vmem:[#allocation3] sm:$0xff] }
 0x557   : > { %v5706_v35 = vpop.permute.xlu1 %5705  ;;  %6295 = vmatprep.subr.bf16.mxu0 %v13674_v42  ;;  %8845 = vmatprep.subr.bf16.mxu1 %v13674_v42 }
 0x558   : > { %v5839_v40 = vadd.f32 %v5706_v35, %v5503_v51  ;;  %v6200_v51 = vld [vmem:[#allocation3 + $0x6d8] sm:$0xff]  ;;  %v6203_v35 = vld [vmem:[#allocation3 + $0x6f0] sm:$0xff] }
 0x55a   : > { %v5935_v33 = vadd.f32 %v5887_v23, %v5839_v40  ;;  %v5987_v40 = vld [vmem:[#allocation3 + $0x30] sm:$0xff] }
 0x55b   : > { %v5380_v52 = vpop.permute.xlu1 %5379 }
 0x55c   : > { %v5970_v57 = vpack.c.bf16 %v5936_v28, %v5935_v33  ;;  %v5505_v4 = vmul.f32 %v5380_v52, %v5169_v18  ;;  %v6207_v28 = vld [vmem:[#allocation3 + $0x710] sm:$0xff]  ;;  %v6210_v18 = vld [vmem:[#allocation3 + $0x728] sm:$0xff] }
 0x55e   : > { %6296 = vmatpush1.bf16.msra.mxu0 %v5970_v57  ;;  %8861 = vmatpush1.bf16.msra.mxu1 %v5970_v57  ;;  %v5994_v57 = vld [vmem:[#allocation3 + $0x68] sm:$0xff] }
 0x55f   : > { %v5716_v62 = vpop.permute.xlu1 %5715  ;;  %6297 = vmatprep.subr.bf16.mxu0 %v13674_v42  ;;  %8846 = vmatprep.subr.bf16.mxu1 %v13674_v42 }
 0x560   : > { %v5841_v5 = vadd.f32 %v5716_v62, %v5505_v4  ;;  %v6213_v4 = vld [vmem:[#allocation3 + $0x740] sm:$0xff]  ;;  %v6212_v62 = vld [vmem:[#allocation3 + $0x738] sm:$0xff] }
 0x562   : > { %v5937_v46 = vadd.f32 %v5889_v0, %v5841_v5  ;;  %v5996_v5 = vld [vmem:[#allocation3 + $0x78] sm:$0xff] }
 0x563   : > { %v5390_v8 = vpop.permute.xlu1 %5389 }
 0x564   : > { %v5971_v43 = vpack.c.bf16 %v5938_v56, %v5937_v46  ;;  %v5507_v10 = vmul.f32 %v5390_v8, %v5171_v60  ;;  %v6000_v56 = vld [vmem:[#allocation3 + $0x98] sm:$0xff] }
 0x566   : > { %6298 = vmatpush1.bf16.msra.mxu0 %v5971_v43  ;;  %8862 = vmatpush1.bf16.msra.mxu1 %v5971_v43 }
 0x567   : > { %v5726_v26 = vpop.permute.xlu1 %5725  ;;  %6299 = vmatprep.subr.bf16.mxu0 %v13674_v42  ;;  %8847 = vmatprep.subr.bf16.mxu1 %v13674_v42 }
 0x568   : > { %v5843_v58 = vadd.f32 %v5726_v26, %v5507_v10  ;;  %v5999_v26 = vld [vmem:[#allocation3 + $0x90] sm:$0xff] }
 0x56a   : > { %v5939_v20 = vadd.f32 %v5891_v27, %v5843_v58  ;;  %v6215_v27 = vld [vmem:[#allocation3 + $0x750] sm:$0xff] }
 0x56c   : > { %v5972_v12 = vpack.c.bf16 %v5940_v25, %v5939_v20  ;;  %v6219_v25 = vld [vmem:[#allocation3 + $0x770] sm:$0xff] }
 0x56d   : > { %v6003_v20 = vld [vmem:[#allocation3 + $0xb0] sm:$0xff] }
 0x56e   : > { %6300 = vmatpush1.bf16.msra.mxu0 %v5972_v12  ;;  %8863 = vmatpush1.bf16.msra.mxu1 %v5972_v12 }
 0x571   : > { %6878 = vmatmul.mubr.bf16.vlgmr.msra.gmra.mrb[0].mxu1 %v6197_v32  ;;  %6302 = vmatmul.mubr.bf16.vlgmr.msra.gmra.mrb[0].mxu0 %v5981_v6 }
 0x572   : > { %6885 = vmatprep.mubr.bf16.mxu1 %v6201_v15  ;;  %6309 = vmatprep.mubr.bf16.mxu0 %v5985_v61  ;;  %v13692_v61 = vld [vmem:[#allocation21_spill] sm:$0xff] }
 0x579   : > { %6886 = vmatmul.mubr.bf16.gmra.mrb[4].mxu1 %v6200_v51  ;;  %6310 = vmatmul.mubr.bf16.gmra.mrb[4].mxu0 %v5984_v47 }
 0x57a   : > { %6893 = vmatprep.mubr.bf16.mxu1 %v6204_v21  ;;  %6317 = vmatprep.mubr.bf16.mxu0 %v5988_v38 }
 0x57c   : > { %v4665_v42 = vpop.xlane.xlu0 %4664 }
 0x57d   : > { %v4742_v23 = vmul.f32 0.020408163, %v4665_v42  ;;  %v13693_v42 = vld [vmem:[#allocation22_spill] sm:$0xff] }
 0x57f   : > { %v12041_v24 = vsub.f32 %v11748_v55, %v4742_v23 }
 0x580   : > { %v4668_v52 = vpop.xlane.xlu0 %4667 }
 0x581   : > { %v4838_v36 = vmul.f32 %v12041_v24, %v12041_v24  ;;  %6894 = vmatmul.mubr.bf16.gmra.mrb[8].mxu1 %v6203_v35  ;;  %6318 = vmatmul.mubr.bf16.gmra.mrb[8].mxu0 %v5987_v40  ;;  %v4743_v0 = vmul.f32 0.020408163, %v4668_v52  ;;  %v6002_v52 = vld [vmem:[#allocation3 + $0xa8] sm:$0xff] }
 0x582   : > { %6901 = vmatprep.mubr.bf16.mxu1 %v6207_v28  ;;  %6325 = vmatprep.mubr.bf16.mxu0 %v5991_v14 }
 0x583   : > { %v4952_v33 = vsel %vm4463_vm1, %v4838_v36, 0.0  ;;  %v12047_v2 = vsub.f32 %v11755_v45, %v4743_v0 }
 0x584   : > { %4953 = vadd.xlane.f32.xlu1 %v4952_v33  ;;  %v4674_v55 = vpop.xlane.xlu0 %4673  ;;  %v6218_v33 = vld [vmem:[#allocation3 + $0x768] sm:$0xff] }
 0x585   : > { %v4745_v8 = vmul.f32 0.020408163, %v4674_v55  ;;  %v4839_v60 = vmul.f32 %v12047_v2, %v12047_v2 }
 0x587   : > { %v12057_v45 = vsub.f32 %v11766_v16, %v4745_v8  ;;  %v4955_v32 = vsel %vm4463_vm1, %v4839_v60, 0.0 }
 0x589   : > { %6902 = vmatmul.mubr.bf16.gmra.mrb[12].mxu1 %v6206_v50  ;;  %6326 = vmatmul.mubr.bf16.gmra.mrb[12].mxu0 %v5990_v31  ;;  %v4680_v63 = vpop.xlane.xlu0 %4679 }
 0x58a   : > { %6909 = vmatprep.mubr.bf16.mxu1 %v6210_v18  ;;  %6333 = vmatprep.mubr.bf16.mxu0 %v5994_v57  ;;  %v4747_v10 = vmul.f32 0.020408163, %v4680_v63  ;;  %v6222_v18 = vld [vmem:[#allocation3 + $0x788] sm:$0xff] }
 0x58b   : > { %v6006_v57 = vld [vmem:[#allocation3 + $0xc8] sm:$0xff] }
 0x58c   : > { %v12067_v51 = vsub.f32 %v13692_v61, %v4747_v10  ;;  %v6009_v10 = vld [vmem:[#allocation3 + $0xe0] sm:$0xff]  ;;  %v6008_v61 = vld [vmem:[#allocation3 + $0xd8] sm:$0xff] }
 0x58d   : > { %v4686_v46 = vpop.xlane.xlu0 %4685 }
 0x58e   : > { %v4749_v6 = vmul.f32 0.020408163, %v4686_v46 }
 0x590   : > { %v12076_v23 = vsub.f32 %v13693_v42, %v4749_v6 }
 0x591   : > { %6910 = vmatmul.mubr.bf16.gmra.mrb[16].mxu1 %v6209_v37  ;;  %6334 = vmatmul.mubr.bf16.gmra.mrb[16].mxu0 %v5993_v1  ;;  %v4692_v44 = vpop.xlane.xlu0 %4691 }
 0x592   : > { %6917 = vmatprep.mubr.bf16.mxu1 %v6213_v4  ;;  %6341 = vmatprep.mubr.bf16.mxu0 %v5997_v22  ;;  %v4751_v35 = vmul.f32 0.020408163, %v4692_v44  ;;  %v4845_v1 = vmul.f32 %v12076_v23, %v12076_v23 }
 0x594   : > { %v12088_v37 = vsub.f32 %v11798_v17, %v4751_v35 }
 0x595   : > { %v4698_v40 = vpop.xlane.xlu0 %4697 }
 0x596   : > { %v4753_v63 = vmul.f32 0.020408163, %v4698_v40 }
 0x598   : > { %v4662_v48 = vpop.xlane.xlu1 %4661 }
 0x599   : > { %v4741_v49 = vmul.f32 0.020408163, %v4662_v48  ;;  %6918 = vmatmul.mubr.bf16.gmra.mrb[20].mxu1 %v6212_v62  ;;  %6342 = vmatmul.mubr.bf16.gmra.mrb[20].mxu0 %v5996_v5  ;;  %v4704_v0 = vpop.xlane.xlu0 %4703 }
 0x59a   : > { %6925 = vmatprep.mubr.bf16.mxu1 %v6216_v59  ;;  %6349 = vmatprep.mubr.bf16.mxu0 %v6000_v56  ;;  %v4973_v59 = vsel %vm4463_vm1, %v4845_v1, 0.0  ;;  %v4847_v56 = vmul.f32 %v12088_v37, %v12088_v37  ;;  %v4755_v8 = vmul.f32 0.020408163, %v4704_v0  ;;  %v5221_v1 = vld [vmem:[%s13640_s5 + $0x100] sm:$0xff]  ;;  %v5558_v0 = vld [vmem:[%s13641_s6 + $0x108] sm:$0xff] }
 0x59b   : > { %v12050_v13 = vsub.f32 %v11818_v11, %v4741_v49  ;;  %v12105_v49 = vsub.f32 %v11812_v3, %v4753_v63  ;;  %v5224_v63 = vld [vmem:[%s13640_s5 + $0x118] sm:$0xff] }
 0x59c   : > { %v4671_v54 = vpop.xlane.xlu1 %4670 }
 0x59d   : > { %v4744_v43 = vmul.f32 0.020408163, %v4671_v54  ;;  %v4837_v39 = vmul.f32 %v12050_v13, %v12050_v13  ;;  %v6005_v54 = vld [vmem:[#allocation3 + $0xc0] sm:$0xff] }
 0x59f   : > { %v12060_v58 = vsub.f32 %v11839_v29, %v4744_v43  ;;  %v4949_v11 = vsel %vm4463_vm1, %v4837_v39, 0.0  ;;  %v4841_v29 = vmul.f32 %v12057_v45, %v12057_v45  ;;  %v6225_v39 = vld [vmem:[#allocation3 + $0x7a0] sm:$0xff] }
 0x5a0   : > { %v4677_v12 = vpop.xlane.xlu1 %4676  ;;  %4950 = vadd.xlane.f32.xlu0 %v4949_v11  ;;  %v12115_v11 = vsub.f32 %v11824_v9, %v4755_v8  ;;  %v5225_v8 = vld [vmem:[%s13640_s5 + $0x120] sm:$0xff] }
 0x5a1   : > { %v4746_v15 = vmul.f32 0.020408163, %v4677_v12  ;;  %v4840_v16 = vmul.f32 %v12060_v58, %v12060_v58  ;;  %6926 = vmatmul.mubr.bf16.gmra.mrb[24].mxu1 %v6215_v27  ;;  %6350 = vmatmul.mubr.bf16.gmra.mrb[24].mxu0 %v5999_v26  ;;  %v4961_v36 = vsel %vm4463_vm1, %v4841_v29, 0.0  ;;  %v4979_v27 = vsel %vm4463_vm1, %v4847_v56, 0.0  ;;  %v6240_v56 = vld [vmem:[#allocation3 + $0x818] sm:$0xff] }
 0x5a2   : > { %6933 = vmatprep.mubr.bf16.mxu1 %v6219_v25  ;;  %6357 = vmatprep.mubr.bf16.mxu0 %v6003_v20 }
 0x5a3   : > { %v12072_v47 = vsub.f32 %v11850_v19, %v4746_v15  ;;  %v4958_v21 = vsel %vm4463_vm1, %v4840_v16, 0.0  ;;  %v4843_v19 = vmul.f32 %v12067_v51, %v12067_v51  ;;  %v4851_v15 = vmul.f32 %v12115_v11, %v12115_v11  ;;  %v6224_v16 = vld [vmem:[#allocation3 + $0x798] sm:$0xff] }
 0x5a4   : > { %v4683_v38 = vpop.xlane.xlu1 %4682  ;;  %4959 = vadd.xlane.f32.xlu1 %v4958_v21  ;;  %4956 = vadd.xlane.f32.xlu0 %v4955_v32  ;;  %v6228_v21 = vld [vmem:[#allocation3 + $0x7b8] sm:$0xff] }
 0x5a5   : > { %v4748_v28 = vmul.f32 0.020408163, %v4683_v38  ;;  %v4842_v14 = vmul.f32 %v12072_v47, %v12072_v47  ;;  %v6012_v38 = vld [vmem:[#allocation3 + $0xf8] sm:$0xff]  ;;  %v4991_v35 = vsel %vm4463_vm1, %v4851_v15, 0.0  ;;  %v5229_v15 = vld [vmem:[%s13640_s5 + $0x140] sm:$0xff] }
 0x5a7   : > { %v12084_v50 = vsub.f32 %v11867_v34, %v4748_v28  ;;  %v4964_v31 = vsel %vm4463_vm1, %v4842_v14, 0.0  ;;  %v4967_v34 = vsel %vm4463_vm1, %v4843_v19, 0.0  ;;  %v6011_v28 = vld [vmem:[#allocation3 + $0xf0] sm:$0xff]  ;;  %v6230_v19 = vld [vmem:[#allocation3 + $0x7c8] sm:$0xff] }
 0x5a8   : > { %v4689_v55 = vpop.xlane.xlu1 %4688  ;;  %4965 = vadd.xlane.f32.xlu1 %v4964_v31  ;;  %4962 = vadd.xlane.f32.xlu0 %v4961_v36  ;;  %v6231_v14 = vld [vmem:[#allocation3 + $0x7d0] sm:$0xff]  ;;  %v6018_v31 = vld [vmem:[#allocation3 + $0x128] sm:$0xff] }
 0x5a9   : > { %v4750_v4 = vmul.f32 0.020408163, %v4689_v55  ;;  %v4844_v22 = vmul.f32 %v12084_v50, %v12084_v50  ;;  %6934 = vmatmul.mubr.bf16.gmra.mrb[28].mxu1 %v6218_v33  ;;  %6358 = vmatmul.mubr.bf16.gmra.mrb[28].mxu0 %v6002_v52  ;;  %v6015_v36 = vld [vmem:[#allocation3 + $0x110] sm:$0xff]  ;;  %v6014_v33 = vld [vmem:[#allocation3 + $0x108] sm:$0xff]  ;;  %v6233_v55 = vld [vmem:[#allocation3 + $0x7e0] sm:$0xff] }
 0x5aa   : > { %6941 = vmatprep.mubr.bf16.mxu1 %v6222_v18  ;;  %6365 = vmatprep.mubr.bf16.mxu0 %v6006_v57  ;;  %v6234_v52 = vld [vmem:[#allocation3 + $0x7e8] sm:$0xff]  ;;  %v5557_v57 = vld [vmem:[%s13641_s6 + $0x100] sm:$0xff] }
 0x5ab   : > { %v12096_v62 = vsub.f32 %v11876_v53, %v4750_v4  ;;  %v4970_v17 = vsel %vm4463_vm1, %v4844_v22, 0.0  ;;  %v6221_v53 = vld [vmem:[#allocation3 + $0x780] sm:$0xff]  ;;  %v5222_v18 = vld [vmem:[%s13640_s5 + $0x108] sm:$0xff] }
 0x5ac   : > { %v4695_v5 = vpop.xlane.xlu1 %4694  ;;  %4971 = vadd.xlane.f32.xlu1 %v4970_v17  ;;  %4968 = vadd.xlane.f32.xlu0 %v4967_v34  ;;  %v6237_v4 = vld [vmem:[#allocation3 + $0x800] sm:$0xff]  ;;  %v5559_v17 = vld [vmem:[%s13641_s6 + $0x110] sm:$0xff] }
 0x5ad   : > { %v4752_v48 = vmul.f32 0.020408163, %v4695_v5  ;;  %v4846_v46 = vmul.f32 %v12096_v62, %v12096_v62  ;;  %v6017_v22 = vld [vmem:[#allocation3 + $0x120] sm:$0xff]  ;;  %v6236_v5 = vld [vmem:[#allocation3 + $0x7f8] sm:$0xff] }
 0x5ae   : > { %v6021_v34 = vld [vmem:[#allocation3 + $0x140] sm:$0xff] }
 0x5af   : > { %v12108_v60 = vsub.f32 %v11893_v7, %v4752_v48  ;;  %v4976_v43 = vsel %vm4463_vm1, %v4846_v46, 0.0  ;;  %v4849_v7 = vmul.f32 %v12105_v49, %v12105_v49  ;;  %v6020_v48 = vld [vmem:[#allocation3 + $0x138] sm:$0xff] }
 0x5b0   : > { %v4701_v44 = vpop.xlane.xlu1 %4700  ;;  %4977 = vadd.xlane.f32.xlu1 %v4976_v43  ;;  %4974 = vadd.xlane.f32.xlu0 %v4973_v59  ;;  %v5223_v59 = vld [vmem:[%s13640_s5 + $0x110] sm:$0xff]  ;;  %v6024_v46 = vld [vmem:[#allocation3 + $0x158] sm:$0xff] }
 0x5b1   : > { %v4754_v26 = vmul.f32 0.020408163, %v4701_v44  ;;  %v4848_v3 = vmul.f32 %v12108_v60, %v12108_v60  ;;  %6942 = vmatmul.mubr.bf16.gmra.mrb[32].mxu1 %v6221_v53  ;;  %6366 = vmatmul.mubr.bf16.gmra.mrb[32].mxu0 %v6005_v54  ;;  %v4985_v6 = vsel %vm4463_vm1, %v4849_v7, 0.0  ;;  %v5560_v53 = vld [vmem:[%s13641_s6 + $0x118] sm:$0xff]  ;;  %v5561_v54 = vld [vmem:[%s13641_s6 + $0x120] sm:$0xff]  ;;  %v6239_v43 = vld [vmem:[#allocation3 + $0x810] sm:$0xff] }
 0x5b2   : > { %6949 = vmatprep.mubr.bf16.mxu1 %v6225_v39  ;;  %6373 = vmatprep.mubr.bf16.mxu0 %v6009_v10  ;;  %v5226_v39 = vld [vmem:[%s13640_s5 + $0x128] sm:$0xff]  ;;  %v6243_v10 = vld [vmem:[#allocation3 + $0x830] sm:$0xff] }
 0x5b3   : > { %v12120_v25 = vsub.f32 %v11902_v41, %v4754_v26  ;;  %v4982_v20 = vsel %vm4463_vm1, %v4848_v3, 0.0  ;;  %v6023_v44 = vld [vmem:[#allocation3 + $0x150] sm:$0xff]  ;;  %v5562_v3 = vld [vmem:[%s13641_s6 + $0x128] sm:$0xff] }
 0x5b4   : > { %v4707_v12 = vpop.xlane.xlu1 %4706  ;;  %4983 = vadd.xlane.f32.xlu1 %v4982_v20  ;;  %4980 = vadd.xlane.f32.xlu0 %v4979_v27  ;;  %v6027_v27 = vld [vmem:[#allocation3 + $0x170] sm:$0xff]  ;;  %v6242_v20 = vld [vmem:[#allocation3 + $0x828] sm:$0xff] }
 0x5b5   : > { %v4756_v32 = vmul.f32 0.020408163, %v4707_v12  ;;  %v4850_v9 = vmul.f32 %v12120_v25, %v12120_v25  ;;  %v5227_v26 = vld [vmem:[%s13640_s5 + $0x130] sm:$0xff]  ;;  %v5228_v12 = vld [vmem:[%s13640_s5 + $0x138] sm:$0xff] }
 0x5b6   : > { %v5563_v7 = vld [vmem:[%s13641_s6 + $0x130] sm:$0xff] }
 0x5b7   : > { %v12129_v29 = vsub.f32 %v11919_v30, %v4756_v32  ;;  %v4988_v41 = vsel %vm4463_vm1, %v4850_v9, 0.0  ;;  %v6227_v30 = vld [vmem:[#allocation3 + $0x7b0] sm:$0xff]  ;;  %v6246_v32 = vld [vmem:[#allocation3 + $0x848] sm:$0xff] }
 0x5b8   : > { %4989 = vadd.xlane.f32.xlu1 %v4988_v41  ;;  %4986 = vadd.xlane.f32.xlu0 %v4985_v6  ;;  %v6026_v9 = vld [vmem:[#allocation3 + $0x168] sm:$0xff]  ;;  %v6245_v41 = vld [vmem:[#allocation3 + $0x840] sm:$0xff] }
 0x5b9   : > { %v4852_v42 = vmul.f32 %v12129_v29, %v12129_v29  ;;  %6950 = vmatmul.mubr.bf16.gmra.mrb[36].mxu1 %v6224_v16  ;;  %6374 = vmatmul.mubr.bf16.gmra.mrb[36].mxu0 %v6008_v61  ;;  %v6030_v6 = vld [vmem:[#allocation3 + $0x188] sm:$0xff]  ;;  %v5564_v16 = vld [vmem:[%s13641_s6 + $0x138] sm:$0xff]  ;;  %v5565_v61 = vld [vmem:[%s13641_s6 + $0x140] sm:$0xff] }
 0x5ba   : > { %6957 = vmatprep.mubr.bf16.mxu1 %v6228_v21  ;;  %6381 = vmatprep.mubr.bf16.mxu0 %v6012_v38  ;;  %v5230_v21 = vld [vmem:[%s13640_s5 + $0x148] sm:$0xff]  ;;  %v6249_v38 = vld [vmem:[#allocation3 + $0x860] sm:$0xff] }
 0x5bb   : > { %v4994_v40 = vsel %vm4463_vm1, %v4852_v42, 0.0  ;;  %v6029_v42 = vld [vmem:[#allocation3 + $0x180] sm:$0xff] }
 0x5bc   : > { %4995 = vadd.xlane.f32.xlu0 %v4994_v40  ;;  %4992 = vadd.xlane.f32.xlu1 %v4991_v35  ;;  %v6033_v35 = vld [vmem:[#allocation3 + $0x1a0] sm:$0xff]  ;;  %v5231_v40 = vld [vmem:[%s13640_s5 + $0x150] sm:$0xff] }
 0x5c1   : > { %6958 = vmatmul.mubr.bf16.gmra.mrb[40].mxu1 %v6227_v30  ;;  %6382 = vmatmul.mubr.bf16.gmra.mrb[40].mxu0 %v6011_v28  ;;  %v5566_v30 = vld [vmem:[%s13641_s6 + $0x148] sm:$0xff]  ;;  %v5567_v28 = vld [vmem:[%s13641_s6 + $0x150] sm:$0xff] }
 0x5c2   : > { %6965 = vmatprep.mubr.bf16.mxu1 %v6231_v14  ;;  %6389 = vmatprep.mubr.bf16.mxu0 %v6015_v36  ;;  %v6248_v14 = vld [vmem:[#allocation3 + $0x858] sm:$0xff] }
 0x5c3   : > { %v5232_v36 = vld [vmem:[%s13640_s5 + $0x158] sm:$0xff] }
 0x5c9   : > { %6966 = vmatmul.mubr.bf16.gmra.mrb[44].mxu1 %v6230_v19  ;;  %6390 = vmatmul.mubr.bf16.gmra.mrb[44].mxu0 %v6014_v33  ;;  %v6252_v19 = vld [vmem:[#allocation3 + $0x878] sm:$0xff] }
 0x5ca   : > { %6973 = vmatprep.mubr.bf16.mxu1 %v6234_v52  ;;  %6397 = vmatprep.mubr.bf16.mxu0 %v6018_v31  ;;  %v6032_v33 = vld [vmem:[#allocation3 + $0x198] sm:$0xff]  ;;  %v5233_v31 = vld [vmem:[%s13640_s5 + $0x160] sm:$0xff] }
 0x5cb   : > { %v6036_v52 = vld [vmem:[#allocation3 + $0x1b8] sm:$0xff] }
 0x5cd   : > { %5404 = vperm.xlu1 %9624, %v5222_v18   ;;  %v5568_v18 = vld [vmem:[%s13641_s6 + $0x158] sm:$0xff] }
 0x5d1   : > { %5735 = vperm.xlu1 %9624, %v5557_v57   ;;  %6974 = vmatmul.mubr.bf16.gmra.mrb[48].mxu1 %v6233_v55  ;;  %v5569_v57 = vld [vmem:[%s13641_s6 + $0x160] sm:$0xff]  ;;  %v6251_v55 = vld [vmem:[#allocation3 + $0x870] sm:$0xff] }
 0x5d2   : > { %5399 = vperm.xlu0 %9625, %v5221_v1   ;;  %6981 = vmatprep.mubr.bf16.mxu1 %v6237_v4  ;;  %v5234_v1 = vld [vmem:[%s13640_s5 + $0x168] sm:$0xff]  ;;  %v6255_v4 = vld [vmem:[#allocation3 + $0x890] sm:$0xff] }
 0x5d3   : > { %6398 = vmatmul.mubr.bf16.gmra.mrb[48].mxu0 %v6017_v22  ;;  %v6035_v22 = vld [vmem:[#allocation3 + $0x1b0] sm:$0xff] }
 0x5d4   : > { %6405 = vmatprep.mubr.bf16.mxu0 %v6021_v34  ;;  %v6039_v34 = vld [vmem:[#allocation3 + $0x1d0] sm:$0xff] }
 0x5d5   : > { %5414 = vperm.xlu1 %9624, %v5224_v63   ;;  %v5235_v63 = vld [vmem:[%s13640_s5 + $0x170] sm:$0xff] }
 0x5d6   : > { %5740 = vperm.xlu0 %9625, %v5558_v0   ;;  %v5570_v0 = vld [vmem:[%s13641_s6 + $0x168] sm:$0xff] }
 0x5d9   : > { %5745 = vperm.xlu1 %9624, %v5559_v17   ;;  %6982 = vmatmul.mubr.bf16.gmra.mrb[52].mxu1 %v6236_v5  ;;  %v5571_v17 = vld [vmem:[%s13641_s6 + $0x170] sm:$0xff]  ;;  %v6254_v5 = vld [vmem:[#allocation3 + $0x888] sm:$0xff] }
 0x5da   : > { %5409 = vperm.xlu0 %9625, %v5223_v59   ;;  %6989 = vmatprep.mubr.bf16.mxu1 %v6240_v56  ;;  %v5236_v59 = vld [vmem:[%s13640_s5 + $0x178] sm:$0xff]  ;;  %v6258_v56 = vld [vmem:[#allocation3 + $0x8a8] sm:$0xff] }
 0x5db   : > { %6406 = vmatmul.mubr.bf16.gmra.mrb[52].mxu0 %v6020_v48  ;;  %v6038_v48 = vld [vmem:[#allocation3 + $0x1c8] sm:$0xff] }
 0x5dc   : > { %6413 = vmatprep.mubr.bf16.mxu0 %v6024_v46  ;;  %v6042_v46 = vld [vmem:[#allocation3 + $0x1e8] sm:$0xff] }
 0x5dd   : > { %5419 = vperm.xlu1 %9624, %v5225_v8   ;;  %v5572_v8 = vld [vmem:[%s13641_s6 + $0x178] sm:$0xff] }
 0x5de   : > { %5750 = vperm.xlu0 %9625, %v5560_v53   ;;  %v6257_v53 = vld [vmem:[#allocation3 + $0x8a0] sm:$0xff] }
 0x5e1   : > { %5755 = vperm.xlu1 %9624, %v5561_v54   ;;  %6990 = vmatmul.mubr.bf16.gmra.mrb[56].mxu1 %v6239_v43  ;;  %v6261_v54 = vld [vmem:[#allocation3 + $0x8c0] sm:$0xff] }
 0x5e2   : > { %5424 = vperm.xlu0 %9625, %v5226_v39   ;;  %6997 = vmatprep.mubr.bf16.mxu1 %v6243_v10  ;;  %v6041_v43 = vld [vmem:[#allocation3 + $0x1e0] sm:$0xff]  ;;  %v6260_v10 = vld [vmem:[#allocation3 + $0x8b8] sm:$0xff] }
 0x5e3   : > { %6414 = vmatmul.mubr.bf16.gmra.mrb[56].mxu0 %v6023_v44  ;;  %v6045_v39 = vld [vmem:[#allocation3 + $0x200] sm:$0xff]  ;;  %v6264_v44 = vld [vmem:[#allocation3 + $0x8d8] sm:$0xff] }
 0x5e4   : > { %6421 = vmatprep.mubr.bf16.mxu0 %v6027_v27  ;;  %v6044_v27 = vld [vmem:[#allocation3 + $0x1f8] sm:$0xff] }
 0x5e5   : > { %5429 = vperm.xlu1 %9624, %v5227_v26   ;;  %v6048_v26 = vld [vmem:[#allocation3 + $0x218] sm:$0xff] }
 0x5e6   : > { %5760 = vperm.xlu0 %9625, %v5562_v3   ;;  %v6263_v3 = vld [vmem:[#allocation3 + $0x8d0] sm:$0xff] }
 0x5e9   : > { %5765 = vperm.xlu1 %9624, %v5563_v7   ;;  %6998 = vmatmul.mubr.bf16.gmra.mrb[60].mxu1 %v6242_v20  ;;  %v6267_v7 = vld [vmem:[#allocation3 + $0x8f0] sm:$0xff] }
 0x5ea   : > { %5434 = vperm.xlu0 %9625, %v5228_v12   ;;  %7005 = vmatprep.mubr.bf16.mxu1 %v6246_v32  ;;  %v6047_v20 = vld [vmem:[#allocation3 + $0x210] sm:$0xff]  ;;  %v6266_v32 = vld [vmem:[#allocation3 + $0x8e8] sm:$0xff] }
 0x5eb   : > { %6422 = vmatmul.mubr.bf16.gmra.mrb[60].mxu0 %v6026_v9  ;;  %v6051_v12 = vld [vmem:[#allocation3 + $0x230] sm:$0xff] }
 0x5ec   : > { %6429 = vmatprep.mubr.bf16.mxu0 %v6030_v6  ;;  %v5983_v9 = vld [vmem:[#allocation3 + $0x10] sm:$0xff]  ;;  %v6050_v6 = vld [vmem:[#allocation3 + $0x228] sm:$0xff] }
 0x5ed   : > { %5439 = vperm.xlu1 %9624, %v5229_v15   ;;  %v6054_v15 = vld [vmem:[#allocation3 + $0x248] sm:$0xff] }
 0x5ee   : > { %5770 = vperm.xlu0 %9625, %v5564_v16  }
 0x5f1   : > { %5775 = vperm.xlu1 %9624, %v5565_v61   ;;  %7006 = vmatmul.mubr.bf16.gmra.mrb[64].mxu1 %v6245_v41  ;;  %v6053_v41 = vld [vmem:[#allocation3 + $0x240] sm:$0xff] }
 0x5f2   : > { %5444 = vperm.xlu0 %9625, %v5230_v21   ;;  %7013 = vmatprep.mubr.bf16.mxu1 %v6249_v38 }
 0x5f3   : > { %6430 = vmatmul.mubr.bf16.gmra.mrb[64].mxu0 %v6029_v42  ;;  %v6057_v42 = vld [vmem:[#allocation3 + $0x260] sm:$0xff] }
 0x5f4   : > { %6437 = vmatprep.mubr.bf16.mxu0 %v6033_v35 }
 0x5f5   : > { %5449 = vperm.xlu1 %9624, %v5231_v40  }
 0x5f6   : > { %5780 = vperm.xlu0 %9625, %v5566_v30   ;;  %v6056_v30 = vld [vmem:[#allocation3 + $0x258] sm:$0xff] }
 0x5f9   : > { %5785 = vperm.xlu1 %9624, %v5567_v28   ;;  %7014 = vmatmul.mubr.bf16.gmra.mrb[68].mxu1 %v6248_v14 }
 0x5fa   : > { %5454 = vperm.xlu0 %9625, %v5232_v36   ;;  %7021 = vmatprep.mubr.bf16.mxu1 %v6252_v19  ;;  %v6060_v36 = vld [vmem:[#allocation3 + $0x278] sm:$0xff] }
 0x5fb   : > { %6438 = vmatmul.mubr.bf16.gmra.mrb[68].mxu0 %v6032_v33 }
 0x5fc   : > { %6445 = vmatprep.mubr.bf16.mxu0 %v6036_v52 }
 0x5fd   : > { %5459 = vperm.xlu1 %9624, %v5233_v31  }
 0x5fe   : > { %5790 = vperm.xlu0 %9625, %v5568_v18  }
 0x601   : > { %5795 = vperm.xlu1 %9624, %v5569_v57   ;;  %7022 = vmatmul.mubr.bf16.gmra.mrb[72].mxu1 %v6251_v55  ;;  %v6059_v57 = vld [vmem:[#allocation3 + $0x270] sm:$0xff] }
 0x602   : > { %5464 = vperm.xlu0 %9625, %v5234_v1   ;;  %7029 = vmatprep.mubr.bf16.mxu1 %v6255_v4 }
 0x603   : > { %6446 = vmatmul.mubr.bf16.gmra.mrb[72].mxu0 %v6035_v22  ;;  %v6063_v22 = vld [vmem:[#allocation3 + $0x290] sm:$0xff] }
 0x604   : > { %6453 = vmatprep.mubr.bf16.mxu0 %v6039_v34 }
 0x605   : > { %5469 = vperm.xlu1 %9624, %v5235_v63  }
 0x606   : > { %5800 = vperm.xlu0 %9625, %v5570_v0  }
 0x609   : > { %5805 = vperm.xlu1 %9624, %v5571_v17   ;;  %7030 = vmatmul.mubr.bf16.gmra.mrb[76].mxu1 %v6254_v5 }
 0x60a   : > { %5474 = vperm.xlu0 %9625, %v5236_v59   ;;  %7037 = vmatprep.mubr.bf16.mxu1 %v6258_v56 }
 0x60b   : > { %6454 = vmatmul.mubr.bf16.gmra.mrb[76].mxu0 %v6038_v48 }
 0x60c   : > { %6461 = vmatprep.mubr.bf16.mxu0 %v6042_v46 }
 0x60e   : > { %5810 = vperm.xlu0 %9625, %v5572_v8  }
 0x611   : > { %7038 = vmatmul.mubr.bf16.gmra.mrb[80].mxu1 %v6257_v53  ;;  %v4954_v16 = vpop.xlane.xlu1 %4953 }
 0x612   : > { %7045 = vmatprep.mubr.bf16.mxu1 %v6261_v54  ;;  %v5030_v33 = vmul.f32 0.020408163, %v4954_v16  ;;  %v6062_v54 = vld [vmem:[#allocation3 + $0x288] sm:$0xff] }
 0x613   : > { %6462 = vmatmul.mubr.bf16.gmra.mrb[80].mxu0 %v6041_v43 }
 0x614   : > { %6469 = vmatprep.mubr.bf16.mxu0 %v6045_v39  ;;  %v5078_v55 = vadd.f32 1e-05, %v5030_v33 }
 0x619   : > { %7046 = vmatmul.mubr.bf16.gmra.mrb[84].mxu1 %v6260_v10 }
 0x61a   : > { %7053 = vmatprep.mubr.bf16.mxu1 %v6264_v44  ;;  %v6066_v44 = vld [vmem:[#allocation3 + $0x2a8] sm:$0xff] }
 0x61b   : > { %6470 = vmatmul.mubr.bf16.gmra.mrb[84].mxu0 %v6044_v27 }
 0x61c   : > { %6477 = vmatprep.mubr.bf16.mxu0 %v6048_v26 }
 0x621   : > { %7054 = vmatmul.mubr.bf16.gmra.mrb[88].mxu1 %v6263_v3 }
 0x622   : > { %7061 = vmatprep.mubr.bf16.mxu1 %v6267_v7 }
 0x623   : > { %6478 = vmatmul.mubr.bf16.gmra.mrb[88].mxu0 %v6047_v20 }
 0x624   : > { %6485 = vmatprep.mubr.bf16.mxu0 %v6051_v12 }
 0x629   : > { %7062 = vmatmul.mubr.bf16.gmra.mrb[92].mxu1 %v6266_v32 }
 0x62a   : > { %8608 = vmatprep.mubr.bf16.mxu1 %v5983_v9 }
 0x62b   : > { %6486 = vmatmul.mubr.bf16.gmra.mrb[92].mxu0 %v6050_v6 }
 0x62c   : > { %6493 = vmatprep.mubr.bf16.mxu0 %v6054_v15 }
 0x62d   : > { %v4951_v61 = vpop.xlane.xlu0 %4950 }
 0x62e   : > { %v5029_v19 = vmul.f32 0.020408163, %v4951_v61 }
 0x630   : > { %v5077_v18 = vadd.f32 1e-05, %v5029_v19 }
 0x631   : > { %v4960_v21 = vpop.xlane.xlu1 %4959  ;;  %v4957_v38 = vpop.xlane.xlu0 %4956 }
 0x632   : > { %9690 = vrsqrt.f32 %v5077_v18  ;;  %v5031_v34 = vmul.f32 0.020408163, %v4957_v38  ;;  %v5032_v17 = vmul.f32 0.020408163, %v4960_v21  ;;  %v6069_v18 = vld [vmem:[#allocation3 + $0x2c0] sm:$0xff] }
 0x633   : > { %6494 = vmatmul.mubr.bf16.gmra.mrb[96].mxu0 %v6053_v41  ;;  %9692 = vrsqrt.f32 %v5078_v55 }
 0x634   : > { %6501 = vmatprep.mubr.bf16.mxu0 %v6057_v42  ;;  %v5079_v46 = vadd.f32 1e-05, %v5031_v34  ;;  %v5080_v39 = vadd.f32 1e-05, %v5032_v17 }
 0x635   : > { %v4966_v35 = vpop.xlane.xlu1 %4965  ;;  %v4963_v40 = vpop.xlane.xlu0 %4962 }
 0x636   : > { %9694 = vrsqrt.f32 %v5079_v46  ;;  %v5033_v26 = vmul.f32 0.020408163, %v4963_v40  ;;  %v5034_v32 = vmul.f32 0.020408163, %v4966_v35  ;;  %v6065_v40 = vld [vmem:[#allocation3 + $0x2a0] sm:$0xff] }
 0x637   : > { %9696 = vrsqrt.f32 %v5080_v39  ;;  %v5893_v46 = vld [vmem:[%s13637_s2 + $0x100] sm:$0xff] }
 0x638   : > { %v5081_v41 = vadd.f32 1e-05, %v5033_v26 }
 0x639   : > { %v12232_v28 = vpop.xlane.xlu1 %4971  ;;  %v4969_v14 = vpop.xlane.xlu0 %4968 }
 0x63a   : > { %9698 = vrsqrt.f32 %v5081_v41  ;;  %v5035_v55 = vmul.f32 0.020408163, %v4969_v14  ;;  %v5894_v14 = vld [vmem:[%s13637_s2 + $0x108] sm:$0xff] }
 0x63b   : > { %6502 = vmatmul.mubr.bf16.gmra.mrb[100].mxu0 %v6056_v30 }
 0x63c   : > { %6509 = vmatprep.mubr.bf16.mxu0 %v6060_v36  ;;  %v9691_v12 = vpop.eup %9690  ;;  %v5082_v36 = vadd.f32 1e-05, %v5034_v32  ;;  %v5083_v26 = vadd.f32 1e-05, %v5035_v55 }
 0x63d   : > { %v12234_v52 = vpop.xlane.xlu1 %4977  ;;  %v12236_v31 = vpop.xlane.xlu0 %4974  ;;  %v5173_v42 = vmul.f32 %v9691_v12, %v12050_v13 }
 0x63e   : > { %v9693_v61 = vpop.eup %9692  ;;  %9700 = vrsqrt.f32 %v5082_v36 }
 0x63f   : > { %v5174_v35 = vmul.f32 %v9693_v61, %v12041_v24  ;;  %9702 = vrsqrt.f32 %v5083_v26 }
 0x640   : > { %v9695_v13 = vpop.eup %9694 }
 0x641   : > { %v12238_v1 = vpop.xlane.xlu1 %4983  ;;  %v12240_v4 = vpop.xlane.xlu0 %4980 }
 0x643   : > { %6510 = vmatmul.mubr.bf16.gmra.mrb[104].mxu0 %v6059_v57 }
 0x644   : > { %6517 = vmatprep.mubr.bf16.mxu0 %v6063_v22  ;;  %v12242_v63 = vpop.f32.mrb[0].mxu1  ;;  %v12244_v0 = vpop.f32.mrb[0].mxu0 }
 0x645   : > { %13694 = vst [vmem:[#allocation16_spill] sm:$0xff] %v12242_v63  ;;  %v12246_v5 = vpop.xlane.xlu1 %4989  ;;  %v12248_v59 = vpop.xlane.xlu0 %4986  ;;  %v6082_v63 = vld [vmem:[#allocation3 + $0x328] sm:$0xff] }
 0x646   : > { %v6881_v56 = vpop.f32.mrb[1].mxu1  ;;  %v6305_v48 = vpop.f32.mrb[1].mxu0 }
 0x647   : > { %v12250_v8 = vpop.f32.mrb[2].mxu1  ;;  %v12252_v53 = vpop.f32.mrb[2].mxu0  ;;  %v5036_v48 = vmul.f32 0.020408163, %v12232_v28 }
 0x648   : > { %13695 = vst [vmem:[#allocation6_spill] sm:$0xff] %v12250_v8  ;;  %v6884_v43 = vpop.f32.mrb[3].mxu1  ;;  %v6308_v27 = vpop.f32.mrb[3].mxu0 }
 0x649   : > { %v12254_v10 = vpop.xlane.xlu1 %4992  ;;  %v12256_v3 = vpop.xlane.xlu0 %4995 }
 0x64a   : > { %v9697_v27 = vpop.eup %9696 }
 0x64b   : > { %6518 = vmatmul.mubr.bf16.gmra.mrb[108].mxu0 %v6062_v54  ;;  %v5176_v36 = vmul.f32 %v9697_v27, %v12060_v58  ;;  %v5895_v58 = vld [vmem:[%s13637_s2 + $0x110] sm:$0xff] }
 0x64c   : > { %6525 = vmatprep.mubr.bf16.mxu0 %v6066_v44  ;;  %v12258_v7 = vpop.f32.mrb[4].mxu1  ;;  %v12260_v20 = vpop.f32.mrb[4].mxu0 }
 0x64d   : > { %13696 = vst [vmem:[#allocation7_spill] sm:$0xff] %v12258_v7  ;;  %v5405_v9 = vpop.permute.xlu1 %5404  ;;  %v6889_v6 = vpop.f32.mrb[5].mxu1 }
 0x64e   : > { %v12262_v15 = vpop.f32.mrb[6].mxu1  ;;  %v6313_v16 = vpop.f32.mrb[5].mxu0  ;;  %v5510_v22 = vmul.f32 %v5405_v9, %v5174_v35  ;;  %v5175_v6 = vmul.f32 %v9695_v13, %v12047_v2 }
 0x64f   : > { %13697 = vst [vmem:[#allocation17_spill] sm:$0xff] %v12262_v15  ;;  %v6892_v21 = vpop.f32.mrb[7].mxu1  ;;  %v12264_v38 = vpop.f32.mrb[6].mxu0  ;;  %v6068_v16 = vld [vmem:[#allocation3 + $0x2b8] sm:$0xff] }
 0x650   : > { %v6316_v30 = vpop.f32.mrb[7].mxu0  ;;  %v5084_v21 = vadd.f32 1e-05, %v5036_v48 }
 0x651   : > { %v5736_v19 = vpop.permute.xlu1 %5735  ;;  %v5400_v33 = vpop.permute.xlu0 %5399  ;;  %v6072_v30 = vld [vmem:[#allocation3 + $0x2d8] sm:$0xff] }
 0x652   : > { %v5509_v57 = vmul.f32 %v5400_v33, %v5173_v42  ;;  %9704 = vrsqrt.f32 %v5084_v21  ;;  %v6075_v21 = vld [vmem:[#allocation3 + $0x2f0] sm:$0xff] }
 0x653   : > { %6526 = vmatmul.mubr.bf16.gmra.mrb[112].mxu0 %v6065_v40 }
 0x654   : > { %v5845_v34 = vadd.f32 %v5736_v19, %v5509_v57  ;;  %6533 = vmatprep.mubr.bf16.mxu0 %v6069_v18  ;;  %v12268_v17 = vpop.f32.mrb[8].mxu1  ;;  %v12270_v56 = vpop.f32.mrb[8].mxu0  ;;  %v5037_v18 = vmul.f32 0.020408163, %v12236_v31  ;;  %v5896_v31 = vld [vmem:[%s13637_s2 + $0x118] sm:$0xff] }
 0x655   : > { %13698 = vst [vmem:[#allocation18_spill] sm:$0xff] %v12268_v17  ;;  %v5415_v24 = vpop.permute.xlu1 %5414  ;;  %v5741_v54 = vpop.permute.xlu0 %5740 }
 0x656   : > { %v5846_v43 = vadd.f32 %v5741_v54, %v5510_v22  ;;  %v6897_v39 = vpop.f32.mrb[9].mxu1  ;;  %v6321_v44 = vpop.f32.mrb[9].mxu0  ;;  %v5941_v28 = vadd.f32 %v5893_v46, %v5845_v34  ;;  %v5512_v35 = vmul.f32 %v5415_v24, %v5176_v36  ;;  %v5038_v34 = vmul.f32 0.020408163, %v12234_v52 }
 0x657   : > { %v12279_v12 = vpop.f32.mrb[10].mxu1  ;;  %v12281_v32 = vpop.f32.mrb[10].mxu0  ;;  %v5039_v36 = vmul.f32 0.020408163, %v12240_v4  ;;  %v5898_v4 = vld [vmem:[%s13637_s2 + $0x128] sm:$0xff] }
 0x658   : > { %13699 = vst [vmem:[#allocation8_spill] sm:$0xff] %v12279_v12  ;;  %v5942_v9 = vadd.f32 %v5894_v14, %v5846_v43  ;;  %v6900_v61 = vpop.f32.mrb[11].mxu1  ;;  %v6324_v41 = vpop.f32.mrb[11].mxu0  ;;  %v5085_v43 = vadd.f32 1e-05, %v5037_v18 }
 0x659   : > { %v5746_v42 = vpop.permute.xlu1 %5745  ;;  %v5410_v40 = vpop.permute.xlu0 %5409 }
 0x65a   : > { %v5511_v19 = vmul.f32 %v5410_v40, %v5175_v6  ;;  %v5973_v33 = vpack.c.bf16 %v5942_v9, %v5941_v28  ;;  %v9699_v22 = vpop.eup %9698  ;;  %v6071_v28 = vld [vmem:[#allocation3 + $0x2d0] sm:$0xff]  ;;  %9706 = vrsqrt.f32 %v5085_v43 }
 0x65b   : > { %6534 = vmatmul.mubr.bf16.gmra.mrb[116].mxu0 %v6068_v16  ;;  %v9701_v54 = vpop.eup %9700  ;;  %v5177_v27 = vmul.f32 %v9699_v22, %v12057_v45  ;;  %v5086_v16 = vadd.f32 1e-05, %v5038_v34 }
 0x65c   : > { %v5847_v57 = vadd.f32 %v5746_v42, %v5511_v19  ;;  %8592 = vmatprep.subr.bf16.mxu1 %v5973_v33  ;;  %6541 = vmatprep.mubr.bf16.mxu0 %v6072_v30  ;;  %v12286_v2 = vpop.f32.mrb[12].mxu1  ;;  %v12288_v55 = vpop.f32.mrb[12].mxu0  ;;  %v5178_v40 = vmul.f32 %v9701_v54, %v12072_v47  ;;  %v5897_v47 = vld [vmem:[%s13637_s2 + $0x120] sm:$0xff] }
 0x65d   : > { %13700 = vst [vmem:[#allocation9_spill] sm:$0xff] %v12286_v2  ;;  %v5420_v13 = vpop.permute.xlu1 %5419  ;;  %8593 = vmatpush3.bf16.msra.mxu1 %v5973_v33  ;;  %v5751_v48 = vpop.permute.xlu0 %5750  ;;  %9708 = vrsqrt.f32 %v5086_v16  ;;  %v6078_v16 = vld [vmem:[#allocation3 + $0x308] sm:$0xff] }
 0x65e   : > { %v5848_v46 = vadd.f32 %v5751_v48, %v5512_v35  ;;  %v6905_v24 = vpop.f32.mrb[13].mxu1  ;;  %v6329_v14 = vpop.f32.mrb[13].mxu0  ;;  %v5943_v52 = vadd.f32 %v5895_v58, %v5847_v57  ;;  %v5513_v42 = vmul.f32 %v5420_v13, %v5177_v27  ;;  %v5040_v57 = vmul.f32 0.020408163, %v12238_v1 }
 0x65f   : > { %v12297_v39 = vpop.f32.mrb[14].mxu1  ;;  %v12299_v44 = vpop.f32.mrb[14].mxu0 }
 0x660   : > { %13701 = vst [vmem:[#allocation19_spill] sm:$0xff] %v12297_v39  ;;  %v5944_v26 = vadd.f32 %v5896_v31, %v5848_v46  ;;  %v6908_v9 = vpop.f32.mrb[15].mxu1  ;;  %v6332_v6 = vpop.f32.mrb[15].mxu0  ;;  %v5087_v46 = vadd.f32 1e-05, %v5039_v36 }
 0x661   : > { %v5756_v61 = vpop.permute.xlu1 %5755  ;;  %v5425_v41 = vpop.permute.xlu0 %5424 }
 0x662   : > { %v5974_v30 = vpack.c.bf16 %v5944_v26, %v5943_v52  ;;  %v5849_v19 = vadd.f32 %v5756_v61, %v5513_v42  ;;  %v5514_v33 = vmul.f32 %v5425_v41, %v5178_v40  ;;  %v9703_v35 = vpop.eup %9702  ;;  %v6074_v52 = vld [vmem:[#allocation3 + $0x2e8] sm:$0xff]  ;;  %9710 = vrsqrt.f32 %v5087_v46 }
 0x663   : > { %6542 = vmatmul.mubr.bf16.gmra.mrb[120].mxu0 %v6071_v28  ;;  %v9705_v48 = vpop.eup %9704  ;;  %v5179_v54 = vmul.f32 %v9703_v35, %v12067_v51  ;;  %v5088_v28 = vadd.f32 1e-05, %v5040_v57  ;;  %v5041_v42 = vmul.f32 0.020408163, %v12248_v59  ;;  %v5900_v59 = vld [vmem:[%s13637_s2 + $0x138] sm:$0xff] }
 0x664   : > { %8594 = vmatprep.subr.bf16.mxu1 %v5974_v30  ;;  %6549 = vmatprep.mubr.bf16.mxu0 %v6075_v21  ;;  %v12304_v45 = vpop.f32.mrb[16].mxu1  ;;  %v12306_v18 = vpop.f32.mrb[16].mxu0  ;;  %v5945_v1 = vadd.f32 %v5897_v47, %v5849_v19  ;;  %v5180_v41 = vmul.f32 %v9705_v48, %v12084_v50  ;;  %v5899_v50 = vld [vmem:[%s13637_s2 + $0x130] sm:$0xff] }
 0x665   : > { %13702 = vst [vmem:[#allocation20_spill] sm:$0xff] %v12304_v45  ;;  %v5430_v22 = vpop.permute.xlu1 %5429  ;;  %8595 = vmatpush3.bf16.msra.mxu1 %v5974_v30  ;;  %v5761_v34 = vpop.permute.xlu0 %5760  ;;  %9712 = vrsqrt.f32 %v5088_v28  ;;  %v6081_v28 = vld [vmem:[#allocation3 + $0x320] sm:$0xff] }
 0x666   : > { %v5850_v58 = vadd.f32 %v5761_v34, %v5514_v33  ;;  %v6913_v13 = vpop.f32.mrb[17].mxu1  ;;  %v6337_v31 = vpop.f32.mrb[17].mxu0  ;;  %v5515_v61 = vmul.f32 %v5430_v22, %v5179_v54  ;;  %v5042_v33 = vmul.f32 0.020408163, %v12246_v5 }
 0x667   : > { %v12315_v24 = vpop.f32.mrb[18].mxu1  ;;  %v12317_v14 = vpop.f32.mrb[18].mxu0 }
 0x668   : > { %13703 = vst [vmem:[#allocation10_spill] sm:$0xff] %v12315_v24  ;;  %v5946_v43 = vadd.f32 %v5898_v4, %v5850_v58  ;;  %v6916_v27 = vpop.f32.mrb[19].mxu1  ;;  %v6340_v26 = vpop.f32.mrb[19].mxu0  ;;  %v5089_v58 = vadd.f32 1e-05, %v5041_v42 }
 0x669   : > { %v5766_v9 = vpop.permute.xlu1 %5765  ;;  %v5435_v6 = vpop.permute.xlu0 %5434 }
 0x66a   : > { %v5975_v21 = vpack.c.bf16 %v5946_v43, %v5945_v1  ;;  %v5851_v40 = vadd.f32 %v5766_v9, %v5515_v61  ;;  %v5516_v30 = vmul.f32 %v5435_v6, %v5180_v41  ;;  %v9707_v19 = vpop.eup %9706  ;;  %v6077_v1 = vld [vmem:[#allocation3 + $0x300] sm:$0xff]  ;;  %9714 = vrsqrt.f32 %v5089_v58 }
 0x66b   : > { %6550 = vmatmul.mubr.bf16.gmra.mrb[124].mxu0 %v6074_v52  ;;  %v9709_v34 = vpop.eup %9708  ;;  %v5181_v48 = vmul.f32 %v9707_v19, %v12076_v23  ;;  %v5090_v52 = vadd.f32 1e-05, %v5042_v33  ;;  %v5043_v61 = vmul.f32 0.020408163, %v12254_v10  ;;  %v5902_v10 = vld [vmem:[%s13637_s2 + $0x148] sm:$0xff] }
 0x66c   : > { %8596 = vmatprep.subr.bf16.mxu1 %v5975_v21  ;;  %6557 = vmatprep.mubr.bf16.mxu0 %v6078_v16  ;;  %v12322_v51 = vpop.f32.mrb[20].mxu1  ;;  %v12324_v36 = vpop.f32.mrb[20].mxu0  ;;  %v5947_v5 = vadd.f32 %v5899_v50, %v5851_v40  ;;  %v5182_v6 = vmul.f32 %v9709_v34, %v12096_v62  ;;  %v5901_v62 = vld [vmem:[%s13637_s2 + $0x140] sm:$0xff] }
 0x66d   : > { %13704 = vst [vmem:[#allocation11_spill] sm:$0xff] %v12322_v51  ;;  %v5440_v35 = vpop.permute.xlu1 %5439  ;;  %8597 = vmatpush3.bf16.msra.mxu1 %v5975_v21  ;;  %v5771_v57 = vpop.permute.xlu0 %5770  ;;  %9716 = vrsqrt.f32 %v5090_v52  ;;  %v6084_v52 = vld [vmem:[#allocation3 + $0x338] sm:$0xff] }
 0x66e   : > { %v5852_v47 = vadd.f32 %v5771_v57, %v5516_v30  ;;  %v6921_v22 = vpop.f32.mrb[21].mxu1  ;;  %v6345_v4 = vpop.f32.mrb[21].mxu0  ;;  %v5517_v9 = vmul.f32 %v5440_v35, %v5181_v48  ;;  %v5044_v30 = vmul.f32 0.020408163, %v12256_v3 }
 0x66f   : > { %v12333_v13 = vpop.f32.mrb[22].mxu1  ;;  %v12335_v31 = vpop.f32.mrb[22].mxu0 }
 0x670   : > { %13705 = vst [vmem:[#allocation12_spill] sm:$0xff] %v12333_v13  ;;  %v5948_v46 = vadd.f32 %v5900_v59, %v5852_v47  ;;  %v6924_v54 = vpop.f32.mrb[23].mxu1  ;;  %v6348_v43 = vpop.f32.mrb[23].mxu0  ;;  %v5091_v47 = vadd.f32 1e-05, %v5043_v61 }
 0x671   : > { %v5776_v27 = vpop.permute.xlu1 %5775  ;;  %v5445_v26 = vpop.permute.xlu0 %5444 }
 0x672   : > { %v5976_v16 = vpack.c.bf16 %v5948_v46, %v5947_v5  ;;  %v5853_v41 = vadd.f32 %v5776_v27, %v5517_v9  ;;  %v5518_v21 = vmul.f32 %v5445_v26, %v5182_v6  ;;  %v9711_v40 = vpop.eup %9710  ;;  %v6080_v5 = vld [vmem:[#allocation3 + $0x318] sm:$0xff]  ;;  %9718 = vrsqrt.f32 %v5091_v47  ;;  %v6083_v47 = vld [vmem:[#allocation3 + $0x330] sm:$0xff] }
 0x673   : > { %6558 = vmatmul.mubr.bf16.gmra.mrb[128].mxu0 %v6077_v1  ;;  %v9713_v57 = vpop.eup %9712  ;;  %v5183_v34 = vmul.f32 %v9711_v40, %v12088_v37  ;;  %v5092_v1 = vadd.f32 1e-05, %v5044_v30 }
 0x674   : > { %8598 = vmatprep.subr.bf16.mxu1 %v5976_v16  ;;  %6565 = vmatprep.mubr.bf16.mxu0 %v6081_v28  ;;  %v12340_v23 = vpop.f32.mrb[24].mxu1  ;;  %v12342_v42 = vpop.f32.mrb[24].mxu0  ;;  %v5949_v3 = vadd.f32 %v5901_v62, %v5853_v41  ;;  %v5184_v26 = vmul.f32 %v9713_v57, %v12108_v60  ;;  %v5903_v41 = vld [vmem:[%s13637_s2 + $0x150] sm:$0xff]  ;;  %v5904_v60 = vld [vmem:[%s13637_s2 + $0x158] sm:$0xff] }
 0x675   : > { %13706 = vst [vmem:[#allocation13_spill] sm:$0xff] %v12340_v23  ;;  %v5450_v19 = vpop.permute.xlu1 %5449  ;;  %8599 = vmatpush3.bf16.msra.mxu1 %v5976_v16  ;;  %v5781_v33 = vpop.permute.xlu0 %5780  ;;  %9720 = vrsqrt.f32 %v5092_v1 }
 0x676   : > { %v5854_v50 = vadd.f32 %v5781_v33, %v5518_v21  ;;  %v6929_v35 = vpop.f32.mrb[25].mxu1  ;;  %v6353_v59 = vpop.f32.mrb[25].mxu0  ;;  %v5519_v27 = vmul.f32 %v5450_v19, %v5183_v34 }
 0x677   : > { %v12351_v22 = vpop.f32.mrb[26].mxu1  ;;  %v12353_v4 = vpop.f32.mrb[26].mxu0 }
 0x678   : > { %13707 = vst [vmem:[#allocation14_spill] sm:$0xff] %v12351_v22  ;;  %v5950_v58 = vadd.f32 %v5902_v10, %v5854_v50  ;;  %v6932_v48 = vpop.f32.mrb[27].mxu1  ;;  %v6356_v46 = vpop.f32.mrb[27].mxu0 }
 0x679   : > { %v5786_v54 = vpop.permute.xlu1 %5785  ;;  %v5455_v43 = vpop.permute.xlu0 %5454  ;;  %v6087_v48 = vld [vmem:[#allocation3 + $0x350] sm:$0xff] }
 0x67a   : > { %v5977_v28 = vpack.c.bf16 %v5950_v58, %v5949_v3  ;;  %v5855_v9 = vadd.f32 %v5786_v54, %v5519_v27  ;;  %v5520_v6 = vmul.f32 %v5455_v43, %v5184_v26  ;;  %v9715_v61 = vpop.eup %9714 }
 0x67b   : > { %6566 = vmatmul.mubr.bf16.gmra.mrb[132].mxu0 %v6080_v5  ;;  %v9717_v10 = vpop.eup %9716  ;;  %v5185_v59 = vmul.f32 %v9715_v61, %v12105_v49 }
 0x67c   : > { %8600 = vmatprep.subr.bf16.mxu1 %v5977_v28  ;;  %6573 = vmatprep.mubr.bf16.mxu0 %v6084_v52  ;;  %v12357_v16 = vpop.f32.mrb[28].mxu1  ;;  %v12359_v37 = vpop.f32.mrb[28].mxu0  ;;  %v5951_v35 = vadd.f32 %v5903_v41, %v5855_v9  ;;  %v5186_v1 = vmul.f32 %v9717_v10, %v12120_v25  ;;  %v5906_v25 = vld [vmem:[%s13637_s2 + $0x168] sm:$0xff] }
 0x67d   : > { %13708 = vst [vmem:[#allocation15_spill] sm:$0xff] %v12357_v16  ;;  %v5460_v21 = vpop.permute.xlu1 %5459  ;;  %8601 = vmatpush3.bf16.msra.mxu1 %v5977_v28  ;;  %v5791_v40 = vpop.permute.xlu0 %5790  ;;  %v5905_v28 = vld [vmem:[%s13637_s2 + $0x160] sm:$0xff] }
 0x67e   : > { %v5856_v30 = vadd.f32 %v5791_v40, %v5520_v6  ;;  %v6937_v62 = vpop.f32.mrb[29].mxu1  ;;  %v6361_v19 = vpop.f32.mrb[29].mxu0  ;;  %v5521_v46 = vmul.f32 %v5460_v21, %v5185_v59 }
 0x67f   : > { %v12367_v33 = vpop.f32.mrb[30].mxu1  ;;  %v12369_v50 = vpop.f32.mrb[30].mxu0 }
 0x680   : > { %13709 = vst [vmem:[#allocation21_spill] sm:$0xff] %v12367_v33  ;;  %v5952_v57 = vadd.f32 %v5904_v60, %v5856_v30  ;;  %v6940_v3 = vpop.f32.mrb[31].mxu1  ;;  %v6364_v34 = vpop.f32.mrb[31].mxu0 }
 0x681   : > { %v5796_v58 = vpop.permute.xlu1 %5795  ;;  %v5465_v5 = vpop.permute.xlu0 %5464  ;;  %v6090_v34 = vld [vmem:[#allocation3 + $0x368] sm:$0xff] }
 0x682   : > { %v5978_v54 = vpack.c.bf16 %v5952_v57, %v5951_v35  ;;  %v5857_v43 = vadd.f32 %v5796_v58, %v5521_v46  ;;  %v5522_v52 = vmul.f32 %v5465_v5, %v5186_v1  ;;  %v9719_v49 = vpop.eup %9718  ;;  %v6086_v35 = vld [vmem:[#allocation3 + $0x348] sm:$0xff] }
 0x683   : > { %6574 = vmatmul.mubr.bf16.gmra.mrb[136].mxu0 %v6083_v47  ;;  %v9721_v60 = vpop.eup %9720  ;;  %v5187_v19 = vmul.f32 %v9719_v49, %v12115_v11  ;;  %v5907_v11 = vld [vmem:[%s13637_s2 + $0x170] sm:$0xff] }
 0x684   : > { %8602 = vmatprep.subr.bf16.mxu1 %v5978_v54  ;;  %6581 = vmatprep.mubr.bf16.mxu0 %v6087_v48  ;;  %v12373_v27 = vpop.f32.mrb[32].mxu1  ;;  %v12375_v26 = vpop.f32.mrb[32].mxu0  ;;  %v5953_v62 = vadd.f32 %v5905_v28, %v5857_v43  ;;  %v5188_v5 = vmul.f32 %v9721_v60, %v12129_v29  ;;  %v6089_v60 = vld [vmem:[#allocation3 + $0x360] sm:$0xff] }
 0x685   : > { %13710 = vst [vmem:[#allocation22_spill] sm:$0xff] %v12373_v27  ;;  %v5470_v9 = vpop.permute.xlu1 %5469  ;;  %8603 = vmatpush3.bf16.msra.mxu1 %v5978_v54  ;;  %v5801_v6 = vpop.permute.xlu0 %5800 }
 0x686   : > { %v5858_v61 = vadd.f32 %v5801_v6, %v5522_v52  ;;  %v6945_v41 = vpop.f32.mrb[33].mxu1  ;;  %v6369_v21 = vpop.f32.mrb[33].mxu0  ;;  %v5523_v58 = vmul.f32 %v5470_v9, %v5187_v19  ;;  %v5908_v52 = vld [vmem:[%s13637_s2 + $0x178] sm:$0xff]  ;;  %v6093_v19 = vld [vmem:[#allocation3 + $0x380] sm:$0xff] }
 0x687   : > { %v12383_v40 = vpop.f32.mrb[34].mxu1  ;;  %v12385_v30 = vpop.f32.mrb[34].mxu0 }
 0x688   : > { %13711 = vst [vmem:[#allocation23_spill] sm:$0xff] %v12383_v40  ;;  %v5954_v10 = vadd.f32 %v5906_v25, %v5858_v61  ;;  %v6948_v59 = vpop.f32.mrb[35].mxu1  ;;  %v6372_v57 = vpop.f32.mrb[35].mxu0 }
 0x689   : > { %v5806_v47 = vpop.permute.xlu1 %5805  ;;  %v5475_v3 = vpop.permute.xlu0 %5474  ;;  %v5986_v57 = vld [vmem:[#allocation3 + $0x28] sm:$0xff] }
 0x68a   : > { %v5979_v48 = vpack.c.bf16 %v5954_v10, %v5953_v62  ;;  %v5859_v46 = vadd.f32 %v5806_v47, %v5523_v58  ;;  %v5524_v1 = vmul.f32 %v5475_v3, %v5188_v5 }
 0x68b   : > { %6582 = vmatmul.mubr.bf16.gmra.mrb[140].mxu0 %v6086_v35 }
 0x68c   : > { %8604 = vmatprep.subr.bf16.mxu1 %v5979_v48  ;;  %6589 = vmatprep.mubr.bf16.mxu0 %v6090_v34  ;;  %v12389_v54 = vpop.f32.mrb[36].mxu1  ;;  %v12391_v43 = vpop.f32.mrb[36].mxu0  ;;  %v5955_v41 = vadd.f32 %v5907_v11, %v5859_v46  ;;  %v5989_v34 = vld [vmem:[#allocation3 + $0x40] sm:$0xff]  ;;  %v6096_v11 = vld [vmem:[#allocation3 + $0x398] sm:$0xff] }
 0x68d   : > { %13712 = vst [vmem:[#allocation24_spill] sm:$0xff] %v12389_v54  ;;  %8605 = vmatpush3.bf16.msra.mxu1 %v5979_v48  ;;  %v5811_v29 = vpop.permute.xlu0 %5810  ;;  %v6953_v49 = vpop.f32.mrb[37].mxu1 }
 0x68e   : > { %v5860_v28 = vadd.f32 %v5811_v29, %v5524_v1  ;;  %v12399_v9 = vpop.f32.mrb[38].mxu1  ;;  %v6377_v25 = vpop.f32.mrb[37].mxu0  ;;  %v6092_v1 = vld [vmem:[#allocation3 + $0x378] sm:$0xff] }
 0x68f   : > { %13713 = vst [vmem:[#allocation25_spill] sm:$0xff] %v12399_v9  ;;  %v6956_v6 = vpop.f32.mrb[39].mxu1  ;;  %v12401_v61 = vpop.f32.mrb[38].mxu0  ;;  %v5992_v49 = vld [vmem:[#allocation3 + $0x58] sm:$0xff] }
 0x690   : > { %v5956_v21 = vadd.f32 %v5908_v52, %v5860_v28  ;;  %v6380_v62 = vpop.f32.mrb[39].mxu0  ;;  %v5995_v6 = vld [vmem:[#allocation3 + $0x70] sm:$0xff] }
 0x692   : > { %v5980_v10 = vpack.c.bf16 %v5956_v21, %v5955_v41 }
 0x693   : > { %6590 = vmatmul.mubr.bf16.gmra.mrb[144].mxu0 %v6089_v60 }
 0x694   : > { %8606 = vmatprep.subr.bf16.mxu1 %v5980_v10  ;;  %6597 = vmatprep.mubr.bf16.mxu0 %v6093_v19  ;;  %v12403_v35 = vpop.f32.mrb[40].mxu1  ;;  %v12405_v59 = vpop.f32.mrb[40].mxu0  ;;  %v6095_v19 = vld [vmem:[#allocation3 + $0x390] sm:$0xff] }
 0x695   : > { %13714 = vst [vmem:[#allocation26_spill] sm:$0xff] %v12403_v35  ;;  %8607 = vmatpush3.bf16.msra.mxu1 %v5980_v10  ;;  %v6961_v47 = vpop.f32.mrb[41].mxu1  ;;  %v6385_v3 = vpop.f32.mrb[41].mxu0  ;;  %v6099_v10 = vld [vmem:[#allocation3 + $0x3b0] sm:$0xff] }
 0x696   : > { %v12407_v58 = vpop.f32.mrb[42].mxu1  ;;  %v12409_v5 = vpop.f32.mrb[42].mxu0  ;;  %v5998_v47 = vld [vmem:[#allocation3 + $0x88] sm:$0xff] }
 0x697   : > { %13715 = vst [vmem:[#allocation27_spill] sm:$0xff] %v12407_v58  ;;  %v6964_v48 = vpop.f32.mrb[43].mxu1  ;;  %v6388_v46 = vpop.f32.mrb[43].mxu0 }
 0x698   : > { %8609 = vmatmul.mubr.bf16.vlgmr.msra.gmra.mrb[96].mxu1 %v5986_v57 }
 0x699   : > { %8612 = vmatprep.mubr.bf16.mxu1 %v5989_v34  ;;  %v6001_v34 = vld [vmem:[#allocation3 + $0xa0] sm:$0xff] }
 0x69b   : > { %6598 = vmatmul.mubr.bf16.gmra.mrb[148].mxu0 %v6092_v1 }
 0x69c   : > { %6605 = vmatprep.mubr.bf16.mxu0 %v6096_v11  ;;  %v12411_v52 = vpop.f32.mrb[44].mxu1  ;;  %v12413_v29 = vpop.f32.mrb[44].mxu0 }
 0x69d   : > { %13716 = vst [vmem:[#allocation28_spill] sm:$0xff] %v12411_v52  ;;  %v6969_v28 = vpop.f32.mrb[45].mxu1  ;;  %v6393_v25 = vpop.f32.mrb[45].mxu0 }
 0x69e   : > { %v12415_v41 = vpop.f32.mrb[46].mxu1  ;;  %v12417_v21 = vpop.f32.mrb[46].mxu0  ;;  %v6098_v28 = vld [vmem:[#allocation3 + $0x3a8] sm:$0xff] }
 0x69f   : > { %13717 = vst [vmem:[#allocation29_spill] sm:$0xff] %v12415_v41  ;;  %v6972_v60 = vpop.f32.mrb[47].mxu1  ;;  %v6396_v62 = vpop.f32.mrb[47].mxu0 }
 0x6a0   : > { %8613 = vmatmul.mubr.bf16.gmra.mrb[100].mxu1 %v5992_v49  ;;  %v6102_v49 = vld [vmem:[#allocation3 + $0x3c8] sm:$0xff]  ;;  %v6004_v62 = vld [vmem:[#allocation3 + $0xb8] sm:$0xff] }
 0x6a1   : > { %8616 = vmatprep.mubr.bf16.mxu1 %v5995_v6 }
 0x6a3   : > { %6606 = vmatmul.mubr.bf16.gmra.mrb[152].mxu0 %v6095_v19 }
 0x6a4   : > { %6613 = vmatprep.mubr.bf16.mxu0 %v6099_v10  ;;  %v12419_v57 = vpop.f32.mrb[48].mxu1  ;;  %v6007_v10 = vld [vmem:[#allocation3 + $0xd0] sm:$0xff] }
 0x6a5   : > { %13718 = vst [vmem:[#allocation30_spill] sm:$0xff] %v12419_v57  ;;  %v6977_v3 = vpop.f32.mrb[49].mxu1 }
 0x6a6   : > { %v12421_v48 = vpop.f32.mrb[50].mxu1  ;;  %v12423_v46 = vpop.f32.mrb[48].mxu0 }
 0x6a7   : > { %13719 = vst [vmem:[#allocation31_spill] sm:$0xff] %v12421_v48  ;;  %v6980_v1 = vpop.f32.mrb[51].mxu1  ;;  %v6401_v11 = vpop.f32.mrb[49].mxu0 }
 0x6a8   : > { %8617 = vmatmul.mubr.bf16.gmra.mrb[104].mxu1 %v5998_v47  ;;  %v12425_v25 = vpop.f32.mrb[50].mxu0  ;;  %v6101_v47 = vld [vmem:[#allocation3 + $0x3c0] sm:$0xff] }
 0x6a9   : > { %8620 = vmatprep.mubr.bf16.mxu1 %v6001_v34  ;;  %v6404_v6 = vpop.f32.mrb[51].mxu0  ;;  %v6105_v34 = vld [vmem:[#allocation3 + $0x3e0] sm:$0xff] }
 0x6ab   : > { %6614 = vmatmul.mubr.bf16.gmra.mrb[156].mxu0 %v6098_v28 }
 0x6ac   : > { %6621 = vmatprep.mubr.bf16.mxu0 %v6102_v49  ;;  %v12427_v60 = vpop.f32.mrb[52].mxu1  ;;  %v6010_v49 = vld [vmem:[#allocation3 + $0xe8] sm:$0xff] }
 0x6ad   : > { %13720 = vst [vmem:[#allocation32_spill] sm:$0xff] %v12427_v60  ;;  %v6985_v19 = vpop.f32.mrb[53].mxu1  ;;  %v6013_v60 = vld [vmem:[#allocation3 + $0x100] sm:$0xff] }
 0x6ae   : > { %v12429_v3 = vpop.f32.mrb[54].mxu1  ;;  %v12431_v48 = vpop.f32.mrb[52].mxu0 }
 0x6af   : > { %13721 = vst [vmem:[#allocation33_spill] sm:$0xff] %v12429_v3  ;;  %v6988_v1 = vpop.f32.mrb[55].mxu1  ;;  %v6409_v11 = vpop.f32.mrb[53].mxu0 }
 0x6b0   : > { %8621 = vmatmul.mubr.bf16.gmra.mrb[108].mxu1 %v6004_v62  ;;  %v12433_v57 = vpop.f32.mrb[54].mxu0  ;;  %v6104_v62 = vld [vmem:[#allocation3 + $0x3d8] sm:$0xff] }
 0x6b1   : > { %8624 = vmatprep.mubr.bf16.mxu1 %v6007_v10  ;;  %v6412_v6 = vpop.f32.mrb[55].mxu0  ;;  %v6108_v10 = vld [vmem:[#allocation3 + $0x3f8] sm:$0xff] }
 0x6b3   : > { %6622 = vmatmul.mubr.bf16.gmra.mrb[160].mxu0 %v6101_v47 }
 0x6b4   : > { %6629 = vmatprep.mubr.bf16.mxu0 %v6105_v34  ;;  %v12435_v28 = vpop.f32.mrb[56].mxu1  ;;  %v6016_v34 = vld [vmem:[#allocation3 + $0x118] sm:$0xff] }
 0x6b5   : > { %13722 = vst [vmem:[#allocation34_spill] sm:$0xff] %v12435_v28  ;;  %v6993_v19 = vpop.f32.mrb[57].mxu1  ;;  %v6019_v28 = vld [vmem:[#allocation3 + $0x130] sm:$0xff] }
 0x6b6   : > { %v12437_v58 = vpop.f32.mrb[58].mxu1  ;;  %v12439_v3 = vpop.f32.mrb[56].mxu0 }
 0x6b7   : > { %13723 = vst [vmem:[#allocation35_spill] sm:$0xff] %v12437_v58  ;;  %v6996_v1 = vpop.f32.mrb[59].mxu1  ;;  %v6417_v11 = vpop.f32.mrb[57].mxu0 }
 0x6b8   : > { %8625 = vmatmul.mubr.bf16.gmra.mrb[112].mxu1 %v6010_v49  ;;  %v12441_v41 = vpop.f32.mrb[58].mxu0  ;;  %v6107_v49 = vld [vmem:[#allocation3 + $0x3f0] sm:$0xff] }
 0x6b9   : > { %8628 = vmatprep.mubr.bf16.mxu1 %v6013_v60  ;;  %v6420_v6 = vpop.f32.mrb[59].mxu0  ;;  %v6111_v60 = vld [vmem:[#allocation3 + $0x410] sm:$0xff] }
 0x6bb   : > { %6630 = vmatmul.mubr.bf16.gmra.mrb[164].mxu0 %v6104_v62 }
 0x6bc   : > { %v12443_v47 = vpop.f32.mrb[60].mxu1  ;;  %6637 = vmatprep.mubr.bf16.mxu0 %v6108_v10  ;;  %v6022_v10 = vld [vmem:[#allocation3 + $0x148] sm:$0xff] }
 0x6bd   : > { %13724 = vst [vmem:[#allocation36_spill] sm:$0xff] %v12443_v47  ;;  %v7001_v19 = vpop.f32.mrb[61].mxu1  ;;  %v6025_v47 = vld [vmem:[#allocation3 + $0x160] sm:$0xff] }
 0x6be   : > { %v12445_v35 = vpop.f32.mrb[62].mxu1  ;;  %v12447_v58 = vpop.f32.mrb[60].mxu0 }
 0x6bf   : > { %13725 = vst [vmem:[#allocation37_spill] sm:$0xff] %v12445_v35  ;;  %v7004_v1 = vpop.f32.mrb[63].mxu1  ;;  %v6425_v11 = vpop.f32.mrb[61].mxu0 }
 0x6c0   : > { %8629 = vmatmul.mubr.bf16.gmra.mrb[116].mxu1 %v6016_v34  ;;  %v12449_v52 = vpop.f32.mrb[62].mxu0  ;;  %v6110_v34 = vld [vmem:[#allocation3 + $0x408] sm:$0xff] }
 0x6c1   : > { %8632 = vmatprep.mubr.bf16.mxu1 %v6019_v28  ;;  %v6428_v6 = vpop.f32.mrb[63].mxu0  ;;  %v6114_v28 = vld [vmem:[#allocation3 + $0x428] sm:$0xff] }
 0x6c3   : > { %6638 = vmatmul.mubr.bf16.gmra.mrb[168].mxu0 %v6107_v49 }
 0x6c4   : > { %v12451_v62 = vpop.f32.mrb[64].mxu1  ;;  %6645 = vmatprep.mubr.bf16.mxu0 %v6111_v60  ;;  %v6028_v60 = vld [vmem:[#allocation3 + $0x178] sm:$0xff] }
 0x6c5   : > { %13726 = vst [vmem:[#allocation38_spill] sm:$0xff] %v12451_v62  ;;  %v7009_v19 = vpop.f32.mrb[65].mxu1  ;;  %v6031_v62 = vld [vmem:[#allocation3 + $0x190] sm:$0xff] }
 0x6c6   : > { %v12453_v40 = vpop.f32.mrb[66].mxu1  ;;  %v12455_v35 = vpop.f32.mrb[64].mxu0 }
 0x6c7   : > { %13727 = vst [vmem:[#allocation39_spill] sm:$0xff] %v12453_v40  ;;  %v7012_v1 = vpop.f32.mrb[67].mxu1  ;;  %v6433_v11 = vpop.f32.mrb[65].mxu0 }
 0x6c8   : > { %8633 = vmatmul.mubr.bf16.gmra.mrb[120].mxu1 %v6022_v10  ;;  %v12457_v9 = vpop.f32.mrb[66].mxu0  ;;  %v6113_v10 = vld [vmem:[#allocation3 + $0x420] sm:$0xff] }
 0x6c9   : > { %8636 = vmatprep.mubr.bf16.mxu1 %v6025_v47  ;;  %v6436_v6 = vpop.f32.mrb[67].mxu0  ;;  %v6117_v47 = vld [vmem:[#allocation3 + $0x440] sm:$0xff] }
 0x6cb   : > { %6646 = vmatmul.mubr.bf16.gmra.mrb[172].mxu0 %v6110_v34 }
 0x6cc   : > { %v12459_v49 = vpop.f32.mrb[68].mxu1  ;;  %6653 = vmatprep.mubr.bf16.mxu0 %v6114_v28  ;;  %v6034_v28 = vld [vmem:[#allocation3 + $0x1a8] sm:$0xff] }
 0x6cd   : > { %13728 = vst [vmem:[#allocation40_spill] sm:$0xff] %v12459_v49  ;;  %v7017_v19 = vpop.f32.mrb[69].mxu1  ;;  %v6037_v49 = vld [vmem:[#allocation3 + $0x1c0] sm:$0xff] }
 0x6ce   : > { %v12461_v27 = vpop.f32.mrb[70].mxu1  ;;  %v12463_v40 = vpop.f32.mrb[68].mxu0 }
 0x6cf   : > { %13729 = vst [vmem:[#allocation41_spill] sm:$0xff] %v12461_v27  ;;  %v7020_v1 = vpop.f32.mrb[71].mxu1  ;;  %v6441_v11 = vpop.f32.mrb[69].mxu0 }
 0x6d0   : > { %8637 = vmatmul.mubr.bf16.gmra.mrb[124].mxu1 %v6028_v60  ;;  %v12465_v54 = vpop.f32.mrb[70].mxu0  ;;  %v6116_v60 = vld [vmem:[#allocation3 + $0x438] sm:$0xff] }
 0x6d1   : > { %8640 = vmatprep.mubr.bf16.mxu1 %v6031_v62  ;;  %v6444_v6 = vpop.f32.mrb[71].mxu0  ;;  %v6120_v62 = vld [vmem:[#allocation3 + $0x458] sm:$0xff] }
 0x6d3   : > { %6654 = vmatmul.mubr.bf16.gmra.mrb[176].mxu0 %v6113_v10 }
 0x6d4   : > { %v12467_v34 = vpop.f32.mrb[72].mxu1  ;;  %6661 = vmatprep.mubr.bf16.mxu0 %v6117_v47  ;;  %v6040_v47 = vld [vmem:[#allocation3 + $0x1d8] sm:$0xff] }
 0x6d5   : > { %13730 = vst [vmem:[#allocation42_spill] sm:$0xff] %v12467_v34  ;;  %v7025_v19 = vpop.f32.mrb[73].mxu1  ;;  %v6043_v34 = vld [vmem:[#allocation3 + $0x1f0] sm:$0xff] }
 0x6d6   : > { %v12469_v22 = vpop.f32.mrb[74].mxu1  ;;  %v12471_v27 = vpop.f32.mrb[72].mxu0 }
 0x6d7   : > { %13731 = vst [vmem:[#allocation43_spill] sm:$0xff] %v12469_v22  ;;  %v7028_v1 = vpop.f32.mrb[75].mxu1  ;;  %v6449_v11 = vpop.f32.mrb[73].mxu0 }
 0x6d8   : > { %8641 = vmatmul.mubr.bf16.gmra.mrb[128].mxu1 %v6034_v28  ;;  %v12473_v33 = vpop.f32.mrb[74].mxu0  ;;  %v6119_v28 = vld [vmem:[#allocation3 + $0x450] sm:$0xff] }
 0x6d9   : > { %8644 = vmatprep.mubr.bf16.mxu1 %v6037_v49  ;;  %v6452_v6 = vpop.f32.mrb[75].mxu0  ;;  %v6123_v49 = vld [vmem:[#allocation3 + $0x470] sm:$0xff] }
 0x6db   : > { %6662 = vmatmul.mubr.bf16.gmra.mrb[180].mxu0 %v6116_v60 }
 0x6dc   : > { %v12475_v10 = vpop.f32.mrb[76].mxu1  ;;  %6669 = vmatprep.mubr.bf16.mxu0 %v6120_v62  ;;  %v6046_v62 = vld [vmem:[#allocation3 + $0x208] sm:$0xff] }
 0x6dd   : > { %13732 = vst [vmem:[#allocation44_spill] sm:$0xff] %v12475_v10  ;;  %v7033_v19 = vpop.f32.mrb[77].mxu1  ;;  %v6049_v10 = vld [vmem:[#allocation3 + $0x220] sm:$0xff] }
 0x6de   : > { %v12477_v23 = vpop.f32.mrb[78].mxu1  ;;  %v12479_v22 = vpop.f32.mrb[76].mxu0 }
 0x6df   : > { %13733 = vst [vmem:[#allocation45_spill] sm:$0xff] %v12477_v23  ;;  %v7036_v1 = vpop.f32.mrb[79].mxu1  ;;  %v6457_v11 = vpop.f32.mrb[77].mxu0 }
 0x6e0   : > { %8645 = vmatmul.mubr.bf16.gmra.mrb[132].mxu1 %v6040_v47  ;;  %v12481_v16 = vpop.f32.mrb[78].mxu0  ;;  %v6122_v47 = vld [vmem:[#allocation3 + $0x468] sm:$0xff] }
 0x6e1   : > { %8648 = vmatprep.mubr.bf16.mxu1 %v6043_v34  ;;  %v6460_v6 = vpop.f32.mrb[79].mxu0  ;;  %v6126_v34 = vld [vmem:[#allocation3 + $0x488] sm:$0xff] }
 0x6e3   : > { %6670 = vmatmul.mubr.bf16.gmra.mrb[184].mxu0 %v6119_v28 }
 0x6e4   : > { %v12483_v60 = vpop.f32.mrb[80].mxu1  ;;  %6677 = vmatprep.mubr.bf16.mxu0 %v6123_v49  ;;  %v6052_v49 = vld [vmem:[#allocation3 + $0x238] sm:$0xff] }
 0x6e5   : > { %13734 = vst [vmem:[#allocation46_spill] sm:$0xff] %v12483_v60  ;;  %v7041_v19 = vpop.f32.mrb[81].mxu1  ;;  %v6055_v60 = vld [vmem:[#allocation3 + $0x250] sm:$0xff] }
 0x6e6   : > { %v12485_v24 = vpop.f32.mrb[82].mxu1  ;;  %v12487_v23 = vpop.f32.mrb[80].mxu0 }
 0x6e7   : > { %13735 = vst [vmem:[#allocation47_spill] sm:$0xff] %v12485_v24  ;;  %v7044_v1 = vpop.f32.mrb[83].mxu1  ;;  %v6465_v11 = vpop.f32.mrb[81].mxu0 }
 0x6e8   : > { %8649 = vmatmul.mubr.bf16.gmra.mrb[136].mxu1 %v6046_v62  ;;  %v12489_v13 = vpop.f32.mrb[82].mxu0  ;;  %v6125_v62 = vld [vmem:[#allocation3 + $0x480] sm:$0xff] }
 0x6e9   : > { %8652 = vmatprep.mubr.bf16.mxu1 %v6049_v10  ;;  %v6468_v6 = vpop.f32.mrb[83].mxu0  ;;  %v6129_v10 = vld [vmem:[#allocation3 + $0x4a0] sm:$0xff] }
 0x6eb   : > { %6678 = vmatmul.mubr.bf16.gmra.mrb[188].mxu0 %v6122_v47 }
 0x6ec   : > { %v12491_v28 = vpop.f32.mrb[84].mxu1  ;;  %6685 = vmatprep.mubr.bf16.mxu0 %v6126_v34  ;;  %v6058_v34 = vld [vmem:[#allocation3 + $0x268] sm:$0xff] }
 0x6ed   : > { %13736 = vst [vmem:[#allocation48_spill] sm:$0xff] %v12491_v28  ;;  %v7049_v19 = vpop.f32.mrb[85].mxu1  ;;  %v6061_v28 = vld [vmem:[#allocation3 + $0x280] sm:$0xff] }
 0x6ee   : > { %v12493_v45 = vpop.f32.mrb[86].mxu1  ;;  %v12495_v24 = vpop.f32.mrb[84].mxu0 }
 0x6ef   : > { %13737 = vst [vmem:[#allocation49_spill] sm:$0xff] %v12493_v45  ;;  %v7052_v1 = vpop.f32.mrb[87].mxu1  ;;  %v6473_v11 = vpop.f32.mrb[85].mxu0 }
 0x6f0   : > { %8653 = vmatmul.mubr.bf16.gmra.mrb[140].mxu1 %v6052_v49  ;;  %v12497_v51 = vpop.f32.mrb[86].mxu0  ;;  %v6128_v49 = vld [vmem:[#allocation3 + $0x498] sm:$0xff] }
 0x6f1   : > { %8656 = vmatprep.mubr.bf16.mxu1 %v6055_v60  ;;  %v6476_v6 = vpop.f32.mrb[87].mxu0  ;;  %v6132_v60 = vld [vmem:[#allocation3 + $0x4b8] sm:$0xff] }
 0x6f3   : > { %6686 = vmatmul.mubr.bf16.gmra.mrb[192].mxu0 %v6125_v62 }
 0x6f4   : > { %v12499_v47 = vpop.f32.mrb[88].mxu1  ;;  %6693 = vmatprep.mubr.bf16.mxu0 %v6129_v10  ;;  %v6064_v10 = vld [vmem:[#allocation3 + $0x298] sm:$0xff] }
 0x6f5   : > { %13738 = vst [vmem:[#allocation50_spill] sm:$0xff] %v12499_v47  ;;  %v7057_v19 = vpop.f32.mrb[89].mxu1  ;;  %v6067_v47 = vld [vmem:[#allocation3 + $0x2b0] sm:$0xff] }
 0x6f6   : > { %v12501_v12 = vpop.f32.mrb[90].mxu1  ;;  %v12503_v45 = vpop.f32.mrb[88].mxu0 }
 0x6f7   : > { %13739 = vst [vmem:[#allocation51_spill] sm:$0xff] %v12501_v12  ;;  %v7060_v1 = vpop.f32.mrb[91].mxu1  ;;  %v6481_v11 = vpop.f32.mrb[89].mxu0 }
 0x6f8   : > { %8657 = vmatmul.mubr.bf16.gmra.mrb[144].mxu1 %v6058_v34  ;;  %v12505_v39 = vpop.f32.mrb[90].mxu0  ;;  %v6131_v34 = vld [vmem:[#allocation3 + $0x4b0] sm:$0xff] }
 0x6f9   : > { %8660 = vmatprep.mubr.bf16.mxu1 %v6061_v28  ;;  %v6484_v6 = vpop.f32.mrb[91].mxu0  ;;  %v6135_v28 = vld [vmem:[#allocation3 + $0x4d0] sm:$0xff] }
 0x6fb   : > { %6694 = vmatmul.mubr.bf16.gmra.mrb[196].mxu0 %v6128_v49  ;;  %v6070_v49 = vld [vmem:[#allocation3 + $0x2c8] sm:$0xff] }
 0x6fc   : > { %v12507_v62 = vpop.f32.mrb[92].mxu1  ;;  %6701 = vmatprep.mubr.bf16.mxu0 %v6132_v60  ;;  %v6073_v60 = vld [vmem:[#allocation3 + $0x2e0] sm:$0xff] }
 0x6fd   : > { %13740 = vst [vmem:[#allocation52_spill] sm:$0xff] %v12507_v62  ;;  %v7065_v19 = vpop.f32.mrb[93].mxu1 }
 0x6fe   : > { %v12509_v17 = vpop.f32.mrb[94].mxu1  ;;  %v12511_v12 = vpop.f32.mrb[92].mxu0 }
 0x6ff   : > { %13741 = vst [vmem:[#allocation53_spill] sm:$0xff] %v12509_v17  ;;  %v7068_v1 = vpop.f32.mrb[95].mxu1  ;;  %v6489_v11 = vpop.f32.mrb[93].mxu0  ;;  %v6134_v17 = vld [vmem:[#allocation3 + $0x4c8] sm:$0xff] }
 0x700   : > { %8661 = vmatmul.mubr.bf16.gmra.mrb[148].mxu1 %v6064_v10  ;;  %v12513_v2 = vpop.f32.mrb[94].mxu0  ;;  %v6138_v1 = vld [vmem:[#allocation3 + $0x4e8] sm:$0xff]  ;;  %v6076_v11 = vld [vmem:[#allocation3 + $0x2f8] sm:$0xff] }
 0x701   : > { %8664 = vmatprep.mubr.bf16.mxu1 %v6067_v47  ;;  %v6492_v6 = vpop.f32.mrb[95].mxu0  ;;  %v6079_v47 = vld [vmem:[#allocation3 + $0x310] sm:$0xff] }
 0x703   : > { %6702 = vmatmul.mubr.bf16.gmra.mrb[200].mxu0 %v6131_v34 }
 0x704   : > { %6709 = vmatprep.mubr.bf16.mxu0 %v6135_v28  ;;  %v6137_v28 = vld [vmem:[#allocation3 + $0x4e0] sm:$0xff] }
 0x706   : > { %v12515_v62 = vpop.f32.mrb[96].mxu0 }
 0x707   : > { %v6497_v19 = vpop.f32.mrb[97].mxu0 }
 0x708   : > { %8665 = vmatmul.mubr.bf16.gmra.mrb[152].mxu1 %v6070_v49  ;;  %v12517_v8 = vpop.f32.mrb[98].mxu0  ;;  %v6141_v19 = vld [vmem:[#allocation3 + $0x500] sm:$0xff] }
 0x709   : > { %13742 = vst [vmem:[#allocation54_spill] sm:$0xff] %v12517_v8  ;;  %8668 = vmatprep.mubr.bf16.mxu1 %v6073_v60  ;;  %v6500_v10 = vpop.f32.mrb[99].mxu0  ;;  %v6085_v60 = vld [vmem:[#allocation3 + $0x340] sm:$0xff]  ;;  %v6088_v8 = vld [vmem:[#allocation3 + $0x358] sm:$0xff] }
 0x70b   : > { %6710 = vmatmul.mubr.bf16.gmra.mrb[204].mxu0 %v6134_v17 }
 0x70c   : > { %6717 = vmatprep.mubr.bf16.mxu0 %v6138_v1  ;;  %v6140_v1 = vld [vmem:[#allocation3 + $0x4f8] sm:$0xff] }
 0x70e   : > { %v12519_v15 = vpop.f32.mrb[100].mxu0 }
 0x70f   : > { %v6505_v34 = vpop.f32.mrb[101].mxu0 }
 0x710   : > { %8669 = vmatmul.mubr.bf16.gmra.mrb[156].mxu1 %v6076_v11  ;;  %v12521_v6 = vpop.f32.mrb[102].mxu0  ;;  %v6144_v34 = vld [vmem:[#allocation3 + $0x518] sm:$0xff] }
 0x711   : > { %13743 = vst [vmem:[#allocation55_spill] sm:$0xff] %v12521_v6  ;;  %8672 = vmatprep.mubr.bf16.mxu1 %v6079_v47  ;;  %v6508_v49 = vpop.f32.mrb[103].mxu0  ;;  %v6091_v47 = vld [vmem:[#allocation3 + $0x370] sm:$0xff] }
 0x713   : > { %6718 = vmatmul.mubr.bf16.gmra.mrb[208].mxu0 %v6137_v28 }
 0x714   : > { %6725 = vmatprep.mubr.bf16.mxu0 %v6141_v19  ;;  %v6143_v19 = vld [vmem:[#allocation3 + $0x510] sm:$0xff] }
 0x716   : > { %v12523_v7 = vpop.f32.mrb[104].mxu0 }
 0x717   : > { %13744 = vst [vmem:[#allocation56_spill] sm:$0xff] %v12523_v7  ;;  %v6513_v17 = vpop.f32.mrb[105].mxu0 }
 0x718   : > { %8673 = vmatmul.mubr.bf16.gmra.mrb[160].mxu1 %v6082_v63  ;;  %v12525_v10 = vpop.f32.mrb[106].mxu0  ;;  %v6147_v17 = vld [vmem:[#allocation3 + $0x530] sm:$0xff] }
 0x719   : > { %13745 = vst [vmem:[#allocation57_spill] sm:$0xff] %v12525_v10  ;;  %8676 = vmatprep.mubr.bf16.mxu1 %v6085_v60  ;;  %v6516_v11 = vpop.f32.mrb[107].mxu0  ;;  %v6094_v10 = vld [vmem:[#allocation3 + $0x388] sm:$0xff]  ;;  %v6097_v60 = vld [vmem:[#allocation3 + $0x3a0] sm:$0xff] }
 0x71b   : > { %6726 = vmatmul.mubr.bf16.gmra.mrb[212].mxu0 %v6140_v1 }
 0x71c   : > { %6733 = vmatprep.mubr.bf16.mxu0 %v6144_v34  ;;  %v6146_v34 = vld [vmem:[#allocation3 + $0x528] sm:$0xff] }
 0x71e   : > { %v12527_v6 = vpop.f32.mrb[108].mxu0 }
 0x71f   : > { %13746 = vst [vmem:[#allocation58_spill] sm:$0xff] %v12527_v6  ;;  %v6521_v28 = vpop.f32.mrb[109].mxu0 }
 0x720   : > { %8677 = vmatmul.mubr.bf16.gmra.mrb[164].mxu1 %v6088_v8  ;;  %v12529_v49 = vpop.f32.mrb[110].mxu0  ;;  %v6150_v28 = vld [vmem:[#allocation3 + $0x548] sm:$0xff] }
 0x721   : > { %13747 = vst [vmem:[#allocation59_spill] sm:$0xff] %v12529_v49  ;;  %8680 = vmatprep.mubr.bf16.mxu1 %v6091_v47  ;;  %v6524_v63 = vpop.f32.mrb[111].mxu0  ;;  %v6100_v49 = vld [vmem:[#allocation3 + $0x3b8] sm:$0xff]  ;;  %v6103_v47 = vld [vmem:[#allocation3 + $0x3d0] sm:$0xff] }
 0x723   : > { %6734 = vmatmul.mubr.bf16.gmra.mrb[216].mxu0 %v6143_v19 }
 0x724   : > { %6741 = vmatprep.mubr.bf16.mxu0 %v6147_v17  ;;  %v6149_v17 = vld [vmem:[#allocation3 + $0x540] sm:$0xff] }
 0x726   : > { %v12531_v7 = vpop.f32.mrb[112].mxu0 }
 0x727   : > { %13748 = vst [vmem:[#allocation60_spill] sm:$0xff] %v12531_v7  ;;  %v6529_v1 = vpop.f32.mrb[113].mxu0 }
 0x728   : > { %8681 = vmatmul.mubr.bf16.gmra.mrb[168].mxu1 %v6094_v10  ;;  %v12533_v11 = vpop.f32.mrb[114].mxu0  ;;  %v6153_v1 = vld [vmem:[#allocation3 + $0x560] sm:$0xff] }
 0x729   : > { %13749 = vst [vmem:[#allocation61_spill] sm:$0xff] %v12533_v11  ;;  %8684 = vmatprep.mubr.bf16.mxu1 %v6097_v60  ;;  %v6532_v8 = vpop.f32.mrb[115].mxu0  ;;  %v6106_v11 = vld [vmem:[#allocation3 + $0x3e8] sm:$0xff]  ;;  %v6109_v60 = vld [vmem:[#allocation3 + $0x400] sm:$0xff] }
 0x72b   : > { %6742 = vmatmul.mubr.bf16.gmra.mrb[220].mxu0 %v6146_v34 }
 0x72c   : > { %6749 = vmatprep.mubr.bf16.mxu0 %v6150_v28  ;;  %v6152_v28 = vld [vmem:[#allocation3 + $0x558] sm:$0xff] }
 0x72e   : > { %v12535_v6 = vpop.f32.mrb[116].mxu0 }
 0x72f   : > { %13750 = vst [vmem:[#allocation62_spill] sm:$0xff] %v12535_v6  ;;  %v6537_v19 = vpop.f32.mrb[117].mxu0 }
 0x730   : > { %8685 = vmatmul.mubr.bf16.gmra.mrb[172].mxu1 %v6100_v49  ;;  %v12537_v63 = vpop.f32.mrb[118].mxu0  ;;  %v6156_v19 = vld [vmem:[#allocation3 + $0x578] sm:$0xff] }
 0x731   : > { %13751 = vst [vmem:[#allocation63_spill] sm:$0xff] %v12537_v63  ;;  %8688 = vmatprep.mubr.bf16.mxu1 %v6103_v47  ;;  %v6540_v10 = vpop.f32.mrb[119].mxu0  ;;  %v6112_v63 = vld [vmem:[#allocation3 + $0x418] sm:$0xff]  ;;  %v6115_v47 = vld [vmem:[#allocation3 + $0x430] sm:$0xff] }
 0x733   : > { %6750 = vmatmul.mubr.bf16.gmra.mrb[224].mxu0 %v6149_v17 }
 0x734   : > { %6757 = vmatprep.mubr.bf16.mxu0 %v6153_v1  ;;  %v6155_v1 = vld [vmem:[#allocation3 + $0x570] sm:$0xff] }
 0x736   : > { %v12539_v7 = vpop.f32.mrb[120].mxu0 }
 0x737   : > { %13752 = vst [vmem:[#allocation64_spill] sm:$0xff] %v12539_v7  ;;  %v6545_v34 = vpop.f32.mrb[121].mxu0 }
 0x738   : > { %8689 = vmatmul.mubr.bf16.gmra.mrb[176].mxu1 %v6106_v11  ;;  %v12541_v8 = vpop.f32.mrb[122].mxu0  ;;  %v6159_v34 = vld [vmem:[#allocation3 + $0x590] sm:$0xff] }
 0x739   : > { %13753 = vst [vmem:[#allocation65_spill] sm:$0xff] %v12541_v8  ;;  %8692 = vmatprep.mubr.bf16.mxu1 %v6109_v60  ;;  %v6548_v49 = vpop.f32.mrb[123].mxu0  ;;  %v6118_v8 = vld [vmem:[#allocation3 + $0x448] sm:$0xff]  ;;  %v6121_v60 = vld [vmem:[#allocation3 + $0x460] sm:$0xff] }
 0x73b   : > { %6758 = vmatmul.mubr.bf16.gmra.mrb[228].mxu0 %v6152_v28 }
 0x73c   : > { %6765 = vmatprep.mubr.bf16.mxu0 %v6156_v19  ;;  %v6158_v19 = vld [vmem:[#allocation3 + $0x588] sm:$0xff] }
 0x73e   : > { %v12543_v6 = vpop.f32.mrb[124].mxu0 }
 0x73f   : > { %13754 = vst [vmem:[#allocation66_spill] sm:$0xff] %v12543_v6  ;;  %v6553_v17 = vpop.f32.mrb[125].mxu0 }
 0x740   : > { %8693 = vmatmul.mubr.bf16.gmra.mrb[180].mxu1 %v6112_v63  ;;  %v12545_v10 = vpop.f32.mrb[126].mxu0  ;;  %v6162_v17 = vld [vmem:[#allocation3 + $0x5a8] sm:$0xff] }
 0x741   : > { %13755 = vst [vmem:[#allocation67_spill] sm:$0xff] %v12545_v10  ;;  %8696 = vmatprep.mubr.bf16.mxu1 %v6115_v47  ;;  %v6556_v11 = vpop.f32.mrb[127].mxu0  ;;  %v6124_v10 = vld [vmem:[#allocation3 + $0x478] sm:$0xff]  ;;  %v6127_v47 = vld [vmem:[#allocation3 + $0x490] sm:$0xff] }
 0x743   : > { %6766 = vmatmul.mubr.bf16.gmra.mrb[232].mxu0 %v6155_v1 }
 0x744   : > { %6773 = vmatprep.mubr.bf16.mxu0 %v6159_v34  ;;  %v6161_v34 = vld [vmem:[#allocation3 + $0x5a0] sm:$0xff] }
 0x746   : > { %v12547_v7 = vpop.f32.mrb[128].mxu0 }
 0x747   : > { %13756 = vst [vmem:[#allocation68_spill] sm:$0xff] %v12547_v7  ;;  %v6561_v28 = vpop.f32.mrb[129].mxu0 }
 0x748   : > { %8697 = vmatmul.mubr.bf16.gmra.mrb[184].mxu1 %v6118_v8  ;;  %v12549_v49 = vpop.f32.mrb[130].mxu0  ;;  %v6165_v28 = vld [vmem:[#allocation3 + $0x5c0] sm:$0xff] }
 0x749   : > { %13757 = vst [vmem:[#allocation69_spill] sm:$0xff] %v12549_v49  ;;  %8700 = vmatprep.mubr.bf16.mxu1 %v6121_v60  ;;  %v6564_v63 = vpop.f32.mrb[131].mxu0  ;;  %v6130_v49 = vld [vmem:[#allocation3 + $0x4a8] sm:$0xff]  ;;  %v6133_v60 = vld [vmem:[#allocation3 + $0x4c0] sm:$0xff] }
 0x74b   : > { %6774 = vmatmul.mubr.bf16.gmra.mrb[236].mxu0 %v6158_v19 }
 0x74c   : > { %6781 = vmatprep.mubr.bf16.mxu0 %v6162_v17  ;;  %v6164_v17 = vld [vmem:[#allocation3 + $0x5b8] sm:$0xff] }
 0x74e   : > { %v12551_v6 = vpop.f32.mrb[132].mxu0 }
 0x74f   : > { %13758 = vst [vmem:[#allocation70_spill] sm:$0xff] %v12551_v6  ;;  %v6569_v1 = vpop.f32.mrb[133].mxu0 }
 0x750   : > { %8701 = vmatmul.mubr.bf16.gmra.mrb[188].mxu1 %v6124_v10  ;;  %v12553_v11 = vpop.f32.mrb[134].mxu0  ;;  %v6168_v1 = vld [vmem:[#allocation3 + $0x5d8] sm:$0xff] }
 0x751   : > { %13759 = vst [vmem:[#allocation71_spill] sm:$0xff] %v12553_v11  ;;  %8704 = vmatprep.mubr.bf16.mxu1 %v6127_v47  ;;  %v6572_v8 = vpop.f32.mrb[135].mxu0  ;;  %v6136_v11 = vld [vmem:[#allocation3 + $0x4d8] sm:$0xff]  ;;  %v6139_v47 = vld [vmem:[#allocation3 + $0x4f0] sm:$0xff] }
 0x753   : > { %6782 = vmatmul.mubr.bf16.gmra.mrb[240].mxu0 %v6161_v34 }
 0x754   : > { %6789 = vmatprep.mubr.bf16.mxu0 %v6165_v28  ;;  %v6167_v28 = vld [vmem:[#allocation3 + $0x5d0] sm:$0xff] }
 0x756   : > { %v12555_v7 = vpop.f32.mrb[136].mxu0 }
 0x757   : > { %13760 = vst [vmem:[#allocation72_spill] sm:$0xff] %v12555_v7  ;;  %v6577_v19 = vpop.f32.mrb[137].mxu0 }
 0x758   : > { %8705 = vmatmul.mubr.bf16.gmra.mrb[192].mxu1 %v6130_v49  ;;  %v12557_v63 = vpop.f32.mrb[138].mxu0  ;;  %v6171_v19 = vld [vmem:[#allocation3 + $0x5f0] sm:$0xff] }
 0x759   : > { %13761 = vst [vmem:[#allocation73_spill] sm:$0xff] %v12557_v63  ;;  %8708 = vmatprep.mubr.bf16.mxu1 %v6133_v60  ;;  %v6580_v10 = vpop.f32.mrb[139].mxu0  ;;  %v6142_v63 = vld [vmem:[#allocation3 + $0x508] sm:$0xff]  ;;  %v6145_v60 = vld [vmem:[#allocation3 + $0x520] sm:$0xff] }
 0x75b   : > { %6790 = vmatmul.mubr.bf16.gmra.mrb[244].mxu0 %v6164_v17 }
 0x75c   : > { %6797 = vmatprep.mubr.bf16.mxu0 %v6168_v1  ;;  %v6170_v1 = vld [vmem:[#allocation3 + $0x5e8] sm:$0xff] }
 0x75e   : > { %v12559_v6 = vpop.f32.mrb[140].mxu0 }
 0x75f   : > { %13762 = vst [vmem:[#allocation74_spill] sm:$0xff] %v12559_v6  ;;  %v6585_v34 = vpop.f32.mrb[141].mxu0 }
 0x760   : > { %8709 = vmatmul.mubr.bf16.gmra.mrb[196].mxu1 %v6136_v11  ;;  %v12561_v8 = vpop.f32.mrb[142].mxu0  ;;  %v6174_v34 = vld [vmem:[#allocation3 + $0x608] sm:$0xff] }
 0x761   : > { %13763 = vst [vmem:[#allocation75_spill] sm:$0xff] %v12561_v8  ;;  %8712 = vmatprep.mubr.bf16.mxu1 %v6139_v47  ;;  %v6588_v49 = vpop.f32.mrb[143].mxu0 }
 0x762   : > { %v6148_v49 = vld [vmem:[#allocation3 + $0x538] sm:$0xff] }
 0x763   : > { %6798 = vmatmul.mubr.bf16.gmra.mrb[248].mxu0 %v6167_v28 }
 0x764   : > { %6805 = vmatprep.mubr.bf16.mxu0 %v6171_v19 }
 0x766   : > { %v12563_v7 = vpop.f32.mrb[144].mxu0 }
 0x767   : > { %v6593_v17 = vpop.f32.mrb[145].mxu0 }
 0x768   : > { %8713 = vmatmul.mubr.bf16.gmra.mrb[200].mxu1 %v6142_v63  ;;  %v12565_v10 = vpop.f32.mrb[146].mxu0  ;;  %v6151_v17 = vld [vmem:[#allocation3 + $0x550] sm:$0xff] }
 0x769   : > { %8716 = vmatprep.mubr.bf16.mxu1 %v6145_v60  ;;  %v6596_v11 = vpop.f32.mrb[147].mxu0 }
 0x76b   : > { %v8610_v6 = vpop.f32.mrb[96].mxu1  ;;  %6806 = vmatmul.mubr.bf16.gmra.mrb[252].mxu0 %v6170_v1 }
 0x76c   : > { %v7113_v47 = vadd.f32 %v8610_v6, %v12260_v20  ;;  %v7104_v8 = vpop.f32.mrb[97].mxu1  ;;  %6813 = vmatprep.mubr.bf16.mxu0 %v6174_v34  ;;  %v6173_v6 = vld [vmem:[#allocation3 + $0x600] sm:$0xff] }
 0x76d   : > { %v7105_v28 = vadd.f32 %v7104_v8, %v12244_v0  ;;  %v8611_v19 = vpop.f32.mrb[98].mxu1  ;;  %v6177_v8 = vld [vmem:[#allocation3 + $0x620] sm:$0xff] }
 0x76e   : > { %7873 = vst.msk [vmem:[%s13642_s7 + $0x10] sm:$0xff] %vm4463_vm1, %v7113_v47  ;;  %v7116_v63 = vadd.f32 %v8611_v19, %v12264_v38  ;;  %v7107_v60 = vpop.f32.mrb[99].mxu1  ;;  %v12574_v11 = vpop.f32.mrb[148].mxu0 }
 0x76f   : > { %7871 = vst.msk [vmem:[%s13642_s7] sm:$0xff] %vm4463_vm1, %v7105_v28  ;;  %v7108_v0 = vadd.f32 %v7107_v60, %v12252_v53  ;;  %v6601_v20 = vpop.f32.mrb[149].mxu0 }
 0x770   : > { %7874 = vst.msk [vmem:[%s13642_s7 + $0x18] sm:$0xff] %vm4463_vm1, %v7116_v63  ;;  %8717 = vmatmul.mubr.bf16.gmra.mrb[204].mxu1 %v6148_v49  ;;  %v12585_v38 = vpop.f32.mrb[150].mxu0  ;;  %v6154_v49 = vld [vmem:[#allocation3 + $0x568] sm:$0xff]  ;;  %v6176_v20 = vld [vmem:[#allocation3 + $0x618] sm:$0xff] }
 0x771   : > { %7872 = vst.msk [vmem:[%s13642_s7 + $0x8] sm:$0xff] %vm4463_vm1, %v7108_v0  ;;  %8720 = vmatprep.mubr.bf16.mxu1 %v6151_v17  ;;  %v6604_v1 = vpop.f32.mrb[151].mxu0  ;;  %v6157_v17 = vld [vmem:[#allocation3 + $0x580] sm:$0xff] }
 0x773   : > { %v8614_v34 = vpop.f32.mrb[100].mxu1  ;;  %6814 = vmatmul.mubr.bf16.gmra.mrb[0].mxu0 %v6173_v6  ;;  %v6180_v6 = vld [vmem:[#allocation3 + $0x638] sm:$0xff] }
 0x774   : > { %v7129_v53 = vadd.f32 %v8614_v34, %v12288_v55  ;;  %v7120_v47 = vpop.f32.mrb[101].mxu1  ;;  %6821 = vmatprep.mubr.bf16.mxu0 %v6177_v8 }
 0x775   : > { %v7121_v28 = vadd.f32 %v7120_v47, %v12270_v56  ;;  %v8615_v19 = vpop.f32.mrb[102].mxu1 }
 0x776   : > { %7877 = vst.msk [vmem:[%s13642_s7 + $0x30] sm:$0xff] %vm4463_vm1, %v7129_v53  ;;  %v7132_v63 = vadd.f32 %v8615_v19, %v12299_v44  ;;  %v7123_v60 = vpop.f32.mrb[103].mxu1  ;;  %v12598_v0 = vpop.f32.mrb[152].mxu0 }
 0x777   : > { %7875 = vst.msk [vmem:[%s13642_s7 + $0x20] sm:$0xff] %vm4463_vm1, %v7121_v28  ;;  %v7124_v56 = vadd.f32 %v7123_v60, %v12281_v32  ;;  %v6609_v55 = vpop.f32.mrb[153].mxu0  ;;  %v6160_v28 = vld [vmem:[#allocation3 + $0x598] sm:$0xff] }
 0x778   : > { %7878 = vst.msk [vmem:[%s13642_s7 + $0x38] sm:$0xff] %vm4463_vm1, %v7132_v63  ;;  %8721 = vmatmul.mubr.bf16.gmra.mrb[208].mxu1 %v6154_v49  ;;  %v12609_v44 = vpop.f32.mrb[154].mxu0  ;;  %v6163_v63 = vld [vmem:[#allocation3 + $0x5b0] sm:$0xff] }
 0x779   : > { %7876 = vst.msk [vmem:[%s13642_s7 + $0x28] sm:$0xff] %vm4463_vm1, %v7124_v56  ;;  %8724 = vmatprep.mubr.bf16.mxu1 %v6157_v17  ;;  %v6612_v8 = vpop.f32.mrb[155].mxu0  ;;  %v6179_v17 = vld [vmem:[#allocation3 + $0x630] sm:$0xff] }
 0x77a   : > { %v6183_v56 = vld [vmem:[#allocation3 + $0x650] sm:$0xff] }
 0x77b   : > { %v8618_v1 = vpop.f32.mrb[104].mxu1  ;;  %6822 = vmatmul.mubr.bf16.gmra.mrb[4].mxu0 %v6176_v20 }
 0x77c   : > { %v7145_v32 = vadd.f32 %v8618_v1, %v12324_v36  ;;  %v7136_v34 = vpop.f32.mrb[105].mxu1  ;;  %6829 = vmatprep.mubr.bf16.mxu0 %v6180_v6 }
 0x77d   : > { %v7137_v53 = vadd.f32 %v7136_v34, %v12306_v18  ;;  %v8619_v47 = vpop.f32.mrb[106].mxu1 }
 0x77e   : > { %7881 = vst.msk [vmem:[%s13642_s7 + $0x50] sm:$0xff] %vm4463_vm1, %v7145_v32  ;;  %v7148_v19 = vadd.f32 %v8619_v47, %v12335_v31  ;;  %v7139_v49 = vpop.f32.mrb[107].mxu1  ;;  %v12622_v60 = vpop.f32.mrb[156].mxu0  ;;  %v6166_v32 = vld [vmem:[#allocation3 + $0x5c8] sm:$0xff]  ;;  %v6169_v47 = vld [vmem:[#allocation3 + $0x5e0] sm:$0xff] }
 0x77f   : > { %7879 = vst.msk [vmem:[%s13642_s7 + $0x40] sm:$0xff] %vm4463_vm1, %v7137_v53  ;;  %v7140_v18 = vadd.f32 %v7139_v49, %v12317_v14  ;;  %v6617_v36 = vpop.f32.mrb[157].mxu0  ;;  %v6186_v49 = vld [vmem:[#allocation3 + $0x668] sm:$0xff] }
 0x780   : > { %7882 = vst.msk [vmem:[%s13642_s7 + $0x58] sm:$0xff] %vm4463_vm1, %v7148_v19  ;;  %8725 = vmatmul.mubr.bf16.gmra.mrb[212].mxu1 %v6160_v28  ;;  %v12633_v31 = vpop.f32.mrb[158].mxu0  ;;  %v6182_v19 = vld [vmem:[#allocation3 + $0x648] sm:$0xff] }
 0x781   : > { %7880 = vst.msk [vmem:[%s13642_s7 + $0x48] sm:$0xff] %vm4463_vm1, %v7140_v18  ;;  %8728 = vmatprep.mubr.bf16.mxu1 %v6163_v63  ;;  %v6620_v55 = vpop.f32.mrb[159].mxu0 }
 0x782   : > { %v6172_v55 = vld [vmem:[#allocation3 + $0x5f8] sm:$0xff] }
 0x783   : > { %v8622_v20 = vpop.f32.mrb[108].mxu1  ;;  %6830 = vmatmul.mubr.bf16.gmra.mrb[8].mxu0 %v6179_v17 }
 0x784   : > { %v7161_v14 = vadd.f32 %v8622_v20, %v12359_v37  ;;  %v7152_v6 = vpop.f32.mrb[109].mxu1  ;;  %6837 = vmatprep.mubr.bf16.mxu0 %v6183_v56 }
 0x785   : > { %v7153_v8 = vadd.f32 %v7152_v6, %v12342_v42  ;;  %v8623_v1 = vpop.f32.mrb[110].mxu1  ;;  %v6175_v6 = vld [vmem:[#allocation3 + $0x610] sm:$0xff] }
 0x786   : > { %7885 = vst.msk [vmem:[%s13642_s7 + $0x70] sm:$0xff] %vm4463_vm1, %v7161_v14  ;;  %v7164_v34 = vadd.f32 %v8623_v1, %v12369_v50  ;;  %v7155_v53 = vpop.f32.mrb[111].mxu1  ;;  %v12646_v28 = vpop.f32.mrb[160].mxu0  ;;  %v6185_v1 = vld [vmem:[#allocation3 + $0x660] sm:$0xff] }
 0x787   : > { %7883 = vst.msk [vmem:[%s13642_s7 + $0x60] sm:$0xff] %vm4463_vm1, %v7153_v8  ;;  %v7156_v42 = vadd.f32 %v7155_v53, %v12353_v4  ;;  %v6625_v37 = vpop.f32.mrb[161].mxu0 }
 0x788   : > { %7886 = vst.msk [vmem:[%s13642_s7 + $0x78] sm:$0xff] %vm4463_vm1, %v7164_v34  ;;  %8729 = vmatmul.mubr.bf16.gmra.mrb[216].mxu1 %v6166_v32  ;;  %v12657_v50 = vpop.f32.mrb[162].mxu0  ;;  %v6189_v32 = vld [vmem:[#allocation3 + $0x680] sm:$0xff] }
 0x789   : > { %7884 = vst.msk [vmem:[%s13642_s7 + $0x68] sm:$0xff] %vm4463_vm1, %v7156_v42  ;;  %8732 = vmatprep.mubr.bf16.mxu1 %v6169_v47  ;;  %v6628_v63 = vpop.f32.mrb[163].mxu0 }
 0x78b   : > { %v8626_v18 = vpop.f32.mrb[112].mxu1  ;;  %6838 = vmatmul.mubr.bf16.gmra.mrb[12].mxu0 %v6182_v19  ;;  %v6178_v19 = vld [vmem:[#allocation3 + $0x628] sm:$0xff] }
 0x78c   : > { %v7177_v4 = vadd.f32 %v8626_v18, %v12391_v43  ;;  %v7168_v36 = vpop.f32.mrb[113].mxu1  ;;  %6845 = vmatprep.mubr.bf16.mxu0 %v6186_v49  ;;  %v6181_v18 = vld [vmem:[#allocation3 + $0x640] sm:$0xff] }
 0x78d   : > { %v7169_v17 = vadd.f32 %v7168_v36, %v12375_v26  ;;  %v8627_v56 = vpop.f32.mrb[114].mxu1  ;;  %v6188_v36 = vld [vmem:[#allocation3 + $0x678] sm:$0xff] }
 0x78e   : > { %7889 = vst.msk [vmem:[%s13642_s7 + $0x90] sm:$0xff] %vm4463_vm1, %v7177_v4  ;;  %v7180_v20 = vadd.f32 %v8627_v56, %v12401_v61  ;;  %v7171_v14 = vpop.f32.mrb[115].mxu1  ;;  %v12670_v8 = vpop.f32.mrb[164].mxu0 }
 0x78f   : > { %7887 = vst.msk [vmem:[%s13642_s7 + $0x80] sm:$0xff] %vm4463_vm1, %v7169_v17  ;;  %v7172_v26 = vadd.f32 %v7171_v14, %v12385_v30  ;;  %v6633_v43 = vpop.f32.mrb[165].mxu0  ;;  %v6192_v17 = vld [vmem:[#allocation3 + $0x698] sm:$0xff] }
 0x790   : > { %7890 = vst.msk [vmem:[%s13642_s7 + $0x98] sm:$0xff] %vm4463_vm1, %v7180_v20  ;;  %8733 = vmatmul.mubr.bf16.gmra.mrb[220].mxu1 %v6172_v55  ;;  %v12681_v61 = vpop.f32.mrb[166].mxu0 }
 0x791   : > { %7888 = vst.msk [vmem:[%s13642_s7 + $0x88] sm:$0xff] %vm4463_vm1, %v7172_v26  ;;  %8736 = vmatprep.mubr.bf16.mxu1 %v6175_v6  ;;  %v6636_v34 = vpop.f32.mrb[167].mxu0  ;;  %v6184_v26 = vld [vmem:[#allocation3 + $0x658] sm:$0xff] }
 0x793   : > { %v8630_v53 = vpop.f32.mrb[116].mxu1  ;;  %6846 = vmatmul.mubr.bf16.gmra.mrb[16].mxu0 %v6185_v1 }
 0x794   : > { %v7193_v30 = vadd.f32 %v8630_v53, %v12413_v29  ;;  %v7184_v47 = vpop.f32.mrb[117].mxu1  ;;  %6853 = vmatprep.mubr.bf16.mxu0 %v6189_v32  ;;  %v6187_v32 = vld [vmem:[#allocation3 + $0x670] sm:$0xff] }
 0x795   : > { %v7185_v42 = vadd.f32 %v7184_v47, %v12405_v59  ;;  %v8631_v37 = vpop.f32.mrb[118].mxu1  ;;  %v6191_v53 = vld [vmem:[#allocation3 + $0x690] sm:$0xff] }
 0x796   : > { %7893 = vst.msk [vmem:[%s13642_s7 + $0xb0] sm:$0xff] %vm4463_vm1, %v7193_v30  ;;  %v7196_v49 = vadd.f32 %v8631_v37, %v12417_v21  ;;  %v7187_v63 = vpop.f32.mrb[119].mxu1  ;;  %v12694_v4 = vpop.f32.mrb[168].mxu0  ;;  %v6195_v30 = vld [vmem:[#allocation3 + $0x6b0] sm:$0xff] }
 0x797   : > { %7891 = vst.msk [vmem:[%s13642_s7 + $0xa0] sm:$0xff] %vm4463_vm1, %v7185_v42  ;;  %v7188_v59 = vadd.f32 %v7187_v63, %v12409_v5  ;;  %v6641_v29 = vpop.f32.mrb[169].mxu0  ;;  %v6190_v63 = vld [vmem:[#allocation3 + $0x688] sm:$0xff] }
 0x798   : > { %7894 = vst.msk [vmem:[%s13642_s7 + $0xb8] sm:$0xff] %vm4463_vm1, %v7196_v49  ;;  %8737 = vmatmul.mubr.bf16.gmra.mrb[224].mxu1 %v6178_v19  ;;  %v12705_v21 = vpop.f32.mrb[170].mxu0  ;;  %v6193_v29 = vld [vmem:[#allocation3 + $0x6a0] sm:$0xff] }
 0x799   : > { %7892 = vst.msk [vmem:[%s13642_s7 + $0xa8] sm:$0xff] %vm4463_vm1, %v7188_v59  ;;  %8740 = vmatprep.mubr.bf16.mxu1 %v6181_v18  ;;  %v6644_v56 = vpop.f32.mrb[171].mxu0 }
 0x79b   : > { %v8634_v55 = vpop.f32.mrb[120].mxu1  ;;  %6854 = vmatmul.mubr.bf16.gmra.mrb[20].mxu0 %v6188_v36 }
 0x79c   : > { %v7209_v5 = vadd.f32 %v8634_v55, %v12431_v48  ;;  %v7200_v20 = vpop.f32.mrb[121].mxu1  ;;  %6861 = vmatprep.mubr.bf16.mxu0 %v6192_v17  ;;  %v6194_v17 = vld [vmem:[#allocation3 + $0x6a8] sm:$0xff] }
 0x79d   : > { %v7201_v14 = vadd.f32 %v7200_v20, %v12423_v46  ;;  %v8635_v6 = vpop.f32.mrb[122].mxu1 }
 0x79e   : > { %7897 = vst.msk [vmem:[%s13642_s7 + $0xd0] sm:$0xff] %vm4463_vm1, %v7209_v5  ;;  %v7212_v43 = vadd.f32 %v8635_v6, %v12433_v57  ;;  %v7203_v1 = vpop.f32.mrb[123].mxu1  ;;  %v12718_v34 = vpop.f32.mrb[172].mxu0  ;;  %v6196_v6 = vld [vmem:[#allocation3 + $0x6b8] sm:$0xff] }
 0x79f   : > { %7895 = vst.msk [vmem:[%s13642_s7 + $0xc0] sm:$0xff] %vm4463_vm1, %v7201_v14  ;;  %v7204_v48 = vadd.f32 %v7203_v1, %v12425_v25  ;;  %v6649_v46 = vpop.f32.mrb[173].mxu0 }
 0x7a0   : > { %7898 = vst.msk [vmem:[%s13642_s7 + $0xd8] sm:$0xff] %vm4463_vm1, %v7212_v43  ;;  %8741 = vmatmul.mubr.bf16.gmra.mrb[228].mxu1 %v6184_v26  ;;  %v12729_v57 = vpop.f32.mrb[174].mxu0  ;;  %v6199_v43 = vld [vmem:[#allocation3 + $0x6d0] sm:$0xff] }
 0x7a1   : > { %7896 = vst.msk [vmem:[%s13642_s7 + $0xc8] sm:$0xff] %vm4463_vm1, %v7204_v48  ;;  %8744 = vmatprep.mubr.bf16.mxu1 %v6187_v32  ;;  %v6652_v47 = vpop.f32.mrb[175].mxu0 }
 0x7a3   : > { %v8638_v42 = vpop.f32.mrb[124].mxu1  ;;  %6862 = vmatmul.mubr.bf16.gmra.mrb[24].mxu0 %v6191_v53 }
 0x7a4   : > { %v7216_v25 = vpop.f32.mrb[125].mxu1  ;;  %v7225_v37 = vadd.f32 %v8638_v42, %v12447_v58  ;;  %6869 = vmatprep.mubr.bf16.mxu0 %v6195_v30  ;;  %v6202_v30 = vld [vmem:[#allocation3 + $0x6e8] sm:$0xff] }
 0x7a5   : > { %v7217_v19 = vadd.f32 %v7216_v25, %v12439_v3  ;;  %v8639_v49 = vpop.f32.mrb[126].mxu1  ;;  %v6205_v25 = vld [vmem:[#allocation3 + $0x700] sm:$0xff] }
 0x7a6   : > { %7901 = vst.msk [vmem:[%s13642_s7 + $0xf0] sm:$0xff] %vm4463_vm1, %v7225_v37  ;;  %v7219_v18 = vpop.f32.mrb[127].mxu1  ;;  %v7228_v59 = vadd.f32 %v8639_v49, %v12449_v52  ;;  %v12742_v36 = vpop.f32.mrb[176].mxu0 }
 0x7a7   : > { %7899 = vst.msk [vmem:[%s13642_s7 + $0xe0] sm:$0xff] %vm4463_vm1, %v7217_v19  ;;  %v7220_v58 = vadd.f32 %v7219_v18, %v12441_v41  ;;  %v6657_v3 = vpop.f32.mrb[177].mxu0 }
 0x7a8   : > { %7902 = vst.msk [vmem:[%s13642_s7 + $0xf8] sm:$0xff] %vm4463_vm1, %v7228_v59  ;;  %8745 = vmatmul.mubr.bf16.gmra.mrb[232].mxu1 %v6190_v63  ;;  %v12753_v56 = vpop.f32.mrb[178].mxu0 }
 0x7a9   : > { %7900 = vst.msk [vmem:[%s13642_s7 + $0xe8] sm:$0xff] %vm4463_vm1, %v7220_v58  ;;  %8748 = vmatprep.mubr.bf16.mxu1 %v6193_v29  ;;  %v6660_v52 = vpop.f32.mrb[179].mxu0  ;;  %v6208_v29 = vld [vmem:[#allocation3 + $0x718] sm:$0xff] }
 0x7ab   : > { %v8642_v55 = vpop.f32.mrb[128].mxu1  ;;  %6870 = vmatmul.mubr.bf16.gmra.mrb[28].mxu0 %v6194_v17  ;;  %v6211_v17 = vld [vmem:[#allocation3 + $0x730] sm:$0xff] }
 0x7ac   : > { %v7232_v41 = vpop.f32.mrb[129].mxu1  ;;  %v7241_v5 = vadd.f32 %v8642_v55, %v12463_v40 }
 0x7ad   : > { %v7233_v20 = vadd.f32 %v7232_v41, %v12455_v35  ;;  %v8643_v14 = vpop.f32.mrb[130].mxu1 }
 0x7ae   : > { %v7235_v26 = vpop.f32.mrb[131].mxu1  ;;  %7905 = vst.msk [vmem:[%s13642_s7 + $0x110] sm:$0xff] %vm4463_vm1, %v7241_v5  ;;  %v7244_v1 = vadd.f32 %v8643_v14, %v12465_v54  ;;  %v12766_v32 = vpop.f32.mrb[180].mxu0 }
 0x7af   : > { %7903 = vst.msk [vmem:[%s13642_s7 + $0x100] sm:$0xff] %vm4463_vm1, %v7233_v20  ;;  %v7236_v40 = vadd.f32 %v7235_v26, %v12457_v9  ;;  %v6665_v35 = vpop.f32.mrb[181].mxu0 }
 0x7b0   : > { %8749 = vmatmul.mubr.bf16.gmra.mrb[236].mxu1 %v6196_v6  ;;  %7906 = vst.msk [vmem:[%s13642_s7 + $0x118] sm:$0xff] %vm4463_vm1, %v7244_v1  ;;  %v12777_v48 = vpop.f32.mrb[182].mxu0  ;;  %v6214_v6 = vld [vmem:[#allocation3 + $0x748] sm:$0xff]  ;;  %v6217_v1 = vld [vmem:[#allocation3 + $0x760] sm:$0xff] }
 0x7b1   : > { %7904 = vst.msk [vmem:[%s13642_s7 + $0x108] sm:$0xff] %vm4463_vm1, %v7236_v40  ;;  %8752 = vmatprep.mubr.bf16.mxu1 %v6199_v43  ;;  %v6668_v54 = vpop.f32.mrb[183].mxu0 }
 0x7b3   : > { %v8646_v46 = vpop.f32.mrb[132].mxu1 }
 0x7b4   : > { %v7248_v53 = vpop.f32.mrb[133].mxu1  ;;  %v7257_v9 = vadd.f32 %v8646_v46, %v12479_v22 }
 0x7b5   : > { %v7249_v47 = vadd.f32 %v7248_v53, %v12471_v27  ;;  %v8647_v42 = vpop.f32.mrb[134].mxu1 }
 0x7b6   : > { %v7251_v37 = vpop.f32.mrb[135].mxu1  ;;  %7909 = vst.msk [vmem:[%s13642_s7 + $0x130] sm:$0xff] %vm4463_vm1, %v7257_v9  ;;  %v7260_v19 = vadd.f32 %v8647_v42, %v12481_v16  ;;  %v12790_v49 = vpop.f32.mrb[184].mxu0 }
 0x7b7   : > { %7907 = vst.msk [vmem:[%s13642_s7 + $0x120] sm:$0xff] %vm4463_vm1, %v7249_v47  ;;  %v7252_v22 = vadd.f32 %v7251_v37, %v12473_v33  ;;  %v6673_v27 = vpop.f32.mrb[185].mxu0 }
 0x7b8   : > { %8753 = vmatmul.mubr.bf16.gmra.mrb[240].mxu1 %v6202_v30  ;;  %7910 = vst.msk [vmem:[%s13642_s7 + $0x138] sm:$0xff] %vm4463_vm1, %v7260_v19  ;;  %v12801_v63 = vpop.f32.mrb[186].mxu0  ;;  %v6220_v30 = vld [vmem:[#allocation3 + $0x778] sm:$0xff]  ;;  %v13764_v19 = vld [vmem:[#allocation55_spill] sm:$0xff] }
 0x7b9   : > { %8756 = vmatprep.mubr.bf16.mxu1 %v6205_v25  ;;  %7908 = vst.msk [vmem:[%s13642_s7 + $0x128] sm:$0xff] %vm4463_vm1, %v7252_v22  ;;  %v6676_v16 = vpop.f32.mrb[187].mxu0  ;;  %v6223_v25 = vld [vmem:[#allocation3 + $0x790] sm:$0xff] }
 0x7bb   : > { %v8650_v18 = vpop.f32.mrb[136].mxu1 }
 0x7bc   : > { %v7264_v59 = vpop.f32.mrb[137].mxu1  ;;  %v7273_v33 = vadd.f32 %v8650_v18, %v12495_v24 }
 0x7bd   : > { %v7265_v58 = vadd.f32 %v7264_v59, %v12487_v23  ;;  %v8651_v3 = vpop.f32.mrb[138].mxu1 }
 0x7be   : > { %v7267_v52 = vpop.f32.mrb[139].mxu1  ;;  %7913 = vst.msk [vmem:[%s13642_s7 + $0x150] sm:$0xff] %vm4463_vm1, %v7273_v33  ;;  %v7276_v55 = vadd.f32 %v8651_v3, %v12497_v51  ;;  %v12814_v41 = vpop.f32.mrb[188].mxu0 }
 0x7bf   : > { %7911 = vst.msk [vmem:[%s13642_s7 + $0x140] sm:$0xff] %vm4463_vm1, %v7265_v58  ;;  %v7268_v24 = vadd.f32 %v7267_v52, %v12489_v13  ;;  %v6681_v23 = vpop.f32.mrb[189].mxu0  ;;  %v13766_v58 = vld [vmem:[#allocation58_spill] sm:$0xff]  ;;  %v13767_v52 = vld [vmem:[#allocation56_spill] sm:$0xff] }
 0x7c0   : > { %8757 = vmatmul.mubr.bf16.gmra.mrb[244].mxu1 %v6208_v29  ;;  %7914 = vst.msk [vmem:[%s13642_s7 + $0x158] sm:$0xff] %vm4463_vm1, %v7276_v55  ;;  %v12825_v5 = vpop.f32.mrb[190].mxu0  ;;  %v6229_v23 = vld [vmem:[#allocation3 + $0x7c0] sm:$0xff] }
 0x7c1   : > { %8760 = vmatprep.mubr.bf16.mxu1 %v6211_v17  ;;  %7912 = vst.msk [vmem:[%s13642_s7 + $0x148] sm:$0xff] %vm4463_vm1, %v7268_v24  ;;  %v6684_v51 = vpop.f32.mrb[191].mxu0  ;;  %v6226_v17 = vld [vmem:[#allocation3 + $0x7a8] sm:$0xff] }
 0x7c3   : > { %v8654_v20 = vpop.f32.mrb[140].mxu1 }
 0x7c4   : > { %v7280_v14 = vpop.f32.mrb[141].mxu1  ;;  %v7289_v13 = vadd.f32 %v8654_v20, %v12511_v12  ;;  %v13768_v20 = vld [vmem:[#allocation59_spill] sm:$0xff] }
 0x7c5   : > { %v7281_v26 = vadd.f32 %v7280_v14, %v12503_v45  ;;  %v8655_v43 = vpop.f32.mrb[142].mxu1 }
 0x7c6   : > { %v7283_v40 = vpop.f32.mrb[143].mxu1  ;;  %7917 = vst.msk [vmem:[%s13642_s7 + $0x170] sm:$0xff] %vm4463_vm1, %v7289_v13  ;;  %v7292_v35 = vadd.f32 %v8655_v43, %v12513_v2  ;;  %v12838_v54 = vpop.f32.mrb[192].mxu0 }
 0x7c7   : > { %7915 = vst.msk [vmem:[%s13642_s7 + $0x160] sm:$0xff] %vm4463_vm1, %v7281_v26  ;;  %v7284_v12 = vadd.f32 %v7283_v40, %v12505_v39  ;;  %v6689_v45 = vpop.f32.mrb[193].mxu0 }
 0x7c8   : > { %8761 = vmatmul.mubr.bf16.gmra.mrb[248].mxu1 %v6214_v6  ;;  %7918 = vst.msk [vmem:[%s13642_s7 + $0x178] sm:$0xff] %vm4463_vm1, %v7292_v35  ;;  %v12849_v46 = vpop.f32.mrb[194].mxu0  ;;  %v13769_v6 = vld [vmem:[#allocation57_spill] sm:$0xff]  ;;  %v13770_v45 = vld [vmem:[#allocation62_spill] sm:$0xff] }
 0x7c9   : > { %8764 = vmatprep.mubr.bf16.mxu1 %v6217_v1  ;;  %7916 = vst.msk [vmem:[%s13642_s7 + $0x168] sm:$0xff] %vm4463_vm1, %v7284_v12  ;;  %v6692_v2 = vpop.f32.mrb[195].mxu0 }
 0x7cb   : > { %v8658_v53 = vpop.f32.mrb[144].mxu1 }
 0x7cc   : > { %v7296_v9 = vpop.f32.mrb[145].mxu1  ;;  %v7305_v39 = vadd.f32 %v8658_v53, %v12519_v15  ;;  %v13765_v15 = vld [vmem:[#allocation54_spill] sm:$0xff]  ;;  %v6232_v53 = vld [vmem:[#allocation3 + $0x7d8] sm:$0xff] }
 0x7cd   : > { %v7297_v47 = vadd.f32 %v7296_v9, %v12515_v62  ;;  %v8659_v42 = vpop.f32.mrb[146].mxu1  ;;  %v13771_v9 = vld [vmem:[#allocation60_spill] sm:$0xff] }
 0x7ce   : > { %v7299_v37 = vpop.f32.mrb[147].mxu1  ;;  %7921 = vst.msk [vmem:[%s13642_s7 + $0x190] sm:$0xff] %vm4463_vm1, %v7305_v39  ;;  %v7308_v22 = vadd.f32 %v8659_v42, %v13764_v19  ;;  %v12862_v27 = vpop.f32.mrb[196].mxu0 }
 0x7cf   : > { %7919 = vst.msk [vmem:[%s13642_s7 + $0x180] sm:$0xff] %vm4463_vm1, %v7297_v47  ;;  %v7300_v16 = vadd.f32 %v7299_v37, %v13765_v15  ;;  %v6697_v62 = vpop.f32.mrb[197].mxu0  ;;  %v6235_v47 = vld [vmem:[#allocation3 + $0x7f0] sm:$0xff] }
 0x7d0   : > { %8765 = vmatmul.mubr.bf16.gmra.mrb[252].mxu1 %v6220_v30  ;;  %7922 = vst.msk [vmem:[%s13642_s7 + $0x198] sm:$0xff] %vm4463_vm1, %v7308_v22  ;;  %v12873_v18 = vpop.f32.mrb[198].mxu0  ;;  %v13773_v22 = vld [vmem:[#allocation61_spill] sm:$0xff] }
 0x7d1   : > { %8768 = vmatprep.mubr.bf16.mxu1 %v6223_v25  ;;  %7920 = vst.msk [vmem:[%s13642_s7 + $0x188] sm:$0xff] %vm4463_vm1, %v7300_v16  ;;  %v6700_v59 = vpop.f32.mrb[199].mxu0  ;;  %v13772_v25 = vld [vmem:[#allocation63_spill] sm:$0xff] }
 0x7d3   : > { %v8662_v33 = vpop.f32.mrb[148].mxu1 }
 0x7d4   : > { %v7312_v29 = vpop.f32.mrb[149].mxu1  ;;  %v7321_v3 = vadd.f32 %v8662_v33, %v13766_v58  ;;  %v13774_v58 = vld [vmem:[#allocation66_spill] sm:$0xff] }
 0x7d5   : > { %v7313_v55 = vadd.f32 %v7312_v29, %v13767_v52  ;;  %v8663_v24 = vpop.f32.mrb[150].mxu1  ;;  %v13775_v52 = vld [vmem:[#allocation64_spill] sm:$0xff] }
 0x7d6   : > { %v7315_v51 = vpop.f32.mrb[151].mxu1  ;;  %7925 = vst.msk [vmem:[%s13642_s7 + $0x1b0] sm:$0xff] %vm4463_vm1, %v7321_v3  ;;  %v7324_v14 = vadd.f32 %v8663_v24, %v13768_v20  ;;  %v12886_v13 = vpop.f32.mrb[200].mxu0  ;;  %v13776_v20 = vld [vmem:[#allocation67_spill] sm:$0xff] }
 0x7d7   : > { %7923 = vst.msk [vmem:[%s13642_s7 + $0x1a0] sm:$0xff] %vm4463_vm1, %v7313_v55  ;;  %v7316_v26 = vadd.f32 %v7315_v51, %v13769_v6  ;;  %v6705_v43 = vpop.f32.mrb[201].mxu0 }
 0x7d8   : > { %8769 = vmatmul.mubr.bf16.gmra.mrb[0].mxu1 %v6226_v17  ;;  %7926 = vst.msk [vmem:[%s13642_s7 + $0x1b8] sm:$0xff] %vm4463_vm1, %v7324_v14  ;;  %v12897_v1 = vpop.f32.mrb[202].mxu0  ;;  %v6238_v17 = vld [vmem:[#allocation3 + $0x808] sm:$0xff] }
 0x7d9   : > { %8772 = vmatprep.mubr.bf16.mxu1 %v6229_v23  ;;  %7924 = vst.msk [vmem:[%s13642_s7 + $0x1a8] sm:$0xff] %vm4463_vm1, %v7316_v26  ;;  %v6708_v40 = vpop.f32.mrb[203].mxu0  ;;  %v6241_v23 = vld [vmem:[#allocation3 + $0x820] sm:$0xff] }
 0x7da   : > { %v13777_v26 = vld [vmem:[#allocation65_spill] sm:$0xff] }
 0x7db   : > { %v8666_v35 = vpop.f32.mrb[152].mxu1 }
 0x7dc   : > { %v7328_v12 = vpop.f32.mrb[153].mxu1  ;;  %v7337_v2 = vadd.f32 %v8666_v35, %v13770_v45 }
 0x7dd   : > { %v7329_v39 = vadd.f32 %v7328_v12, %v13771_v9  ;;  %v8667_v30 = vpop.f32.mrb[154].mxu1 }
 0x7de   : > { %v7331_v42 = vpop.f32.mrb[155].mxu1  ;;  %7929 = vst.msk [vmem:[%s13642_s7 + $0x1d0] sm:$0xff] %vm4463_vm1, %v7337_v2  ;;  %v7340_v37 = vadd.f32 %v8667_v30, %v13772_v25  ;;  %v12910_v19 = vpop.f32.mrb[204].mxu0  ;;  %v13779_v30 = vld [vmem:[#allocation68_spill] sm:$0xff]  ;;  %v6247_v25 = vld [vmem:[#allocation3 + $0x850] sm:$0xff] }
 0x7df   : > { %7927 = vst.msk [vmem:[%s13642_s7 + $0x1c0] sm:$0xff] %vm4463_vm1, %v7329_v39  ;;  %v7332_v15 = vadd.f32 %v7331_v42, %v13773_v22  ;;  %v6713_v16 = vpop.f32.mrb[205].mxu0  ;;  %v6244_v39 = vld [vmem:[#allocation3 + $0x838] sm:$0xff]  ;;  %v13780_v22 = vld [vmem:[#allocation71_spill] sm:$0xff] }
 0x7e0   : > { %8773 = vmatmul.mubr.bf16.gmra.mrb[4].mxu1 %v6232_v53  ;;  %7930 = vst.msk [vmem:[%s13642_s7 + $0x1d8] sm:$0xff] %vm4463_vm1, %v7340_v37  ;;  %v12921_v62 = vpop.f32.mrb[206].mxu0  ;;  %v13778_v53 = vld [vmem:[#allocation70_spill] sm:$0xff] }
 0x7e1   : > { %8776 = vmatprep.mubr.bf16.mxu1 %v6235_v47  ;;  %7928 = vst.msk [vmem:[%s13642_s7 + $0x1c8] sm:$0xff] %vm4463_vm1, %v7332_v15  ;;  %v6716_v59 = vpop.f32.mrb[207].mxu0 }
 0x7e2   : > { %v13781_v59 = vld [vmem:[#allocation69_spill] sm:$0xff] }
 0x7e3   : > { %v8670_v33 = vpop.f32.mrb[156].mxu1 }
 0x7e4   : > { %v7344_v29 = vpop.f32.mrb[157].mxu1  ;;  %v7353_v3 = vadd.f32 %v8670_v33, %v13774_v58 }
 0x7e5   : > { %v7345_v55 = vadd.f32 %v7344_v29, %v13775_v52  ;;  %v8671_v24 = vpop.f32.mrb[158].mxu1 }
 0x7e6   : > { %v7347_v51 = vpop.f32.mrb[159].mxu1  ;;  %7933 = vst.msk [vmem:[%s13642_s7 + $0x1f0] sm:$0xff] %vm4463_vm1, %v7353_v3  ;;  %v7356_v14 = vadd.f32 %v8671_v24, %v13776_v20  ;;  %v12934_v6 = vpop.f32.mrb[208].mxu0 }
 0x7e7   : > { %7931 = vst.msk [vmem:[%s13642_s7 + $0x1e0] sm:$0xff] %vm4463_vm1, %v7345_v55  ;;  %v7348_v43 = vadd.f32 %v7347_v51, %v13777_v26  ;;  %v6721_v40 = vpop.f32.mrb[209].mxu0  ;;  %v13782_v55 = vld [vmem:[#allocation74_spill] sm:$0xff]  ;;  %v13783_v51 = vld [vmem:[#allocation72_spill] sm:$0xff]  ;;  %v6253_v26 = vld [vmem:[#allocation3 + $0x880] sm:$0xff] }
 0x7e8   : > { %8777 = vmatmul.mubr.bf16.gmra.mrb[8].mxu1 %v6238_v17  ;;  %7934 = vst.msk [vmem:[%s13642_s7 + $0x1f8] sm:$0xff] %vm4463_vm1, %v7356_v14  ;;  %v12945_v35 = vpop.f32.mrb[210].mxu0  ;;  %v13784_v40 = vld [vmem:[#allocation75_spill] sm:$0xff] }
 0x7e9   : > { %8780 = vmatprep.mubr.bf16.mxu1 %v6241_v23  ;;  %7932 = vst.msk [vmem:[%s13642_s7 + $0x1e8] sm:$0xff] %vm4463_vm1, %v7348_v43  ;;  %v6724_v12 = vpop.f32.mrb[211].mxu0  ;;  %v6250_v23 = vld [vmem:[#allocation3 + $0x868] sm:$0xff] }
 0x7eb   : > { %v8674_v45 = vpop.f32.mrb[160].mxu1 }
 0x7ec   : > { %v7360_v2 = vpop.f32.mrb[161].mxu1  ;;  %v7369_v9 = vadd.f32 %v8674_v45, %v13778_v53 }
 0x7ed   : > { %v7361_v47 = vadd.f32 %v7360_v2, %v13779_v30  ;;  %v8675_v42 = vpop.f32.mrb[162].mxu1  ;;  %v13785_v2 = vld [vmem:[#allocation73_spill] sm:$0xff] }
 0x7ee   : > { %v7363_v37 = vpop.f32.mrb[163].mxu1  ;;  %7937 = vst.msk [vmem:[%s13642_s7 + $0x210] sm:$0xff] %vm4463_vm1, %v7369_v9  ;;  %v7372_v15 = vadd.f32 %v8675_v42, %v13780_v22  ;;  %v12958_v16 = vpop.f32.mrb[212].mxu0 }
 0x7ef   : > { %7935 = vst.msk [vmem:[%s13642_s7 + $0x200] sm:$0xff] %vm4463_vm1, %v7361_v47  ;;  %v7364_v33 = vadd.f32 %v7363_v37, %v13781_v59  ;;  %v6729_v29 = vpop.f32.mrb[213].mxu0  ;;  %v6256_v37 = vld [vmem:[#allocation3 + $0x898] sm:$0xff]  ;;  %v6259_v59 = vld [vmem:[#allocation3 + $0x8b0] sm:$0xff] }
 0x7f0   : > { %8781 = vmatmul.mubr.bf16.gmra.mrb[12].mxu1 %v6244_v39  ;;  %7938 = vst.msk [vmem:[%s13642_s7 + $0x218] sm:$0xff] %vm4463_vm1, %v7372_v15  ;;  %v12969_v58 = vpop.f32.mrb[214].mxu0 }
 0x7f1   : > { %8784 = vmatprep.mubr.bf16.mxu1 %v6247_v25  ;;  %7936 = vst.msk [vmem:[%s13642_s7 + $0x208] sm:$0xff] %vm4463_vm1, %v7364_v33  ;;  %v6732_v3 = vpop.f32.mrb[215].mxu0 }
 0x7f3   : > { %v8678_v17 = vpop.f32.mrb[164].mxu1 }
 0x7f4   : > { %v7376_v52 = vpop.f32.mrb[165].mxu1  ;;  %v7385_v24 = vadd.f32 %v8678_v17, %v13782_v55 }
 0x7f5   : > { %v7377_v20 = vadd.f32 %v7376_v52, %v13783_v51  ;;  %v8679_v14 = vpop.f32.mrb[166].mxu1 }
 0x7f6   : > { %v7379_v43 = vpop.f32.mrb[167].mxu1  ;;  %7941 = vst.msk [vmem:[%s13642_s7 + $0x230] sm:$0xff] %vm4463_vm1, %v7385_v24  ;;  %v7388_v12 = vadd.f32 %v8679_v14, %v13784_v40  ;;  %v12982_v45 = vpop.f32.mrb[216].mxu0  ;;  %v6262_v24 = vld [vmem:[#allocation3 + $0x8c8] sm:$0xff] }
 0x7f7   : > { %7939 = vst.msk [vmem:[%s13642_s7 + $0x220] sm:$0xff] %vm4463_vm1, %v7377_v20  ;;  %v7380_v53 = vadd.f32 %v7379_v43, %v13785_v2  ;;  %v6737_v9 = vpop.f32.mrb[217].mxu0  ;;  %v6265_v20 = vld [vmem:[#allocation3 + $0x8e0] sm:$0xff] }
 0x7f8   : > { %8785 = vmatmul.mubr.bf16.gmra.mrb[16].mxu1 %v6250_v23  ;;  %7942 = vst.msk [vmem:[%s13642_s7 + $0x238] sm:$0xff] %vm4463_vm1, %v7388_v12  ;;  %v12993_v39 = vpop.f32.mrb[218].mxu0 }
 0x7f9   : > { %8788 = vmatprep.mubr.bf16.mxu1 %v6253_v26  ;;  %7940 = vst.msk [vmem:[%s13642_s7 + $0x228] sm:$0xff] %vm4463_vm1, %v7380_v53  ;;  %v6740_v30 = vpop.f32.mrb[219].mxu0  ;;  %v6268_v53 = vld [vmem:[#allocation3 + $0x8f8] sm:$0xff] }
 0x7fb   : > { %v8682_v47 = vpop.f32.mrb[168].mxu1 }
 0x7fc   : > { %v7392_v42 = vpop.f32.mrb[169].mxu1  ;;  %v7401_v25 = vadd.f32 %v8682_v47, %v12574_v11 }
 0x7fd   : > { %v8683_v22 = vpop.f32.mrb[170].mxu1  ;;  %v7393_v15 = vadd.f32 %v7392_v42, %v12563_v7 }
 0x7fe   : > { %v7395_v33 = vpop.f32.mrb[171].mxu1  ;;  %7945 = vst.msk [vmem:[%s13642_s7 + $0x250] sm:$0xff] %vm4463_vm1, %v7401_v25  ;;  %v7404_v29 = vadd.f32 %v8683_v22, %v12585_v38  ;;  %v13006_v3 = vpop.f32.mrb[220].mxu0 }
 0x7ff   : > { %7943 = vst.msk [vmem:[%s13642_s7 + $0x240] sm:$0xff] %vm4463_vm1, %v7393_v15  ;;  %v7396_v11 = vadd.f32 %v7395_v33, %v12565_v10  ;;  %v6745_v17 = vpop.f32.mrb[221].mxu0 }
 0x800   : > { %8789 = vmatmul.mubr.bf16.gmra.mrb[20].mxu1 %v6256_v37  ;;  %7946 = vst.msk [vmem:[%s13642_s7 + $0x258] sm:$0xff] %vm4463_vm1, %v7404_v29  ;;  %v13017_v7 = vpop.f32.mrb[222].mxu0 }
 0x801   : > { %8792 = vmatprep.mubr.bf16.mxu1 %v6259_v59  ;;  %7944 = vst.msk [vmem:[%s13642_s7 + $0x248] sm:$0xff] %vm4463_vm1, %v7396_v11  ;;  %v6748_v38 = vpop.f32.mrb[223].mxu0 }
 0x803   : > { %v8686_v52 = vpop.f32.mrb[172].mxu1 }
 0x804   : > { %v7408_v55 = vpop.f32.mrb[173].mxu1  ;;  %v7417_v10 = vadd.f32 %v8686_v52, %v12622_v60 }
 0x805   : > { %v8687_v23 = vpop.f32.mrb[174].mxu1  ;;  %v7409_v51 = vadd.f32 %v7408_v55, %v12598_v0 }
 0x806   : > { %v7411_v14 = vpop.f32.mrb[175].mxu1  ;;  %7949 = vst.msk [vmem:[%s13642_s7 + $0x270] sm:$0xff] %vm4463_vm1, %v7417_v10  ;;  %v7420_v26 = vadd.f32 %v8687_v23, %v12633_v31  ;;  %v13030_v43 = vpop.f32.mrb[224].mxu0 }
 0x807   : > { %7947 = vst.msk [vmem:[%s13642_s7 + $0x260] sm:$0xff] %vm4463_vm1, %v7409_v51  ;;  %v7412_v60 = vadd.f32 %v7411_v14, %v12609_v44  ;;  %v6753_v40 = vpop.f32.mrb[225].mxu0 }
 0x808   : > { %8793 = vmatmul.mubr.bf16.gmra.mrb[24].mxu1 %v6262_v24  ;;  %7950 = vst.msk [vmem:[%s13642_s7 + $0x278] sm:$0xff] %vm4463_vm1, %v7420_v26  ;;  %v13041_v0 = vpop.f32.mrb[226].mxu0 }
 0x809   : > { %8796 = vmatprep.mubr.bf16.mxu1 %v6265_v20  ;;  %7948 = vst.msk [vmem:[%s13642_s7 + $0x268] sm:$0xff] %vm4463_vm1, %v7412_v60  ;;  %v6756_v31 = vpop.f32.mrb[227].mxu0 }
 0x80b   : > { %v8690_v12 = vpop.f32.mrb[176].mxu1 }
 0x80c   : > { %v7424_v2 = vpop.f32.mrb[177].mxu1  ;;  %v7433_v44 = vadd.f32 %v8690_v12, %v12670_v8 }
 0x80d   : > { %v8691_v9 = vpop.f32.mrb[178].mxu1  ;;  %v7425_v30 = vadd.f32 %v7424_v2, %v12646_v28 }
 0x80e   : > { %v7427_v47 = vpop.f32.mrb[179].mxu1  ;;  %7953 = vst.msk [vmem:[%s13642_s7 + $0x290] sm:$0xff] %vm4463_vm1, %v7433_v44  ;;  %v7436_v42 = vadd.f32 %v8691_v9, %v12681_v61  ;;  %v13054_v25 = vpop.f32.mrb[228].mxu0 }
 0x80f   : > { %7951 = vst.msk [vmem:[%s13642_s7 + $0x280] sm:$0xff] %vm4463_vm1, %v7425_v30  ;;  %v7428_v8 = vadd.f32 %v7427_v47, %v12657_v50  ;;  %v6761_v37 = vpop.f32.mrb[229].mxu0 }
 0x810   : > { %8797 = vmatmul.mubr.bf16.gmra.mrb[28].mxu1 %v6268_v53  ;;  %7954 = vst.msk [vmem:[%s13642_s7 + $0x298] sm:$0xff] %vm4463_vm1, %v7436_v42  ;;  %v13065_v28 = vpop.f32.mrb[230].mxu0 }
 0x811   : > { %7952 = vst.msk [vmem:[%s13642_s7 + $0x288] sm:$0xff] %vm4463_vm1, %v7428_v8  ;;  %v6764_v61 = vpop.f32.mrb[231].mxu0 }
 0x813   : > { %v8694_v22 = vpop.f32.mrb[180].mxu1 }
 0x814   : > { %v7440_v15 = vpop.f32.mrb[181].mxu1  ;;  %v7449_v59 = vadd.f32 %v8694_v22, %v12718_v34 }
 0x815   : > { %v8695_v50 = vpop.f32.mrb[182].mxu1  ;;  %v7441_v33 = vadd.f32 %v7440_v15, %v12694_v4 }
 0x816   : > { %v7443_v29 = vpop.f32.mrb[183].mxu1  ;;  %7957 = vst.msk [vmem:[%s13642_s7 + $0x2b0] sm:$0xff] %vm4463_vm1, %v7449_v59  ;;  %v7452_v11 = vadd.f32 %v8695_v50, %v12729_v57  ;;  %v13078_v17 = vpop.f32.mrb[232].mxu0 }
 0x817   : > { %7955 = vst.msk [vmem:[%s13642_s7 + $0x2a0] sm:$0xff] %vm4463_vm1, %v7441_v33  ;;  %v7444_v34 = vadd.f32 %v7443_v29, %v12705_v21  ;;  %v6769_v38 = vpop.f32.mrb[233].mxu0 }
 0x818   : > { %7958 = vst.msk [vmem:[%s13642_s7 + $0x2b8] sm:$0xff] %vm4463_vm1, %v7452_v11  ;;  %v13089_v4 = vpop.f32.mrb[234].mxu0 }
 0x819   : > { %7956 = vst.msk [vmem:[%s13642_s7 + $0x2a8] sm:$0xff] %vm4463_vm1, %v7444_v34  ;;  %v6772_v57 = vpop.f32.mrb[235].mxu0 }
 0x81b   : > { %v8698_v52 = vpop.f32.mrb[184].mxu1 }
 0x81c   : > { %v7456_v55 = vpop.f32.mrb[185].mxu1  ;;  %v7465_v10 = vadd.f32 %v8698_v52, %v12766_v32 }
 0x81d   : > { %v8699_v24 = vpop.f32.mrb[186].mxu1  ;;  %v7457_v21 = vadd.f32 %v7456_v55, %v12742_v36 }
 0x81e   : > { %v7459_v23 = vpop.f32.mrb[187].mxu1  ;;  %7961 = vst.msk [vmem:[%s13642_s7 + $0x2d0] sm:$0xff] %vm4463_vm1, %v7465_v10  ;;  %v7468_v51 = vadd.f32 %v8699_v24, %v12777_v48  ;;  %v13102_v20 = vpop.f32.mrb[236].mxu0 }
 0x81f   : > { %7959 = vst.msk [vmem:[%s13642_s7 + $0x2c0] sm:$0xff] %vm4463_vm1, %v7457_v21  ;;  %v7460_v32 = vadd.f32 %v7459_v23, %v12753_v56  ;;  %v6777_v14 = vpop.f32.mrb[237].mxu0 }
 0x820   : > { %7962 = vst.msk [vmem:[%s13642_s7 + $0x2d8] sm:$0xff] %vm4463_vm1, %v7468_v51  ;;  %v13113_v36 = vpop.f32.mrb[238].mxu0 }
 0x821   : > { %7960 = vst.msk [vmem:[%s13642_s7 + $0x2c8] sm:$0xff] %vm4463_vm1, %v7460_v32  ;;  %v6780_v48 = vpop.f32.mrb[239].mxu0 }
 0x823   : > { %v8702_v26 = vpop.f32.mrb[188].mxu1 }
 0x824   : > { %v7472_v60 = vpop.f32.mrb[189].mxu1  ;;  %v7481_v40 = vadd.f32 %v8702_v26, %v12814_v41 }
 0x825   : > { %v8703_v31 = vpop.f32.mrb[190].mxu1  ;;  %v7473_v56 = vadd.f32 %v7472_v60, %v12790_v49 }
 0x826   : > { %v7475_v12 = vpop.f32.mrb[191].mxu1  ;;  %7965 = vst.msk [vmem:[%s13642_s7 + $0x2f0] sm:$0xff] %vm4463_vm1, %v7481_v40  ;;  %v7484_v2 = vadd.f32 %v8703_v31, %v12825_v5  ;;  %v13126_v44 = vpop.f32.mrb[240].mxu0 }
 0x827   : > { %7963 = vst.msk [vmem:[%s13642_s7 + $0x2e0] sm:$0xff] %vm4463_vm1, %v7473_v56  ;;  %v7476_v41 = vadd.f32 %v7475_v12, %v12801_v63  ;;  %v6785_v53 = vpop.f32.mrb[241].mxu0 }
 0x828   : > { %7966 = vst.msk [vmem:[%s13642_s7 + $0x2f8] sm:$0xff] %vm4463_vm1, %v7484_v2  ;;  %v13137_v49 = vpop.f32.mrb[242].mxu0 }
 0x829   : > { %7964 = vst.msk [vmem:[%s13642_s7 + $0x2e8] sm:$0xff] %vm4463_vm1, %v7476_v41  ;;  %v6788_v5 = vpop.f32.mrb[243].mxu0 }
 0x82b   : > { %v8706_v9 = vpop.f32.mrb[192].mxu1 }
 0x82c   : > { %v7488_v30 = vpop.f32.mrb[193].mxu1  ;;  %v7497_v47 = vadd.f32 %v8706_v9, %v12862_v27 }
 0x82d   : > { %v8707_v42 = vpop.f32.mrb[194].mxu1  ;;  %v7489_v63 = vadd.f32 %v7488_v30, %v12838_v54 }
 0x82e   : > { %v7491_v8 = vpop.f32.mrb[195].mxu1  ;;  %7969 = vst.msk [vmem:[%s13642_s7 + $0x310] sm:$0xff] %vm4463_vm1, %v7497_v47  ;;  %v7500_v37 = vadd.f32 %v8707_v42, %v12873_v18  ;;  %v13150_v61 = vpop.f32.mrb[244].mxu0 }
 0x82f   : > { %7967 = vst.msk [vmem:[%s13642_s7 + $0x300] sm:$0xff] %vm4463_vm1, %v7489_v63  ;;  %v7492_v27 = vadd.f32 %v7491_v8, %v12849_v46  ;;  %v6793_v22 = vpop.f32.mrb[245].mxu0 }
 0x830   : > { %7970 = vst.msk [vmem:[%s13642_s7 + $0x318] sm:$0xff] %vm4463_vm1, %v7500_v37  ;;  %v13161_v54 = vpop.f32.mrb[246].mxu0 }
 0x831   : > { %7968 = vst.msk [vmem:[%s13642_s7 + $0x308] sm:$0xff] %vm4463_vm1, %v7492_v27  ;;  %v6796_v18 = vpop.f32.mrb[247].mxu0 }
 0x833   : > { %v8710_v15 = vpop.f32.mrb[196].mxu1 }
 0x834   : > { %v7504_v59 = vpop.f32.mrb[197].mxu1  ;;  %v7513_v50 = vadd.f32 %v8710_v15, %v12910_v19 }
 0x835   : > { %v8711_v33 = vpop.f32.mrb[198].mxu1  ;;  %v7505_v46 = vadd.f32 %v7504_v59, %v12886_v13 }
 0x836   : > { %v7507_v29 = vpop.f32.mrb[199].mxu1  ;;  %7973 = vst.msk [vmem:[%s13642_s7 + $0x330] sm:$0xff] %vm4463_vm1, %v7513_v50  ;;  %v7516_v11 = vadd.f32 %v8711_v33, %v12921_v62  ;;  %v13174_v34 = vpop.f32.mrb[248].mxu0 }
 0x837   : > { %7971 = vst.msk [vmem:[%s13642_s7 + $0x320] sm:$0xff] %vm4463_vm1, %v7505_v46  ;;  %v7508_v19 = vadd.f32 %v7507_v29, %v12897_v1  ;;  %v6801_v38 = vpop.f32.mrb[249].mxu0 }
 0x838   : > { %7974 = vst.msk [vmem:[%s13642_s7 + $0x338] sm:$0xff] %vm4463_vm1, %v7516_v11  ;;  %v13185_v13 = vpop.f32.mrb[250].mxu0 }
 0x839   : > { %7972 = vst.msk [vmem:[%s13642_s7 + $0x328] sm:$0xff] %vm4463_vm1, %v7508_v19  ;;  %v6804_v62 = vpop.f32.mrb[251].mxu0 }
 0x83b   : > { %v8714_v57 = vpop.f32.mrb[200].mxu1 }
 0x83c   : > { %v7520_v52 = vpop.f32.mrb[201].mxu1  ;;  %v7529_v55 = vadd.f32 %v8714_v57, %v12958_v16 }
 0x83d   : > { %v8715_v10 = vpop.f32.mrb[202].mxu1  ;;  %v7521_v1 = vadd.f32 %v7520_v52, %v12934_v6 }
 0x83e   : > { %v7523_v24 = vpop.f32.mrb[203].mxu1  ;;  %7977 = vst.msk [vmem:[%s13642_s7 + $0x350] sm:$0xff] %vm4463_vm1, %v7529_v55  ;;  %v7532_v21 = vadd.f32 %v8715_v10, %v12969_v58  ;;  %v13198_v23 = vpop.f32.mrb[252].mxu0 }
 0x83f   : > { %7975 = vst.msk [vmem:[%s13642_s7 + $0x340] sm:$0xff] %vm4463_vm1, %v7521_v1  ;;  %v7524_v16 = vadd.f32 %v7523_v24, %v12945_v35  ;;  %v6809_v51 = vpop.f32.mrb[253].mxu0 }
 0x840   : > { %7978 = vst.msk [vmem:[%s13642_s7 + $0x358] sm:$0xff] %vm4463_vm1, %v7532_v21  ;;  %v13209_v6 = vpop.f32.mrb[254].mxu0 }
 0x841   : > { %7976 = vst.msk [vmem:[%s13642_s7 + $0x348] sm:$0xff] %vm4463_vm1, %v7524_v16  ;;  %v6812_v58 = vpop.f32.mrb[255].mxu0 }
 0x843   : > { %v8718_v32 = vpop.f32.mrb[204].mxu1 }
 0x844   : > { %v7536_v14 = vpop.f32.mrb[205].mxu1  ;;  %v7545_v48 = vadd.f32 %v8718_v32, %v13006_v3 }
 0x845   : > { %v8719_v26 = vpop.f32.mrb[206].mxu1  ;;  %v7537_v35 = vadd.f32 %v7536_v14, %v12982_v45 }
 0x846   : > { %v7539_v60 = vpop.f32.mrb[207].mxu1  ;;  %7981 = vst.msk [vmem:[%s13642_s7 + $0x370] sm:$0xff] %vm4463_vm1, %v7545_v48  ;;  %v7548_v40 = vadd.f32 %v8719_v26, %v13017_v7  ;;  %v13222_v31 = vpop.f32.mrb[0].mxu0 }
 0x847   : > { %7979 = vst.msk [vmem:[%s13642_s7 + $0x360] sm:$0xff] %vm4463_vm1, %v7537_v35  ;;  %v7540_v3 = vadd.f32 %v7539_v60, %v12993_v39  ;;  %v6817_v56 = vpop.f32.mrb[1].mxu0 }
 0x848   : > { %7982 = vst.msk [vmem:[%s13642_s7 + $0x378] sm:$0xff] %vm4463_vm1, %v7548_v40  ;;  %v13233_v45 = vpop.f32.mrb[2].mxu0 }
 0x849   : > { %7980 = vst.msk [vmem:[%s13642_s7 + $0x368] sm:$0xff] %vm4463_vm1, %v7540_v3  ;;  %v6820_v7 = vpop.f32.mrb[3].mxu0 }
 0x84b   : > { %v8722_v12 = vpop.f32.mrb[208].mxu1 }
 0x84c   : > { %v7552_v2 = vpop.f32.mrb[209].mxu1  ;;  %v7561_v41 = vadd.f32 %v8722_v12, %v13054_v25 }
 0x84d   : > { %v8723_v53 = vpop.f32.mrb[210].mxu1  ;;  %v7553_v39 = vadd.f32 %v7552_v2, %v13030_v43 }
 0x84e   : > { %v7555_v5 = vpop.f32.mrb[211].mxu1  ;;  %7985 = vst.msk [vmem:[%s13642_s7 + $0x390] sm:$0xff] %vm4463_vm1, %v7561_v41  ;;  %v7564_v9 = vadd.f32 %v8723_v53, %v13065_v28  ;;  %v6823_v30 = vpop.f32.mrb[4].mxu0 }
 0x84f   : > { %7983 = vst.msk [vmem:[%s13642_s7 + $0x380] sm:$0xff] %vm4463_vm1, %v7553_v39  ;;  %v7556_v47 = vadd.f32 %v7555_v5, %v13041_v0  ;;  %v6825_v25 = vpop.f32.mrb[5].mxu0 }
 0x850   : > { %7986 = vst.msk [vmem:[%s13642_s7 + $0x398] sm:$0xff] %vm4463_vm1, %v7564_v9  ;;  %v6826_v43 = vpop.f32.mrb[6].mxu0 }
 0x851   : > { %7984 = vst.msk [vmem:[%s13642_s7 + $0x388] sm:$0xff] %vm4463_vm1, %v7556_v47  ;;  %v6828_v28 = vpop.f32.mrb[7].mxu0 }
 0x853   : > { %v8726_v42 = vpop.f32.mrb[212].mxu1 }
 0x854   : > { %v7568_v63 = vpop.f32.mrb[213].mxu1  ;;  %v7577_v8 = vadd.f32 %v8726_v42, %v13102_v20 }
 0x855   : > { %v8727_v37 = vpop.f32.mrb[214].mxu1  ;;  %v7569_v0 = vadd.f32 %v7568_v63, %v13078_v17 }
 0x856   : > { %v7571_v27 = vpop.f32.mrb[215].mxu1  ;;  %7989 = vst.msk [vmem:[%s13642_s7 + $0x3b0] sm:$0xff] %vm4463_vm1, %v7577_v8  ;;  %v7580_v22 = vadd.f32 %v8727_v37, %v13113_v36  ;;  %v6831_v18 = vpop.f32.mrb[8].mxu0 }
 0x857   : > { %7987 = vst.msk [vmem:[%s13642_s7 + $0x3a0] sm:$0xff] %vm4463_vm1, %v7569_v0  ;;  %v7572_v15 = vadd.f32 %v7571_v27, %v13089_v4  ;;  %v6833_v20 = vpop.f32.mrb[9].mxu0 }
 0x858   : > { %7990 = vst.msk [vmem:[%s13642_s7 + $0x3b8] sm:$0xff] %vm4463_vm1, %v7580_v22  ;;  %v6834_v17 = vpop.f32.mrb[10].mxu0 }
 0x859   : > { %7988 = vst.msk [vmem:[%s13642_s7 + $0x3a8] sm:$0xff] %vm4463_vm1, %v7572_v15  ;;  %v6836_v36 = vpop.f32.mrb[11].mxu0 }
 0x85b   : > { %v8730_v59 = vpop.f32.mrb[216].mxu1 }
 0x85c   : > { %v7584_v50 = vpop.f32.mrb[217].mxu1  ;;  %v7593_v33 = vadd.f32 %v8730_v59, %v13150_v61 }
 0x85d   : > { %v8731_v46 = vpop.f32.mrb[218].mxu1  ;;  %v7585_v4 = vadd.f32 %v7584_v50, %v13126_v44 }
 0x85e   : > { %v7587_v29 = vpop.f32.mrb[219].mxu1  ;;  %7993 = vst.msk [vmem:[%s13642_s7 + $0x3d0] sm:$0xff] %vm4463_vm1, %v7593_v33  ;;  %v7596_v11 = vadd.f32 %v8731_v46, %v13161_v54  ;;  %v6839_v19 = vpop.f32.mrb[12].mxu0 }
 0x85f   : > { %7991 = vst.msk [vmem:[%s13642_s7 + $0x3c0] sm:$0xff] %vm4463_vm1, %v7585_v4  ;;  %v7588_v38 = vadd.f32 %v7587_v29, %v13137_v49  ;;  %v6841_v61 = vpop.f32.mrb[13].mxu0  ;;  %v13786_v29 = vld [vmem:[#allocation7_spill] sm:$0xff] }
 0x860   : > { %7994 = vst.msk [vmem:[%s13642_s7 + $0x3d8] sm:$0xff] %vm4463_vm1, %v7596_v11  ;;  %v6842_v44 = vpop.f32.mrb[14].mxu0 }
 0x861   : > { %7992 = vst.msk [vmem:[%s13642_s7 + $0x3c8] sm:$0xff] %vm4463_vm1, %v7588_v38  ;;  %v6844_v54 = vpop.f32.mrb[15].mxu0  ;;  %v13787_v38 = vld [vmem:[#allocation16_spill] sm:$0xff] }
 0x862   : > { %v13788_v54 = vld [vmem:[#allocation17_spill] sm:$0xff] }
 0x863   : > { %v8734_v62 = vpop.f32.mrb[220].mxu1 }
 0x864   : > { %v7600_v57 = vpop.f32.mrb[221].mxu1  ;;  %v7609_v52 = vadd.f32 %v8734_v62, %v13198_v23 }
 0x865   : > { %v8735_v55 = vpop.f32.mrb[222].mxu1  ;;  %v7601_v49 = vadd.f32 %v7600_v57, %v13174_v34 }
 0x866   : > { %v7603_v10 = vpop.f32.mrb[223].mxu1  ;;  %7997 = vst.msk [vmem:[%s13642_s7 + $0x3f0] sm:$0xff] %vm4463_vm1, %v7609_v52  ;;  %v7612_v1 = vadd.f32 %v8735_v55, %v13209_v6  ;;  %v6847_v24 = vpop.f32.mrb[16].mxu0  ;;  %v13789_v52 = vld [vmem:[#allocation6_spill] sm:$0xff] }
 0x867   : > { %7995 = vst.msk [vmem:[%s13642_s7 + $0x3e0] sm:$0xff] %vm4463_vm1, %v7601_v49  ;;  %v7604_v21 = vadd.f32 %v7603_v10, %v13185_v13  ;;  %v6849_v23 = vpop.f32.mrb[17].mxu0  ;;  %v13790_v10 = vld [vmem:[#allocation9_spill] sm:$0xff] }
 0x868   : > { %7998 = vst.msk [vmem:[%s13642_s7 + $0x3f8] sm:$0xff] %vm4463_vm1, %v7612_v1  ;;  %v6850_v34 = vpop.f32.mrb[18].mxu0 }
 0x869   : > { %7996 = vst.msk [vmem:[%s13642_s7 + $0x3e8] sm:$0xff] %vm4463_vm1, %v7604_v21  ;;  %v6852_v16 = vpop.f32.mrb[19].mxu0  ;;  %v13791_v21 = vld [vmem:[#allocation18_spill] sm:$0xff] }
 0x86a   : > { %v13792_v16 = vld [vmem:[#allocation19_spill] sm:$0xff] }
 0x86b   : > { %v8738_v51 = vpop.f32.mrb[224].mxu1 }
 0x86c   : > { %v7616_v6 = vpop.f32.mrb[225].mxu1  ;;  %v7625_v58 = vadd.f32 %v8738_v51, %v6823_v30 }
 0x86d   : > { %v8739_v32 = vpop.f32.mrb[226].mxu1  ;;  %v7617_v14 = vadd.f32 %v7616_v6, %v13222_v31 }
 0x86e   : > { %v7619_v13 = vpop.f32.mrb[227].mxu1  ;;  %8001 = vst.msk [vmem:[%s13642_s7 + $0x410] sm:$0xff] %vm4463_vm1, %v7625_v58  ;;  %v7628_v48 = vadd.f32 %v8739_v32, %v6826_v43  ;;  %v6855_v26 = vpop.f32.mrb[20].mxu0  ;;  %v13793_v58 = vld [vmem:[#allocation8_spill] sm:$0xff] }
 0x86f   : > { %7999 = vst.msk [vmem:[%s13642_s7 + $0x400] sm:$0xff] %vm4463_vm1, %v7617_v14  ;;  %v7620_v35 = vadd.f32 %v7619_v13, %v13233_v45  ;;  %v6857_v60 = vpop.f32.mrb[21].mxu0  ;;  %v13794_v13 = vld [vmem:[#allocation11_spill] sm:$0xff] }
 0x870   : > { %8002 = vst.msk [vmem:[%s13642_s7 + $0x418] sm:$0xff] %vm4463_vm1, %v7628_v48  ;;  %v6858_v40 = vpop.f32.mrb[22].mxu0 }
 0x871   : > { %8000 = vst.msk [vmem:[%s13642_s7 + $0x408] sm:$0xff] %vm4463_vm1, %v7620_v35  ;;  %v6860_v31 = vpop.f32.mrb[23].mxu0  ;;  %v13795_v35 = vld [vmem:[#allocation20_spill] sm:$0xff] }
 0x872   : > { %v13796_v31 = vld [vmem:[#allocation12_spill] sm:$0xff] }
 0x873   : > { %v8742_v3 = vpop.f32.mrb[228].mxu1 }
 0x874   : > { %v7632_v56 = vpop.f32.mrb[229].mxu1  ;;  %v7641_v7 = vadd.f32 %v8742_v3, %v6839_v19 }
 0x875   : > { %v8743_v12 = vpop.f32.mrb[230].mxu1  ;;  %v7633_v2 = vadd.f32 %v7632_v56, %v6831_v18 }
 0x876   : > { %v7635_v41 = vpop.f32.mrb[231].mxu1  ;;  %8005 = vst.msk [vmem:[%s13642_s7 + $0x430] sm:$0xff] %vm4463_vm1, %v7641_v7  ;;  %v7644_v45 = vadd.f32 %v8743_v12, %v6842_v44  ;;  %v6863_v53 = vpop.f32.mrb[24].mxu0  ;;  %v13797_v7 = vld [vmem:[#allocation10_spill] sm:$0xff] }
 0x877   : > { %8003 = vst.msk [vmem:[%s13642_s7 + $0x420] sm:$0xff] %vm4463_vm1, %v7633_v2  ;;  %v7636_v39 = vadd.f32 %v7635_v41, %v6834_v17  ;;  %v6865_v5 = vpop.f32.mrb[25].mxu0  ;;  %v13798_v41 = vld [vmem:[#allocation15_spill] sm:$0xff] }
 0x878   : > { %8006 = vst.msk [vmem:[%s13642_s7 + $0x438] sm:$0xff] %vm4463_vm1, %v7644_v45  ;;  %v6866_v9 = vpop.f32.mrb[26].mxu0 }
 0x879   : > { %8004 = vst.msk [vmem:[%s13642_s7 + $0x428] sm:$0xff] %vm4463_vm1, %v7636_v39  ;;  %v6868_v30 = vpop.f32.mrb[27].mxu0  ;;  %v13799_v39 = vld [vmem:[#allocation13_spill] sm:$0xff] }
 0x87a   : > { %v13800_v30 = vld [vmem:[#allocation21_spill] sm:$0xff] }
 0x87b   : > { %v8746_v47 = vpop.f32.mrb[232].mxu1 }
 0x87c   : > { %v7648_v25 = vpop.f32.mrb[233].mxu1  ;;  %v7657_v43 = vadd.f32 %v8746_v47, %v6855_v26 }
 0x87d   : > { %v8747_v28 = vpop.f32.mrb[234].mxu1  ;;  %v7649_v42 = vadd.f32 %v7648_v25, %v6847_v24 }
 0x87e   : > { %v7651_v63 = vpop.f32.mrb[235].mxu1  ;;  %8009 = vst.msk [vmem:[%s13642_s7 + $0x450] sm:$0xff] %vm4463_vm1, %v7657_v43  ;;  %v7660_v8 = vadd.f32 %v8747_v28, %v6858_v40  ;;  %v6871_v37 = vpop.f32.mrb[28].mxu0  ;;  %v13801_v43 = vld [vmem:[#allocation14_spill] sm:$0xff] }
 0x87f   : > { %8007 = vst.msk [vmem:[%s13642_s7 + $0x440] sm:$0xff] %vm4463_vm1, %v7649_v42  ;;  %v7652_v0 = vadd.f32 %v7651_v63, %v6850_v34  ;;  %v6873_v27 = vpop.f32.mrb[29].mxu0  ;;  %v13802_v63 = vld [vmem:[#allocation24_spill] sm:$0xff] }
 0x880   : > { %8010 = vst.msk [vmem:[%s13642_s7 + $0x458] sm:$0xff] %vm4463_vm1, %v7660_v8  ;;  %v6874_v22 = vpop.f32.mrb[30].mxu0 }
 0x881   : > { %8008 = vst.msk [vmem:[%s13642_s7 + $0x448] sm:$0xff] %vm4463_vm1, %v7652_v0  ;;  %v6876_v18 = vpop.f32.mrb[31].mxu0  ;;  %v13803_v0 = vld [vmem:[#allocation22_spill] sm:$0xff] }
 0x882   : > { %v13804_v18 = vld [vmem:[#allocation25_spill] sm:$0xff] }
 0x883   : > { %v8750_v15 = vpop.f32.mrb[236].mxu1 }
 0x884   : > { %v7664_v20 = vpop.f32.mrb[237].mxu1  ;;  %v7673_v17 = vadd.f32 %v8750_v15, %v6871_v37 }
 0x885   : > { %v8751_v36 = vpop.f32.mrb[238].mxu1  ;;  %v7665_v59 = vadd.f32 %v7664_v20, %v6863_v53 }
 0x886   : > { %v7667_v50 = vpop.f32.mrb[239].mxu1  ;;  %8013 = vst.msk [vmem:[%s13642_s7 + $0x470] sm:$0xff] %vm4463_vm1, %v7673_v17  ;;  %v7676_v33 = vadd.f32 %v8751_v36, %v6874_v22  ;;  %v13805_v17 = vld [vmem:[#allocation23_spill] sm:$0xff] }
 0x887   : > { %8011 = vst.msk [vmem:[%s13642_s7 + $0x460] sm:$0xff] %vm4463_vm1, %v7665_v59  ;;  %v7668_v46 = vadd.f32 %v7667_v50, %v6866_v9  ;;  %v13806_v50 = vld [vmem:[#allocation28_spill] sm:$0xff] }
 0x888   : > { %8014 = vst.msk [vmem:[%s13642_s7 + $0x478] sm:$0xff] %vm4463_vm1, %v7676_v33 }
 0x889   : > { %8012 = vst.msk [vmem:[%s13642_s7 + $0x468] sm:$0xff] %vm4463_vm1, %v7668_v46 }
 0x88b   : > { %v8754_v4 = vpop.f32.mrb[240].mxu1 }
 0x88c   : > { %v7689_v11 = vadd.f32 %v8754_v4, %v13786_v29  ;;  %v7680_v19 = vpop.f32.mrb[241].mxu1  ;;  %v13807_v4 = vld [vmem:[#allocation26_spill] sm:$0xff] }
 0x88d   : > { %v7681_v61 = vadd.f32 %v7680_v19, %v13787_v38  ;;  %v8755_v44 = vpop.f32.mrb[242].mxu1  ;;  %v13808_v19 = vld [vmem:[#allocation29_spill] sm:$0xff] }
 0x88e   : > { %8017 = vst.msk [vmem:[%s13642_s7 + $0x490] sm:$0xff] %vm4463_vm1, %v7689_v11  ;;  %v7692_v62 = vadd.f32 %v8755_v44, %v13788_v54  ;;  %v7683_v57 = vpop.f32.mrb[243].mxu1  ;;  %v13809_v44 = vld [vmem:[#allocation27_spill] sm:$0xff] }
 0x88f   : > { %8015 = vst.msk [vmem:[%s13642_s7 + $0x480] sm:$0xff] %vm4463_vm1, %v7681_v61  ;;  %v7684_v55 = vadd.f32 %v7683_v57, %v13789_v52  ;;  %v13810_v57 = vld [vmem:[#allocation32_spill] sm:$0xff] }
 0x890   : > { %8018 = vst.msk [vmem:[%s13642_s7 + $0x498] sm:$0xff] %vm4463_vm1, %v7692_v62 }
 0x891   : > { %8016 = vst.msk [vmem:[%s13642_s7 + $0x488] sm:$0xff] %vm4463_vm1, %v7684_v55 }
 0x893   : > { %v8758_v49 = vpop.f32.mrb[244].mxu1 }
 0x894   : > { %v7705_v1 = vadd.f32 %v8758_v49, %v13790_v10  ;;  %v7696_v24 = vpop.f32.mrb[245].mxu1  ;;  %v13811_v49 = vld [vmem:[#allocation30_spill] sm:$0xff] }
 0x895   : > { %v7697_v23 = vadd.f32 %v7696_v24, %v13791_v21  ;;  %v8759_v34 = vpop.f32.mrb[246].mxu1  ;;  %v13812_v24 = vld [vmem:[#allocation33_spill] sm:$0xff] }
 0x896   : > { %8021 = vst.msk [vmem:[%s13642_s7 + $0x4b0] sm:$0xff] %vm4463_vm1, %v7705_v1  ;;  %v7708_v51 = vadd.f32 %v8759_v34, %v13792_v16  ;;  %v7699_v6 = vpop.f32.mrb[247].mxu1  ;;  %v13813_v34 = vld [vmem:[#allocation31_spill] sm:$0xff] }
 0x897   : > { %8019 = vst.msk [vmem:[%s13642_s7 + $0x4a0] sm:$0xff] %vm4463_vm1, %v7697_v23  ;;  %v7700_v32 = vadd.f32 %v7699_v6, %v13793_v58  ;;  %v13814_v6 = vld [vmem:[#allocation36_spill] sm:$0xff] }
 0x898   : > { %8022 = vst.msk [vmem:[%s13642_s7 + $0x4b8] sm:$0xff] %vm4463_vm1, %v7708_v51 }
 0x899   : > { %8020 = vst.msk [vmem:[%s13642_s7 + $0x4a8] sm:$0xff] %vm4463_vm1, %v7700_v32 }
 0x89b   : > { %v8762_v14 = vpop.f32.mrb[248].mxu1 }
 0x89c   : > { %v7721_v48 = vadd.f32 %v8762_v14, %v13794_v13  ;;  %v7712_v26 = vpop.f32.mrb[249].mxu1  ;;  %v13815_v14 = vld [vmem:[#allocation34_spill] sm:$0xff] }
 0x89d   : > { %v7713_v60 = vadd.f32 %v7712_v26, %v13795_v35  ;;  %v8763_v40 = vpop.f32.mrb[250].mxu1  ;;  %v13816_v26 = vld [vmem:[#allocation37_spill] sm:$0xff] }
 0x89e   : > { %8025 = vst.msk [vmem:[%s13642_s7 + $0x4d0] sm:$0xff] %vm4463_vm1, %v7721_v48  ;;  %v7724_v3 = vadd.f32 %v8763_v40, %v13796_v31  ;;  %v7715_v56 = vpop.f32.mrb[251].mxu1  ;;  %v13817_v40 = vld [vmem:[#allocation35_spill] sm:$0xff] }
 0x89f   : > { %8023 = vst.msk [vmem:[%s13642_s7 + $0x4c0] sm:$0xff] %vm4463_vm1, %v7713_v60  ;;  %v7716_v12 = vadd.f32 %v7715_v56, %v13797_v7  ;;  %v13818_v56 = vld [vmem:[#allocation40_spill] sm:$0xff] }
 0x8a0   : > { %8026 = vst.msk [vmem:[%s13642_s7 + $0x4d8] sm:$0xff] %vm4463_vm1, %v7724_v3 }
 0x8a1   : > { %8024 = vst.msk [vmem:[%s13642_s7 + $0x4c8] sm:$0xff] %vm4463_vm1, %v7716_v12 }
 0x8a3   : > { %v8766_v2 = vpop.f32.mrb[252].mxu1 }
 0x8a4   : > { %v7737_v45 = vadd.f32 %v8766_v2, %v13798_v41  ;;  %v7728_v53 = vpop.f32.mrb[253].mxu1  ;;  %v13819_v2 = vld [vmem:[#allocation38_spill] sm:$0xff] }
 0x8a5   : > { %v7729_v5 = vadd.f32 %v7728_v53, %v13799_v39  ;;  %v8767_v9 = vpop.f32.mrb[254].mxu1  ;;  %v13820_v53 = vld [vmem:[#allocation41_spill] sm:$0xff] }
 0x8a6   : > { %8029 = vst.msk [vmem:[%s13642_s7 + $0x4f0] sm:$0xff] %vm4463_vm1, %v7737_v45  ;;  %v7740_v47 = vadd.f32 %v8767_v9, %v13800_v30  ;;  %v7731_v25 = vpop.f32.mrb[255].mxu1  ;;  %v13821_v9 = vld [vmem:[#allocation39_spill] sm:$0xff] }
 0x8a7   : > { %8027 = vst.msk [vmem:[%s13642_s7 + $0x4e0] sm:$0xff] %vm4463_vm1, %v7729_v5  ;;  %v7732_v28 = vadd.f32 %v7731_v25, %v13801_v43  ;;  %v13822_v25 = vld [vmem:[#allocation44_spill] sm:$0xff] }
 0x8a8   : > { %8030 = vst.msk [vmem:[%s13642_s7 + $0x4f8] sm:$0xff] %vm4463_vm1, %v7740_v47 }
 0x8a9   : > { %8028 = vst.msk [vmem:[%s13642_s7 + $0x4e8] sm:$0xff] %vm4463_vm1, %v7732_v28 }
 0x8ab   : > { %v8770_v42 = vpop.f32.mrb[0].mxu1 }
 0x8ac   : > { %v7753_v8 = vadd.f32 %v8770_v42, %v13802_v63  ;;  %v7744_v37 = vpop.f32.mrb[1].mxu1  ;;  %v13823_v42 = vld [vmem:[#allocation42_spill] sm:$0xff] }
 0x8ad   : > { %v7745_v27 = vadd.f32 %v7744_v37, %v13803_v0  ;;  %v8771_v22 = vpop.f32.mrb[2].mxu1  ;;  %v13824_v37 = vld [vmem:[#allocation45_spill] sm:$0xff] }
 0x8ae   : > { %8033 = vst.msk [vmem:[%s13642_s7 + $0x510] sm:$0xff] %vm4463_vm1, %v7753_v8  ;;  %v7756_v15 = vadd.f32 %v8771_v22, %v13804_v18  ;;  %v7747_v20 = vpop.f32.mrb[3].mxu1  ;;  %v13825_v22 = vld [vmem:[#allocation43_spill] sm:$0xff] }
 0x8af   : > { %8031 = vst.msk [vmem:[%s13642_s7 + $0x500] sm:$0xff] %vm4463_vm1, %v7745_v27  ;;  %v7748_v36 = vadd.f32 %v7747_v20, %v13805_v17  ;;  %v13826_v20 = vld [vmem:[#allocation48_spill] sm:$0xff] }
 0x8b0   : > { %8034 = vst.msk [vmem:[%s13642_s7 + $0x518] sm:$0xff] %vm4463_vm1, %v7756_v15 }
 0x8b1   : > { %8032 = vst.msk [vmem:[%s13642_s7 + $0x508] sm:$0xff] %vm4463_vm1, %v7748_v36 }
 0x8b3   : > { %v8774_v59 = vpop.f32.mrb[4].mxu1 }
 0x8b4   : > { %v7769_v33 = vadd.f32 %v8774_v59, %v13806_v50  ;;  %v7760_v46 = vpop.f32.mrb[5].mxu1  ;;  %v13827_v59 = vld [vmem:[#allocation46_spill] sm:$0xff] }
 0x8b5   : > { %v7761_v29 = vadd.f32 %v7760_v46, %v13807_v4  ;;  %v8775_v11 = vpop.f32.mrb[6].mxu1  ;;  %v13828_v46 = vld [vmem:[#allocation49_spill] sm:$0xff] }
 0x8b6   : > { %8037 = vst.msk [vmem:[%s13642_s7 + $0x530] sm:$0xff] %vm4463_vm1, %v7769_v33  ;;  %v7772_v38 = vadd.f32 %v8775_v11, %v13808_v19  ;;  %v7763_v61 = vpop.f32.mrb[7].mxu1  ;;  %v13829_v11 = vld [vmem:[#allocation47_spill] sm:$0xff] }
 0x8b7   : > { %8035 = vst.msk [vmem:[%s13642_s7 + $0x520] sm:$0xff] %vm4463_vm1, %v7761_v29  ;;  %v7764_v54 = vadd.f32 %v7763_v61, %v13809_v44  ;;  %v13830_v61 = vld [vmem:[#allocation52_spill] sm:$0xff] }
 0x8b8   : > { %8038 = vst.msk [vmem:[%s13642_s7 + $0x538] sm:$0xff] %vm4463_vm1, %v7772_v38 }
 0x8b9   : > { %8036 = vst.msk [vmem:[%s13642_s7 + $0x528] sm:$0xff] %vm4463_vm1, %v7764_v54 }
 0x8bb   : > { %v8778_v62 = vpop.f32.mrb[8].mxu1 }
 0x8bc   : > { %v7785_v52 = vadd.f32 %v8778_v62, %v13810_v57  ;;  %v7776_v55 = vpop.f32.mrb[9].mxu1  ;;  %v13831_v62 = vld [vmem:[#allocation50_spill] sm:$0xff] }
 0x8bd   : > { %v7777_v10 = vadd.f32 %v7776_v55, %v13811_v49  ;;  %v8779_v1 = vpop.f32.mrb[10].mxu1  ;;  %v13832_v55 = vld [vmem:[#allocation53_spill] sm:$0xff] }
 0x8be   : > { %8041 = vst.msk [vmem:[%s13642_s7 + $0x550] sm:$0xff] %vm4463_vm1, %v7785_v52  ;;  %v7788_v21 = vadd.f32 %v8779_v1, %v13812_v24  ;;  %v7779_v23 = vpop.f32.mrb[11].mxu1  ;;  %v13833_v1 = vld [vmem:[#allocation51_spill] sm:$0xff] }
 0x8bf   : > { %8039 = vst.msk [vmem:[%s13642_s7 + $0x540] sm:$0xff] %vm4463_vm1, %v7777_v10  ;;  %v7780_v16 = vadd.f32 %v7779_v23, %v13813_v34 }
 0x8c0   : > { %8042 = vst.msk [vmem:[%s13642_s7 + $0x558] sm:$0xff] %vm4463_vm1, %v7788_v21 }
 0x8c1   : > { %8040 = vst.msk [vmem:[%s13642_s7 + $0x548] sm:$0xff] %vm4463_vm1, %v7780_v16 }
 0x8c3   : > { %v8782_v51 = vpop.f32.mrb[12].mxu1 }
 0x8c4   : > { %v7801_v58 = vadd.f32 %v8782_v51, %v13814_v6  ;;  %v7792_v32 = vpop.f32.mrb[13].mxu1 }
 0x8c5   : > { %v7793_v13 = vadd.f32 %v7792_v32, %v13815_v14  ;;  %v8783_v48 = vpop.f32.mrb[14].mxu1 }
 0x8c6   : > { %8045 = vst.msk [vmem:[%s13642_s7 + $0x570] sm:$0xff] %vm4463_vm1, %v7801_v58  ;;  %v7804_v35 = vadd.f32 %v8783_v48, %v13816_v26  ;;  %v7795_v60 = vpop.f32.mrb[15].mxu1 }
 0x8c7   : > { %8043 = vst.msk [vmem:[%s13642_s7 + $0x560] sm:$0xff] %vm4463_vm1, %v7793_v13  ;;  %v7796_v31 = vadd.f32 %v7795_v60, %v13817_v40 }
 0x8c8   : > { %8046 = vst.msk [vmem:[%s13642_s7 + $0x578] sm:$0xff] %vm4463_vm1, %v7804_v35 }
 0x8c9   : > { %8044 = vst.msk [vmem:[%s13642_s7 + $0x568] sm:$0xff] %vm4463_vm1, %v7796_v31 }
 0x8cb   : > { %v8786_v3 = vpop.f32.mrb[16].mxu1 }
 0x8cc   : > { %v7817_v7 = vadd.f32 %v8786_v3, %v13818_v56  ;;  %v7808_v12 = vpop.f32.mrb[17].mxu1 }
 0x8cd   : > { %v7809_v41 = vadd.f32 %v7808_v12, %v13819_v2  ;;  %v8787_v45 = vpop.f32.mrb[18].mxu1 }
 0x8ce   : > { %8049 = vst.msk [vmem:[%s13642_s7 + $0x590] sm:$0xff] %vm4463_vm1, %v7817_v7  ;;  %v7820_v39 = vadd.f32 %v8787_v45, %v13820_v53  ;;  %v7811_v5 = vpop.f32.mrb[19].mxu1 }
 0x8cf   : > { %8047 = vst.msk [vmem:[%s13642_s7 + $0x580] sm:$0xff] %vm4463_vm1, %v7809_v41  ;;  %v7812_v30 = vadd.f32 %v7811_v5, %v13821_v9 }
 0x8d0   : > { %8050 = vst.msk [vmem:[%s13642_s7 + $0x598] sm:$0xff] %vm4463_vm1, %v7820_v39 }
 0x8d1   : > { %8048 = vst.msk [vmem:[%s13642_s7 + $0x588] sm:$0xff] %vm4463_vm1, %v7812_v30 }
 0x8d3   : > { %v8790_v47 = vpop.f32.mrb[20].mxu1 }
 0x8d4   : > { %v7833_v43 = vadd.f32 %v8790_v47, %v13822_v25  ;;  %v7824_v28 = vpop.f32.mrb[21].mxu1 }
 0x8d5   : > { %v7825_v63 = vadd.f32 %v7824_v28, %v13823_v42  ;;  %v8791_v8 = vpop.f32.mrb[22].mxu1 }
 0x8d6   : > { %8053 = vst.msk [vmem:[%s13642_s7 + $0x5b0] sm:$0xff] %vm4463_vm1, %v7833_v43  ;;  %v7836_v0 = vadd.f32 %v8791_v8, %v13824_v37  ;;  %v7827_v27 = vpop.f32.mrb[23].mxu1 }
 0x8d7   : > { %8051 = vst.msk [vmem:[%s13642_s7 + $0x5a0] sm:$0xff] %vm4463_vm1, %v7825_v63  ;;  %v7828_v18 = vadd.f32 %v7827_v27, %v13825_v22 }
 0x8d8   : > { %8054 = vst.msk [vmem:[%s13642_s7 + $0x5b8] sm:$0xff] %vm4463_vm1, %v7836_v0 }
 0x8d9   : > { %8052 = vst.msk [vmem:[%s13642_s7 + $0x5a8] sm:$0xff] %vm4463_vm1, %v7828_v18 }
 0x8db   : > { %v8794_v15 = vpop.f32.mrb[24].mxu1 }
 0x8dc   : > { %v7849_v17 = vadd.f32 %v8794_v15, %v13826_v20  ;;  %v7840_v36 = vpop.f32.mrb[25].mxu1 }
 0x8dd   : > { %v7841_v50 = vadd.f32 %v7840_v36, %v13827_v59  ;;  %v8795_v33 = vpop.f32.mrb[26].mxu1 }
 0x8de   : > { %8057 = vst.msk [vmem:[%s13642_s7 + $0x5d0] sm:$0xff] %vm4463_vm1, %v7849_v17  ;;  %v7852_v4 = vadd.f32 %v8795_v33, %v13828_v46  ;;  %v7843_v29 = vpop.f32.mrb[27].mxu1 }
 0x8df   : > { %8055 = vst.msk [vmem:[%s13642_s7 + $0x5c0] sm:$0xff] %vm4463_vm1, %v7841_v50  ;;  %v7844_v19 = vadd.f32 %v7843_v29, %v13829_v11 }
 0x8e0   : > { %8058 = vst.msk [vmem:[%s13642_s7 + $0x5d8] sm:$0xff] %vm4463_vm1, %v7852_v4 }
 0x8e1   : > { %8056 = vst.msk [vmem:[%s13642_s7 + $0x5c8] sm:$0xff] %vm4463_vm1, %v7844_v19 }
 0x8e3   : > { %v8798_v38 = vpop.f32.mrb[28].mxu1 }
 0x8e4   : > { %v7865_v44 = vadd.f32 %v8798_v38, %v13830_v61  ;;  %v7856_v54 = vpop.f32.mrb[29].mxu1 }
 0x8e5   : > { %v7857_v57 = vadd.f32 %v7856_v54, %v13831_v62  ;;  %v8799_v52 = vpop.f32.mrb[30].mxu1 }
 0x8e6   : > { %8061 = vst.msk [vmem:[%s13642_s7 + $0x5f0] sm:$0xff] %vm4463_vm1, %v7865_v44  ;;  %v7868_v49 = vadd.f32 %v8799_v52, %v13832_v55  ;;  %v7859_v10 = vpop.f32.mrb[31].mxu1 }
 0x8e7   : > { %8059 = vst.msk [vmem:[%s13642_s7 + $0x5e0] sm:$0xff] %vm4463_vm1, %v7857_v57  ;;  %v7860_v24 = vadd.f32 %v7859_v10, %v13833_v1 }
 0x8e8   : > { %8062 = vst.msk [vmem:[%s13642_s7 + $0x5f8] sm:$0xff] %vm4463_vm1, %v7868_v49 }
 0x8e9   : > { %8060 = vst.msk [vmem:[%s13642_s7 + $0x5e8] sm:$0xff] %vm4463_vm1, %v7860_v24 }
 0x8ea PF: > { %p14_p12 = scmp.ge.s32.totalorder %s9808_s28, 5   ;;  %s13834_s24 = smov %s9740_s25 }
 0x8eb   : > { %s13835_s25 = smov %s9817_s8  ;;  %s13836_s26 = smov %s9808_s28 }
 0x8ec   :  { %16 = sbr.rel (!%p14_p12) target bundleno = 2 (0x2), region = 120 }

</bundles_post_ra>
